<compile_context>
chip_gen: v5e
topology: v5e:2x2
jax: 0.10.0
libtpu: 0.0.40
codegen_flags: <defaults>
</compile_context>

<pallas_src>
import math
from functools import partial

import jax
import jax.numpy as jnp
from jax.experimental import pallas as pl
from jax.experimental.pallas import tpu as pltpu

_COLS = 1024              # lane-dense column width (multiple of 128)
_MIB = 1024 * 1024

# Dtypes the kernel preserves for I/O.
_KERNEL_IO_DTYPES = (jnp.dtype(jnp.float32), jnp.dtype(jnp.bfloat16))
# Dtypes the kernel can read directly from VMEM (cast to f32 happens in-kernel,
# so no wrapper-side HBM pass is needed).
_KERNEL_IN_DTYPES = _KERNEL_IO_DTYPES + (
    jnp.dtype(jnp.int32), jnp.dtype(jnp.uint32),
    jnp.dtype(jnp.int16), jnp.dtype(jnp.int8), jnp.dtype(jnp.uint8),
)


def _round_up(a, b):
    return ((a + b - 1) // b) * b


def _sublane_multiple(*dtypes):
    # Sub-32-bit dtypes pack 2/4 rows per sublane: f32 -> 8, bf16 -> 16, i8 -> 32.
    return max(8, *(32 // max(1, jnp.dtype(d).itemsize) for d in dtypes))


def _cos_lr_kernel(x_ref, o_ref, *, pi_over_t, amp, bias):
    # out = amp * cos(x * (pi / t_initial)) + bias   (affine folded at trace time)
    x = x_ref[...].astype(jnp.float32)
    # TODO(synk): if a v7x bundle dump shows VALU saturation, compute the cos
    # in bf16 (packed VALU) or with a shorter range-reduced polynomial; keep
    # f32 on v5e (no bf16 VPU/EUP) where it hides under HBM DMA anyway.
    o_ref[...] = (amp * jnp.cos(x * pi_over_t) + bias).astype(o_ref.dtype)


def cos_lr(
    x,
    t_initial,
    lr_max=0.001,
    lr_min=1e-6,
    *,
    target_block_bytes=8 * _MIB,   # ~8 MiB blocks: per-step tax ~5% on v7x HBM
    min_pallas_elems=64 * 1024,
    min_grid_steps=4,
):
    """Cosine LR schedule applied elementwise to `x` (any shape).

    Large inputs go through a lane-dense Pallas kernel; tiny inputs take a
    plain-XLA fast path (launch overhead would dominate).
    """
    # Folded affine constants, baked at trace time.
    amp = 0.5 * (float(lr_max) - float(lr_min))
    bias = float(lr_min) + amp
    pi_over_t = math.pi / float(t_initial)

    x_dt = jnp.dtype(x.dtype)
    if x_dt in _KERNEL_IO_DTYPES:
        out_dtype = x_dt          # preserve f32/bf16 I/O (bf16 halves HBM writes)
        x_in = x
    elif x_dt in _KERNEL_IN_DTYPES:
        out_dtype = jnp.dtype(jnp.float32)
        x_in = x                  # kernel casts internally -> no extra HBM pass
    else:
        out_dtype = jnp.dtype(jnp.float32)
        x_in = x.astype(jnp.float32)   # f64/f16/... coerced once on entry

    # Fast path: Pallas launch overhead dwarfs the work for tiny arrays.
    if x.size < min_pallas_elems:
        xf = x.astype(jnp.float32)
        return (amp * jnp.cos(xf * pi_over_t) + bias).astype(out_dtype)

    orig_shape = x.shape
    n = x.size
    rows = pl.cdiv(n, _COLS)

    in_bytes = jnp.dtype(x_in.dtype).itemsize
    out_bytes = jnp.dtype(out_dtype).itemsize
    sub_mult = _sublane_multiple(x_in.dtype, out_dtype)

    # tile_rows: ~target_block_bytes per block, multiple of the dtype sublane
    # packing, capped so the grid has >= min_grid_steps steps (keeps the
    # software pipeline overlapping and lets megacore shard on v7x).
    tile_rows = max(
        sub_mult,
        (target_block_bytes // (max(in_bytes, out_bytes) * _COLS))
        // sub_mult * sub_mult,
    )
    tile_rows = min(
        tile_rows,
        max(sub_mult, _round_up(pl.cdiv(rows, min_grid_steps), sub_mult)),
    )
    tile_rows = min(tile_rows, _round_up(rows, sub_mult))

    grid = (pl.cdiv(rows, tile_rows),)

    # Flatten to a lane-dense (rows, 1024) slab.  Pad only when n is not a
    # multiple of 1024 (<= 1023 extra elems); rows need NOT be a multiple of
    # tile_rows -- Pallas masks the partial final row-block.
    padded = n != rows * _COLS
    if padded:
        x2d = jnp.pad(x_in.reshape(-1), (0, rows * _COLS - n)).reshape(rows, _COLS)
    else:
        x2d = x_in.reshape(rows, _COLS)

    # Double-buffered in + out blocks, plus headroom; v7x-safe (<= 48 MiB),
    # and always above v5e's 16 MiB scoped default when blocks are large.
    block_bytes = tile_rows * _COLS * (in_bytes + out_bytes)
    vmem_limit = int(min(48 * _MIB, max(8 * _MIB, 2 * block_bytes + 4 * _MIB)))

    kernel = partial(_cos_lr_kernel, pi_over_t=pi_over_t, amp=amp, bias=bias)

    out2d = pl.pallas_call(
        kernel,
        out_shape=jax.ShapeDtypeStruct((rows, _COLS), out_dtype),
        grid_spec=pltpu.PrefetchScalarGridSpec(
            num_scalar_prefetch=0,
            grid=grid,
            in_specs=[pl.BlockSpec((tile_rows, _COLS), lambda i: (i, 0))],
            out_specs=pl.BlockSpec((tile_rows, _COLS), lambda i: (i, 0)),
        ),
        compiler_params=pltpu.CompilerParams(
            dimension_semantics=("parallel",),
            vmem_limit_bytes=vmem_limit,
        ),
    )(x2d)

    if padded:
        return out2d.reshape(-1)[:n].reshape(orig_shape)
    return out2d.reshape(orig_shape)


def cos_lr_ref(x, t_initial, lr_max=0.001, lr_min=1e-6):
    xf = x.astype(jnp.float32)
    out = lr_min + 0.5 * (lr_max - lr_min) * (1.0 + jnp.cos(jnp.pi * xf / t_initial))
    x_dt = jnp.dtype(x.dtype)
    out_dtype = x_dt if x_dt in _KERNEL_IO_DTYPES else jnp.dtype(jnp.float32)
    return out.astype(out_dtype)


if __name__ == "__main__":
    key = jax.random.PRNGKey(0)
    t_initial = 100.0
    lr_max = 1e-3
    lr_min = 1e-6

    k1, k2, k3, k4 = jax.random.split(key, 4)

    # --- Pallas path, f32, n % 1024 == 0 (pad-free, slice-free path). ---
    x_big = jax.random.uniform(k1, (512, 256), dtype=jnp.float32,
                               minval=0.0, maxval=t_initial)
    out_big = jax.block_until_ready(cos_lr(x_big, t_initial, lr_max, lr_min))
    ref_big = cos_lr_ref(x_big, t_initial, lr_max, lr_min)
    assert out_big.shape == ref_big.shape and out_big.dtype == ref_big.dtype
    assert jnp.allclose(out_big, ref_big, atol=1e-8, rtol=1e-5), "pallas f32 mismatch"

    # --- Pallas path, ragged shape (exercises <=1023-elem pad + partial block). ---
    x_ragged = jax.random.uniform(k2, (300, 333), dtype=jnp.float32,
                                  minval=0.0, maxval=t_initial)
    out_r = jax.block_until_ready(cos_lr(x_ragged, t_initial, lr_max, lr_min))
    ref_r = cos_lr_ref(x_ragged, t_initial, lr_max, lr_min)
    assert out_r.shape == ref_r.shape
    assert jnp.allclose(out_r, ref_r, atol=1e-8, rtol=1e-5), "ragged path mismatch"

    # --- Pallas path, bf16 I/O (16-row sublane packing, bf16 writeback). ---
    x_bf16 = jax.random.uniform(k3, (256, 512), dtype=jnp.float32,
                                minval=0.0, maxval=t_initial).astype(jnp.bfloat16)
    out_bf = jax.block_until_ready(cos_lr(x_bf16, t_initial, lr_max, lr_min))
    ref_bf = cos_lr_ref(x_bf16, t_initial, lr_max, lr_min)
    assert out_bf.dtype == jnp.bfloat16
    assert jnp.allclose(out_bf.astype(jnp.float32), ref_bf.astype(jnp.float32),
                        atol=1e-6, rtol=2e-2), "bf16 path mismatch"

    # --- Pallas path, int32 input (kernel-internal cast, f32 output). ---
    x_int = (jnp.arange(512 * 256, dtype=jnp.int32) % 200).reshape(512, 256)
    out_i = jax.block_until_ready(cos_lr(x_int, t_initial, lr_max, lr_min))
    ref_i = cos_lr_ref(x_int, t_initial, lr_max, lr_min)
    assert out_i.dtype == jnp.float32
    assert jnp.allclose(out_i, ref_i, atol=1e-8, rtol=1e-5), "int path mismatch"

    # --- Tiny input: plain-XLA fast path, semantics must still match. ---
    x_small = jax.random.uniform(k4, (8, 128), dtype=jnp.float32,
                                 minval=0.0, maxval=t_initial)
    out_s = jax.block_until_ready(cos_lr(x_small, t_initial, lr_max, lr_min))
    ref_s = cos_lr_ref(x_small, t_initial, lr_max, lr_min)
    assert jnp.allclose(out_s, ref_s, atol=1e-8, rtol=1e-5), "fast path mismatch"

    print("KERNEL_OK")
</pallas_src>

<mosaic_0001>
module attributes {stable_mosaic.version = 11 : i64} {
  func.func @_cos_lr_kernel(%arg0: i32, %arg1: memref<32x1024xf32, #tpu.memory_space<vmem>>, %arg2: memref<32x1024xf32, #tpu.memory_space<vmem>>) attributes {dimension_semantics = [#tpu.dimension_semantics<parallel>], iteration_bounds = array<i64: 4>, scalar_prefetch = 0 : i64, scratch_operands = 0 : i64, tpu.core_type = #tpu.core_type<tc>, window_params = [{transform_indices = @transform_0, window_bounds = array<i64: 32, 1024>}, {transform_indices = @transform_1, window_bounds = array<i64: 32, 1024>}]} {
    %c0 = arith.constant 0 : index
    %c0_0 = arith.constant 0 : index
    %0 = vector.load %arg1[%c0, %c0_0] : memref<32x1024xf32, #tpu.memory_space<vmem>>, vector<32x1024xf32>
    %cst = arith.constant 0.0314159282 : f32
    %1 = vector.broadcast %cst : f32 to vector<32x1024xf32>
    %2 = arith.mulf %0, %1 : vector<32x1024xf32>
    %3 = math.cos %2 : vector<32x1024xf32>
    %cst_1 = arith.constant 4.995000e-04 : f32
    %4 = vector.broadcast %cst_1 : f32 to vector<32x1024xf32>
    %5 = arith.mulf %4, %3 : vector<32x1024xf32>
    %cst_2 = arith.constant 5.005000e-04 : f32
    %6 = vector.broadcast %cst_2 : f32 to vector<32x1024xf32>
    %7 = arith.addf %5, %6 : vector<32x1024xf32>
    %c0_3 = arith.constant 0 : index
    %c0_4 = arith.constant 0 : index
    %8 = vector.load %arg2[%c0_3, %c0_4] : memref<32x1024xf32, #tpu.memory_space<vmem>>, vector<32x1024xf32>
    tpu.vector_store %arg2[%c0_3, %c0_4], %7 {strides = array<i32>} : memref<32x1024xf32, #tpu.memory_space<vmem>>, vector<32x1024xf32>,
    return
  }
  func.func @transform_0(%arg0: i32) -> (i32, i32) {
    %c0_i32 = arith.constant 0 : i32
    %c0_i32_0 = arith.constant 0 : i32
    return %arg0, %c0_i32 : i32, i32
  }
  func.func @transform_1(%arg0: i32) -> (i32, i32) {
    %c0_i32 = arith.constant 0 : i32
    %c0_i32_0 = arith.constant 0 : i32
    return %arg0, %c0_i32 : i32, i32
  }
}

</mosaic_0001>

<bundles_post_ra>
// kernel: tpu_custom_call.1
= control target key start
LH: loop header
LB: loop body
LE: loop exit
PB: predicated region body
PF: predicated region fallthrough
CT: control target
= control target key end

     0   :  { %6 = vsyncpa [#allocation3], 0  ;;  %s12010_s0 = inlined_call_operand.hbm [shape: f32[128,1024], index: 0, kind: input, shape index: {}]   ;;  %s12011_s1 = inlined_call_operand.hbm [shape: f32[128,1024], index: 1, kind: output, shape index: {}]  }
   0x1   :  { %8 = vsyncpa [#allocation3 + $0x1], 0 }
   0x2   :  { %9 = vsyncpa [#allocation4], 0 }
   0x3   :  { %11 = vsyncpa [#allocation4 + $0x1], 0  ;;  %s5610_s6 = smov 0   ;;  %s5612_s7 = smov 0  }
   0x4   :  { %s5614_s8 = smov 0   ;;  %s5616_s9 = smov 0  }
   0x5 LB: > { %s5631_s10 = sadd.s32 4294967295, %s5587_s9   ;;  %s5318_s11 = sadd.s32 4294967294, %s5587_s9   ;;  %s5587_s9 = sphi %s5616_s9, %s12614_s9   ;;  %s5583_s8 = sphi %s5614_s8, %s12613_s8   ;;  %s5579_s7 = sphi %s5612_s7, %s12612_s7   ;;  %s5575_s6 = sphi %s5610_s6, %s12611_s6  }
   0x6   : > { %s5635_s12 = sadd.s32 1, %s5587_s9   ;;  %s24_s13 = sadd.s32 1, %s5583_s8 }
   0x7   : > { %s21_s14 = ssub.s32 %s5587_s9, %s5635_s12  ;;  %p31_p0 = scmp.ne.s32.totalorder %s5583_s8, %s5579_s7 }
   0x8   : > { %p22_p1 = scmp.eq.s32.totalorder %s21_s14, 0  ;;  %p32_p2 = scmp.eq.s32.totalorder %s5587_s9, 0 }
   0x9   : > { %p37_p3 = scmp.ne.s32.totalorder %s5579_s7, %s5575_s6  ;;  %p38_p4 = scmp.eq.s32.totalorder %s5631_s10, 0 }
   0xa   : > { %s5647_s15 = scalar_select %p22_p1, %s5583_s8, %s24_s13  }
   0xb   : > { %p5649_p5 = por %p32_p2, %p31_p0  ;;  %p5653_p6 = por %p38_p4, %p37_p3 }
   0xc   : > { %p61_p7 = scmp.eq.s32.totalorder %s5631_s10, 3  ;;  %p67_p8 = scmp.eq.s32.totalorder %s5318_s11, 3 }
   0xd   : > { %p5446_p9 = scmp.lt.s32.totalorder %s5587_s9, 4  ;;  %s87_s20 = sand.u32 1, %s5583_s8  }
   0xe   : > { %p5659_p10 = por %p61_p7, %p31_p0  ;;  %p5663_p11 = por %p67_p8, %p37_p3 }
   0xf   : > { %s5431_s21 = sshll.u32 %s5587_s9, 8  ;;  %s5321_s22 = sshll.u32 %s87_s20, 8 }
  0x10   : > { %s97_s25 = scalar_lea.hbm %s12010_s0, %s5431_s21  ;;  %s91_s27 = scalar_lea.vmem [#allocation2], %s5321_s22 }
  0x11   : > { %s98_s26 = sshll.u32 %s97_s25, 4  ;;  %s100_s28 = sshll.u32 %s91_s27, 4  ;;  %s99_s26 = int_to_ptr.hbm [resolvable:$true] %s98_s26  ;;  %s101_s28 = int_to_ptr.vmem [resolvable:$true] %s100_s28 }
  0x12   : > { %p5674_p12 = pnand %p5446_p9, %p5649_p5  ;;  %p5325_p13 = scmp.ge.s32.totalorder %s5587_s9, 1 }
  0x13   : > { %p108_p0 = scmp.lt.s32.totalorder %s5587_s9, 5  ;;  %s88_s30 = scalar_lea.sflag [#allocation3], %s87_s20 }
  0x14   : > { %s5491_s2 = sshra.s32 %s99_s26, 4  ;;  %p5495_p2 = pneg %p5674_p12  ;;  %s5492_s2 = int_to_ptr.hbm [resolvable:$true] %s5491_s2 }
  0x15   : > { %s5493_s3 = scalar_lea.hbm %s5492_s2, 256  ;;  %s5498_s11 = scalar_lea.hbm %s12010_s0, 1024 }
  0x16   : > { %p5494_p1 = scmp.ne.s32.totalorder %s5492_s2, %s5493_s3  ;;  %p5499_p5 = scmp.lt.s32.totalorder %s5492_s2, %s12010_s0 }
  0x17   : > { %p5500_p7 = scmp.lt.s32.totalorder %s5498_s11, %s5493_s3 }
  0x18   : > { %p5496_p3 = pnand %p5495_p2, %p5494_p1 }
  0x19   : > { %p5501_p8 = por %p5500_p7, %p5499_p5 }
  0x1a   : > { %p5497_p4 = pneg %p5496_p3 }
  0x1c   : > { %p5502_p9 = pnand %p5501_p8, %p5497_p4 }
  0x1e   : > { %5505 = shalt.err (!%p5502_p9)
}
  0x1f   : > { %s5589_s16 = smov 1024   ;;  %s5590_s20 = smov 64  }
  0x20   : > { %5441 = dma.hbm_to_vmem [thread:$0]  (!%p5674_p12), %s99_s26, 4096, %s101_s28, %s88_s30, %s5589_s16, %s5589_s16, %s5590_s20  }
  0x21   : > { %p109_p1 = pnand %p5325_p13, %p108_p0 }
  0x23   : > { %112 = sbr.rel (%p109_p1) target bundleno = 1286 (0x506), region = 24 }
  0x28   : > { %s5695_s21 = sand.u32 1, %s5579_s7  }
  0x29   : > { %s5326_s22 = sshll.u32 %s5695_s21, 8  ;;  %s115_s23 = scalar_lea.sflag [#allocation3], %s5695_s21 }
  0x2a   : > { %s5701_s24 = scalar_lea.vmem [#allocation2], %s5326_s22 }
  0x2b   : > { %5566 = dma.done.wait (%p5653_p6), %s115_s23, 4096  }
  0x2c   : > { %5568 = vsyncadd (%p5653_p6), %s115_s23, 4294963200  ;;  %v140_v0 = vld [vmem:[%s5701_s24] sm:$0xff]  ;;  %v141_v6 = vld [vmem:[%s5701_s24 + $0x8] sm:$0xff]  ;;  %v12028_v13 = vmov 2102212464   ;;  %s11851_s17 = scalar_lea.vmem [#allocation5], %s5326_s22 }
  0x2d   : > { %v5708_v1 = vmul.f32 0.03141593, %v140_v0  ;;  %v5712_v7 = vmul.f32 0.03141593, %v141_v6  ;;  %v12033_v15 = vmov 920167782  }
  0x2e   : > { %v12023_v20 = vmov 683565275   ;;  %v12020_v22 = vmov 2475754826   ;;  %v12036_v25 = vmov 1326507024  }
  0x2f   : > { %12202 = vst [vmem:[#allocation8_spill] sm:$0xff] %v5708_v1  ;;  %v207_v2 = vand.u32 2139095040, %v5708_v1  ;;  %v361_v10 = vand.u32 2139095040, %v5712_v7  ;;  %v12015_v17 = vand.u32 2147483647, %v5708_v1  ;;  %v142_v54 = vld [vmem:[%s5701_s24 + $0x10] sm:$0xff] }
  0x30   : > { %12203 = vst [vmem:[#allocation9_spill] sm:$0xff] %v5712_v7  ;;  %v12018_v28 = vmov 2131351028   ;;  %v5779_v61 = vmul.f32 0.03141593, %v142_v54  ;;  %s5433_s25 = sshll.u32 %s5631_s10, 8 }
  0x31   : > { %v208_v3 = vshrl.u32 %v207_v2, 23  ;;  %v362_v12 = vshrl.u32 %v361_v10, 23  ;;  %v211_v33 = vand.u32 8388607, %v12015_v17  ;;  %v12014_v62 = vand.u32 2147483647, %v5712_v7  ;;  %s5241_s27 = scalar_lea.hbm %s12011_s1, %s5433_s25 }
  0x32   : > { %12204 = vst [vmem:[#allocation10_spill] sm:$0xff] %v5779_v61  ;;  %s5242_s28 = sshll.u32 %s11851_s17, 4  ;;  %s5244_s29 = sshll.u32 %s5241_s27, 4  ;;  %s5243_s28 = int_to_ptr.vmem [resolvable:$true] %s5242_s28  ;;  %s5245_s29 = int_to_ptr.hbm [resolvable:$true] %s5244_s29 }
  0x33   : > { %v5328_v4 = vadd.s32 4294967169, %v208_v3  ;;  %v5331_v19 = vadd.s32 4294967169, %v362_v12  ;;  %v212_v40 = vor.u32 8388608, %v211_v33  ;;  %s5229_s30 = scalar_lea.sflag [#allocation4], %s5695_s21  ;;  %s5535_s2 = sshra.s32 %s5245_s29, 4  ;;  %s5536_s2 = int_to_ptr.hbm [resolvable:$true] %s5535_s2 }
  0x34   : > { %s5537_s3 = scalar_lea.hbm %s5536_s2, 256  ;;  %s5541_s11 = scalar_lea.hbm %s12011_s1, 1024 }
  0x35   : > { %v214_v5 = vadd.s32 1, %v5328_v4  ;;  %v368_v38 = vadd.s32 1, %v5331_v19  ;;  %v5764_v46 = vshll.u32 %v212_v40, 8  ;;  %p5538_p6 = scmp.ne.s32.totalorder %s5536_s2, %s5537_s3  ;;  %p5542_p0 = scmp.lt.s32.totalorder %s5536_s2, %s12011_s1 }
  0x36   : > { %p5543_p2 = scmp.lt.s32.totalorder %s5541_s11, %s5537_s3 }
  0x37   : > { %vm215_vm0 = vcmp.gt.s32.totalorder %v214_v5, 0  ;;  %vm369_vm5 = vcmp.gt.s32.totalorder %v368_v38, 0  ;;  %v253_v50 = vand.u32 65535, %v5764_v46  ;;  %v254_v58 = vshrl.u32 %v5764_v46, 16  ;;  %p5539_p12 = pnand %p5538_p6, %p5659_p10 }
  0x38   : > { %v216_v8 = vsel %vm215_vm0, %v214_v5, 0  ;;  %v370_v48 = vsel %vm369_vm5, %v368_v38, 0  ;;  %p5544_p3 = por %p5543_p2, %p5542_p0 }
  0x39   : > { %v218_v9 = vand.u32 31, %v216_v8  ;;  %v5721_v18 = vshrl.u32 %v216_v8, 5  ;;  %v372_v52 = vand.u32 31, %v370_v48  ;;  %v5782_v63 = vshrl.u32 %v370_v48, 5  ;;  %p5540_p13 = pneg %p5539_p12 }
  0x3b   : > { %v5715_v11 = vsub.s32 32, %v218_v9  ;;  %v230_v14 = vshll.u32 %v12028_v13, %v218_v9  ;;  %v221_v21 = vshll.u32 %v12023_v20, %v218_v9  ;;  %v224_v23 = vshll.u32 %v12020_v22, %v218_v9  ;;  %p5545_p4 = pnand %p5544_p3, %p5540_p13 }
  0x3c   : > { %v233_v24 = vshll.u32 %v12033_v15, %v218_v9  ;;  %v227_v30 = vshll.u32 %v12018_v28, %v218_v9  ;;  %vm239_vm1 = vcmp.lt.s32.totalorder %v5721_v18, 4  ;;  %vm236_vm2 = vcmp.lt.s32.totalorder %v5721_v18, 1 }
  0x3d   : > { %v231_v16 = vshrl.u32 %v12033_v15, %v5715_v11  ;;  %v234_v26 = vshrl.u32 %v12036_v25, %v5715_v11  ;;  %v222_v27 = vshrl.u32 %v12020_v22, %v5715_v11  ;;  %v225_v29 = vshrl.u32 %v12018_v28, %v5715_v11 }
  0x3e   : > { %v228_v31 = vshrl.u32 %v12028_v13, %v5715_v11  ;;  %vm238_vm3 = vcmp.lt.s32.totalorder %v5721_v18, 3  ;;  %vm237_vm4 = vcmp.lt.s32.totalorder %v5721_v18, 2  ;;  %v5774_v57 = vsub.s32 32, %v372_v52 }
  0x3f   : > { %v232_v32 = vor.u32 %v231_v16, %v230_v14  ;;  %v235_v34 = vor.u32 %v234_v26, %v233_v24  ;;  %v5738_v35 = vor.u32 %v222_v27, %v221_v21  ;;  %v5740_v36 = vor.u32 %v225_v29, %v224_v23 }
  0x40   : > { %v5742_v37 = vor.u32 %v228_v31, %v227_v30  ;;  %v384_v3 = vshll.u32 %v12028_v13, %v372_v52  ;;  %v385_v4 = vshrl.u32 %v12033_v15, %v5774_v57  ;;  %v375_v6 = vshll.u32 %v12023_v20, %v372_v52 }
  0x41   : > { %v245_v39 = vsel %vm239_vm1, %v232_v32, 920167782  ;;  %v249_v41 = vsel %vm239_vm1, %v235_v34, 1326507024  ;;  %v244_v42 = vsel %vm236_vm2, %v5738_v35, %v5740_v36  ;;  %v376_v8 = vshrl.u32 %v12020_v22, %v5774_v57 }
  0x42   : > { %v246_v43 = vsel %vm238_vm3, %v5742_v37, %v245_v39  ;;  %v248_v44 = vsel %vm236_vm2, %v5740_v36, %v5742_v37  ;;  %v250_v45 = vsel %vm238_vm3, %v232_v32, %v249_v41  ;;  %v378_v9 = vshll.u32 %v12020_v22, %v372_v52 }
  0x43   : > { %v247_v47 = vsel %vm237_vm4, %v244_v42, %v246_v43  ;;  %v251_v49 = vsel %vm237_vm4, %v248_v44, %v250_v45  ;;  %v379_v16 = vshrl.u32 %v12018_v28, %v5774_v57  ;;  %v381_v19 = vshll.u32 %v12018_v28, %v372_v52 }
  0x44   : > { %v278_v51 = vshrl.u32 %v247_v47, 16  ;;  %v256_v53 = vshrl.u32 %v251_v49, 16  ;;  %v277_v55 = vand.u32 65535, %v247_v47  ;;  %v255_v59 = vand.u32 65535, %v251_v49 }
  0x45   : > { %v382_v21 = vshrl.u32 %v12028_v13, %v5774_v57  ;;  %v387_v23 = vshll.u32 %v12033_v15, %v372_v52  ;;  %v388_v24 = vshrl.u32 %v12036_v25, %v5774_v57  ;;  %v365_v26 = vand.u32 8388607, %v12014_v62 }
  0x46   : > { %v5772_v56 = vmul.u32 %v278_v51, %v253_v50  ;;  %v5777_v60 = vmul.u32 %v256_v53, %v253_v50  ;;  %v279_v0 = vmul.u32 %v277_v55, %v253_v50  ;;  %v5788_v5 = vmul.u32 %v277_v55, %v254_v58 }
  0x47   : > { %v257_v10 = vmul.u32 %v255_v59, %v253_v50  ;;  %v5794_v12 = vmul.u32 %v255_v59, %v254_v58  ;;  %v386_v27 = vor.u32 %v385_v4, %v384_v3  ;;  %v515_v29 = vand.u32 2139095040, %v5779_v61 }
  0x48   : > { %v283_v2 = vshll.u32 %v5772_v56, 16  ;;  %v261_v14 = vshll.u32 %v5777_v60, 16  ;;  %v282_v30 = vmul.u32 %v278_v51, %v254_v58  ;;  %v285_v31 = vshll.u32 %v5788_v5, 16 }
  0x49   : > { %vm393_vm7 = vcmp.lt.s32.totalorder %v5782_v63, 4  ;;  %v263_v33 = vshll.u32 %v5794_v12, 16  ;;  %v5811_v38 = vor.u32 %v376_v8, %v375_v6  ;;  %v12016_v39 = vmov 0  }
  0x4a   : > { %vm287_vm6 = vc.u32 %v279_v0, %v283_v2  ;;  %v289_v32 = vadd.s32 %v283_v2, %v279_v0  ;;  %vm265_vm8 = vc.u32 %v257_v10, %v261_v14  ;;  %v267_v34 = vadd.s32 %v261_v14, %v257_v10 }
  0x4b   : > { %v288_v40 = vsel %vm287_vm6, 1, %v12016_v39  ;;  %v5814_v41 = vor.u32 %v379_v16, %v378_v9  ;;  %v5816_v42 = vor.u32 %v382_v21, %v381_v19  ;;  %v389_v43 = vor.u32 %v388_v24, %v387_v23 }
  0x4c   : > { %v260_v44 = vmul.u32 %v256_v53, %v254_v58  ;;  %vm390_vm9 = vcmp.lt.s32.totalorder %v5782_v63, 1  ;;  %vm392_vm10 = vcmp.lt.s32.totalorder %v5782_v63, 3  ;;  %v399_v45 = vsel %vm393_vm7, %v386_v27, 920167782 }
  0x4d   : > { %v266_v47 = vsel %vm265_vm8, 1, %v12016_v39  ;;  %vm291_vm11 = vc.u32 %v289_v32, %v285_v31  ;;  %v366_v48 = vor.u32 8388608, %v365_v26  ;;  %v516_v49 = vshrl.u32 %v515_v29, 23 }
  0x4e   : > { %vm269_vm12 = vc.u32 %v267_v34, %v263_v33  ;;  %v290_v50 = vadd.s32 %v288_v40, %v282_v30  ;;  %vm391_vm13 = vcmp.lt.s32.totalorder %v5782_v63, 2  ;;  %v398_v51 = vsel %vm390_vm9, %v5811_v38, %v5814_v41 }
  0x4f   : > { %v400_v52 = vsel %vm392_vm10, %v5816_v42, %v399_v45  ;;  %v403_v53 = vsel %vm393_vm7, %v389_v43, 1326507024  ;;  %v268_v54 = vadd.s32 %v266_v47, %v260_v44  ;;  %v292_v55 = vsel %vm291_vm11, 1, %v12016_v39 }
  0x50   : > { %v270_v58 = vsel %vm269_vm12, 1, %v12016_v39  ;;  %v5835_v59 = vshll.u32 %v366_v48, 8  ;;  %v5334_v0 = vadd.s32 4294967169, %v516_v49  ;;  %v401_v2 = vsel %vm391_vm13, %v398_v51, %v400_v52 }
  0x51   : > { %v402_v3 = vsel %vm390_vm9, %v5814_v41, %v5816_v42  ;;  %v404_v4 = vsel %vm392_vm10, %v386_v27, %v403_v53  ;;  %v284_v6 = vshrl.u32 %v5772_v56, 16  ;;  %v294_v8 = vadd.s32 %v292_v55, %v290_v50 }
  0x52   : > { %v262_v9 = vshrl.u32 %v5777_v60, 16  ;;  %v272_v10 = vadd.s32 %v270_v58, %v268_v54  ;;  %v405_v14 = vsel %vm391_vm13, %v402_v3, %v404_v4  ;;  %v407_v16 = vand.u32 65535, %v5835_v59 }
  0x53   : > { %v432_v19 = vshrl.u32 %v401_v2, 16  ;;  %v522_v21 = vadd.s32 1, %v5334_v0  ;;  %v220_v23 = vshrl.u32 %v12023_v20, %v5715_v11  ;;  %v286_v24 = vshrl.u32 %v5788_v5, 16 }
  0x54   : > { %v295_v26 = vadd.s32 %v294_v8, %v284_v6  ;;  %v241_v56 = vsel %vm239_vm1, %v5742_v37, 2102212464  ;;  %v264_v60 = vshrl.u32 %v5794_v12, 16  ;;  %v273_v27 = vadd.s32 %v272_v10, %v262_v9 }
  0x55   : > { %v410_v29 = vshrl.u32 %v405_v14, 16  ;;  %v408_v30 = vshrl.u32 %v5835_v59, 16  ;;  %v431_v33 = vand.u32 65535, %v401_v2  ;;  %v5858_v34 = vmul.u32 %v432_v19, %v407_v16 }
  0x56   : > { %vm523_vm14 = vcmp.gt.s32.totalorder %v522_v21, 0  ;;  %v240_v11 = vsel %vm236_vm2, %v220_v23, %v5738_v35  ;;  %v242_v5 = vsel %vm238_vm3, %v5740_v36, %v241_v56  ;;  %v5866_v40 = vadd.s32 %v289_v32, %v285_v31 }
  0x57   : > { %v296_v37 = vadd.s32 %v295_v26, %v286_v24  ;;  %v5868_v12 = vadd.s32 %v273_v27, %v264_v60  ;;  %v409_v43 = vand.u32 65535, %v405_v14  ;;  %v5870_v44 = vmul.u32 %v410_v29, %v407_v16 }
  0x58   : > { %v524_v45 = vsel %vm523_vm14, %v522_v21, 0  ;;  %v433_v47 = vmul.u32 %v431_v33, %v407_v16  ;;  %v5872_v48 = vmul.u32 %v431_v33, %v408_v30  ;;  %v437_v49 = vshll.u32 %v5858_v34, 16 }
  0x59   : > { %v243_v35 = vsel %vm237_vm4, %v240_v11, %v242_v5  ;;  %v300_v50 = vadd.s32 1, %v296_v37  ;;  %v526_v51 = vand.u32 31, %v524_v45  ;;  %vm299_vm15 = vc.u32 %v5868_v12, %v5866_v40 }
  0x5a   : > { %v411_v36 = vmul.u32 %v409_v43, %v407_v16  ;;  %v5879_v31 = vmul.u32 %v409_v43, %v408_v30  ;;  %v415_v32 = vshll.u32 %v5870_v44, 16  ;;  %v439_v52 = vshll.u32 %v5872_v48, 16 }
  0x5b   : > { %v5883_v53 = vadd.s32 %v437_v49, %v433_v47  ;;  %v297_v54 = vmul.u32 %v5764_v46, %v243_v35  ;;  %vm441_vm0 = vc.u32 %v433_v47, %v437_v49  ;;  %v301_v55 = vsel %vm299_vm15, %v300_v50, %v296_v37  ;;  %v143_v49 = vld [vmem:[%s5701_s24 + $0x18] sm:$0xff] }
  0x5c   : > { %v5886_v18 = vsub.s32 32, %v526_v51  ;;  %v417_v58 = vshll.u32 %v5879_v31, 16  ;;  %vm419_vm1 = vc.u32 %v411_v36, %v415_v32  ;;  %v421_v0 = vadd.s32 %v415_v32, %v411_v36 }
  0x5d   : > { %v436_v2 = vmul.u32 %v432_v19, %v408_v30  ;;  %v442_v3 = vsel %vm441_vm0, 1, %v12016_v39  ;;  %vm445_vm2 = vc.u32 %v5883_v53, %v439_v52  ;;  %v5893_v4 = vadd.s32 %v301_v55, %v297_v54 }
  0x5e   : > { %v12013_v6 = vand.u32 2147483647, %v5779_v61  ;;  %v414_v46 = vmul.u32 %v410_v29, %v408_v30  ;;  %v420_v8 = vsel %vm419_vm1, 1, %v12016_v39  ;;  %v538_v9 = vshll.u32 %v12028_v13, %v526_v51 }
  0x5f   : > { %v539_v10 = vshrl.u32 %v12033_v15, %v5886_v18  ;;  %vm423_vm3 = vc.u32 %v421_v0, %v417_v58  ;;  %v444_v14 = vadd.s32 %v442_v3, %v436_v2  ;;  %v446_v16 = vsel %vm445_vm2, 1, %v12016_v39 }
  0x60   : > { %v5901_v19 = vshrl.u32 %v524_v45, 5  ;;  %v529_v21 = vshll.u32 %v12023_v20, %v526_v51  ;;  %v530_v23 = vshrl.u32 %v12020_v22, %v5886_v18  ;;  %v532_v24 = vshll.u32 %v12020_v22, %v526_v51 }
  0x61   : > { %v535_v26 = vshll.u32 %v12018_v28, %v526_v51  ;;  %v533_v56 = vshrl.u32 %v12018_v28, %v5886_v18  ;;  %v536_v60 = vshrl.u32 %v12028_v13, %v5886_v18  ;;  %v541_v27 = vshll.u32 %v12033_v15, %v526_v51 }
  0x62   : > { %v542_v29 = vshrl.u32 %v12036_v25, %v5886_v18  ;;  %v422_v30 = vadd.s32 %v420_v8, %v414_v46  ;;  %v540_v33 = vor.u32 %v539_v10, %v538_v9  ;;  %v424_v11 = vsel %vm423_vm3, 1, %v12016_v39 }
  0x63   : > { %v519_v5 = vand.u32 8388607, %v12013_v6  ;;  %vm547_vm4 = vcmp.lt.s32.totalorder %v5901_v19, 4  ;;  %v303_v37 = vadd.s32 536870912, %v5893_v4  ;;  %v416_v43 = vshrl.u32 %v5870_v44, 16 }
  0x64   : > { %v438_v45 = vshrl.u32 %v5858_v34, 16  ;;  %v448_v47 = vadd.s32 %v446_v16, %v444_v14  ;;  %v5923_v35 = vor.u32 %v530_v23, %v529_v21  ;;  %v5925_v50 = vor.u32 %v533_v56, %v532_v24 }
  0x65   : > { %v5927_v51 = vor.u32 %v536_v60, %v535_v26  ;;  %v543_v36 = vor.u32 %v542_v29, %v541_v27  ;;  %v426_v32 = vadd.s32 %v424_v11, %v422_v30  ;;  %vm544_vm5 = vcmp.lt.s32.totalorder %v5901_v19, 1 }
  0x66   : > { %vm546_vm6 = vcmp.lt.s32.totalorder %v5901_v19, 3  ;;  %v553_v54 = vsel %vm547_vm4, %v540_v33, 920167782  ;;  %v520_v44 = vor.u32 8388608, %v519_v5  ;;  %v5933_v55 = vmul.f32 0.03141593, %v143_v49 }
  0x67   : > { %v5935_v34 = vshrl.u32 %v303_v37, 30  ;;  %v440_v58 = vshrl.u32 %v5872_v48, 16  ;;  %vm545_vm8 = vcmp.lt.s32.totalorder %v5901_v19, 2  ;;  %v449_v0 = vadd.s32 %v448_v47, %v438_v45 }
  0x68   : > { %12205 = vst [vmem:[#allocation11_spill] sm:$0xff] %v5933_v55  ;;  %v552_v2 = vsel %vm544_vm5, %v5923_v35, %v5925_v50  ;;  %v554_v3 = vsel %vm546_vm6, %v5927_v51, %v553_v54  ;;  %v557_v46 = vsel %vm547_vm4, %v543_v36, 1326507024  ;;  %v374_v8 = vshrl.u32 %v12023_v20, %v5774_v57 }
  0x69   : > { %v418_v9 = vshrl.u32 %v5879_v31, 16  ;;  %v427_v10 = vadd.s32 %v426_v32, %v416_v43  ;;  %v395_v14 = vsel %vm393_vm7, %v5816_v42, 2102212464  ;;  %v5954_v16 = vshll.u32 %v520_v44, 8 }
  0x6a   : > { %v555_v21 = vsel %vm545_vm8, %v552_v2, %v554_v3  ;;  %v556_v23 = vsel %vm544_vm5, %v5925_v50, %v5927_v51  ;;  %v558_v57 = vsel %vm546_vm6, %v540_v33, %v557_v46  ;;  %v305_v31 = vshll.u32 %v5935_v34, 30 }
  0x6b   : > { %v450_v24 = vadd.s32 %v449_v0, %v440_v58  ;;  %v669_v26 = vand.u32 2139095040, %v5933_v55  ;;  %v394_v42 = vsel %vm390_vm9, %v374_v8, %v5811_v38  ;;  %v396_v56 = vsel %vm392_vm10, %v5814_v41, %v395_v14 }
  0x6c   : > { %v5972_v60 = vadd.s32 %v427_v10, %v418_v9  ;;  %v5977_v27 = vadd.s32 %v5883_v53, %v439_v52  ;;  %v559_v29 = vsel %vm545_vm8, %v556_v23, %v558_v57  ;;  %v561_v30 = vand.u32 65535, %v5954_v16 }
  0x6d   : > { %v586_v33 = vshrl.u32 %v555_v21, 16  ;;  %v5983_v11 = vsub.s32 %v5893_v4, %v305_v31  ;;  %v397_v38 = vsel %vm391_vm13, %v394_v42, %v396_v56  ;;  %v454_v41 = vadd.s32 1, %v450_v24 }
  0x6e   : > { %v670_v5 = vshrl.u32 %v669_v26, 23  ;;  %vm453_vm7 = vc.u32 %v5972_v60, %v5977_v27  ;;  %v564_v48 = vshrl.u32 %v559_v29, 16  ;;  %v562_v52 = vshrl.u32 %v5954_v16, 16 }
  0x6f   : > { %v585_v53 = vand.u32 65535, %v555_v21  ;;  %v588_v37 = vmul.u32 %v586_v33, %v561_v30  ;;  %v451_v43 = vmul.u32 %v5835_v59, %v397_v38  ;;  %v308_v45 = vsub.s32 0, %v5983_v11  ;;  %v144_v21 = vld [vmem:[%s5701_s24 + $0x20] sm:$0xff] }
  0x70   : > { %v455_v47 = vsel %vm453_vm7, %v454_v41, %v450_v24  ;;  %v5337_v4 = vadd.s32 4294967169, %v670_v5  ;;  %vm307_vm9 = vcmp.lt.s32.totalorder %v5983_v11, 0  ;;  %v563_v63 = vand.u32 65535, %v559_v29  ;;  %v145_v5 = vld [vmem:[%s5701_s24 + $0x28] sm:$0xff] }
  0x71   : > { %v5993_v49 = vmul.u32 %v564_v48, %v561_v30  ;;  %v587_v36 = vmul.u32 %v585_v53, %v561_v30  ;;  %v5995_v32 = vmul.u32 %v585_v53, %v562_v52  ;;  %v591_v54 = vshll.u32 %v588_v37, 16 }
  0x72   : > { %v456_v44 = vadd.s32 %v455_v47, %v451_v43  ;;  %v309_v58 = vsel %vm307_vm9, %v308_v45, %v5983_v11  ;;  %v676_v0 = vadd.s32 1, %v5337_v4  ;;  %v565_v2 = vmul.u32 %v563_v63, %v561_v30  ;;  %v146_v45 = vld [vmem:[%s5701_s24 + $0x30] sm:$0xff]  ;;  %v147_v47 = vld [vmem:[%s5701_s24 + $0x38] sm:$0xff] }
  0x73   : > { %v5998_v59 = vmul.u32 %v563_v63, %v562_v52  ;;  %v569_v3 = vshll.u32 %v5993_v49, 16  ;;  %v593_v46 = vshll.u32 %v5995_v32, 16  ;;  %vm595_vm10 = vc.u32 %v587_v36, %v591_v54 }
  0x74   : > { %v6002_v8 = vadd.s32 %v591_v54, %v587_v36  ;;  %v310_v9 = vclz %v309_v58  ;;  %v457_v10 = vadd.s32 536870912, %v456_v44  ;;  %v590_v14 = vmul.u32 %v586_v33, %v562_v52 }
  0x75   : > { %vm677_vm11 = vcmp.gt.s32.totalorder %v676_v0, 0  ;;  %v571_v23 = vshll.u32 %v5998_v59, 16  ;;  %vm573_vm12 = vc.u32 %v565_v2, %v569_v3  ;;  %v575_v57 = vadd.s32 %v569_v3, %v565_v2 }
  0x76   : > { %v596_v31 = vsel %vm595_vm10, 1, %v12016_v39  ;;  %vm599_vm13 = vc.u32 %v6002_v8, %v593_v46  ;;  %v5329_v24 = vadd.s32 4294967294, %v310_v9  ;;  %v6010_v26 = vshrl.u32 %v457_v10, 30 }
  0x77   : > { %v568_v42 = vmul.u32 %v564_v48, %v562_v52  ;;  %v678_v56 = vsel %vm677_vm11, %v676_v0, 0  ;;  %v6012_v29 = vmul.f32 0.03141593, %v144_v21  ;;  %v574_v30 = vsel %vm573_vm12, 1, %v12016_v39 }
  0x78   : > { %v598_v33 = vadd.s32 %v596_v31, %v590_v14  ;;  %vm577_vm14 = vc.u32 %v575_v57, %v571_v23  ;;  %v600_v38 = vsel %vm599_vm13, 1, %v12016_v39  ;;  %v680_v41 = vand.u32 31, %v678_v56 }
  0x79   : > { %12206 = vst [vmem:[#allocation12_spill] sm:$0xff] %v6012_v29  ;;  %vm5330_vm15 = vcmp.lt.s32.totalorder %v5329_v24, 0  ;;  %v459_v53 = vshll.u32 %v6010_v26, 30  ;;  %v576_v43 = vadd.s32 %v574_v30, %v568_v42  ;;  %v578_v4 = vsel %vm577_vm14, 1, %v12016_v39 }
  0x7a   : > { %v592_v48 = vshrl.u32 %v588_v37, 16  ;;  %v602_v52 = vadd.s32 %v600_v38, %v598_v33  ;;  %v823_v63 = vand.u32 2139095040, %v6012_v29  ;;  %v528_v36 = vshrl.u32 %v12023_v20, %v5886_v18 }
  0x7b   : > { %v6024_v54 = vmul.f32 0.03141593, %v145_v5  ;;  %v6026_v58 = vsel %vm5330_vm15, 0, %v5329_v24  ;;  %v549_v0 = vsel %vm547_vm4, %v5927_v51, 2102212464  ;;  %v6031_v2 = vsub.s32 32, %v680_v41 }
  0x7c   : > { %v6033_v3 = vmul.f32 0.03141593, %v146_v45  ;;  %v6035_v9 = vmul.f32 0.03141593, %v147_v47  ;;  %v570_v37 = vshrl.u32 %v5993_v49, 16  ;;  %v580_v10 = vadd.s32 %v578_v4, %v576_v43 }
  0x7d   : > { %12207 = vst [vmem:[#allocation13_spill] sm:$0xff] %v6024_v54  ;;  %v6038_v14 = vsub.s32 %v456_v44, %v459_v53  ;;  %v594_v18 = vshrl.u32 %v5995_v32, 16  ;;  %v603_v21 = vadd.s32 %v602_v52, %v592_v48  ;;  %v824_v23 = vshrl.u32 %v823_v63, 23 }
  0x7e   : > { %12208 = vst [vmem:[#allocation14_spill] sm:$0xff] %v6033_v3  ;;  %v298_v57 = vadd.s32 %v5866_v40, %v5868_v12  ;;  %v318_v51 = vsub.s32 4294967266, %v6026_v58  ;;  %v548_v31 = vsel %vm544_vm5, %v528_v36, %v5923_v35  ;;  %v550_v49 = vsel %vm546_vm6, %v5925_v50, %v549_v0 }
  0x7f   : > { %12209 = vst [vmem:[#allocation15_spill] sm:$0xff] %v6035_v9  ;;  %v572_v44 = vshrl.u32 %v5998_v59, 16  ;;  %v12012_v24 = vand.u32 2147483647, %v5933_v55  ;;  %v695_v42 = vshll.u32 %v12033_v15, %v680_v41  ;;  %v696_v30 = vshrl.u32 %v12036_v25, %v6031_v2 }
  0x80   : > { %v581_v40 = vadd.s32 %v580_v10, %v570_v37  ;;  %v6055_v12 = vshrl.u32 %v678_v56, 5  ;;  %v692_v33 = vshll.u32 %v12028_v13, %v680_v41  ;;  %v693_v35 = vshrl.u32 %v12033_v15, %v6031_v2 }
  0x81   : > { %vm461_vm0 = vcmp.lt.s32.totalorder %v6038_v14, 0  ;;  %v462_v50 = vsub.s32 0, %v6038_v14  ;;  %v604_v59 = vadd.s32 %v603_v21, %v594_v18  ;;  %v5340_v38 = vadd.s32 4294967169, %v824_v23 }
  0x82   : > { %v686_v5 = vshll.u32 %v12020_v22, %v680_v41  ;;  %v687_v53 = vshrl.u32 %v12018_v28, %v6031_v2  ;;  %v689_v43 = vshll.u32 %v12018_v28, %v680_v41  ;;  %v690_v56 = vshrl.u32 %v12028_v13, %v6031_v2 }
  0x83   : > { %v673_v45 = vand.u32 8388607, %v12012_v24  ;;  %v683_v47 = vshll.u32 %v12023_v20, %v680_v41  ;;  %v684_v4 = vshrl.u32 %v12020_v22, %v6031_v2  ;;  %v697_v48 = vor.u32 %v696_v30, %v695_v42 }
  0x84   : > { %v6073_v52 = vadd.s32 %v581_v40, %v572_v44  ;;  %v6078_v63 = vadd.s32 %v6002_v8, %v593_v46  ;;  %v694_v36 = vor.u32 %v693_v35, %v692_v33  ;;  %vm701_vm1 = vcmp.lt.s32.totalorder %v6055_v12, 4  ;;  %v149_v44 = vld [vmem:[%s5701_s24 + $0x48] sm:$0xff]  ;;  %v150_v33 = vld [vmem:[%s5701_s24 + $0x50] sm:$0xff] }
  0x85   : > { %v314_v0 = vsub.s32 32, %v6026_v58  ;;  %v319_v37 = vadd.s32 127, %v318_v51  ;;  %v463_v41 = vsel %vm461_vm0, %v462_v50, %v6038_v14  ;;  %v830_v10 = vadd.s32 1, %v5340_v38  ;;  %v148_v51 = vld [vmem:[%s5701_s24 + $0x40] sm:$0xff] }
  0x86   : > { %v551_v18 = vsel %vm545_vm8, %v548_v31, %v550_v49  ;;  %v608_v32 = vadd.s32 1, %v604_v59  ;;  %v6087_v21 = vor.u32 %v687_v53, %v686_v5  ;;  %v6089_v46 = vor.u32 %v690_v56, %v689_v43  ;;  %v154_v56 = vld [vmem:[%s5701_s24 + $0x70] sm:$0xff] }
  0x87   : > { %v6091_v8 = vor.u32 %v684_v4, %v683_v47  ;;  %vm698_vm2 = vcmp.lt.s32.totalorder %v6055_v12, 1  ;;  %vm700_vm3 = vcmp.lt.s32.totalorder %v6055_v12, 3  ;;  %v711_v23 = vsel %vm701_vm1, %v697_v48, 1326507024 }
  0x88   : > { %v464_v19 = vclz %v463_v41  ;;  %vm607_vm4 = vc.u32 %v6073_v52, %v6078_v63  ;;  %v674_v31 = vor.u32 8388608, %v673_v45  ;;  %v707_v49 = vsel %vm701_vm1, %v694_v36, 920167782 }
  0x89   : > { %v315_v42 = vshll.u32 %v5983_v11, %v6026_v58  ;;  %v316_v30 = vshrl.u32 %v298_v57, %v314_v0  ;;  %v320_v40 = vshll.u32 %v319_v37, 23  ;;  %vm831_vm5 = vcmp.gt.s32.totalorder %v830_v10, 0  ;;  %v151_v11 = vld [vmem:[%s5701_s24 + $0x58] sm:$0xff]  ;;  %v152_v58 = vld [vmem:[%s5701_s24 + $0x60] sm:$0xff]  ;;  %v153_v57 = vld [vmem:[%s5701_s24 + $0x68] sm:$0xff] }
  0x8a   : > { %v605_v35 = vmul.u32 %v5954_v16, %v551_v18  ;;  %vm699_vm6 = vcmp.lt.s32.totalorder %v6055_v12, 2  ;;  %v710_v50 = vsel %vm698_vm2, %v6087_v21, %v6089_v46  ;;  %v712_v38 = vsel %vm700_vm3, %v694_v36, %v711_v23  ;;  %v155_v36 = vld [vmem:[%s5701_s24 + $0x78] sm:$0xff]  ;;  %v158_v23 = vld [vmem:[%s5701_s24 + $0x90] sm:$0xff] }
  0x8b   : > { %v6117_v5 = vmul.f32 0.03141593, %v148_v51  ;;  %v609_v16 = vsel %vm607_vm4, %v608_v32, %v604_v59  ;;  %v706_v53 = vsel %vm698_vm2, %v6091_v8, %v6087_v21  ;;  %v708_v43 = vsel %vm700_vm3, %v6089_v46, %v707_v49  ;;  %v156_v59 = vld [vmem:[%s5701_s24 + $0x80] sm:$0xff]  ;;  %v157_v32 = vld [vmem:[%s5701_s24 + $0x88] sm:$0xff]  ;;  %v159_v49 = vld [vmem:[%s5701_s24 + $0x98] sm:$0xff] }
  0x8c   : > { %v6130_v45 = vmul.f32 0.03141593, %v149_v44  ;;  %v5332_v47 = vadd.s32 4294967294, %v464_v19  ;;  %v6132_v4 = vshll.u32 %v674_v31, 8  ;;  %v832_v48 = vsel %vm831_vm5, %v830_v10, 0 }
  0x8d   : > { %12210 = vst [vmem:[#allocation16_spill] sm:$0xff] %v6117_v5  ;;  %v6137_v0 = vmul.f32 0.03141593, %v150_v33  ;;  %v317_v37 = vor.u32 %v316_v30, %v315_v42  ;;  %v321_v41 = vor.u32 4788187, %v320_v40  ;;  %v6141_v18 = vsel %vm699_vm6, %v710_v50, %v712_v38  ;;  %v160_v40 = vld [vmem:[%s5701_s24 + $0xa0] sm:$0xff] }
  0x8e   : > { %12211 = vst [vmem:[#allocation17_spill] sm:$0xff] %v6130_v45  ;;  %v6145_v51 = vmul.f32 0.03141593, %v151_v11  ;;  %v6147_v19 = vmul.f32 0.03141593, %v152_v58  ;;  %v6149_v31 = vadd.s32 %v609_v16, %v605_v35  ;;  %v6153_v10 = vsel %vm699_vm6, %v706_v53, %v708_v43  ;;  %v161_v35 = vld [vmem:[%s5701_s24 + $0xa8] sm:$0xff] }
  0x8f   : > { %12212 = vst [vmem:[#allocation18_spill] sm:$0xff] %v6137_v0  ;;  %v6156_v44 = vmul.f32 0.03141593, %v153_v57  ;;  %v6158_v42 = vmul.f32 0.03141593, %v154_v56  ;;  %v834_v30 = vand.u32 31, %v832_v48  ;;  %v324_v16 = vcvt.s32.f32 %v317_v37 }
  0x90   : > { %12213 = vst [vmem:[#allocation19_spill] sm:$0xff] %v6145_v51  ;;  %v6161_v33 = vmul.f32 0.03141593, %v155_v36  ;;  %vm5333_vm8 = vcmp.lt.s32.totalorder %v5332_v47, 0  ;;  %v715_v50 = vand.u32 65535, %v6132_v4  ;;  %v12022_v38 = vshrl.u32 %v6141_v18, 16 }
  0x91   : > { %12214 = vst [vmem:[#allocation20_spill] sm:$0xff] %v6147_v19  ;;  %v6166_v11 = vmul.f32 0.03141593, %v156_v59  ;;  %v322_v58 = vand.u32 2147483647, %v321_v41  ;;  %v12025_v53 = vshrl.u32 %v6153_v10, 16 }
  0x92   : > { %12215 = vst [vmem:[#allocation21_spill] sm:$0xff] %v6156_v44  ;;  %v6169_v57 = vmul.f32 0.03141593, %v157_v32  ;;  %v6171_v43 = vmul.f32 0.03141593, %v158_v23  ;;  %v611_v56 = vadd.s32 536870912, %v6149_v31  ;;  %v6189_v23 = vmul.u32 %v12022_v38, %v715_v50 }
  0x93   : > { %12216 = vst [vmem:[#allocation22_spill] sm:$0xff] %v6158_v42  ;;  %v739_v36 = vand.u32 65535, %v6153_v10  ;;  %v6175_v24 = vsel %vm5333_vm8, 0, %v5332_v47  ;;  %v716_v6 = vshrl.u32 %v6132_v4, 16  ;;  %v717_v62 = vand.u32 65535, %v6141_v18 }
  0x94   : > { %12217 = vst [vmem:[#allocation23_spill] sm:$0xff] %v6161_v33  ;;  %v6179_v59 = vsub.s32 32, %v834_v30  ;;  %v6181_v41 = vmul.f32 0.03141593, %v159_v49  ;;  %v6183_v37 = vmul.f32 0.03141593, %v160_v40  ;;  %v6191_v17 = vmul.f32 %v324_v16, %v322_v58 }
  0x95   : > { %12218 = vst [vmem:[#allocation24_spill] sm:$0xff] %v6166_v11  ;;  %v6185_v32 = vmul.f32 0.03141593, %v161_v35  ;;  %v452_v47 = vadd.s32 %v5977_v27, %v5972_v60  ;;  %v468_v39 = vsub.s32 32, %v6175_v24  ;;  %v6198_v28 = vmul.u32 %v12025_v53, %v715_v50 }
  0x96   : > { %12219 = vst [vmem:[#allocation25_spill] sm:$0xff] %v6169_v57  ;;  %v472_v49 = vsub.s32 4294967266, %v6175_v24  ;;  %v6201_v40 = vshrl.u32 %v611_v56, 30  ;;  %v741_v35 = vmul.u32 %v739_v36, %v715_v50  ;;  %v719_v38 = vmul.u32 %v717_v62, %v715_v50 }
  0x97   : > { %12220 = vst [vmem:[#allocation26_spill] sm:$0xff] %v6171_v43  ;;  %v6204_v20 = vmul.u32 %v717_v62, %v716_v6  ;;  %v846_v58 = vshll.u32 %v12028_v13, %v834_v30  ;;  %v847_v60 = vshrl.u32 %v12033_v15, %v6179_v59  ;;  %v723_v27 = vshll.u32 %v6189_v23, 16 }
  0x98   : > { %12221 = vst [vmem:[#allocation27_spill] sm:$0xff] %v6181_v41  ;;  %v6210_v16 = vshrl.u32 %v832_v48, 5  ;;  %v849_v53 = vshll.u32 %v12033_v15, %v834_v30  ;;  %v850_v56 = vshrl.u32 %v12036_v25, %v6179_v59  ;;  %v745_v50 = vshll.u32 %v6198_v28, 16 }
  0x99   : > { %12222 = vst [vmem:[#allocation28_spill] sm:$0xff] %v6183_v37  ;;  %v12224_v62 = vmov 683565275   ;;  %v12225_v37 = vmov 2475754826   ;;  %v469_v25 = vshll.u32 %v6038_v14, %v6175_v24  ;;  %v470_v33 = vshrl.u32 %v452_v47, %v468_v39  ;;  %v163_v39 = vld [vmem:[%s5701_s24 + $0xb8] sm:$0xff] }
  0x9a   : > { %12223 = vst [vmem:[#allocation29_spill] sm:$0xff] %v6185_v32  ;;  %v6215_v32 = vmul.u32 %v739_v36, %v716_v6  ;;  %v837_v22 = vshll.u32 %v12224_v62, %v834_v30  ;;  %v840_v13 = vshll.u32 %v12225_v37, %v834_v30  ;;  %v838_v41 = vshrl.u32 %v12225_v37, %v6179_v59 }
  0x9b   : > { %v12226_v43 = vmov 2131351028   ;;  %v12227_v15 = vmov 2102212464   ;;  %v326_v36 = vxor.u32 2147483648, %v6191_v17  ;;  %v848_v42 = vor.u32 %v847_v60, %v846_v58 }
  0x9c   : > { %v841_v48 = vshrl.u32 %v12226_v43, %v6179_v59  ;;  %v843_v57 = vshll.u32 %v12226_v43, %v834_v30  ;;  %v844_v11 = vshrl.u32 %v12227_v15, %v6179_v59  ;;  %vm206_vm7 = vcmp.lt.s32.totalorder %v5708_v1, 0 }
  0x9d   : > { %v473_v44 = vadd.s32 127, %v472_v49  ;;  %v12228_v19 = vand.u32 2147483647, %v6012_v29  ;;  %v851_v0 = vor.u32 %v850_v56, %v849_v53  ;;  %vm855_vm9 = vcmp.lt.s32.totalorder %v6210_v16, 4 }
  0x9e   : > { %v613_v30 = vshll.u32 %v6201_v40, 30  ;;  %v725_v45 = vshll.u32 %v6204_v20, 16  ;;  %vm6236_vm10 = vc.u32 %v719_v38, %v723_v27  ;;  %vm6241_vm11 = vc.u32 %v741_v35, %v745_v50 }
  0x9f   : > { %v827_v51 = vand.u32 8388607, %v12228_v19  ;;  %v6245_v24 = vor.u32 %v838_v41, %v837_v22  ;;  %v6247_v19 = vor.u32 %v841_v48, %v840_v13  ;;  %v6249_v53 = vor.u32 %v844_v11, %v843_v57  ;;  %v162_v13 = vld [vmem:[%s5701_s24 + $0xb0] sm:$0xff] }
  0xa0   : > { %v6251_v47 = vadd.s32 %v745_v50, %v741_v35  ;;  %vm852_vm12 = vcmp.lt.s32.totalorder %v6210_v16, 1  ;;  %vm854_vm13 = vcmp.lt.s32.totalorder %v6210_v16, 3  ;;  %v861_v49 = vsel %vm855_vm9, %v848_v42, 920167782 }
  0xa1   : > { %v729_v58 = vadd.s32 %v723_v27, %v719_v38  ;;  %v828_v60 = vor.u32 8388608, %v827_v51  ;;  %v865_v22 = vsel %vm855_vm9, %v851_v0, 1326507024  ;;  %v977_v41 = vand.u32 2139095040, %v6024_v54 }
  0xa2   : > { %v474_v56 = vshll.u32 %v473_v44, 23  ;;  %v6262_v11 = vsub.s32 %v6149_v31, %v613_v30  ;;  %v12233_v57 = vshrl.u32 %v6141_v18, 16  ;;  %v12234_v50 = vshrl.u32 %v6153_v10, 16 }
  0xa3   : > { %v12235_v29 = vmov 0   ;;  %vm853_vm14 = vcmp.lt.s32.totalorder %v6210_v16, 2  ;;  %v860_v0 = vsel %vm852_vm12, %v6245_v24, %v6247_v19  ;;  %v862_v18 = vsel %vm854_vm13, %v6249_v53, %v861_v49  ;;  %v168_v16 = vld [vmem:[%s5701_s24 + $0xe0] sm:$0xff] }
  0xa4   : > { %v722_v35 = vmul.u32 %v12233_v57, %v716_v6  ;;  %v744_v48 = vmul.u32 %v12234_v50, %v716_v6  ;;  %v750_v51 = vsel %vm6241_vm11, 1, %v12235_v29  ;;  %v728_v6 = vsel %vm6236_vm10, 1, %v12235_v29 }
  0xa5   : > { %v12236_v31 = vshll.u32 %v6215_v32, 16  ;;  %v864_v10 = vsel %vm852_vm12, %v6247_v19, %v6249_v53  ;;  %v866_v44 = vsel %vm854_vm13, %v848_v42, %v865_v22  ;;  %v6292_v38 = vmul.f32 0.03141593, %v162_v13  ;;  %v164_v42 = vld [vmem:[%s5701_s24 + $0xc0] sm:$0xff] }
  0xa6   : > { %vm731_vm0 = vc.u32 %v729_v58, %v725_v45  ;;  %v6294_v27 = vshll.u32 %v828_v60, 8  ;;  %v978_v30 = vshrl.u32 %v977_v41, 23  ;;  %v6296_v5 = vmul.f32 0.03141593, %v163_v39 }
  0xa7   : > { %vm753_vm15 = vc.u32 %v6251_v47, %v12236_v31  ;;  %12237 = vst [vmem:[#allocation30_spill] sm:$0xff] %v6292_v38  ;;  %v12239_v14 = vand.u32 2147483647, %v5708_v1  ;;  %v752_v57 = vadd.s32 %v750_v51, %v744_v48  ;;  %v6306_v50 = vsel %vm853_vm14, %v860_v0, %v862_v18 }
  0xa8   : > { %12238 = vst [vmem:[#allocation31_spill] sm:$0xff] %v6296_v5  ;;  %v471_v22 = vor.u32 %v470_v33, %v469_v25  ;;  %v730_v13 = vadd.s32 %v728_v6, %v722_v35  ;;  %v754_v45 = vsel %vm753_vm15, 1, %v12235_v29  ;;  %v6312_v39 = vsel %vm853_vm14, %v864_v10, %v866_v44 }
  0xa9   : > { %vm6300_vm4 = vcmp.le.f32.partialorder %v12239_v14, 0.7853982  ;;  %v327_v58 = vsel %vm206_vm7, %v326_v36, %v6191_v17  ;;  %v475_v60 = vor.u32 4788187, %v474_v56  ;;  %v616_v41 = vsub.s32 0, %v6262_v11 }
  0xaa   : > { %v732_v48 = vsel %vm731_vm0, 1, %v12235_v29  ;;  %vm615_vm5 = vcmp.lt.s32.totalorder %v6262_v11, 0  ;;  %v869_v25 = vand.u32 65535, %v6294_v27  ;;  %v894_v33 = vshrl.u32 %v6306_v50, 16 }
  0xab   : > { %v5343_v35 = vadd.s32 4294967169, %v978_v30  ;;  %v6322_v51 = vmul.f32 0.03141593, %v164_v42  ;;  %v746_v0 = vshrl.u32 %v6198_v28, 16  ;;  %v756_v18 = vadd.s32 %v754_v45, %v752_v57 }
  0xac   : > { %v872_v6 = vshrl.u32 %v6312_v39, 16  ;;  %v6329_v17 = vsel %vm6300_vm4, %v5708_v1, %v327_v58  ;;  %v478_v36 = vcvt.s32.f32 %v471_v22  ;;  %v724_v56 = vshrl.u32 %v6189_v23, 16 }
  0xad   : > { %12242 = vst [vmem:[#allocation32_spill] sm:$0xff] %v6322_v51  ;;  %v734_v31 = vadd.s32 %v732_v48, %v730_v13  ;;  %v476_v10 = vand.u32 2147483647, %v475_v60  ;;  %v617_v44 = vsel %vm615_vm5, %v616_v41, %v6262_v11  ;;  %v682_v30 = vshrl.u32 %v12224_v62, %v6031_v2 }
  0xae   : > { %v703_v28 = vsel %vm701_vm1, %v6089_v46, 2102212464  ;;  %v870_v14 = vshrl.u32 %v6294_v27, 16  ;;  %v893_v57 = vand.u32 65535, %v6306_v50  ;;  %v6340_v42 = vmul.u32 %v894_v33, %v869_v25 }
  0xaf   : > { %v984_v22 = vadd.s32 1, %v5343_v35  ;;  %v748_v23 = vshrl.u32 %v6215_v32, 16  ;;  %v757_v13 = vadd.s32 %v756_v18, %v746_v0  ;;  %v871_v45 = vand.u32 65535, %v6312_v39 }
  0xb0   : > { %v6344_v58 = vmul.u32 %v872_v6, %v869_v25  ;;  %v6348_v2 = vmul.f32 %v6329_v17, %v6329_v17  ;;  %vm360_vm1 = vcmp.lt.s32.totalorder %v5712_v7, 0  ;;  %v726_v46 = vshrl.u32 %v6204_v20, 16 }
  0xb1   : > { %v735_v60 = vadd.s32 %v734_v31, %v724_v56  ;;  %v479_v50 = vmul.f32 %v478_v36, %v476_v10  ;;  %v618_v41 = vclz %v617_v44  ;;  %v702_v48 = vsel %vm698_vm2, %v682_v30, %v6091_v8 }
  0xb2   : > { %v704_v39 = vsel %vm700_vm3, %v6087_v21, %v703_v28  ;;  %v895_v35 = vmul.u32 %v893_v57, %v869_v25  ;;  %v6358_v0 = vmul.u32 %v893_v57, %v870_v14  ;;  %v899_v18 = vshll.u32 %v6340_v42, 16 }
  0xb3   : > { %vm985_vm8 = vcmp.gt.s32.totalorder %v984_v22, 0  ;;  %v758_v51 = vadd.s32 %v757_v13, %v748_v23  ;;  %v873_v20 = vmul.u32 %v871_v45, %v869_v25  ;;  %v6361_v56 = vmul.u32 %v871_v45, %v870_v14 }
  0xb4   : > { %v877_v36 = vshll.u32 %v6344_v58, 16  ;;  %v328_v31 = vsub.s32 4, %v5935_v34  ;;  %v333_v8 = vmul.f32 -0.001358992, %v6348_v2  ;;  %v6366_v10 = vadd.s32 %v735_v60, %v726_v46  ;;  %v165_v46 = vld [vmem:[%s5701_s24 + $0xc8] sm:$0xff] }
  0xb5   : > { %v12243_v21 = vshll.u32 %v6215_v32, 16  ;;  %v340_v30 = vmul.f32 -0.00019511016, %v6348_v2  ;;  %v480_v28 = vxor.u32 2147483648, %v479_v50  ;;  %v5335_v57 = vadd.s32 4294967294, %v618_v41 }
  0xb6   : > { %v986_v25 = vsel %vm985_vm8, %v984_v22, 0  ;;  %v705_v23 = vsel %vm699_vm6, %v702_v48, %v704_v39  ;;  %v12050_v13 = vshll.u32 %v6358_v0, 16  ;;  %vm903_vm2 = vc.u32 %v895_v35, %v899_v18 }
  0xb7   : > { %v6371_v44 = vadd.s32 %v6251_v47, %v12243_v21  ;;  %v6377_v45 = vadd.s32 %v899_v18, %v895_v35  ;;  %v762_v60 = vadd.s32 1, %v758_v51  ;;  %v879_v32 = vshll.u32 %v6361_v56, 16 }
  0xb8   : > { %vm881_vm3 = vc.u32 %v873_v20, %v877_v36  ;;  %v883_v47 = vadd.s32 %v877_v36, %v873_v20  ;;  %v334_v21 = vadd.f32 0.041655596, %v333_v8  ;;  %v898_v41 = vmul.u32 %v894_v33, %v870_v14 }
  0xb9   : > { %vm761_vm10 = vc.u32 %v6366_v10, %v6371_v44  ;;  %v988_v22 = vand.u32 31, %v986_v25  ;;  %v341_v5 = vadd.f32 0.008332121, %v340_v30  ;;  %vm5336_vm11 = vcmp.lt.s32.totalorder %v5335_v57, 0 }
  0xba   : > { %v876_v12 = vmul.u32 %v872_v6, %v870_v14  ;;  %v904_v48 = vsel %vm903_vm2, 1, %v12235_v29  ;;  %v6384_v39 = vmul.f32 0.03141593, %v165_v46  ;;  %v759_v35 = vmul.u32 %v6132_v4, %v705_v23 }
  0xbb   : > { %v882_v18 = vsel %vm881_vm3, 1, %v12235_v29  ;;  %vm907_vm6 = vc.u32 %v6377_v45, %v12050_v13  ;;  %v12245_v20 = vand.u32 2147483647, %v5712_v7  ;;  %v481_v6 = vsel %vm360_vm1, %v480_v28, %v479_v50 }
  0xbc   : > { %12244 = vst [vmem:[#allocation33_spill] sm:$0xff] %v6384_v39  ;;  %v763_v14 = vsel %vm761_vm10, %v762_v60, %v758_v51  ;;  %vm885_vm0 = vc.u32 %v883_v47, %v879_v32  ;;  %v6402_v4 = vsel %vm206_vm7, %v328_v31, %v5935_v34  ;;  %v6404_v36 = vsel %vm5336_vm11, 0, %v5335_v57 }
  0xbd   : > { %vm6393_vm15 = vcmp.le.f32.partialorder %v12245_v20, 0.7853982  ;;  %v906_v8 = vadd.s32 %v904_v48, %v898_v41  ;;  %v6406_v30 = vsub.s32 32, %v988_v22  ;;  %v6409_v23 = vmul.f32 %v334_v21, %v6348_v2 }
  0xbe   : > { %v6412_v46 = vmul.f32 %v341_v5, %v6348_v2  ;;  %v884_v20 = vadd.s32 %v882_v18, %v876_v12  ;;  %v908_v51 = vsel %vm907_vm6, 1, %v12235_v29  ;;  %v6418_v50 = vsel %vm6393_vm15, %v5712_v7, %v481_v6 }
  0xbf   : > { %v606_v34 = vadd.s32 %v6078_v63, %v6073_v52  ;;  %v6422_v31 = vadd.s32 %v763_v14, %v759_v35  ;;  %v886_v28 = vsel %vm885_vm0, 1, %v12235_v29  ;;  %v626_v57 = vsub.s32 4294967266, %v6404_v36 }
  0xc0   : > { %v836_v5 = vshrl.u32 %v12224_v62, %v6179_v59  ;;  %v878_v60 = vshrl.u32 %v6344_v58, 16  ;;  %v12059_v32 = vand.u32 2147483647, %v6024_v54  ;;  %v900_v47 = vshrl.u32 %v6340_v42, 16 }
  0xc1   : > { %v910_v21 = vadd.s32 %v908_v51, %v906_v8  ;;  %v1000_v41 = vshll.u32 %v12227_v15, %v988_v22  ;;  %v12248_v52 = vmov 920167782   ;;  %v888_v12 = vadd.s32 %v886_v28, %v884_v20 }
  0xc2   : > { %v1001_v63 = vshrl.u32 %v12248_v52, %v6406_v30  ;;  %v6434_v48 = vshrl.u32 %v986_v25, 5  ;;  %v1003_v35 = vshll.u32 %v12248_v52, %v988_v22  ;;  %v12249_v18 = vmov 1326507024  }
  0xc3   : > { %v1004_v59 = vshrl.u32 %v12249_v18, %v6406_v30  ;;  %v765_v58 = vadd.s32 536870912, %v6422_v31  ;;  %v857_v42 = vsel %vm855_vm9, %v6249_v53, 2102212464  ;;  %v991_v6 = vshll.u32 %v12224_v62, %v988_v22 }
  0xc4   : > { %v994_v14 = vshll.u32 %v12225_v37, %v988_v22  ;;  %v992_v8 = vshrl.u32 %v12225_v37, %v6406_v30  ;;  %v995_v25 = vshrl.u32 %v12226_v43, %v6406_v30  ;;  %v997_v20 = vshll.u32 %v12226_v43, %v988_v22 }
  0xc5   : > { %v998_v51 = vshrl.u32 %v12227_v15, %v6406_v30  ;;  %v902_v28 = vshrl.u32 %v6358_v0, 16  ;;  %v911_v13 = vadd.s32 %v910_v21, %v900_v47  ;;  %v981_v53 = vand.u32 8388607, %v12059_v32 }
  0xc6   : > { %v1002_v39 = vor.u32 %v1001_v63, %v1000_v41  ;;  %v880_v38 = vshrl.u32 %v6361_v56, 16  ;;  %v889_v1 = vadd.s32 %v888_v12, %v878_v60  ;;  %v1005_v55 = vor.u32 %v1004_v59, %v1003_v35  ;;  %v167_v59 = vld [vmem:[%s5701_s24 + $0xd8] sm:$0xff] }
  0xc7   : > { %vm1009_vm7 = vcmp.lt.s32.totalorder %v6434_v48, 4  ;;  %v622_v37 = vsub.s32 32, %v6404_v36  ;;  %v627_v22 = vadd.s32 127, %v626_v57  ;;  %v856_v43 = vsel %vm852_vm12, %v836_v5, %v6245_v24 }
  0xc8   : > { %v858_v47 = vsel %vm854_vm13, %v6247_v19, %v857_v42  ;;  %v6464_v21 = vshrl.u32 %v765_v58, 30  ;;  %v6466_v56 = vor.u32 %v992_v8, %v991_v6  ;;  %v6468_v60 = vor.u32 %v995_v25, %v994_v14  ;;  %v169_v8 = vld [vmem:[%s5701_s24 + $0xe8] sm:$0xff] }
  0xc9   : > { %v6470_v41 = vor.u32 %v998_v51, %v997_v20  ;;  %v912_v63 = vadd.s32 %v911_v13, %v902_v28  ;;  %vm1006_vm9 = vcmp.lt.s32.totalorder %v6434_v48, 1  ;;  %vm1008_vm5 = vcmp.lt.s32.totalorder %v6434_v48, 3  ;;  %v166_v13 = vld [vmem:[%s5701_s24 + $0xd0] sm:$0xff] }
  0xca   : > { %v1015_v24 = vsel %vm1009_vm7, %v1002_v39, 920167782  ;;  %v6476_v57 = vadd.s32 %v889_v1, %v880_v38  ;;  %v12250_v19 = vshll.u32 %v6358_v0, 16  ;;  %v982_v12 = vor.u32 8388608, %v981_v53  ;;  %v170_v28 = vld [vmem:[%s5701_s24 + $0xf0] sm:$0xff] }
  0xcb   : > { %v1019_v35 = vsel %vm1009_vm7, %v1005_v55, 1326507024  ;;  %v6489_v58 = vmul.f32 %v6418_v50, %v6418_v50  ;;  %v623_v1 = vshll.u32 %v6262_v11, %v6404_v36  ;;  %v624_v38 = vshrl.u32 %v606_v34, %v622_v37 }
  0xcc   : > { %v6481_v5 = vadd.s32 %v6377_v45, %v12250_v19  ;;  %v628_v0 = vshll.u32 %v627_v22, 23  ;;  %v859_v45 = vsel %vm853_vm14, %v856_v43, %v858_v47  ;;  %vm1007_vm12 = vcmp.lt.s32.totalorder %v6434_v48, 2 }
  0xcd   : > { %v1014_v55 = vsel %vm1006_vm9, %v6466_v56, %v6468_v60  ;;  %v1016_v42 = vsel %vm1008_vm5, %v6470_v41, %v1015_v24  ;;  %v767_v11 = vshll.u32 %v6464_v21, 30  ;;  %v916_v36 = vadd.s32 1, %v912_v63 }
  0xce   : > { %v1018_v43 = vsel %vm1006_vm9, %v6468_v60, %v6470_v41  ;;  %v1020_v37 = vsel %vm1008_vm5, %v1002_v39, %v1019_v35  ;;  %v6511_v34 = vmul.f32 0.03141593, %v166_v13  ;;  %v6513_v6 = vmul.f32 0.03141593, %v167_v59 }
  0xcf   : > { %vm915_vm13 = vc.u32 %v6476_v57, %v6481_v5  ;;  %v6517_v14 = vshll.u32 %v982_v12, 8  ;;  %v331_v25 = vsel %vm6300_vm4, 0, %v6402_v4  ;;  %v336_v20 = vadd.f32 -0.4999988, %v6409_v23 }
  0xd0   : > { %12251 = vst [vmem:[#allocation34_spill] sm:$0xff] %v6511_v34  ;;  %v343_v51 = vadd.f32 -0.16666654, %v6412_v46  ;;  %v6527_v39 = vsel %vm1007_vm12, %v1014_v55, %v1016_v42  ;;  %v494_v53 = vmul.f32 -0.00019511016, %v6489_v58  ;;  %v625_v22 = vor.u32 %v624_v38, %v623_v1  ;;  %v171_v38 = vld [vmem:[%s5701_s24 + $0xf8] sm:$0xff] }
  0xd1   : > { %12252 = vst [vmem:[#allocation35_spill] sm:$0xff] %v6513_v6  ;;  %v913_v47 = vmul.u32 %v6294_v27, %v859_v45  ;;  %v6534_v24 = vsel %vm1007_vm12, %v1018_v43, %v1020_v37  ;;  %v629_v49 = vor.u32 4788187, %v628_v0  ;;  %v6537_v4 = vsub.s32 %v6422_v31, %v767_v11 }
  0xd2   : > { %v917_v23 = vsel %vm915_vm13, %v916_v36, %v912_v63  ;;  %v1131_v46 = vand.u32 2139095040, %v6033_v3  ;;  %v6540_v19 = vmul.f32 0.03141593, %v168_v16  ;;  %v6542_v12 = vmul.f32 0.03141593, %v169_v8 }
  0xd3   : > { %v1023_v35 = vand.u32 65535, %v6517_v14  ;;  %v1048_v13 = vshrl.u32 %v6527_v39, 16  ;;  %v6546_v27 = vmul.f32 0.03141593, %v170_v28  ;;  %v344_v59 = vmul.f32 %v343_v51, %v6348_v2 }
  0xd4   : > { %12253 = vst [vmem:[#allocation36_spill] sm:$0xff] %v6540_v19  ;;  %v6549_v1 = vand.u32 3, %v331_v25  ;;  %v1026_v31 = vshrl.u32 %v6534_v24, 16  ;;  %v337_v63 = vmul.f32 %v336_v20, %v6348_v2  ;;  %v487_v0 = vmul.f32 -0.001358992, %v6489_v58 }
  0xd5   : > { %12254 = vst [vmem:[#allocation37_spill] sm:$0xff] %v6542_v12  ;;  %v495_v45 = vadd.f32 0.008332121, %v494_v53  ;;  %v6555_v55 = vadd.s32 %v917_v23, %v913_v47  ;;  %v630_v42 = vand.u32 2147483647, %v629_v49  ;;  %v632_v11 = vcvt.s32.f32 %v625_v22 }
  0xd6   : > { %12255 = vst [vmem:[#allocation38_spill] sm:$0xff] %v6546_v27  ;;  %v770_v36 = vsub.s32 0, %v6537_v4  ;;  %v1132_v43 = vshrl.u32 %v1131_v46, 23  ;;  %vm769_vm14 = vcmp.lt.s32.totalorder %v6537_v4, 0  ;;  %v1024_v37 = vshrl.u32 %v6517_v14, 16 }
  0xd7   : > { %v1047_v16 = vand.u32 65535, %v6527_v39  ;;  %v6561_v8 = vmul.u32 %v1048_v13, %v1023_v35  ;;  %v6563_v25 = vmul.f32 0.03141593, %v171_v38  ;;  %v345_v2 = vadd.f32 1.0, %v344_v59 }
  0xd8   : > { %v1025_v20 = vand.u32 65535, %v6534_v24  ;;  %v6566_v51 = vmul.u32 %v1026_v31, %v1023_v35  ;;  %v338_v28 = vadd.f32 1.0, %v337_v63  ;;  %vm350_vm4 = vcmp.eq.s32.totalorder %v6549_v1, 0 }
  0xd9   : > { %12256 = vst [vmem:[#allocation39_spill] sm:$0xff] %v6563_v25  ;;  %vm353_vm8 = vcmp.eq.s32.totalorder %v6549_v1, 2  ;;  %vm514_vm2 = vcmp.lt.s32.totalorder %v5779_v61, 0  ;;  %v919_v53 = vadd.s32 536870912, %v6555_v55  ;;  %v488_v22 = vadd.f32 0.041655596, %v487_v0 }
  0xda   : > { %v496_v39 = vmul.f32 %v495_v45, %v6489_v58  ;;  %v771_v47 = vsel %vm769_vm14, %v770_v36, %v6537_v4  ;;  %v5346_v49 = vadd.s32 4294967169, %v1132_v43  ;;  %v633_v23 = vmul.f32 %v632_v11, %v630_v42 }
  0xdb   : > { %v1049_v46 = vmul.u32 %v1047_v16, %v1023_v35  ;;  %v6574_v24 = vmul.u32 %v1047_v16, %v1024_v37  ;;  %v1053_v59 = vshll.u32 %v6561_v8, 16  ;;  %v346_v38 = vmul.f32 %v345_v2, %v6329_v17 }
  0xdc   : > { %v1027_v63 = vmul.u32 %v1025_v20, %v1023_v35  ;;  %v6578_v32 = vmul.u32 %v1025_v20, %v1024_v37  ;;  %v1031_v25 = vshll.u32 %v6566_v51, 16  ;;  %vm349_vm3 = vcmp.lt.s32.totalorder %v6549_v1, 2 }
  0xdd   : > { %v482_v0 = vsub.s32 4, %v6010_v26  ;;  %v12257_v45 = vand.u32 2147483647, %v5779_v61  ;;  %v772_v11 = vclz %v771_v47  ;;  %v6589_v36 = vshrl.u32 %v919_v53, 30 }
  0xde   : > { %v354_v43 = vxor.u32 2147483648, %v338_v28  ;;  %v489_v17 = vmul.f32 %v488_v22, %v6489_v58  ;;  %v497_v35 = vadd.f32 -0.16666654, %v496_v39  ;;  %v1138_v16 = vadd.s32 1, %v5346_v49 }
  0xdf   : > { %vm6585_vm10 = vcmp.le.f32.partialorder %v12257_v45, 0.7853982  ;;  %v634_v2 = vxor.u32 2147483648, %v633_v23  ;;  %vm1057_vm11 = vc.u32 %v1049_v46, %v1053_v59  ;;  %v6593_v27 = vadd.s32 %v1053_v59, %v1049_v46 }
  0xe0   : > { %v351_v12 = vxor.u32 2147483648, %v346_v38  ;;  %v1033_v45 = vshll.u32 %v6578_v32, 16  ;;  %vm1035_vm6 = vc.u32 %v1027_v63, %v1031_v25  ;;  %v1037_v19 = vadd.s32 %v1031_v25, %v1027_v63 }
  0xe1   : > { %v483_v53 = vsel %vm360_vm1, %v482_v0, %v6010_v26  ;;  %v5338_v47 = vadd.s32 4294967294, %v772_v11  ;;  %v921_v22 = vshll.u32 %v6589_v36, 30  ;;  %v1052_v39 = vmul.u32 %v1048_v13, %v1024_v37 }
  0xe2   : > { %v490_v49 = vadd.f32 -0.4999988, %v489_v17  ;;  %v1030_v6 = vmul.u32 %v1026_v31, %v1024_v37  ;;  %v1058_v20 = vsel %vm1057_vm11, 1, %v12235_v29  ;;  %vm1139_vm0 = vcmp.gt.s32.totalorder %v1138_v16, 0 }
  0xe3   : > { %v498_v46 = vmul.f32 %v497_v35, %v6489_v58  ;;  %v635_v59 = vsel %vm514_vm2, %v634_v2, %v633_v23  ;;  %v1036_v25 = vsel %vm1035_vm6, 1, %v12235_v29  ;;  %v12260_v63 = vshll.u32 %v6574_v24, 16 }
  0xe4   : > { %v352_v26 = vsel %vm350_vm4, %v338_v28, %v351_v12  ;;  %v355_v13 = vsel %vm353_vm8, %v354_v43, %v346_v38  ;;  %v485_v31 = vsel %vm6393_vm15, 0, %v483_v53  ;;  %vm1039_vm13 = vc.u32 %v1037_v19, %v1033_v45 }
  0xe5   : > { %vm1061_vm1 = vc.u32 %v6593_v27, %v12260_v63  ;;  %vm5339_vm14 = vcmp.lt.s32.totalorder %v5338_v47, 0  ;;  %v6615_v37 = vsub.s32 %v6555_v55, %v921_v22  ;;  %v1060_v23 = vadd.s32 %v1058_v20, %v1052_v39 }
  0xe6   : > { %v1140_v0 = vsel %vm1139_vm0, %v1138_v16, 0  ;;  %v6620_v11 = vsel %vm6585_vm10, %v5779_v61, %v635_v59  ;;  %v1038_v17 = vadd.s32 %v1036_v25, %v1030_v6  ;;  %v1062_v12 = vsel %vm1061_vm1, 1, %v12235_v29 }
  0xe7   : > { %v1285_v28 = vand.u32 2139095040, %v6035_v9  ;;  %v491_v33 = vmul.f32 %v490_v49, %v6489_v58  ;;  %v499_v38 = vadd.f32 1.0, %v498_v46  ;;  %v6625_v19 = vand.u32 3, %v485_v31 }
  0xe8   : > { %v1040_v55 = vsel %vm1039_vm13, 1, %v12235_v29  ;;  %v6630_v43 = vsel %vm349_vm3, %v352_v26, %v355_v13  ;;  %v636_v35 = vsub.s32 4, %v6201_v40  ;;  %v6633_v16 = vsel %vm5339_vm14, 0, %v5338_v47 }
  0xe9   : > { %12261 = vst [vmem:[#allocation40_spill] sm:$0xff] %v6630_v43  ;;  %v1142_v6 = vand.u32 31, %v1140_v0  ;;  %v6637_v2 = vmul.f32 %v6620_v11, %v6620_v11  ;;  %v924_v58 = vsub.s32 0, %v6615_v37  ;;  %v1054_v20 = vshrl.u32 %v6561_v8, 16 }
  0xea   : > { %v1064_v45 = vadd.s32 %v1062_v12, %v1060_v23  ;;  %vm923_vm15 = vcmp.lt.s32.totalorder %v6615_v37, 0  ;;  %v1032_v1 = vshrl.u32 %v6566_v51, 16  ;;  %v1042_v53 = vadd.s32 %v1040_v55, %v1038_v17 }
  0xeb   : > { %v1286_v22 = vshrl.u32 %v1285_v28, 23  ;;  %v6643_v39 = vadd.f32 1.0, %v491_v33  ;;  %v6646_v47 = vmul.f32 %v499_v38, %v6418_v50  ;;  %v780_v49 = vsub.s32 4294967266, %v6633_v16 }
  0xec   : > { %v990_v46 = vshrl.u32 %v12224_v62, %v6406_v30  ;;  %v6652_v59 = vmul.f32 -0.001358992, %v6637_v2  ;;  %v760_v8 = vadd.s32 %v6371_v44, %v6366_v10  ;;  %v1011_v51 = vsel %vm1009_vm7, %v6470_v41, 2102212464 }
  0xed   : > { %v6659_v25 = vsub.s32 32, %v1142_v6  ;;  %v648_v50 = vmul.f32 -0.00019511016, %v6637_v2  ;;  %v925_v63 = vsel %vm923_vm15, %v924_v58, %v6615_v37  ;;  %v1056_v26 = vshrl.u32 %v6574_v24, 16 }
  0xee   : > { %v1065_v13 = vadd.s32 %v1064_v45, %v1054_v20  ;;  %v776_v30 = vsub.s32 32, %v6633_v16  ;;  %v1034_v31 = vshrl.u32 %v6578_v32, 16  ;;  %v1043_v23 = vadd.s32 %v1042_v53, %v1032_v1 }
  0xef   : > { %v5349_v17 = vadd.s32 4294967169, %v1286_v22  ;;  %v781_v10 = vadd.s32 127, %v780_v49  ;;  %v1010_v44 = vsel %vm1006_vm9, %v990_v46, %v6466_v56  ;;  %v1012_v41 = vsel %vm1008_vm5, %v6468_v60, %v1011_v51 }
  0xf0   : > { %v12066_v12 = vand.u32 2147483647, %v6033_v3  ;;  %v926_v28 = vclz %v925_v63  ;;  %v12262_v33 = vshll.u32 %v6574_v24, 16  ;;  %v1154_v32 = vshll.u32 %v12227_v15, %v1142_v6 }
  0xf1   : > { %v1155_v55 = vshrl.u32 %v12248_v52, %v6659_v25  ;;  %v1066_v58 = vadd.s32 %v1065_v13, %v1056_v26  ;;  %v6681_v20 = vshrl.u32 %v1140_v0, 5  ;;  %v1157_v56 = vshll.u32 %v12248_v52, %v1142_v6 }
  0xf2   : > { %v6676_v38 = vadd.s32 %v6593_v27, %v12262_v33  ;;  %v1158_v60 = vshrl.u32 %v12249_v18, %v6659_v25  ;;  %v6686_v45 = vadd.s32 %v1043_v23, %v1034_v31  ;;  %v1145_v24 = vshll.u32 %v12224_v62, %v1142_v6 }
  0xf3   : > { %v12263_v1 = vmov 2475754826   ;;  %v1292_v53 = vadd.s32 1, %v5349_v17  ;;  %v12264_v49 = vmov 2131351028   ;;  %v1152_v51 = vshrl.u32 %v12227_v15, %v6659_v25 }
  0xf4   : > { %v1148_v27 = vshll.u32 %v12263_v1, %v1142_v6  ;;  %v1146_v22 = vshrl.u32 %v12263_v1, %v6659_v25  ;;  %v1149_v46 = vshrl.u32 %v12264_v49, %v6659_v25  ;;  %v1151_v0 = vshll.u32 %v12264_v49, %v1142_v6 }
  0xf5   : > { %v649_v63 = vadd.f32 0.008332121, %v648_v50  ;;  %v777_v26 = vshll.u32 %v6537_v4, %v6633_v16  ;;  %v1013_v13 = vsel %vm1007_vm12, %v1010_v44, %v1012_v41  ;;  %v1156_v31 = vor.u32 %v1155_v55, %v1154_v32 }
  0xf6   : > { %vm507_vm7 = vcmp.eq.s32.totalorder %v6625_v19, 2  ;;  %v1070_v23 = vadd.s32 1, %v1066_v58  ;;  %v1135_v17 = vand.u32 8388607, %v12066_v12  ;;  %v1159_v33 = vor.u32 %v1158_v60, %v1157_v56 }
  0xf7   : > { %vm1163_vm9 = vcmp.lt.s32.totalorder %v6681_v20, 4  ;;  %vm504_vm5 = vcmp.eq.s32.totalorder %v6625_v19, 0  ;;  %v778_v6 = vshrl.u32 %v760_v8, %v776_v30  ;;  %v782_v50 = vshll.u32 %v781_v10, 23 }
  0xf8   : > { %vm1069_vm4 = vc.u32 %v6686_v45, %v6676_v38  ;;  %vm1293_vm8 = vcmp.gt.s32.totalorder %v1292_v53, 0  ;;  %v5341_v48 = vadd.s32 4294967294, %v926_v28  ;;  %v6708_v4 = vor.u32 %v1146_v22, %v1145_v24 }
  0xf9   : > { %v6710_v16 = vor.u32 %v1149_v46, %v1148_v27  ;;  %v6712_v44 = vor.u32 %v1152_v51, %v1151_v0  ;;  %v1067_v41 = vmul.u32 %v6517_v14, %v1013_v13  ;;  %vm1160_vm12 = vcmp.lt.s32.totalorder %v6681_v20, 1 }
  0xfa   : > { %vm1162_vm3 = vcmp.lt.s32.totalorder %v6681_v20, 3  ;;  %v1169_v8 = vsel %vm1163_vm9, %v1156_v31, 920167782  ;;  %v1071_v30 = vsel %vm1069_vm4, %v1070_v23, %v1066_v58  ;;  %v1136_v10 = vor.u32 8388608, %v1135_v17 }
  0xfb   : > { %v1173_v28 = vsel %vm1163_vm9, %v1159_v33, 1326507024  ;;  %v1294_v32 = vsel %vm1293_vm8, %v1292_v53, 0  ;;  %v508_v55 = vxor.u32 2147483648, %v6643_v39  ;;  %v6727_v14 = vsel %vm514_vm2, %v636_v35, %v6201_v40 }
  0xfc   : > { %v779_v56 = vor.u32 %v778_v6, %v777_v26  ;;  %v783_v60 = vor.u32 4788187, %v782_v50  ;;  %vm5342_vm11 = vcmp.lt.s32.totalorder %v5341_v48, 0  ;;  %vm1161_vm6 = vcmp.lt.s32.totalorder %v6681_v20, 2 }
  0xfd   : > { %v1168_v58 = vsel %vm1160_vm12, %v6708_v4, %v6710_v16  ;;  %v1170_v24 = vsel %vm1162_vm3, %v6712_v44, %v1169_v8  ;;  %v6737_v27 = vadd.s32 %v1071_v30, %v1067_v41  ;;  %v1172_v40 = vsel %vm1160_vm12, %v6710_v16, %v6712_v44 }
  0xfe   : > { %v1174_v35 = vsel %vm1162_vm3, %v1156_v31, %v1173_v28  ;;  %v1296_v53 = vand.u32 31, %v1294_v32  ;;  %v505_v22 = vxor.u32 2147483648, %v6646_v47  ;;  %v642_v46 = vadd.f32 0.041655596, %v6652_v59 }
  0xff   : > { %v650_v0 = vmul.f32 %v649_v63, %v6637_v2  ;;  %v6748_v51 = vshll.u32 %v1136_v10, 8  ;;  %v784_v26 = vand.u32 2147483647, %v783_v60  ;;  %v786_v13 = vcvt.s32.f32 %v779_v56 }
 0x100   : > { %v929_v23 = vsel %vm5342_vm11, 0, %v5341_v48  ;;  %v6752_v17 = vsel %vm1161_vm6, %v1168_v58, %v1170_v24  ;;  %v914_v33 = vadd.s32 %v6481_v5, %v6476_v57  ;;  %v6758_v6 = vsel %vm1161_vm6, %v1172_v40, %v1174_v35 }
 0x101   : > { %v930_v31 = vsub.s32 32, %v929_v23  ;;  %v12065_v59 = vand.u32 2147483647, %v6035_v9  ;;  %v6764_v63 = vsel %vm507_vm7, %v508_v55, %v6646_v47  ;;  %v1073_v48 = vadd.s32 536870912, %v6737_v27 }
 0x102   : > { %v6770_v41 = vsub.s32 32, %v1296_v53  ;;  %v6775_v57 = vsel %vm504_vm5, %v6643_v39, %v505_v22  ;;  %v6778_v5 = vmul.f32 %v642_v46, %v6637_v2  ;;  %v1177_v8 = vand.u32 65535, %v6748_v51 }
 0x103   : > { %v1202_v47 = vshrl.u32 %v6752_v17, 16  ;;  %v6782_v30 = vadd.f32 -0.16666654, %v650_v0  ;;  %v6784_v10 = vmul.f32 %v786_v13, %v784_v26  ;;  %v931_v28 = vshll.u32 %v6615_v37, %v929_v23 }
 0x104   : > { %v1180_v55 = vshrl.u32 %v6758_v6, 16  ;;  %v932_v56 = vshrl.u32 %v914_v33, %v930_v31  ;;  %v934_v60 = vsub.s32 4294967266, %v929_v23  ;;  %v1178_v39 = vshrl.u32 %v6748_v51, 16 }
 0x105   : > { %v1289_v58 = vand.u32 8388607, %v12065_v59  ;;  %v6791_v24 = vshrl.u32 %v1073_v48, 30  ;;  %v1201_v40 = vand.u32 65535, %v6752_v17  ;;  %v1308_v35 = vshll.u32 %v12227_v15, %v1296_v53 }
 0x106   : > { %v1309_v22 = vshrl.u32 %v12248_v52, %v6770_v41  ;;  %v6797_v46 = vmul.u32 %v1202_v47, %v1177_v8  ;;  %v6799_v37 = vshrl.u32 %v1294_v32, 5  ;;  %v1311_v0 = vshll.u32 %v12248_v52, %v1296_v53 }
 0x107   : > { %12265 = vst [vmem:[#allocation41_spill] sm:$0xff] %v6791_v24  ;;  %v1312_v26 = vshrl.u32 %v12249_v18, %v6770_v41  ;;  %v1179_v13 = vand.u32 65535, %v6758_v6  ;;  %v6805_v23 = vmul.u32 %v1180_v55, %v1177_v8  ;;  %v1299_v17 = vshll.u32 %v12224_v62, %v1296_v53 }
 0x108   : > { %v1302_v33 = vshll.u32 %v12263_v1, %v1296_v53  ;;  %v1300_v31 = vshrl.u32 %v12263_v1, %v6770_v41  ;;  %v1303_v32 = vshrl.u32 %v12264_v49, %v6770_v41  ;;  %v1305_v48 = vshll.u32 %v12264_v49, %v1296_v53 }
 0x109   : > { %v1306_v59 = vshrl.u32 %v12227_v15, %v6770_v41  ;;  %v935_v12 = vadd.s32 127, %v934_v60  ;;  %v1075_v6 = vshll.u32 %v6791_v24, 30  ;;  %v1203_v50 = vmul.u32 %v1201_v40, %v1177_v8 }
 0x10a   : > { %v1310_v34 = vor.u32 %v1309_v22, %v1308_v35  ;;  %vm503_vm2 = vcmp.lt.s32.totalorder %v6625_v19, 2  ;;  %v6818_v61 = vmul.u32 %v1201_v40, %v1178_v39  ;;  %v1207_v9 = vshll.u32 %v6797_v46, 16  ;;  %v12266_v40 = vld [vmem:[#allocation11_spill] sm:$0xff] }
 0x10b   : > { %v1313_v3 = vor.u32 %v1312_v26, %v1311_v0  ;;  %vm1317_vm0 = vcmp.lt.s32.totalorder %v6799_v37, 4  ;;  %v6822_v43 = vor.u32 %v932_v56, %v931_v28  ;;  %v1181_v53 = vmul.u32 %v1179_v13, %v1177_v8 }
 0x10c   : > { %v6824_v7 = vmul.u32 %v1179_v13, %v1178_v39  ;;  %v1185_v60 = vshll.u32 %v6805_v23, 16  ;;  %v1290_v54 = vor.u32 8388608, %v1289_v58  ;;  %v6827_v24 = vor.u32 %v1300_v31, %v1299_v17 }
 0x10d   : > { %v6829_v35 = vor.u32 %v1303_v32, %v1302_v33  ;;  %v6831_v22 = vor.u32 %v1306_v59, %v1305_v48  ;;  %vm668_vm1 = vcmp.lt.s32.totalorder %v12266_v40, 0  ;;  %v6835_v0 = vsub.s32 %v6737_v27, %v1075_v6 }
 0x10e   : > { %vm1314_vm13 = vcmp.lt.s32.totalorder %v6799_v37, 1  ;;  %vm1316_vm14 = vcmp.lt.s32.totalorder %v6799_v37, 3  ;;  %v1323_v8 = vsel %vm1317_vm0, %v1310_v34, 920167782  ;;  %v12080_v28 = vshll.u32 %v6818_v61, 16 }
 0x10f   : > { %vm1211_vm15 = vc.u32 %v1203_v50, %v1207_v9  ;;  %v6842_v56 = vadd.s32 %v1207_v9, %v1203_v50  ;;  %v1327_v59 = vsel %vm1317_vm0, %v1313_v3, 1326507024  ;;  %v936_v58 = vshll.u32 %v935_v12, 23 }
 0x110   : > { %v1187_v26 = vshll.u32 %v6824_v7, 16  ;;  %vm1189_vm7 = vc.u32 %v1181_v53, %v1185_v60  ;;  %v1191_v27 = vadd.s32 %v1185_v60, %v1181_v53  ;;  %v12267_v13 = vand.u32 2147483647, %v12266_v40 }
 0x111   : > { %v1206_v33 = vmul.u32 %v1202_v47, %v1178_v39  ;;  %vm1315_vm4 = vcmp.lt.s32.totalorder %v6799_v37, 2  ;;  %v1322_v9 = vsel %vm1314_vm13, %v6827_v24, %v6829_v35  ;;  %v1324_v3 = vsel %vm1316_vm14, %v6831_v22, %v1323_v8 }
 0x112   : > { %vm6849_vm5 = vcmp.le.f32.partialorder %v12267_v13, 0.7853982  ;;  %v1184_v12 = vmul.u32 %v1180_v55, %v1178_v39  ;;  %v1212_v50 = vsel %vm1211_vm15, 1, %v12235_v29  ;;  %v1326_v31 = vsel %vm1314_vm13, %v6829_v35, %v6831_v22 }
 0x113   : > { %v1328_v47 = vsel %vm1316_vm14, %v1310_v34, %v1327_v59  ;;  %v1078_v32 = vsub.s32 0, %v6835_v0  ;;  %v1190_v48 = vsel %vm1189_vm7, 1, %v12235_v29  ;;  %vm1215_vm8 = vc.u32 %v6842_v56, %v12080_v28 }
 0x114   : > { %v6873_v6 = vshll.u32 %v1290_v54, 8  ;;  %v937_v55 = vor.u32 4788187, %v936_v58  ;;  %vm1077_vm11 = vcmp.lt.s32.totalorder %v6835_v0, 0  ;;  %vm1193_vm15 = vc.u32 %v1191_v27, %v1187_v26 }
 0x115   : > { %v6878_v39 = vsel %vm1315_vm4, %v1322_v9, %v1324_v3  ;;  %v644_v34 = vadd.f32 -0.4999988, %v6778_v5  ;;  %v788_v53 = vxor.u32 2147483648, %v6784_v10  ;;  %v1214_v60 = vadd.s32 %v1212_v50, %v1206_v33  ;;  %v12273_v50 = vld [vmem:[#allocation12_spill] sm:$0xff] }
 0x116   : > { %12270 = vst [vmem:[#allocation11_spill] sm:$0xff] %v6873_v6  ;;  %v6884_v8 = vsel %vm1315_vm4, %v1326_v31, %v1328_v47  ;;  %v6890_v54 = vsel %vm503_vm2, %v6775_v57, %v6764_v63  ;;  %v652_v59 = vmul.f32 %v6782_v30, %v6637_v2  ;;  %v1192_v58 = vadd.s32 %v1190_v48, %v1184_v12  ;;  %v12274_v48 = vld [vmem:[#allocation16_spill] sm:$0xff] }
 0x117   : > { %12271 = vst [vmem:[#allocation42_spill] sm:$0xff] %v6890_v54  ;;  %v1216_v26 = vsel %vm1215_vm8, 1, %v12235_v29  ;;  %v1079_v5 = vsel %vm1077_vm11, %v1078_v32, %v6835_v0  ;;  %v1194_v27 = vsel %vm1193_vm15, 1, %v12235_v29  ;;  %v1331_v13 = vand.u32 65535, %v6873_v6 }
 0x118   : > { %v1356_v33 = vshrl.u32 %v6878_v39, 16  ;;  %v12272_v19 = vsel %vm6585_vm10, 0, %v6727_v14  ;;  %v938_v57 = vand.u32 2147483647, %v937_v55  ;;  %v940_v30 = vcvt.s32.f32 %v6822_v43 }
 0x119   : > { %v6903_v63 = vand.u32 3, %v12272_v19  ;;  %v1334_v9 = vshrl.u32 %v6884_v8, 16  ;;  %v645_v3 = vmul.f32 %v644_v34, %v6637_v2  ;;  %v789_v12 = vsel %vm668_vm1, %v788_v53, %v6784_v10 }
 0x11a   : > { %vm822_vm2 = vcmp.lt.s32.totalorder %v12273_v50, 0  ;;  %v1208_v31 = vshrl.u32 %v6797_v46, 16  ;;  %v1218_v42 = vadd.s32 %v1216_v26, %v1214_v60  ;;  %v1080_v47 = vclz %v1079_v5 }
 0x11b   : > { %v1186_v14 = vshrl.u32 %v6805_v23, 16  ;;  %v1196_v32 = vadd.s32 %v1194_v27, %v1192_v58  ;;  %v1439_v55 = vand.u32 2139095040, %v12274_v48  ;;  %v653_v43 = vadd.f32 1.0, %v652_v59 }
 0x11c   : > { %v1332_v19 = vshrl.u32 %v6873_v6, 16  ;;  %v1355_v2 = vand.u32 65535, %v6878_v39  ;;  %v6917_v34 = vmul.u32 %v1356_v33, %v1331_v13  ;;  %v6922_v10 = vsel %vm6849_vm5, %v12266_v40, %v789_v12 }
 0x11d   : > { %12275 = vst [vmem:[#allocation43_spill] sm:$0xff] %v6922_v10  ;;  %v941_v46 = vmul.f32 %v940_v30, %v938_v57  ;;  %v1333_v53 = vand.u32 65535, %v6884_v8  ;;  %v6925_v60 = vmul.u32 %v1334_v9, %v1331_v13  ;;  %v1144_v23 = vshrl.u32 %v12224_v62, %v6659_v25 }
 0x11e   : > { %v1165_v59 = vsel %vm1163_vm9, %v6712_v44, 2102212464  ;;  %v1210_v39 = vshrl.u32 %v6818_v61, 16  ;;  %v1219_v58 = vadd.s32 %v1218_v42, %v1208_v31  ;;  %v12276_v26 = vand.u32 2147483647, %v12273_v50 }
 0x11f   : > { %v5344_v27 = vadd.s32 4294967294, %v1080_v47  ;;  %v1188_v8 = vshrl.u32 %v6824_v7, 16  ;;  %v1197_v57 = vadd.s32 %v1196_v32, %v1186_v14  ;;  %v1440_v30 = vshrl.u32 %v1439_v55, 23 }
 0x120   : > { %vm6935_vm10 = vcmp.le.f32.partialorder %v12276_v26, 0.7853982  ;;  %v6942_v25 = vmul.f32 %v6922_v10, %v6922_v10  ;;  %v1357_v12 = vmul.u32 %v1355_v2, %v1331_v13  ;;  %v6944_v44 = vmul.u32 %v1355_v2, %v1332_v19 }
 0x121   : > { %v1361_v31 = vshll.u32 %v6917_v34, 16  ;;  %v942_v42 = vxor.u32 2147483648, %v941_v46  ;;  %v1335_v28 = vmul.u32 %v1333_v53, %v1331_v13  ;;  %v6947_v26 = vmul.u32 %v1333_v53, %v1332_v19 }
 0x122   : > { %v1339_v54 = vshll.u32 %v6925_v60, 16  ;;  %v795_v47 = vmul.f32 -0.001358992, %v6942_v25  ;;  %v1164_v7 = vsel %vm1160_vm12, %v1144_v23, %v6708_v4  ;;  %v1166_v14 = vsel %vm1162_vm3, %v6710_v16, %v1165_v59 }
 0x123   : > { %v1220_v32 = vadd.s32 %v1219_v58, %v1210_v39  ;;  %vm5345_vm9 = vcmp.lt.s32.totalorder %v5344_v27, 0  ;;  %v6957_v55 = vadd.s32 %v1197_v57, %v1188_v8  ;;  %v12279_v13 = vshll.u32 %v6818_v61, 16 }
 0x124   : > { %v5352_v53 = vadd.s32 4294967169, %v1440_v30  ;;  %v802_v10 = vmul.f32 -0.00019511016, %v6942_v25  ;;  %v1363_v6 = vshll.u32 %v6944_v44, 16  ;;  %vm1365_vm7 = vc.u32 %v1357_v12, %v1361_v31 }
 0x125   : > { %v6962_v2 = vadd.s32 %v6842_v56, %v12279_v13  ;;  %v6966_v4 = vadd.s32 %v1361_v31, %v1357_v12  ;;  %v943_v16 = vsel %vm822_vm2, %v942_v42, %v941_v46  ;;  %v1341_v23 = vshll.u32 %v6947_v26, 16 }
 0x126   : > { %vm1343_vm12 = vc.u32 %v1335_v28, %v1339_v54  ;;  %v1345_v59 = vadd.s32 %v1339_v54, %v1335_v28  ;;  %v6971_v39 = vsel %vm5345_vm9, 0, %v5344_v27  ;;  %v1167_v61 = vsel %vm1161_vm6, %v1164_v7, %v1166_v14 }
 0x127   : > { %v1224_v56 = vadd.s32 1, %v1220_v32  ;;  %v1360_v58 = vmul.u32 %v1356_v33, %v1332_v19  ;;  %vm1223_vm3 = vc.u32 %v6957_v55, %v6962_v2  ;;  %v1338_v8 = vmul.u32 %v1334_v9, %v1332_v19 }
 0x128   : > { %v1366_v57 = vsel %vm1365_vm7, 1, %v12235_v29  ;;  %v1446_v30 = vadd.s32 1, %v5352_v53  ;;  %v796_v12 = vadd.f32 0.041655596, %v795_v47  ;;  %v803_v46 = vadd.f32 0.008332121, %v802_v10 }
 0x129   : > { %v1344_v31 = vsel %vm1343_vm12, 1, %v12235_v29  ;;  %vm1369_vm8 = vc.u32 %v6966_v4, %v1363_v6  ;;  %v646_v28 = vadd.f32 1.0, %v645_v3  ;;  %vm661_vm6 = vcmp.eq.s32.totalorder %v6903_v63, 2 }
 0x12a   : > { %v1221_v20 = vmul.u32 %v6748_v51, %v1167_v61  ;;  %vm1347_vm11 = vc.u32 %v1345_v59, %v1341_v23  ;;  %vm658_vm15 = vcmp.eq.s32.totalorder %v6903_v63, 0  ;;  %v6988_v54 = vsel %vm6935_vm10, %v12273_v50, %v943_v16 }
 0x12b   : > { %v1088_v33 = vsub.s32 4294967266, %v6971_v39  ;;  %v1225_v9 = vsel %vm1223_vm3, %v1224_v56, %v1220_v32  ;;  %v1368_v19 = vadd.s32 %v1366_v57, %v1360_v58  ;;  %v654_v10 = vmul.f32 %v653_v43, %v6620_v11 }
 0x12c   : > { %v1346_v27 = vadd.s32 %v1344_v31, %v1338_v8  ;;  %v1370_v3 = vsel %vm1369_vm8, 1, %v12235_v29  ;;  %vm1447_vm9 = vcmp.gt.s32.totalorder %v1446_v30, 0  ;;  %v790_v51 = vsub.s32 4, %v6464_v21 }
 0x12d   : > { %v797_v42 = vmul.f32 %v796_v12, %v6942_v25  ;;  %v804_v47 = vmul.f32 %v803_v46, %v6942_v25  ;;  %v1348_v7 = vsel %vm1347_vm11, 1, %v12235_v29  ;;  %v6999_v14 = vmul.f32 %v6988_v54, %v6988_v54 }
 0x12e   : > { %v1068_v32 = vadd.s32 %v6676_v38, %v6686_v45  ;;  %v1084_v11 = vsub.s32 32, %v6971_v39  ;;  %v7004_v43 = vadd.s32 %v1225_v9, %v1221_v20  ;;  %v1089_v13 = vadd.s32 127, %v1088_v33 }
 0x12f   : > { %v1362_v53 = vshrl.u32 %v6917_v34, 16  ;;  %v1372_v16 = vadd.s32 %v1370_v3, %v1368_v19  ;;  %v1448_v23 = vsel %vm1447_vm9, %v1446_v30, 0  ;;  %v659_v59 = vxor.u32 2147483648, %v654_v10 }
 0x130   : > { %v662_v61 = vxor.u32 2147483648, %v646_v28  ;;  %v1340_v56 = vshrl.u32 %v6925_v60, 16  ;;  %v1350_v58 = vadd.s32 %v1348_v7, %v1346_v27  ;;  %v791_v8 = vsel %vm668_vm1, %v790_v51, %v6464_v21 }
 0x131   : > { %v798_v57 = vadd.f32 -0.4999988, %v797_v42  ;;  %v805_v38 = vadd.f32 -0.16666654, %v804_v47  ;;  %v949_v45 = vmul.f32 -0.001358992, %v6999_v14  ;;  %v1085_v34 = vshll.u32 %v6835_v0, %v6971_v39 }
 0x132   : > { %v956_v12 = vmul.f32 -0.00019511016, %v6999_v14  ;;  %v1227_v30 = vadd.s32 536870912, %v7004_v43  ;;  %v1450_v46 = vand.u32 31, %v1448_v23  ;;  %v1086_v31 = vshrl.u32 %v1068_v32, %v1084_v11 }
 0x133   : > { %v1090_v20 = vshll.u32 %v1089_v13, 23  ;;  %v1364_v60 = vshrl.u32 %v6944_v44, 16  ;;  %v1373_v33 = vadd.s32 %v1372_v16, %v1362_v53  ;;  %v793_v21 = vsel %vm6849_vm5, 0, %v791_v8 }
 0x134   : > { %v1298_v9 = vshrl.u32 %v12224_v62, %v6770_v41  ;;  %v1342_v19 = vshrl.u32 %v6947_v26, 16  ;;  %v1351_v27 = vadd.s32 %v1350_v58, %v1340_v56  ;;  %v7024_v0 = vsel %vm661_vm6, %v662_v61, %v654_v10 }
 0x135   : > { %v799_v39 = vmul.f32 %v798_v57, %v6942_v25  ;;  %v806_v3 = vmul.f32 %v805_v38, %v6942_v25  ;;  %v1319_v51 = vsel %vm1317_vm0, %v6831_v22, 2102212464  ;;  %v7033_v17 = vsel %vm658_vm15, %v646_v28, %v659_v59 }
 0x136   : > { %v950_v41 = vadd.f32 0.041655596, %v949_v45  ;;  %v7035_v42 = vshrl.u32 %v1227_v30, 30  ;;  %v7037_v26 = vsub.s32 32, %v1450_v46  ;;  %v957_v47 = vadd.f32 0.008332121, %v956_v12 }
 0x137   : > { %v1087_v10 = vor.u32 %v1086_v31, %v1085_v34  ;;  %v1091_v7 = vor.u32 4788187, %v1090_v20  ;;  %v1374_v32 = vadd.s32 %v1373_v33, %v1364_v60  ;;  %v1318_v25 = vsel %vm1314_vm13, %v1298_v9, %v6827_v24  ;;  %v12281_v31 = vld [vmem:[#allocation11_spill] sm:$0xff] }
 0x138   : > { %v1320_v22 = vsel %vm1316_vm14, %v6829_v35, %v1319_v51  ;;  %v7045_v11 = vadd.s32 %v1351_v27, %v1342_v19  ;;  %v7050_v28 = vadd.s32 %v6966_v4, %v1363_v6  ;;  %v7052_v13 = vadd.f32 1.0, %v799_v39  ;;  %v12282_v27 = vld [vmem:[#allocation43_spill] sm:$0xff] }
 0x139   : > { %v807_v53 = vadd.f32 1.0, %v806_v3  ;;  %v7054_v16 = vand.u32 3, %v793_v21  ;;  %v944_v59 = vsub.s32 4, %v6589_v36  ;;  %v1229_v24 = vshll.u32 %v7035_v42, 30 }
 0x13a   : > { %v12083_v61 = vand.u32 2147483647, %v12274_v48  ;;  %v1465_v35 = vshll.u32 %v12248_v52, %v1450_v46  ;;  %v1466_v56 = vshrl.u32 %v12249_v18, %v7037_v26  ;;  %v951_v44 = vmul.f32 %v950_v41, %v6999_v14 }
 0x13b   : > { %v1321_v6 = vsel %vm1315_vm4, %v1318_v25, %v1320_v22  ;;  %v1378_v4 = vadd.s32 1, %v1374_v32  ;;  %v7065_v58 = vshrl.u32 %v1448_v23, 5  ;;  %v958_v8 = vmul.f32 %v957_v47, %v6999_v14  ;;  %v12280_v23 = vld [vmem:[#allocation13_spill] sm:$0xff]  ;;  %v12284_v47 = vld [vmem:[#allocation8_spill] sm:$0xff] }
 0x13c   : > { %v1092_v57 = vand.u32 2147483647, %v1091_v7  ;;  %v1094_v38 = vcvt.s32.f32 %v1087_v10  ;;  %vm1377_vm0 = vc.u32 %v7045_v11, %v7050_v28  ;;  %v1456_v45 = vshll.u32 %v12263_v1, %v1450_v46  ;;  %v12285_v10 = vld [vmem:[#allocation9_spill] sm:$0xff] }
 0x13d   : > { %v1457_v12 = vshrl.u32 %v12264_v49, %v7037_v26  ;;  %v1459_v34 = vshll.u32 %v12264_v49, %v1450_v46  ;;  %v1460_v37 = vshrl.u32 %v12227_v15, %v7037_v26  ;;  %vm815_vm1 = vcmp.eq.s32.totalorder %v7054_v16, 2 }
 0x13e   : > { %vm976_vm13 = vcmp.lt.s32.totalorder %v12280_v23, 0  ;;  %v7079_v30 = vsub.s32 %v7004_v43, %v1229_v24  ;;  %v1375_v20 = vmul.u32 %v12281_v31, %v1321_v6  ;;  %v1443_v60 = vand.u32 8388607, %v12083_v61  ;;  %v12283_v43 = vld [vmem:[#allocation17_spill] sm:$0xff] }
 0x13f   : > { %v1467_v33 = vor.u32 %v1466_v56, %v1465_v35  ;;  %v1379_v21 = vsel %vm1377_vm0, %v1378_v4, %v1374_v32  ;;  %v1462_v9 = vshll.u32 %v12227_v15, %v1450_v46  ;;  %v1463_v19 = vshrl.u32 %v12248_v52, %v7037_v26 }
 0x140   : > { %vm1471_vm14 = vcmp.lt.s32.totalorder %v7065_v58, 4  ;;  %v808_v39 = vmul.f32 %v807_v53, %v12282_v27  ;;  %v959_v3 = vadd.f32 -0.16666654, %v958_v8  ;;  %v1095_v51 = vmul.f32 %v1094_v38, %v1092_v57 }
 0x141   : > { %v1593_v41 = vand.u32 2139095040, %v12283_v43  ;;  %vm347_vm5 = vweird.f32 %v12284_v47  ;;  %vm501_vm4 = vweird.f32 %v12285_v10  ;;  %v1453_v7 = vshll.u32 %v12224_v62, %v1450_v46 }
 0x142   : > { %v1454_v32 = vshrl.u32 %v12263_v1, %v7037_v26  ;;  %v7095_v25 = vor.u32 %v1457_v12, %v1456_v45  ;;  %v7097_v22 = vor.u32 %v1460_v37, %v1459_v34  ;;  %vm657_vm7 = vcmp.lt.s32.totalorder %v6903_v63, 2 }
 0x143   : > { %v7100_v53 = vadd.s32 %v1379_v21, %v1375_v20  ;;  %vm1468_vm12 = vcmp.lt.s32.totalorder %v7065_v58, 1  ;;  %vm1470_vm3 = vcmp.lt.s32.totalorder %v7065_v58, 3  ;;  %v1481_v24 = vsel %vm1471_vm14, %v1467_v33, 1326507024 }
 0x144   : > { %vm811_vm8 = vcmp.lt.s32.totalorder %v7054_v16, 2  ;;  %v952_v46 = vadd.f32 -0.4999988, %v951_v44  ;;  %v1232_v35 = vsub.s32 0, %v7079_v30  ;;  %v1444_v56 = vor.u32 8388608, %v1443_v60 }
 0x145   : > { %v1464_v6 = vor.u32 %v1463_v19, %v1462_v9  ;;  %v816_v4 = vxor.u32 2147483648, %v7052_v13  ;;  %v960_v8 = vmul.f32 %v959_v3, %v6999_v14  ;;  %vm1231_vm6 = vcmp.lt.s32.totalorder %v7079_v30, 0 }
 0x146   : > { %v1594_v57 = vshrl.u32 %v1593_v41, 23  ;;  %v1096_v38 = vxor.u32 2147483648, %v1095_v51  ;;  %vm1469_vm11 = vcmp.lt.s32.totalorder %v7065_v58, 2  ;;  %v1480_v45 = vsel %vm1468_vm12, %v7095_v25, %v7097_v22 }
 0x147   : > { %v1482_v44 = vsel %vm1470_vm3, %v1464_v6, %v1481_v24  ;;  %v813_v12 = vxor.u32 2147483648, %v808_v39  ;;  %v945_v34 = vsel %vm822_vm2, %v944_v59, %v6589_v36  ;;  %v1381_v37 = vadd.s32 536870912, %v7100_v53 }
 0x148   : > { %v7122_v31 = vor.u32 %v1454_v32, %v1453_v7  ;;  %v953_v20 = vmul.f32 %v952_v46, %v6999_v14  ;;  %v1233_v60 = vsel %vm1231_vm6, %v1232_v35, %v7079_v30  ;;  %v1477_v33 = vsel %vm1471_vm14, %v1464_v6, 920167782 }
 0x149   : > { %v7128_v21 = vshll.u32 %v1444_v56, 8  ;;  %vm812_vm15 = vcmp.eq.s32.totalorder %v7054_v16, 0  ;;  %v961_v9 = vadd.f32 1.0, %v960_v8  ;;  %v7133_v19 = vsel %vm1469_vm11, %v1480_v45, %v1482_v44  ;;  %v12296_v44 = vld [vmem:[#allocation41_spill] sm:$0xff] }
 0x14a   : > { %v5355_v36 = vadd.s32 4294967169, %v1594_v57  ;;  %v817_v59 = vsel %vm815_vm1, %v816_v4, %v808_v39  ;;  %v947_v14 = vsel %vm6935_vm10, 0, %v945_v34  ;;  %v12286_v27 = vand.u32 2147483647, %v12280_v23  ;;  %v12292_v4 = vld [vmem:[#allocation42_spill] sm:$0xff] }
 0x14b   : > { %v1097_v41 = vsel %vm976_vm13, %v1096_v38, %v1095_v51  ;;  %v1234_v7 = vclz %v1233_v60  ;;  %v7147_v32 = vshrl.u32 %v1381_v37, 30  ;;  %v1476_v39 = vsel %vm1468_vm12, %v7122_v31, %v7095_v25  ;;  %v12290_v51 = vld [vmem:[#allocation40_spill] sm:$0xff] }
 0x14c   : > { %vm7141_vm2 = vcmp.le.f32.partialorder %v12286_v27, 0.7853982  ;;  %v1478_v5 = vsel %vm1470_vm3, %v7097_v22, %v1477_v33  ;;  %v814_v24 = vsel %vm812_vm15, %v7052_v13, %v813_v12  ;;  %v954_v46 = vadd.f32 1.0, %v953_v20 }
 0x14d   : > { %12289 = vst [vmem:[#allocation11_spill] sm:$0xff] %v7147_v32  ;;  %v1485_v35 = vand.u32 65535, %v7128_v21  ;;  %v1488_v56 = vshrl.u32 %v7133_v19, 16  ;;  %v7162_v6 = vsel %vm347_vm5, nan, %v12290_v51  ;;  %v7167_v8 = vsel %vm501_vm4, nan, %v12292_v4 }
 0x14e   : > { %12291 = vst [vmem:[#allocation43_spill] sm:$0xff] %v7162_v6  ;;  %v962_v57 = vmul.f32 %v961_v9, %v6988_v54  ;;  %v1600_v38 = vadd.s32 1, %v5355_v36  ;;  %v7174_v13 = vsel %vm657_vm7, %v7033_v17, %v7024_v0  ;;  %v964_v45 = vand.u32 3, %v947_v14  ;;  %v12297_v9 = vld [vmem:[#allocation18_spill] sm:$0xff] }
 0x14f   : > { %12293 = vst [vmem:[#allocation8_spill] sm:$0xff] %v7167_v8  ;;  %v7179_v47 = vsel %vm7141_vm2, %v12280_v23, %v1097_v41  ;;  %v7183_v10 = vsel %vm1469_vm11, %v1476_v39, %v1478_v5  ;;  %v7187_v54 = vsel %vm811_vm8, %v814_v24, %v817_v59  ;;  %v1098_v12 = vsub.s32 4, %v12296_v44 }
 0x150   : > { %12294 = vst [vmem:[#allocation9_spill] sm:$0xff] %v7174_v13  ;;  %v5347_v34 = vadd.s32 4294967294, %v1234_v7  ;;  %v1383_v63 = vshll.u32 %v7147_v32, 30  ;;  %v970_v0 = vxor.u32 2147483648, %v954_v46  ;;  %v1486_v17 = vshrl.u32 %v7128_v21, 16 }
 0x151   : > { %12295 = vst [vmem:[#allocation40_spill] sm:$0xff] %v7187_v54  ;;  %v1487_v37 = vand.u32 65535, %v7133_v19  ;;  %v7193_v20 = vmul.u32 %v1488_v56, %v1485_v35  ;;  %v967_v60 = vxor.u32 2147483648, %v962_v57  ;;  %v7197_v33 = vmul.f32 %v7179_v47, %v7179_v47 }
 0x152   : > { %v1510_v16 = vshrl.u32 %v7183_v10, 16  ;;  %vm1601_vm10 = vcmp.gt.s32.totalorder %v1600_v38, 0  ;;  %vm965_vm9 = vcmp.lt.s32.totalorder %v964_v45, 2  ;;  %vm966_vm0 = vcmp.eq.s32.totalorder %v964_v45, 0 }
 0x153   : > { %vm969_vm1 = vcmp.eq.s32.totalorder %v964_v45, 2  ;;  %v1747_v36 = vand.u32 2139095040, %v12297_v9  ;;  %v7204_v59 = vsel %vm976_vm13, %v1098_v12, %v12296_v44  ;;  %v1103_v19 = vmul.f32 -0.001358992, %v7197_v33 }
 0x154   : > { %vm5348_vm5 = vcmp.lt.s32.totalorder %v5347_v34, 0  ;;  %v7208_v14 = vsub.s32 %v7100_v53, %v1383_v63  ;;  %v1489_v27 = vmul.u32 %v1487_v37, %v1485_v35  ;;  %v7210_v41 = vmul.u32 %v1487_v37, %v1486_v17 }
 0x155   : > { %v1493_v7 = vshll.u32 %v7193_v20, 16  ;;  %v1602_v39 = vsel %vm1601_vm10, %v1600_v38, 0  ;;  %v968_v5 = vsel %vm966_vm0, %v954_v46, %v967_v60  ;;  %v971_v24 = vsel %vm969_vm1, %v970_v0, %v962_v57 }
 0x156   : > { %v1509_v51 = vand.u32 65535, %v7183_v10  ;;  %v7214_v4 = vmul.u32 %v1510_v16, %v1485_v35  ;;  %v1110_v44 = vmul.f32 -0.00019511016, %v7197_v33  ;;  %v1222_v12 = vadd.s32 %v6962_v2, %v6957_v55 }
 0x157   : > { %v1237_v61 = vsel %vm5348_vm5, 0, %v5347_v34  ;;  %v1748_v53 = vshrl.u32 %v1747_v36, 23  ;;  %v1104_v63 = vadd.f32 0.041655596, %v1103_v19  ;;  %v1386_v37 = vsub.s32 0, %v7208_v14 }
 0x158   : > { %v1238_v8 = vsub.s32 32, %v1237_v61  ;;  %v1604_v6 = vand.u32 31, %v1602_v39  ;;  %vm1385_vm13 = vcmp.lt.s32.totalorder %v7208_v14, 0  ;;  %v1495_v46 = vshll.u32 %v7210_v41, 16 }
 0x159   : > { %vm1497_vm4 = vc.u32 %v1489_v27, %v1493_v7  ;;  %v1499_v57 = vadd.s32 %v1493_v7, %v1489_v27  ;;  %v1242_v38 = vsub.s32 4294967266, %v1237_v61  ;;  %v1511_v10 = vmul.u32 %v1509_v51, %v1485_v35 }
 0x15a   : > { %v7222_v0 = vmul.u32 %v1509_v51, %v1486_v17  ;;  %v1515_v60 = vshll.u32 %v7214_v4, 16  ;;  %v7226_v55 = vsel %vm965_vm9, %v968_v5, %v971_v24  ;;  %v1492_v34 = vmul.u32 %v1488_v56, %v1486_v17 }
 0x15b   : > { %12298 = vst [vmem:[#allocation42_spill] sm:$0xff] %v7226_v55  ;;  %v5358_v36 = vadd.s32 4294967169, %v1748_v53  ;;  %v7231_v19 = vadd.f32 0.008332121, %v1110_v44  ;;  %v1387_v48 = vsel %vm1385_vm13, %v1386_v37, %v7208_v14  ;;  %v1498_v27 = vsel %vm1497_vm4, 1, %v12235_v29 }
 0x15c   : > { %v7235_v35 = vsub.s32 32, %v1604_v6  ;;  %v7238_v7 = vmul.f32 %v1104_v63, %v7197_v33  ;;  %v1239_v45 = vshll.u32 %v7079_v30, %v1237_v61  ;;  %v1240_v5 = vshrl.u32 %v1222_v12, %v1238_v8 }
 0x15d   : > { %vm1501_vm7 = vc.u32 %v1499_v57, %v1495_v46  ;;  %v7241_v24 = vadd.s32 127, %v1242_v38  ;;  %v12087_v56 = vshll.u32 %v7222_v0, 16  ;;  %vm1519_vm8 = vc.u32 %v1511_v10, %v1515_v60 }
 0x15e   : > { %v7244_v51 = vadd.s32 %v1515_v60, %v1511_v10  ;;  %v1388_v44 = vclz %v1387_v48  ;;  %v1500_v53 = vadd.s32 %v1498_v27, %v1492_v34  ;;  %v12091_v37 = vand.u32 2147483647, %v12283_v43 }
 0x15f   : > { %v1754_v2 = vadd.s32 1, %v5358_v36  ;;  %v1502_v32 = vsel %vm1501_vm7, 1, %v12235_v29  ;;  %v1514_v63 = vmul.u32 %v1510_v16, %v1486_v17  ;;  %v1616_v55 = vshll.u32 %v12227_v15, %v1604_v6 }
 0x160   : > { %v1617_v61 = vshrl.u32 %v12248_v52, %v7235_v35  ;;  %v1520_v30 = vsel %vm1519_vm8, 1, %v12235_v29  ;;  %v7252_v8 = vshrl.u32 %v1602_v39, 5  ;;  %v1619_v12 = vshll.u32 %v12248_v52, %v1604_v6 }
 0x161   : > { %v1620_v48 = vshrl.u32 %v12249_v18, %v7235_v35  ;;  %vm1523_vm6 = vc.u32 %v7244_v51, %v12087_v56  ;;  %v1607_v17 = vshll.u32 %v12224_v62, %v1604_v6  ;;  %v1610_v16 = vshll.u32 %v12263_v1, %v1604_v6 }
 0x162   : > { %v1613_v46 = vshll.u32 %v12264_v49, %v1604_v6  ;;  %v1608_v57 = vshrl.u32 %v12263_v1, %v7235_v35  ;;  %v1611_v39 = vshrl.u32 %v12264_v49, %v7235_v35  ;;  %v1614_v38 = vshrl.u32 %v12227_v15, %v7235_v35 }
 0x163   : > { %vm1755_vm15 = vcmp.gt.s32.totalorder %v1754_v2, 0  ;;  %v7269_v10 = vor.u32 %v1240_v5, %v1239_v45  ;;  %v1244_v60 = vshll.u32 %v7241_v24, 23  ;;  %v1522_v34 = vadd.s32 %v1520_v30, %v1514_v63 }
 0x164   : > { %v1618_v36 = vor.u32 %v1617_v61, %v1616_v55  ;;  %v1524_v27 = vsel %vm1523_vm6, 1, %v12235_v29  ;;  %v1597_v6 = vand.u32 8388607, %v12091_v37  ;;  %v1621_v56 = vor.u32 %v1620_v48, %v1619_v12 }
 0x165   : > { %vm1625_vm10 = vcmp.lt.s32.totalorder %v7252_v8, 4  ;;  %v5350_v54 = vadd.s32 4294967294, %v1388_v44  ;;  %v1494_v13 = vshrl.u32 %v7193_v20, 16  ;;  %v1504_v23 = vadd.s32 %v1502_v32, %v1500_v53 }
 0x166   : > { %v1756_v50 = vsel %vm1755_vm15, %v1754_v2, 0  ;;  %v1516_v45 = vshrl.u32 %v7214_v4, 16  ;;  %v7278_v5 = vor.u32 %v1608_v57, %v1607_v17  ;;  %v7280_v24 = vor.u32 %v1611_v39, %v1610_v16 }
 0x167   : > { %v7282_v55 = vor.u32 %v1614_v38, %v1613_v46  ;;  %v1526_v63 = vadd.s32 %v1524_v27, %v1522_v34  ;;  %vm1622_vm9 = vcmp.lt.s32.totalorder %v7252_v8, 1  ;;  %vm1624_vm0 = vcmp.lt.s32.totalorder %v7252_v8, 3 }
 0x168   : > { %v1631_v44 = vsel %vm1625_vm10, %v1618_v36, 920167782  ;;  %v1452_v32 = vshrl.u32 %v12224_v62, %v7037_v26  ;;  %v1598_v20 = vor.u32 8388608, %v1597_v6  ;;  %v1635_v4 = vsel %vm1625_vm10, %v1621_v56, 1326507024 }
 0x169   : > { %v1758_v2 = vand.u32 31, %v1756_v50  ;;  %vm5351_vm1 = vcmp.lt.s32.totalorder %v5350_v54, 0  ;;  %v1473_v53 = vsel %vm1471_vm14, %v7097_v22, 2102212464  ;;  %v1496_v61 = vshrl.u32 %v7210_v41, 16 }
 0x16a   : > { %v1518_v30 = vshrl.u32 %v7222_v0, 16  ;;  %v1505_v12 = vadd.s32 %v1504_v23, %v1494_v13  ;;  %vm1623_vm5 = vcmp.lt.s32.totalorder %v7252_v8, 2  ;;  %v1630_v26 = vsel %vm1622_vm9, %v7278_v5, %v7280_v24 }
 0x16b   : > { %v1632_v56 = vsel %vm1624_vm0, %v7282_v55, %v1631_v44  ;;  %v1527_v48 = vadd.s32 %v1526_v63, %v1516_v45  ;;  %v1634_v22 = vsel %vm1622_vm9, %v7280_v24, %v7282_v55  ;;  %v1636_v23 = vsel %vm1624_vm0, %v1618_v36, %v1635_v4 }
 0x16c   : > { %v12090_v13 = vand.u32 2147483647, %v12297_v9  ;;  %v7313_v41 = vadd.f32 -0.4999988, %v7238_v7  ;;  %v7317_v17 = vmul.f32 %v7231_v19, %v7197_v33  ;;  %v7319_v16 = vshll.u32 %v1598_v20, 8 }
 0x16d   : > { %v7321_v46 = vsub.s32 32, %v1758_v2  ;;  %v7323_v57 = vor.u32 4788187, %v1244_v60  ;;  %v7328_v38 = vadd.s32 %v7050_v28, %v7045_v11  ;;  %v7332_v7 = vsel %vm1623_vm5, %v1630_v26, %v1632_v56 }
 0x16e   : > { %v7335_v34 = vsel %vm5351_vm1, 0, %v5350_v54  ;;  %v1472_v19 = vsel %vm1468_vm12, %v1452_v32, %v7122_v31  ;;  %v1474_v60 = vsel %vm1470_vm3, %v7095_v25, %v1473_v53  ;;  %v7345_v36 = vsel %vm1623_vm5, %v1634_v22, %v1636_v23 }
 0x16f   : > { %v7347_v11 = vadd.s32 %v1505_v12, %v1496_v61  ;;  %v12300_v28 = vshll.u32 %v7222_v0, 16  ;;  %v1528_v54 = vadd.s32 %v1527_v48, %v1518_v30  ;;  %v1751_v6 = vand.u32 8388607, %v12090_v13 }
 0x170   : > { %v1639_v31 = vand.u32 65535, %v7319_v16  ;;  %v1664_v45 = vshrl.u32 %v7332_v7, 16  ;;  %v1770_v25 = vshll.u32 %v12227_v15, %v1758_v2  ;;  %v1771_v63 = vshrl.u32 %v12248_v52, %v7321_v46 }
 0x171   : > { %12299 = vst [vmem:[#allocation41_spill] sm:$0xff] %v7347_v11  ;;  %v7352_v27 = vadd.s32 %v7244_v51, %v12300_v28  ;;  %v1642_v44 = vshrl.u32 %v7345_v36, 16  ;;  %v7362_v32 = vshrl.u32 %v1756_v50, 5  ;;  %v1773_v0 = vshll.u32 %v12248_v52, %v1758_v2 }
 0x172   : > { %v1774_v51 = vshrl.u32 %v12249_v18, %v7321_v46  ;;  %v1640_v20 = vshrl.u32 %v7319_v16, 16  ;;  %v1663_v4 = vand.u32 65535, %v7332_v7  ;;  %v1761_v53 = vshll.u32 %v12224_v62, %v1758_v2 }
 0x173   : > { %12301 = vst [vmem:[#allocation44_spill] sm:$0xff] %v7352_v27  ;;  %v1764_v61 = vshll.u32 %v12263_v1, %v1758_v2  ;;  %v1762_v30 = vshrl.u32 %v12263_v1, %v7321_v46  ;;  %v1765_v50 = vshrl.u32 %v12264_v49, %v7321_v46  ;;  %v1767_v12 = vshll.u32 %v12264_v49, %v1758_v2 }
 0x174   : > { %v1768_v26 = vshrl.u32 %v12227_v15, %v7321_v46  ;;  %v1396_v56 = vsub.s32 4294967266, %v7335_v34  ;;  %v1475_v48 = vsel %vm1469_vm11, %v1472_v19, %v1474_v60  ;;  %v7381_v22 = vmul.u32 %v1664_v45, %v1639_v31 }
 0x175   : > { %v1772_v23 = vor.u32 %v1771_v63, %v1770_v25  ;;  %v1641_v7 = vand.u32 65535, %v7345_v36  ;;  %v7384_v28 = vmul.u32 %v1642_v44, %v1639_v31  ;;  %v1775_v13 = vor.u32 %v1774_v51, %v1773_v0 }
 0x176   : > { %vm1779_vm14 = vcmp.lt.s32.totalorder %v7362_v32, 4  ;;  %vm1531_vm12 = vc.u32 %v7347_v11, %v7352_v27  ;;  %v1532_v2 = vadd.s32 1, %v1528_v54  ;;  %v1665_v37 = vmul.u32 %v1663_v4, %v1639_v31 }
 0x177   : > { %v1752_v39 = vor.u32 8388608, %v1751_v6  ;;  %v7389_v9 = vmul.u32 %v1663_v4, %v1640_v20  ;;  %v7391_v58 = vor.u32 %v1762_v30, %v1761_v53  ;;  %v7393_v19 = vor.u32 %v1765_v50, %v1764_v61 }
 0x178   : > { %v7395_v60 = vor.u32 %v1768_v26, %v1767_v12  ;;  %v1669_v36 = vshll.u32 %v7381_v22, 16  ;;  %vm1776_vm3 = vcmp.lt.s32.totalorder %v7362_v32, 1  ;;  %vm1778_vm11 = vcmp.lt.s32.totalorder %v7362_v32, 3 }
 0x179   : > { %v1785_v25 = vsel %vm1779_vm14, %v1772_v23, 920167782  ;;  %v1643_v63 = vmul.u32 %v1641_v7, %v1639_v31  ;;  %v7402_v0 = vmul.u32 %v1641_v7, %v1640_v20  ;;  %v1647_v6 = vshll.u32 %v7384_v28, 16 }
 0x17a   : > { %v1789_v51 = vsel %vm1779_vm14, %v1775_v13, 1326507024  ;;  %v1392_v4 = vsub.s32 32, %v7335_v34  ;;  %v1397_v53 = vadd.s32 127, %v1396_v56  ;;  %v1529_v61 = vmul.u32 %v7128_v21, %v1475_v48 }
 0x17b   : > { %v1533_v30 = vsel %vm1531_vm12, %v1532_v2, %v1528_v54  ;;  %vm1777_vm13 = vcmp.lt.s32.totalorder %v7362_v32, 2  ;;  %v1784_v31 = vsel %vm1776_vm3, %v7391_v58, %v7393_v19  ;;  %v1786_v13 = vsel %vm1778_vm11, %v7395_v60, %v1785_v25 }
 0x17c   : > { %vm1673_vm4 = vc.u32 %v1665_v37, %v1669_v36  ;;  %v7421_v12 = vadd.s32 %v1669_v36, %v1665_v37  ;;  %v1788_v21 = vsel %vm1776_vm3, %v7393_v19, %v7395_v60  ;;  %v1790_v54 = vsel %vm1778_vm11, %v1772_v23, %v1789_v51 }
 0x17d   : > { %v1649_v26 = vshll.u32 %v7402_v0, 16  ;;  %vm1651_vm7 = vc.u32 %v1643_v63, %v1647_v6  ;;  %v1653_v56 = vadd.s32 %v1647_v6, %v1643_v63  ;;  %v7430_v48 = vshll.u32 %v1752_v39, 8  ;;  %v12303_v39 = vld [vmem:[#allocation14_spill] sm:$0xff] }
 0x17e   : > { %v1246_v7 = vand.u32 2147483647, %v7323_v57  ;;  %v1393_v37 = vshll.u32 %v7208_v14, %v7335_v34  ;;  %v1668_v2 = vmul.u32 %v1664_v45, %v1640_v20  ;;  %v7437_v36 = vsel %vm1777_vm13, %v1784_v31, %v1786_v13 }
 0x17f   : > { %12302 = vst [vmem:[#allocation45_spill] sm:$0xff] %v7430_v48  ;;  %v1394_v25 = vshrl.u32 %v7328_v38, %v1392_v4  ;;  %v1646_v50 = vmul.u32 %v1642_v44, %v1640_v20  ;;  %v1674_v23 = vsel %vm1673_vm4, 1, %v12235_v29  ;;  %v7443_v63 = vsel %vm1777_vm13, %v1788_v21, %v1790_v54  ;;  %v12305_v44 = vld [vmem:[#allocation19_spill] sm:$0xff] }
 0x180   : > { %vm1130_vm8 = vcmp.lt.s32.totalorder %v12303_v39, 0  ;;  %v1398_v57 = vshll.u32 %v1397_v53, 23  ;;  %v7446_v6 = vadd.s32 %v1533_v30, %v1529_v61  ;;  %v1652_v14 = vsel %vm1651_vm7, 1, %v12235_v29 }
 0x181   : > { %v12304_v34 = vshll.u32 %v7389_v9, 16  ;;  %vm1655_vm15 = vc.u32 %v1653_v56, %v1649_v26  ;;  %v1793_v38 = vand.u32 65535, %v7430_v48  ;;  %v1818_v45 = vshrl.u32 %v7437_v36, 16 }
 0x182   : > { %v1901_v20 = vand.u32 2139095040, %v12305_v44  ;;  %v1113_v51 = vadd.f32 -0.16666654, %v7317_v17  ;;  %v12306_v4 = vsel %vm7141_vm2, 0, %v7204_v59  ;;  %v1676_v61 = vadd.s32 %v1674_v23, %v1668_v2 }
 0x183   : > { %vm1677_vm6 = vc.u32 %v7421_v12, %v12304_v34  ;;  %v7460_v53 = vand.u32 3, %v12306_v4  ;;  %v1796_v30 = vshrl.u32 %v7443_v63, 16  ;;  %v12307_v31 = vcvt.s32.f32 %v7269_v10 }
 0x184   : > { %v1395_v21 = vor.u32 %v1394_v25, %v1393_v37  ;;  %v1654_v54 = vadd.s32 %v1652_v14, %v1646_v50  ;;  %v1678_v26 = vsel %vm1677_vm6, 1, %v12235_v29  ;;  %v1107_v56 = vmul.f32 %v7313_v41, %v7197_v33 }
 0x185   : > { %v1249_v13 = vmul.f32 %v12307_v31, %v1246_v7  ;;  %v1399_v17 = vor.u32 4788187, %v1398_v57  ;;  %v1535_v3 = vadd.s32 536870912, %v7446_v6  ;;  %v1656_v59 = vsel %vm1655_vm15, 1, %v12235_v29 }
 0x186   : > { %v12308_v34 = vand.u32 2147483647, %v12303_v39  ;;  %v1794_v10 = vshrl.u32 %v7430_v48, 16  ;;  %v1817_v50 = vand.u32 65535, %v7437_v36  ;;  %v7478_v7 = vmul.u32 %v1818_v45, %v1793_v38 }
 0x187   : > { %v1902_v37 = vshrl.u32 %v1901_v20, 23  ;;  %v1670_v41 = vshrl.u32 %v7381_v22, 16  ;;  %v1680_v25 = vadd.s32 %v1678_v26, %v1676_v61  ;;  %v1795_v23 = vand.u32 65535, %v7443_v63 }
 0x188   : > { %vm7472_vm2 = vcmp.le.f32.partialorder %v12308_v34, 0.7853982  ;;  %v7482_v57 = vmul.u32 %v1796_v30, %v1793_v38  ;;  %v1250_v14 = vxor.u32 2147483648, %v1249_v13  ;;  %v1402_v4 = vcvt.s32.f32 %v1395_v21 }
 0x189   : > { %v1648_v31 = vshrl.u32 %v7384_v28, 16  ;;  %v1658_v34 = vadd.s32 %v1656_v59, %v1654_v54  ;;  %v1400_v43 = vand.u32 2147483647, %v1399_v17  ;;  %v7485_v27 = vshrl.u32 %v1535_v3, 30 }
 0x18a   : > { %v1606_v36 = vshrl.u32 %v12224_v62, %v7235_v35  ;;  %v1672_v20 = vshrl.u32 %v7389_v9, 16  ;;  %v1819_v11 = vmul.u32 %v1817_v50, %v1793_v38  ;;  %v7490_v22 = vmul.u32 %v1817_v50, %v1794_v10 }
 0x18b   : > { %v1823_v63 = vshll.u32 %v7478_v7, 16  ;;  %v5361_v61 = vadd.s32 4294967169, %v1902_v37  ;;  %v1681_v26 = vadd.s32 %v1680_v25, %v1670_v41  ;;  %v1797_v48 = vmul.u32 %v1795_v23, %v1793_v38 }
 0x18c   : > { %v7493_v21 = vmul.u32 %v1795_v23, %v1794_v10  ;;  %v1801_v28 = vshll.u32 %v7482_v57, 16  ;;  %v1114_v54 = vmul.f32 %v1113_v51, %v7197_v33  ;;  %v1251_v17 = vsel %vm1130_vm8, %v1250_v14, %v1249_v13 }
 0x18d   : > { %v1650_v35 = vshrl.u32 %v7402_v0, 16  ;;  %v1659_v3 = vadd.s32 %v1658_v34, %v1648_v31  ;;  %v1403_v59 = vmul.f32 %v1402_v4, %v1400_v43  ;;  %v1537_v50 = vshll.u32 %v7485_v27, 30 }
 0x18e   : > { %v1626_v37 = vsel %vm1622_vm9, %v1606_v36, %v7278_v5  ;;  %v1627_v38 = vsel %vm1625_vm10, %v7282_v55, 2102212464  ;;  %v1825_v41 = vshll.u32 %v7490_v22, 16  ;;  %vm1827_vm1 = vc.u32 %v1819_v11, %v1823_v63 }
 0x18f   : > { %v7508_v33 = vadd.s32 %v1823_v63, %v1819_v11  ;;  %v1908_v51 = vadd.s32 1, %v5361_v61  ;;  %v1682_v13 = vadd.s32 %v1681_v26, %v1672_v20  ;;  %v1803_v0 = vshll.u32 %v7493_v21, 16 }
 0x190   : > { %vm1805_vm12 = vc.u32 %v1797_v48, %v1801_v28  ;;  %v1807_v43 = vadd.s32 %v1801_v28, %v1797_v48  ;;  %v1628_v25 = vsel %vm1624_vm0, %v7280_v24, %v1627_v38  ;;  %v7514_v5 = vadd.s32 %v1659_v3, %v1650_v35 }
 0x191   : > { %v12311_v23 = vshll.u32 %v7389_v9, 16  ;;  %v1822_v14 = vmul.u32 %v1818_v45, %v1794_v10  ;;  %v1252_v11 = vsub.s32 4, %v7035_v42  ;;  %v7525_v4 = vsel %vm7472_vm2, %v12303_v39, %v1251_v17 }
 0x192   : > { %v1800_v48 = vmul.u32 %v1796_v30, %v1794_v10  ;;  %v1828_v31 = vsel %vm1827_vm1, 1, %v12235_v29  ;;  %v1404_v34 = vxor.u32 2147483648, %v1403_v59  ;;  %v1806_v24 = vsel %vm1805_vm12, 1, %v12235_v29  ;;  %v12312_v30 = vld [vmem:[#allocation15_spill] sm:$0xff] }
 0x193   : > { %v7519_v55 = vadd.s32 %v7421_v12, %v12311_v23  ;;  %vm1831_vm10 = vc.u32 %v7508_v33, %v1825_v41  ;;  %vm1909_vm9 = vcmp.gt.s32.totalorder %v1908_v51, 0  ;;  %v7533_v9 = vsub.s32 %v7446_v6, %v1537_v50 }
 0x194   : > { %v1629_v12 = vsel %vm1623_vm5, %v1626_v37, %v1628_v25  ;;  %v1686_v45 = vadd.s32 1, %v1682_v13  ;;  %vm1809_vm0 = vc.u32 %v1807_v43, %v1803_v0  ;;  %v7537_v36 = vadd.f32 1.0, %v1107_v56 }
 0x195   : > { %vm1284_vm4 = vcmp.lt.s32.totalorder %v12312_v30, 0  ;;  %vm1685_vm7 = vc.u32 %v7514_v5, %v7519_v55  ;;  %v1830_v10 = vadd.s32 %v1828_v31, %v1822_v14  ;;  %v1115_v20 = vadd.f32 1.0, %v1114_v54 }
 0x196   : > { %v1808_v63 = vadd.s32 %v1806_v24, %v1800_v48  ;;  %v1832_v61 = vsel %vm1831_vm10, 1, %v12235_v29  ;;  %v1910_v26 = vsel %vm1909_vm9, %v1908_v51, 0  ;;  %v7545_v6 = vmul.f32 %v7525_v4, %v7525_v4 }
 0x197   : > { %v12313_v8 = vand.u32 2147483647, %v12312_v30  ;;  %v1683_v28 = vmul.u32 %v7319_v16, %v1629_v12  ;;  %v1810_v17 = vsel %vm1809_vm0, 1, %v12235_v29  ;;  %v7558_v54 = vsel %vm1130_vm8, %v1252_v11, %v7035_v42 }
 0x198   : > { %v1405_v35 = vsel %vm1284_vm4, %v1404_v34, %v1403_v59  ;;  %v1540_v3 = vsub.s32 0, %v7533_v9  ;;  %v1687_v50 = vsel %vm1685_vm7, %v1686_v45, %v1682_v13  ;;  %vm1539_vm6 = vcmp.lt.s32.totalorder %v7533_v9, 0 }
 0x199   : > { %vm7549_vm5 = vcmp.le.f32.partialorder %v12313_v8, 0.7853982  ;;  %v1824_v37 = vshrl.u32 %v7478_v7, 16  ;;  %v1834_v38 = vadd.s32 %v1832_v61, %v1830_v10  ;;  %v1912_v51 = vand.u32 31, %v1910_v26 }
 0x19a   : > { %v1116_v16 = vmul.f32 %v1115_v20, %v7179_v47  ;;  %v1124_v0 = vxor.u32 2147483648, %v7537_v36  ;;  %v1802_v43 = vshrl.u32 %v7482_v57, 16  ;;  %v1812_v42 = vadd.s32 %v1810_v17, %v1808_v63 }
 0x19b   : > { %vm1123_vm8 = vcmp.eq.s32.totalorder %v7460_v53, 2  ;;  %v1257_v59 = vmul.f32 -0.001358992, %v7545_v6  ;;  %v1264_v25 = vmul.f32 -0.00019511016, %v7545_v6  ;;  %v7571_v13 = vadd.s32 %v1687_v50, %v1683_v28 }
 0x19c   : > { %vm1120_vm15 = vcmp.eq.s32.totalorder %v7460_v53, 0  ;;  %v1255_v7 = vsel %vm7472_vm2, 0, %v7558_v54  ;;  %v7580_v47 = vsel %vm7549_vm5, %v12312_v30, %v1405_v35  ;;  %v1541_v57 = vsel %vm1539_vm6, %v1540_v3, %v7533_v9 }
 0x19d   : > { %v1760_v23 = vshrl.u32 %v12224_v62, %v7321_v46  ;;  %v1781_v14 = vsel %vm1779_vm14, %v7395_v60, 2102212464  ;;  %v1826_v11 = vshrl.u32 %v7490_v22, 16  ;;  %v1835_v48 = vadd.s32 %v1834_v38, %v1824_v37  ;;  %v12316_v38 = vld [vmem:[#allocation10_spill] sm:$0xff] }
 0x19e   : > { %v7589_v31 = vsub.s32 32, %v1912_v51  ;;  %v1121_v34 = vxor.u32 2147483648, %v1116_v16  ;;  %v1125_v24 = vsel %vm1123_vm8, %v1124_v0, %v1116_v16  ;;  %v1804_v12 = vshrl.u32 %v7493_v21, 16  ;;  %v12318_v0 = vld [vmem:[#allocation13_spill] sm:$0xff] }
 0x19f   : > { %v1813_v45 = vadd.s32 %v1812_v42, %v1802_v43  ;;  %v1258_v10 = vadd.f32 0.041655596, %v1257_v59  ;;  %v1265_v20 = vadd.f32 0.008332121, %v1264_v25  ;;  %v7594_v63 = vmul.f32 %v7580_v47, %v7580_v47 }
 0x1a0   : > { %v1689_v46 = vadd.s32 536870912, %v7571_v13  ;;  %vm1119_vm14 = vcmp.lt.s32.totalorder %v7460_v53, 2  ;;  %v1542_v60 = vclz %v1541_v57  ;;  %v1780_v61 = vsel %vm1776_vm3, %v1760_v23, %v7391_v58 }
 0x1a1   : > { %v1782_v21 = vsel %vm1778_vm11, %v7393_v19, %v1781_v14  ;;  %v12097_v8 = vand.u32 2147483647, %v12305_v44  ;;  %v7608_v28 = vadd.s32 %v7508_v33, %v1825_v41  ;;  %v1836_v17 = vadd.s32 %v1835_v48, %v1826_v11 }
 0x1a2   : > { %v1924_v35 = vshll.u32 %v12227_v15, %v1912_v51  ;;  %v1925_v3 = vshrl.u32 %v12248_v52, %v7589_v31  ;;  %v7613_v50 = vadd.s32 %v1813_v45, %v1804_v12  ;;  %v7615_v58 = vshrl.u32 %v1910_v26, 5  ;;  %v12317_v26 = vld [vmem:[#allocation12_spill] sm:$0xff] }
 0x1a3   : > { %v1927_v37 = vshll.u32 %v12248_v52, %v1912_v51  ;;  %v1928_v19 = vshrl.u32 %v12249_v18, %v7589_v31  ;;  %vm655_vm3 = vweird.f32 %v12316_v38  ;;  %vm809_vm11 = vweird.f32 %v12266_v40 }
 0x1a4   : > { %v7622_v22 = vshrl.u32 %v1689_v46, 30  ;;  %v1783_v41 = vsel %vm1777_vm13, %v1780_v61, %v1782_v21  ;;  %v1915_v33 = vshll.u32 %v12224_v62, %v1912_v51  ;;  %v1918_v16 = vshll.u32 %v12263_v1, %v1912_v51 }
 0x1a5   : > { %vm963_vm1 = vweird.f32 %v12317_v26  ;;  %vm1117_vm12 = vweird.f32 %v12318_v0  ;;  %v1916_v43 = vshrl.u32 %v12263_v1, %v7589_v31  ;;  %v1919_v42 = vshrl.u32 %v12264_v49, %v7589_v31 }
 0x1a6   : > { %v1921_v59 = vshll.u32 %v12264_v49, %v1912_v51  ;;  %v1922_v32 = vshrl.u32 %v12227_v15, %v7589_v31  ;;  %v1259_v25 = vmul.f32 %v1258_v10, %v7545_v6  ;;  %v5353_v57 = vadd.s32 4294967294, %v1542_v60  ;;  %v12319_v10 = vld [vmem:[#allocation45_spill] sm:$0xff] }
 0x1a7   : > { %v1840_v23 = vadd.s32 1, %v1836_v17  ;;  %v1926_v14 = vor.u32 %v1925_v3, %v1924_v35  ;;  %vm1839_vm13 = vc.u32 %v7613_v50, %v7608_v28  ;;  %v1905_v11 = vand.u32 8388607, %v12097_v8 }
 0x1a8   : > { %v1929_v48 = vor.u32 %v1928_v19, %v1927_v37  ;;  %vm1933_vm10 = vcmp.lt.s32.totalorder %v7615_v58, 4  ;;  %v1122_v51 = vsel %vm1120_vm15, %v7537_v36, %v1121_v34  ;;  %v1266_v12 = vmul.f32 %v1265_v20, %v7545_v6 }
 0x1a9   : > { %v1418_v45 = vmul.f32 -0.00019511016, %v7594_v63  ;;  %v1837_v46 = vmul.u32 %v12319_v10, %v1783_v41  ;;  %v1691_v60 = vshll.u32 %v7622_v22, 30  ;;  %v7650_v61 = vor.u32 %v1916_v43, %v1915_v33 }
 0x1aa   : > { %v7652_v21 = vor.u32 %v1919_v42, %v1918_v16  ;;  %v7654_v35 = vor.u32 %v1922_v32, %v1921_v59  ;;  %v1841_v3 = vsel %vm1839_vm13, %v1840_v23, %v1836_v17  ;;  %vm1930_vm9 = vcmp.lt.s32.totalorder %v7615_v58, 1 }
 0x1ab   : > { %vm1932_vm0 = vcmp.lt.s32.totalorder %v7615_v58, 3  ;;  %v1939_v36 = vsel %vm1933_vm10, %v1926_v14, 920167782  ;;  %v1260_v34 = vadd.f32 -0.4999988, %v1259_v25  ;;  %vm5354_vm7 = vcmp.lt.s32.totalorder %v5353_v57, 0 }
 0x1ac   : > { %v1906_v20 = vor.u32 8388608, %v1905_v11  ;;  %v1943_v37 = vsel %vm1933_vm10, %v1929_v48, 1326507024  ;;  %v1126_v19 = vsel %vm1119_vm14, %v1122_v51, %v1125_v24  ;;  %v1267_v41 = vadd.f32 -0.16666654, %v1266_v12  ;;  %v12320_v25 = vld [vmem:[#allocation9_spill] sm:$0xff] }
 0x1ad   : > { %v1411_v33 = vmul.f32 -0.001358992, %v7594_v63  ;;  %v1419_v17 = vadd.f32 0.008332121, %v1418_v45  ;;  %v7665_v16 = vadd.s32 %v1841_v3, %v1837_v46  ;;  %vm1931_vm6 = vcmp.lt.s32.totalorder %v7615_v58, 2  ;;  %v12322_v11 = vld [vmem:[#allocation40_spill] sm:$0xff] }
 0x1ae   : > { %v1938_v43 = vsel %vm1930_vm9, %v7650_v61, %v7652_v21  ;;  %v1940_v42 = vsel %vm1932_vm0, %v7654_v35, %v1939_v36  ;;  %v1545_v59 = vsel %vm5354_vm7, 0, %v5353_v57  ;;  %v7676_v53 = vsub.s32 %v7571_v13, %v1691_v60  ;;  %v12324_v48 = vld [vmem:[#allocation20_spill] sm:$0xff]  ;;  %v12325_v12 = vld [vmem:[#allocation42_spill] sm:$0xff] }
 0x1af   : > { %v1942_v24 = vsel %vm1930_vm9, %v7652_v21, %v7654_v35  ;;  %v1944_v32 = vsel %vm1932_vm0, %v1926_v14, %v1943_v37  ;;  %v7687_v23 = vsel %vm655_vm3, nan, %v12320_v25  ;;  %v7692_v57 = vsel %vm809_vm11, nan, %v12322_v11  ;;  %v12329_v37 = vld [vmem:[#allocation44_spill] sm:$0xff] }
 0x1b0   : > { %12321 = vst [vmem:[#allocation14_spill] sm:$0xff] %v7687_v23  ;;  %v7694_v13 = vshll.u32 %v1906_v20, 8  ;;  %v2055_v51 = vand.u32 2139095040, %v12324_v48  ;;  %v7700_v45 = vsel %vm963_vm1, nan, %v12325_v12  ;;  %v7704_v14 = vsel %vm1117_vm12, nan, %v1126_v19  ;;  %v12328_v20 = vld [vmem:[#allocation41_spill] sm:$0xff] }
 0x1b1   : > { %12323 = vst [vmem:[#allocation15_spill] sm:$0xff] %v7692_v57  ;;  %v7710_v40 = vand.u32 3, %v1255_v7  ;;  %v7714_v38 = vsel %vm1931_vm6, %v1938_v43, %v1940_v42  ;;  %v1261_v10 = vmul.f32 %v1260_v34, %v7545_v6  ;;  %v1550_v46 = vsub.s32 4294967266, %v1545_v59 }
 0x1b2   : > { %12326 = vst [vmem:[#allocation10_spill] sm:$0xff] %v7700_v45  ;;  %v1843_v26 = vadd.s32 536870912, %v7665_v16  ;;  %v7720_v0 = vsel %vm1931_vm6, %v1942_v24, %v1944_v32  ;;  %v1268_v60 = vmul.f32 %v1267_v41, %v7545_v6  ;;  %v1412_v2 = vadd.f32 0.041655596, %v1411_v33  ;;  %v12330_v33 = vld [vmem:[#allocation11_spill] sm:$0xff] }
 0x1b3   : > { %12327 = vst [vmem:[#allocation12_spill] sm:$0xff] %v7704_v14  ;;  %v1420_v54 = vmul.f32 %v1419_v17, %v7594_v63  ;;  %v1694_v7 = vsub.s32 0, %v7676_v53  ;;  %vm1693_vm2 = vcmp.lt.s32.totalorder %v7676_v53, 0  ;;  %v1947_v3 = vand.u32 65535, %v7694_v13 }
 0x1b4   : > { %v1972_v36 = vshrl.u32 %v7714_v38, 16  ;;  %v2056_v34 = vshrl.u32 %v2055_v51, 23  ;;  %vm1277_vm8 = vcmp.eq.s32.totalorder %v7710_v40, 2  ;;  %v1530_v19 = vadd.s32 %v12329_v37, %v12328_v20 }
 0x1b5   : > { %v1546_v43 = vsub.s32 32, %v1545_v59  ;;  %v1950_v6 = vshrl.u32 %v7720_v0, 16  ;;  %v1262_v41 = vadd.f32 1.0, %v1261_v10  ;;  %v1406_v17 = vsub.s32 4, %v12330_v33 }
 0x1b6   : > { %v1551_v42 = vadd.s32 127, %v1550_v46  ;;  %v7733_v24 = vshrl.u32 %v1843_v26, 30  ;;  %v1269_v32 = vadd.f32 1.0, %v1268_v60  ;;  %v1413_v25 = vmul.f32 %v1412_v2, %v7594_v63 }
 0x1b7   : > { %v1421_v11 = vadd.f32 -0.16666654, %v1420_v54  ;;  %v1695_v51 = vsel %vm1693_vm2, %v1694_v7, %v7676_v53  ;;  %v1948_v12 = vshrl.u32 %v7694_v13, 16  ;;  %v1971_v8 = vand.u32 65535, %v7714_v38 }
 0x1b8   : > { %v7739_v20 = vmul.u32 %v1972_v36, %v1947_v3  ;;  %v5364_v37 = vadd.s32 4294967169, %v2056_v34  ;;  %vm1274_vm15 = vcmp.eq.s32.totalorder %v7710_v40, 0  ;;  %v1547_v10 = vshll.u32 %v7533_v9, %v1545_v59 }
 0x1b9   : > { %v1548_v46 = vshrl.u32 %v1530_v19, %v1546_v43  ;;  %v1949_v26 = vand.u32 65535, %v7720_v0  ;;  %v7744_v60 = vmul.u32 %v1950_v6, %v1947_v3  ;;  %v1407_v2 = vsel %vm1284_vm4, %v1406_v17, %v12330_v33 }
 0x1ba   : > { %v1552_v54 = vshll.u32 %v1551_v42, 23  ;;  %v1696_v7 = vclz %v1695_v51  ;;  %v1845_v38 = vshll.u32 %v7733_v24, 30  ;;  %v1270_v14 = vmul.f32 %v1269_v32, %v7525_v4  ;;  %v12331_v51 = vld [vmem:[#allocation16_spill] sm:$0xff] }
 0x1bb   : > { %v1278_v34 = vxor.u32 2147483648, %v1262_v41  ;;  %v1414_v45 = vadd.f32 -0.4999988, %v1413_v25  ;;  %v1422_v57 = vmul.f32 %v1421_v11, %v7594_v63  ;;  %v1973_v9 = vmul.u32 %v1971_v8, %v1947_v3 }
 0x1bc   : > { %v7752_v59 = vmul.u32 %v1971_v8, %v1948_v12  ;;  %v1977_v0 = vshll.u32 %v7739_v20, 16  ;;  %v2062_v19 = vadd.s32 1, %v5364_v37  ;;  %v1549_v43 = vor.u32 %v1548_v46, %v1547_v10 }
 0x1bd   : > { %v1951_v23 = vmul.u32 %v1949_v26, %v1947_v3  ;;  %v7755_v44 = vmul.u32 %v1949_v26, %v1948_v12  ;;  %v1955_v33 = vshll.u32 %v7744_v60, 16  ;;  %v1409_v17 = vsel %vm7549_vm5, 0, %v1407_v2 }
 0x1be   : > { %v1553_v4 = vor.u32 4788187, %v1552_v54  ;;  %v5356_v42 = vadd.s32 4294967294, %v1696_v7  ;;  %v7761_v32 = vsub.s32 %v7665_v16, %v1845_v38  ;;  %v1275_v25 = vxor.u32 2147483648, %v1270_v14 }
 0x1bf   : > { %v7765_v8 = vsel %vm1277_vm8, %v1278_v34, %v1270_v14  ;;  %v1415_v11 = vmul.f32 %v1414_v45, %v7594_v63  ;;  %v1423_v3 = vadd.f32 1.0, %v1422_v57  ;;  %vm1438_vm4 = vcmp.lt.s32.totalorder %v12331_v51, 0 }
 0x1c0   : > { %v1979_v37 = vshll.u32 %v7752_v59, 16  ;;  %vm1981_vm14 = vc.u32 %v1973_v9, %v1977_v0  ;;  %v7770_v56 = vadd.s32 %v1977_v0, %v1973_v9  ;;  %vm2063_vm5 = vcmp.gt.s32.totalorder %v2062_v19, 0 }
 0x1c1   : > { %v1556_v10 = vcvt.s32.f32 %v1549_v43  ;;  %v1957_v16 = vshll.u32 %v7755_v44, 16  ;;  %vm1959_vm3 = vc.u32 %v1951_v23, %v1955_v33  ;;  %v1961_v46 = vadd.s32 %v1955_v33, %v1951_v23 }
 0x1c2   : > { %v1554_v26 = vand.u32 2147483647, %v1553_v4  ;;  %vm5357_vm11 = vcmp.lt.s32.totalorder %v5356_v42, 0  ;;  %v1848_v14 = vsub.s32 0, %v7761_v32  ;;  %v1976_v2 = vmul.u32 %v1972_v36, %v1948_v12 }
 0x1c3   : > { %vm1847_vm1 = vcmp.lt.s32.totalorder %v7761_v32, 0  ;;  %v1954_v63 = vmul.u32 %v1950_v6, %v1948_v12  ;;  %v1982_v57 = vsel %vm1981_vm14, 1, %v12235_v29  ;;  %v2064_v45 = vsel %vm2063_vm5, %v2062_v19, 0 }
 0x1c4   : > { %v7778_v54 = vsel %vm1274_vm15, %v1262_v41, %v1275_v25  ;;  %v7780_v7 = vand.u32 3, %v1409_v17  ;;  %v1960_v38 = vsel %vm1959_vm3, 1, %v12235_v29  ;;  %vm1985_vm12 = vc.u32 %v7770_v56, %v1979_v37  ;;  %v12332_v25 = vld [vmem:[#allocation21_spill] sm:$0xff] }
 0x1c5   : > { %v7786_v23 = vadd.f32 1.0, %v1415_v11  ;;  %v1560_v36 = vsub.s32 4, %v7485_v27  ;;  %v7789_v6 = vsel %vm5357_vm11, 0, %v5356_v42  ;;  %vm1963_vm13 = vc.u32 %v1961_v46, %v1957_v16 }
 0x1c6   : > { %v7792_v12 = vmul.f32 %v1423_v3, %v7580_v47  ;;  %v1849_v41 = vsel %vm1847_vm1, %v1848_v14, %v7761_v32  ;;  %v1984_v34 = vadd.s32 %v1982_v57, %v1976_v2  ;;  %v2066_v9 = vand.u32 31, %v2064_v45 }
 0x1c7   : > { %v1557_v0 = vmul.f32 %v1556_v10, %v1554_v26  ;;  %v1684_v19 = vadd.s32 %v7519_v55, %v7514_v5  ;;  %v1962_v43 = vadd.s32 %v1960_v38, %v1954_v63  ;;  %v1986_v33 = vsel %vm1985_vm12, 1, %v12235_v29 }
 0x1c8   : > { %v1700_v17 = vsub.s32 32, %v7789_v6  ;;  %v1704_v4 = vsub.s32 4294967266, %v7789_v6  ;;  %v1964_v42 = vsel %vm1963_vm13, 1, %v12235_v29  ;;  %v2209_v47 = vand.u32 2139095040, %v12332_v25 }
 0x1c9   : > { %v1432_v11 = vxor.u32 2147483648, %v7786_v23  ;;  %v7806_v3 = vsel %vm1438_vm4, %v1560_v36, %v7485_v27  ;;  %v1850_v10 = vclz %v1849_v41  ;;  %v1914_v5 = vshrl.u32 %v12224_v62, %v7589_v31 }
 0x1ca   : > { %v1978_v16 = vshrl.u32 %v7739_v20, 16  ;;  %v1988_v46 = vadd.s32 %v1986_v33, %v1984_v34  ;;  %v7812_v26 = vsub.s32 32, %v2066_v9  ;;  %v1558_v14 = vxor.u32 2147483648, %v1557_v0 }
 0x1cb   : > { %v1701_v2 = vshll.u32 %v7676_v53, %v7789_v6  ;;  %v1956_v63 = vshrl.u32 %v7744_v60, 16  ;;  %v1966_v57 = vadd.s32 %v1964_v42, %v1962_v43  ;;  %v1702_v27 = vshrl.u32 %v1684_v19, %v1700_v17 }
 0x1cc   : > { %v1705_v38 = vadd.s32 127, %v1704_v4  ;;  %v12100_v36 = vand.u32 2147483647, %v12324_v48  ;;  %v2210_v41 = vshrl.u32 %v2209_v47, 23  ;;  %vm1431_vm7 = vcmp.eq.s32.totalorder %v7780_v7, 2 }
 0x1cd   : > { %v5359_v31 = vadd.s32 4294967294, %v1850_v10  ;;  %v1934_v20 = vsel %vm1930_vm9, %v1914_v5, %v7650_v61  ;;  %v1935_v34 = vsel %vm1933_vm10, %v7654_v35, 2102212464  ;;  %v1958_v53 = vshrl.u32 %v7755_v44, 16 }
 0x1ce   : > { %v1980_v60 = vshrl.u32 %v7752_v59, 16  ;;  %v1989_v6 = vadd.s32 %v1988_v46, %v1978_v16  ;;  %v2078_v19 = vshll.u32 %v12227_v15, %v2066_v9  ;;  %v2079_v43 = vshrl.u32 %v12248_v52, %v7812_v26 }
 0x1cf   : > { %v12333_v33 = vand.u32 2147483647, %v12331_v51  ;;  %v1967_v61 = vadd.s32 %v1966_v57, %v1956_v63  ;;  %v7836_v4 = vshrl.u32 %v2064_v45, 5  ;;  %v2081_v35 = vshll.u32 %v12248_v52, %v2066_v9 }
 0x1d0   : > { %v2082_v44 = vshrl.u32 %v12249_v18, %v7812_v26  ;;  %vm1428_vm10 = vcmp.eq.s32.totalorder %v7780_v7, 0  ;;  %v1936_v42 = vsel %vm1932_vm0, %v7652_v21, %v1935_v34  ;;  %v2069_v47 = vshll.u32 %v12224_v62, %v2066_v9 }
 0x1d1   : > { %vm7832_vm2 = vcmp.le.f32.partialorder %v12333_v33, 0.7853982  ;;  %v2072_v10 = vshll.u32 %v12263_v1, %v2066_v9  ;;  %v5367_v5 = vadd.s32 4294967169, %v2210_v41  ;;  %v2070_v45 = vshrl.u32 %v12263_v1, %v7812_v26 }
 0x1d2   : > { %v2073_v16 = vshrl.u32 %v12264_v49, %v7812_v26  ;;  %v2075_v46 = vshll.u32 %v12264_v49, %v2066_v9  ;;  %v2076_v63 = vshrl.u32 %v12227_v15, %v7812_v26  ;;  %vm5360_vm9 = vcmp.lt.s32.totalorder %v5359_v31, 0 }
 0x1d3   : > { %v7857_v21 = vadd.s32 %v7770_v56, %v1979_v37  ;;  %v1990_v57 = vadd.s32 %v1989_v6, %v1980_v60  ;;  %v2080_v34 = vor.u32 %v2079_v43, %v2078_v19  ;;  %vm1273_vm0 = vcmp.lt.s32.totalorder %v7710_v40, 2 }
 0x1d4   : > { %v7860_v41 = vadd.s32 %v1967_v61, %v1958_v53  ;;  %v2059_v33 = vand.u32 8388607, %v12100_v36  ;;  %v2083_v55 = vor.u32 %v2082_v44, %v2081_v35  ;;  %vm2087_vm8 = vcmp.lt.s32.totalorder %v7836_v4, 4 }
 0x1d5   : > { %vm1427_vm15 = vcmp.lt.s32.totalorder %v7780_v7, 2  ;;  %v1559_v59 = vsel %vm1438_vm4, %v1558_v14, %v1557_v0  ;;  %v1706_v9 = vshll.u32 %v1705_v38, 23  ;;  %v1937_v37 = vsel %vm1931_vm6, %v1934_v20, %v1936_v42 }
 0x1d6   : > { %v2216_v56 = vadd.s32 1, %v5367_v5  ;;  %v7870_v60 = vsel %vm5360_vm9, 0, %v5359_v31  ;;  %v7872_v53 = vor.u32 %v2070_v45, %v2069_v47  ;;  %v7874_v6 = vor.u32 %v2073_v16, %v2072_v10 }
 0x1d7   : > { %v7876_v19 = vor.u32 %v2076_v63, %v2075_v46  ;;  %v1994_v43 = vadd.s32 1, %v1990_v57  ;;  %vm2084_vm14 = vcmp.lt.s32.totalorder %v7836_v4, 1  ;;  %vm2086_vm5 = vcmp.lt.s32.totalorder %v7836_v4, 3 }
 0x1d8   : > { %v2093_v0 = vsel %vm2087_vm8, %v2080_v34, 920167782  ;;  %vm1271_vm4 = vweird.f32 %v12303_v39  ;;  %v1703_v58 = vor.u32 %v1702_v27, %v1701_v2  ;;  %vm1993_vm6 = vc.u32 %v7860_v41, %v7857_v21 }
 0x1d9   : > { %v2060_v14 = vor.u32 8388608, %v2059_v33  ;;  %v2097_v38 = vsel %vm2087_vm8, %v2083_v55, 1326507024  ;;  %v1433_v31 = vsel %vm1431_vm7, %v1432_v11, %v7792_v12  ;;  %v1707_v20 = vor.u32 4788187, %v1706_v9 }
 0x1da   : > { %v1991_v61 = vmul.u32 %v7694_v13, %v1937_v37  ;;  %vm2217_vm3 = vcmp.gt.s32.totalorder %v2216_v56, 0  ;;  %v1858_v35 = vsub.s32 4294967266, %v7870_v60  ;;  %vm2085_vm11 = vcmp.lt.s32.totalorder %v7836_v4, 2 }
 0x1db   : > { %v2092_v2 = vsel %vm2084_vm14, %v7872_v53, %v7874_v6  ;;  %v2094_v55 = vsel %vm2086_vm5, %v7876_v19, %v2093_v0  ;;  %v7905_v11 = vsel %vm7832_vm2, %v12331_v51, %v1559_v59  ;;  %v1995_v13 = vsel %vm1993_vm6, %v1994_v43, %v1990_v57 }
 0x1dc   : > { %v2096_v27 = vsel %vm2084_vm14, %v7874_v6, %v7876_v19  ;;  %v2098_v44 = vsel %vm2086_vm5, %v2080_v34, %v2097_v38  ;;  %v12336_v42 = vxor.u32 2147483648, %v7792_v12  ;;  %v1710_v10 = vcvt.s32.f32 %v1703_v58 }
 0x1dd   : > { %v7918_v5 = vshll.u32 %v2060_v14, 8  ;;  %v2218_v45 = vsel %vm2217_vm3, %v2216_v56, 0  ;;  %v1708_v16 = vand.u32 2147483647, %v1707_v20  ;;  %v1838_v46 = vadd.s32 %v7608_v28, %v7613_v50 }
 0x1de   : > { %v1430_v47 = vsel %vm1428_vm10, %v7786_v23, %v12336_v42  ;;  %v1854_v63 = vsub.s32 32, %v7870_v60  ;;  %v7925_v57 = vsel %vm2085_vm11, %v2092_v2, %v2094_v55  ;;  %v7929_v12 = vmul.f32 %v7905_v11, %v7905_v11 }
 0x1df   : > { %v1859_v34 = vadd.s32 127, %v1858_v35  ;;  %v7931_v23 = vadd.s32 %v1995_v13, %v1991_v61  ;;  %v2099_v33 = vsel %vm2085_vm11, %v2096_v27, %v2098_v44  ;;  %v1280_v28 = vsel %vm1273_vm0, %v7778_v54, %v7765_v8 }
 0x1e0   : > { %vm1425_vm1 = vweird.f32 %v12312_v30  ;;  %v1563_v50 = vsel %vm7832_vm2, 0, %v7806_v3  ;;  %v2220_v59 = vand.u32 31, %v2218_v45  ;;  %v1434_v9 = vsel %vm1427_vm15, %v1430_v47, %v1433_v31 }
 0x1e1   : > { %v1565_v37 = vmul.f32 -0.001358992, %v7929_v12  ;;  %v2101_v56 = vand.u32 65535, %v7918_v5  ;;  %v2126_v43 = vshrl.u32 %v7925_v57, 16  ;;  %v7948_v0 = vmul.f32 %v1710_v10, %v1708_v16 }
 0x1e2   : > { %v1855_v40 = vshll.u32 %v7761_v32, %v7870_v60  ;;  %v1856_v8 = vshrl.u32 %v1838_v46, %v1854_v63  ;;  %v2104_v54 = vshrl.u32 %v2099_v33, 16  ;;  %v1860_v58 = vshll.u32 %v1859_v34, 23 }
 0x1e3   : > { %v1997_v3 = vadd.s32 536870912, %v7931_v23  ;;  %v2125_v17 = vand.u32 65535, %v7925_v57  ;;  %v12099_v7 = vand.u32 2147483647, %v12332_v25  ;;  %v7957_v14 = vsel %vm1271_vm4, nan, %v1280_v28  ;;  %v12340_v28 = vld [vmem:[#allocation17_spill] sm:$0xff] }
 0x1e4   : > { %12337 = vst [vmem:[#allocation13_spill] sm:$0xff] %v7957_v14  ;;  %v2102_v38 = vshrl.u32 %v7918_v5, 16  ;;  %v2103_v31 = vand.u32 65535, %v2099_v33  ;;  %v7960_v20 = vsub.s32 32, %v2220_v59  ;;  %v7964_v32 = vsel %vm1425_vm1, nan, %v1434_v9 }
 0x1e5   : > { %12338 = vst [vmem:[#allocation45_spill] sm:$0xff] %v7964_v32  ;;  %v1572_v60 = vmul.f32 -0.00019511016, %v7929_v12  ;;  %v7967_v61 = vand.u32 3, %v1563_v50  ;;  %v7969_v35 = vmul.u32 %v2126_v43, %v2101_v56  ;;  %v7971_v2 = vadd.f32 0.041655596, %v1565_v37 }
 0x1e6   : > { %v1712_v39 = vxor.u32 2147483648, %v7948_v0  ;;  %v7974_v55 = vor.u32 %v1856_v8, %v1855_v40  ;;  %v7976_v13 = vmul.u32 %v2104_v54, %v2101_v56  ;;  %v7978_v27 = vor.u32 4788187, %v1860_v58 }
 0x1e7   : > { %v7980_v44 = vshrl.u32 %v1997_v3, 30  ;;  %v2127_v30 = vmul.u32 %v2125_v17, %v2101_v56  ;;  %v2213_v42 = vand.u32 8388607, %v12099_v7  ;;  %v2105_v47 = vmul.u32 %v2103_v31, %v2101_v56 }
 0x1e8   : > { %v7984_v10 = vmul.u32 %v2125_v17, %v2102_v38  ;;  %v2232_v16 = vshll.u32 %v12227_v15, %v2220_v59  ;;  %v2233_v46 = vshrl.u32 %v12248_v52, %v7960_v20  ;;  %v2131_v63 = vshll.u32 %v7969_v35, 16 }
 0x1e9   : > { %12339 = vst [vmem:[#allocation9_spill] sm:$0xff] %v7980_v44  ;;  %v7990_v57 = vshrl.u32 %v2218_v45, 5  ;;  %v2235_v34 = vshll.u32 %v12248_v52, %v2220_v59  ;;  %v2236_v33 = vshrl.u32 %v12249_v18, %v7960_v20  ;;  %vm1592_vm12 = vcmp.lt.s32.totalorder %v12340_v28, 0 }
 0x1ea   : > { %v7996_v50 = vmul.u32 %v2103_v31, %v2102_v38  ;;  %v2109_v9 = vshll.u32 %v7976_v13, 16  ;;  %v2223_v37 = vshll.u32 %v12224_v62, %v2220_v59  ;;  %v2226_v56 = vshll.u32 %v12263_v1, %v2220_v59 }
 0x1eb   : > { %v2224_v40 = vshrl.u32 %v12263_v1, %v7960_v20  ;;  %v2227_v45 = vshrl.u32 %v12264_v49, %v7960_v20  ;;  %v2229_v8 = vshll.u32 %v12264_v49, %v2220_v59  ;;  %v2230_v58 = vshrl.u32 %v12227_v15, %v7960_v20 }
 0x1ec   : > { %v1999_v3 = vshll.u32 %v7980_v44, 30  ;;  %v2214_v31 = vor.u32 8388608, %v2213_v42  ;;  %v2234_v7 = vor.u32 %v2233_v46, %v2232_v16  ;;  %v12341_v36 = vand.u32 2147483647, %v12340_v28 }
 0x1ed   : > { %vm2135_vm7 = vc.u32 %v2127_v30, %v2131_v63  ;;  %v8016_v14 = vadd.s32 %v2131_v63, %v2127_v30  ;;  %v2237_v25 = vor.u32 %v2236_v33, %v2235_v34  ;;  %vm2241_vm2 = vcmp.lt.s32.totalorder %v7990_v57, 4 }
 0x1ee   : > { %vm8012_vm13 = vcmp.le.f32.partialorder %v12341_v36, 0.7853982  ;;  %v2108_v59 = vmul.u32 %v2104_v54, %v2102_v38  ;;  %v2111_v48 = vshll.u32 %v7996_v50, 16  ;;  %vm2113_vm10 = vc.u32 %v2105_v47, %v2109_v9 }
 0x1ef   : > { %v2115_v44 = vadd.s32 %v2109_v9, %v2105_v47  ;;  %v2130_v17 = vmul.u32 %v2126_v43, %v2102_v38  ;;  %v8020_v42 = vor.u32 %v2224_v40, %v2223_v37  ;;  %v8022_v16 = vor.u32 %v2227_v45, %v2226_v56 }
 0x1f0   : > { %v8024_v36 = vor.u32 %v2230_v58, %v2229_v8  ;;  %v2136_v46 = vsel %vm2135_vm7, 1, %v12235_v29  ;;  %vm2238_vm9 = vcmp.lt.s32.totalorder %v7990_v57, 1  ;;  %vm2240_vm0 = vcmp.lt.s32.totalorder %v7990_v57, 3  ;;  %v12345_v58 = vld [vmem:[#allocation18_spill] sm:$0xff] }
 0x1f1   : > { %v2247_v54 = vsel %vm2241_vm2, %v2234_v7, 920167782  ;;  %v8032_v30 = vsub.s32 %v7931_v23, %v1999_v3  ;;  %v2114_v43 = vsel %vm2113_vm10, 1, %v12235_v29  ;;  %v12344_v38 = vshll.u32 %v7984_v10, 16 }
 0x1f2   : > { %v2251_v47 = vsel %vm2241_vm2, %v2237_v25, 1326507024  ;;  %v1573_v63 = vadd.f32 0.008332121, %v1572_v60  ;;  %v1862_v34 = vand.u32 2147483647, %v7978_v27  ;;  %v1864_v33 = vcvt.s32.f32 %v7974_v55 }
 0x1f3   : > { %vm2139_vm15 = vc.u32 %v8016_v14, %v12344_v38  ;;  %vm2117_vm4 = vc.u32 %v2115_v44, %v2111_v48  ;;  %v2138_v9 = vadd.s32 %v2136_v46, %v2130_v17  ;;  %vm2239_vm6 = vcmp.lt.s32.totalorder %v7990_v57, 2 }
 0x1f4   : > { %v2246_v23 = vsel %vm2238_vm9, %v8020_v42, %v8022_v16  ;;  %v2248_v37 = vsel %vm2240_vm0, %v8024_v36, %v2247_v54  ;;  %v2116_v56 = vadd.s32 %v2114_v43, %v2108_v59  ;;  %v2140_v25 = vsel %vm2139_vm15, 1, %v12235_v29 }
 0x1f5   : > { %v2250_v48 = vsel %vm2238_vm9, %v8022_v16, %v8024_v36  ;;  %v2252_v60 = vsel %vm2240_vm0, %v2234_v7, %v2251_v47  ;;  %v1713_v55 = vsel %vm1592_vm12, %v1712_v39, %v7948_v0  ;;  %v2002_v27 = vsub.s32 0, %v8032_v30 }
 0x1f6   : > { %v2118_v44 = vsel %vm2117_vm4, 1, %v12235_v29  ;;  %v8062_v40 = vshll.u32 %v2214_v31, 8  ;;  %v1567_v45 = vmul.f32 %v7971_v2, %v7929_v12  ;;  %v1574_v8 = vmul.f32 %v1573_v63, %v7929_v12 }
 0x1f7   : > { %vm2001_vm3 = vcmp.lt.s32.totalorder %v8032_v30, 0  ;;  %v8070_v7 = vsel %vm2239_vm6, %v2246_v23, %v2248_v37  ;;  %vm1746_vm1 = vcmp.lt.s32.totalorder %v12345_v58, 0  ;;  %v2132_v0 = vshrl.u32 %v7969_v35, 16 }
 0x1f8   : > { %v2142_v39 = vadd.s32 %v2140_v25, %v2138_v9  ;;  %v8076_v3 = vsel %vm2239_vm6, %v2250_v48, %v2252_v60  ;;  %v8081_v2 = vsel %vm8012_vm13, %v12340_v28, %v1713_v55  ;;  %v1865_v17 = vmul.f32 %v1864_v33, %v1862_v34  ;;  %v12350_v33 = vld [vmem:[#allocation22_spill] sm:$0xff] }
 0x1f9   : > { %v2110_v31 = vshrl.u32 %v7976_v13, 16  ;;  %v2120_v59 = vadd.s32 %v2118_v44, %v2116_v56  ;;  %v12346_v46 = vand.u32 2147483647, %v12345_v58  ;;  %v12347_v54 = vmov 0 }
 0x1fa   : > { %v2003_v35 = vsel %vm2001_vm3, %v2002_v27, %v8032_v30  ;;  %v2068_v43 = vshrl.u32 %v12224_v62, %v7812_v26  ;;  %v2255_v38 = vand.u32 65535, %v8062_v40  ;;  %v2280_v47 = vshrl.u32 %v8070_v7, 16 }
 0x1fb   : > { %vm8086_vm7 = vcmp.le.f32.partialorder %v12346_v46, 0.7853982  ;;  %v1568_v63 = vadd.f32 -0.4999988, %v1567_v45  ;;  %v1575_v34 = vadd.f32 -0.16666654, %v1574_v8  ;;  %v8099_v23 = vmul.f32 %v8081_v2, %v8081_v2 }
 0x1fc   : > { %v12348_v54 = vsel %vm8086_vm7, 4294967295, %v12347_v54  ;;  %v2258_v13 = vshrl.u32 %v8076_v3, 16  ;;  %v2363_v9 = vand.u32 2139095040, %v12350_v33  ;;  %v2089_v37 = vsel %vm2087_vm8, %v7876_v19, 2102212464 }
 0x1fd   : > { %12349 = vst [vmem:[#allocation40_spill] sm:$0xff] %v12348_v54  ;;  %v2134_v26 = vshrl.u32 %v7984_v10, 16  ;;  %v2143_v56 = vadd.s32 %v2142_v39, %v2132_v0  ;;  %v1866_v25 = vxor.u32 2147483648, %v1865_v17  ;;  %v2004_v48 = vclz %v2003_v35 }
 0x1fe   : > { %v2112_v60 = vshrl.u32 %v7996_v50, 16  ;;  %v2121_v55 = vadd.s32 %v2120_v59, %v2110_v31  ;;  %v2088_v27 = vsel %vm2084_vm14, %v2068_v43, %v7872_v53  ;;  %v2256_v44 = vshrl.u32 %v8062_v40, 16 }
 0x1ff   : > { %v2279_v45 = vand.u32 65535, %v8070_v7  ;;  %v8111_v8 = vmul.u32 %v2280_v47, %v2255_v38  ;;  %v2090_v19 = vsel %vm2086_vm5, %v7874_v6, %v2089_v37  ;;  %v2257_v0 = vand.u32 65535, %v8076_v3 }
 0x200   : > { %v8117_v39 = vmul.u32 %v2258_v13, %v2255_v38  ;;  %v2364_v50 = vshrl.u32 %v2363_v9, 23  ;;  %v1569_v31 = vmul.f32 %v1568_v63, %v7929_v12  ;;  %v1576_v59 = vmul.f32 %v1575_v34, %v7929_v12 }
 0x201   : > { %v1726_v53 = vmul.f32 -0.00019511016, %v8099_v23  ;;  %v2144_v46 = vadd.s32 %v2143_v56, %v2134_v26  ;;  %v1867_v7 = vsel %vm1746_vm1, %v1866_v25, %v1865_v17  ;;  %v5362_v35 = vadd.s32 4294967294, %v2004_v48 }
 0x202   : > { %v8124_v43 = vadd.s32 %v2121_v55, %v2112_v60  ;;  %v12351_v6 = vshll.u32 %v7984_v10, 16  ;;  %v2091_v9 = vsel %vm2085_vm11, %v2088_v27, %v2090_v19  ;;  %v2281_v63 = vmul.u32 %v2279_v45, %v2255_v38 }
 0x203   : > { %v8133_v37 = vmul.u32 %v2279_v45, %v2256_v44  ;;  %v2285_v12 = vshll.u32 %v8111_v8, 16  ;;  %v2259_v34 = vmul.u32 %v2257_v0, %v2255_v38  ;;  %v8136_v26 = vmul.u32 %v2257_v0, %v2256_v44 }
 0x204   : > { %v8129_v3 = vadd.s32 %v8016_v14, %v12351_v6  ;;  %v2263_v17 = vshll.u32 %v8117_v39, 16  ;;  %v5370_v56 = vadd.s32 4294967169, %v2364_v50  ;;  %v8139_v25 = vadd.f32 1.0, %v1569_v31 }
 0x205   : > { %v1714_v10 = vsub.s32 4, %v7622_v22  ;;  %v1719_v14 = vmul.f32 -0.001358992, %v8099_v23  ;;  %v2148_v48 = vadd.s32 1, %v2144_v46  ;;  %v1727_v4 = vadd.f32 0.008332121, %v1726_v53 }
 0x206   : > { %12352 = vst [vmem:[#allocation42_spill] sm:$0xff] %v8129_v3  ;;  %v8146_v60 = vsel %vm8086_vm7, %v12345_v58, %v1867_v7  ;;  %vm5363_vm8 = vcmp.lt.s32.totalorder %v5362_v35, 0  ;;  %vm2147_vm14 = vc.u32 %v8124_v43, %v8129_v3  ;;  %v2145_v38 = vmul.u32 %v7918_v5, %v2091_v9 }
 0x207   : > { %v2287_v55 = vshll.u32 %v8133_v37, 16  ;;  %vm2289_vm5 = vc.u32 %v2281_v63, %v2285_v12  ;;  %v8152_v27 = vadd.s32 %v2285_v12, %v2281_v63  ;;  %v2265_v45 = vshll.u32 %v8136_v26, 16 }
 0x208   : > { %vm2267_vm11 = vc.u32 %v2259_v34, %v2263_v17  ;;  %v2269_v19 = vadd.s32 %v2263_v17, %v2259_v34  ;;  %v2370_v0 = vadd.s32 1, %v5370_v56  ;;  %v1577_v50 = vadd.f32 1.0, %v1576_v59 }
 0x209   : > { %v1720_v31 = vadd.f32 0.041655596, %v1719_v14  ;;  %v2149_v53 = vsel %vm2147_vm14, %v2148_v48, %v2144_v46  ;;  %v2284_v7 = vmul.u32 %v2280_v47, %v2256_v44  ;;  %v1728_v6 = vmul.f32 %v1727_v4, %v8099_v23 }
 0x20a   : > { %v2007_v54 = vsel %vm5363_vm8, 0, %v5362_v35  ;;  %v2262_v3 = vmul.u32 %v2258_v13, %v2256_v44  ;;  %v2290_v5 = vsel %vm2289_vm5, 1, %v12235_v29  ;;  %vm1582_vm10 = vcmp.eq.s32.totalorder %v7967_v61, 0 }
 0x20b   : > { %vm1585_vm15 = vcmp.eq.s32.totalorder %v7967_v61, 2  ;;  %v8161_v9 = vmul.f32 %v8146_v60, %v8146_v60  ;;  %v2268_v63 = vsel %vm2267_vm11, 1, %v12235_v29  ;;  %vm2293_vm4 = vc.u32 %v8152_v27, %v2287_v55 }
 0x20c   : > { %v1715_v47 = vsel %vm1592_vm12, %v1714_v10, %v7622_v22  ;;  %v8170_v13 = vadd.s32 %v2149_v53, %v2145_v38  ;;  %vm2271_vm3 = vc.u32 %v2269_v19, %v2265_v45  ;;  %vm2371_vm8 = vcmp.gt.s32.totalorder %v2370_v0, 0 }
 0x20d   : > { %v1578_v44 = vmul.f32 %v1577_v50, %v7905_v11  ;;  %v1586_v59 = vxor.u32 2147483648, %v8139_v25  ;;  %v2012_v46 = vsub.s32 4294967266, %v2007_v54  ;;  %v2292_v35 = vadd.s32 %v2290_v5, %v2284_v7 }
 0x20e   : > { %v1721_v12 = vmul.f32 %v1720_v31, %v8099_v23  ;;  %v1729_v34 = vadd.f32 -0.16666654, %v1728_v6  ;;  %v2270_v17 = vadd.s32 %v2268_v63, %v2262_v3  ;;  %v2294_v56 = vsel %vm2293_vm4, 1, %v12235_v29 }
 0x20f   : > { %v1873_v14 = vmul.f32 -0.001358992, %v8161_v9  ;;  %v1880_v22 = vmul.f32 -0.00019511016, %v8161_v9  ;;  %v2272_v10 = vsel %vm2271_vm3, 1, %v12235_v29  ;;  %v2372_v48 = vsel %vm2371_vm8, %v2370_v0, 0 }
 0x210   : > { %v1717_v11 = vsel %vm8012_vm13, 0, %v1715_v47  ;;  %v1992_v4 = vadd.s32 %v7857_v21, %v7860_v41  ;;  %v2008_v38 = vsub.s32 32, %v2007_v54  ;;  %v2151_v45 = vadd.s32 536870912, %v8170_v13 }
 0x211   : > { %v1583_v19 = vxor.u32 2147483648, %v1578_v44  ;;  %v2013_v3 = vadd.s32 127, %v2012_v46  ;;  %v2286_v50 = vshrl.u32 %v8111_v8, 16  ;;  %v2296_v31 = vadd.s32 %v2294_v56, %v2292_v35 }
 0x212   : > { %v8187_v53 = vsel %vm1585_vm15, %v1586_v59, %v1578_v44  ;;  %v2264_v0 = vshrl.u32 %v8117_v39, 16  ;;  %v2274_v7 = vadd.s32 %v2272_v10, %v2270_v17  ;;  %v2374_v32 = vand.u32 31, %v2372_v48 }
 0x213   : > { %v1722_v6 = vadd.f32 -0.4999988, %v1721_v12  ;;  %v1730_v5 = vmul.f32 %v1729_v34, %v8099_v23  ;;  %v1874_v21 = vadd.f32 0.041655596, %v1873_v14  ;;  %v1881_v41 = vadd.f32 0.008332121, %v1880_v22 }
 0x214   : > { %v2009_v63 = vshll.u32 %v8032_v30, %v2007_v54  ;;  %v2010_v47 = vshrl.u32 %v1992_v4, %v2008_v38  ;;  %v8192_v46 = vshrl.u32 %v2151_v45, 30  ;;  %v2222_v8 = vshrl.u32 %v12224_v62, %v7960_v20 }
 0x215   : > { %v2014_v35 = vshll.u32 %v2013_v3, 23  ;;  %v2243_v39 = vsel %vm2241_vm2, %v8024_v36, 2102212464  ;;  %v2288_v44 = vshrl.u32 %v8133_v37, 16  ;;  %v2297_v59 = vadd.s32 %v2296_v31, %v2286_v50 }
 0x216   : > { %12353 = vst [vmem:[#allocation41_spill] sm:$0xff] %v8192_v46  ;;  %v8203_v12 = vsel %vm1582_vm10, %v8139_v25, %v1583_v19  ;;  %v2266_v30 = vshrl.u32 %v8136_v26, 16  ;;  %v2275_v54 = vadd.s32 %v2274_v7, %v2264_v0  ;;  %v8206_v34 = vsub.s32 32, %v2374_v32 }
 0x217   : > { %v1723_v20 = vmul.f32 %v1722_v6, %v8099_v23  ;;  %v1731_v17 = vadd.f32 1.0, %v1730_v5  ;;  %v8209_v56 = vand.u32 3, %v1717_v11  ;;  %v1875_v36 = vmul.f32 %v1874_v21, %v8161_v9  ;;  %v12356_v21 = vld [vmem:[#allocation23_spill] sm:$0xff] }
 0x218   : > { %v1882_v14 = vmul.f32 %v1881_v41, %v8161_v9  ;;  %v2153_v22 = vshll.u32 %v8192_v46, 30  ;;  %v2242_v25 = vsel %vm2238_vm9, %v2222_v8, %v8020_v42  ;;  %v2244_v26 = vsel %vm2240_vm0, %v8022_v16, %v2243_v39 }
 0x219   : > { %v2011_v10 = vor.u32 %v2010_v47, %v2009_v63  ;;  %v2015_v4 = vor.u32 4788187, %v2014_v35  ;;  %v2298_v23 = vadd.s32 %v2297_v59, %v2288_v44  ;;  %v12107_v11 = vand.u32 2147483647, %v12350_v33 }
 0x21a   : > { %v8221_v38 = vadd.s32 %v2275_v54, %v2266_v30  ;;  %v8226_v45 = vadd.s32 %v8152_v27, %v2287_v55  ;;  %v2389_v19 = vshll.u32 %v12248_v52, %v2374_v32  ;;  %v2390_v42 = vshrl.u32 %v12249_v18, %v8206_v34 }
 0x21b   : > { %v2245_v16 = vsel %vm2239_vm6, %v2242_v25, %v2244_v26  ;;  %v8233_v3 = vshrl.u32 %v2372_v48, 5  ;;  %v2386_v50 = vshll.u32 %v12227_v15, %v2374_v32  ;;  %v2387_v31 = vshrl.u32 %v12248_v52, %v8206_v34 }
 0x21c   : > { %12354 = vst [vmem:[#allocation44_spill] sm:$0xff] %v8221_v38  ;;  %vm1581_vm12 = vcmp.lt.s32.totalorder %v7967_v61, 2  ;;  %v8240_v37 = vsub.s32 %v8170_v13, %v2153_v22  ;;  %v2377_v55 = vshll.u32 %v12224_v62, %v2374_v32  ;;  %v2380_v27 = vshll.u32 %v12263_v1, %v2374_v32  ;;  %v12357_v61 = vld [vmem:[#allocation19_spill] sm:$0xff] }
 0x21d   : > { %12355 = vst [vmem:[#allocation11_spill] sm:$0xff] %v8226_v45  ;;  %v2383_v0 = vshll.u32 %v12264_v49, %v2374_v32  ;;  %v2302_v57 = vadd.s32 1, %v2298_v23  ;;  %v2378_v48 = vshrl.u32 %v12263_v1, %v8206_v34  ;;  %v2381_v7 = vshrl.u32 %v12264_v49, %v8206_v34 }
 0x21e   : > { %v2384_v6 = vshrl.u32 %v12227_v15, %v8206_v34  ;;  %v1883_v5 = vadd.f32 -0.16666654, %v1882_v14  ;;  %vm2301_vm13 = vc.u32 %v8221_v38, %v8226_v45  ;;  %v2391_v13 = vor.u32 %v2390_v42, %v2389_v19 }
 0x21f   : > { %v2517_v41 = vand.u32 2139095040, %v12356_v21  ;;  %v2018_v63 = vcvt.s32.f32 %v2011_v10  ;;  %v2367_v32 = vand.u32 8388607, %v12107_v11  ;;  %v2388_v47 = vor.u32 %v2387_v31, %v2386_v50 }
 0x220   : > { %vm2395_vm2 = vcmp.lt.s32.totalorder %v8233_v3, 4  ;;  %v2016_v8 = vand.u32 2147483647, %v2015_v4  ;;  %vm2155_vm9 = vcmp.lt.s32.totalorder %v8240_v37, 0  ;;  %v2156_v35 = vsub.s32 0, %v8240_v37 }
 0x221   : > { %v2299_v39 = vmul.u32 %v8062_v40, %v2245_v16  ;;  %v2303_v44 = vsel %vm2301_vm13, %v2302_v57, %v2298_v23  ;;  %v8260_v59 = vor.u32 %v2378_v48, %v2377_v55  ;;  %v8262_v30 = vor.u32 %v2381_v7, %v2380_v27 }
 0x222   : > { %v8264_v54 = vor.u32 %v2384_v6, %v2383_v0  ;;  %vm1579_vm0 = vweird.f32 %v12331_v51  ;;  %vm2392_vm6 = vcmp.lt.s32.totalorder %v8233_v3, 1  ;;  %vm2394_vm14 = vcmp.lt.s32.totalorder %v8233_v3, 3 }
 0x223   : > { %v2405_v14 = vsel %vm2395_vm2, %v2391_v13, 1326507024  ;;  %v2518_v22 = vshrl.u32 %v2517_v41, 23  ;;  %v1724_v25 = vadd.f32 1.0, %v1723_v20  ;;  %v1868_v40 = vsub.s32 4, %v7733_v24 }
 0x224   : > { %v2368_v26 = vor.u32 8388608, %v2367_v32  ;;  %v2401_v10 = vsel %vm2395_vm2, %v2388_v47, 920167782  ;;  %v1876_v4 = vadd.f32 -0.4999988, %v1875_v36  ;;  %v1884_v23 = vmul.f32 %v1883_v5, %v8161_v9 }
 0x225   : > { %v2019_v19 = vmul.f32 %v2018_v63, %v2016_v8  ;;  %v2304_v42 = vadd.s32 %v2303_v44, %v2299_v39  ;;  %v2157_v16 = vsel %vm2155_vm9, %v2156_v35, %v8240_v37  ;;  %vm2393_vm5 = vcmp.lt.s32.totalorder %v8233_v3, 2 }
 0x226   : > { %v2404_v20 = vsel %vm2392_vm6, %v8262_v30, %v8264_v54  ;;  %v2406_v50 = vsel %vm2394_vm14, %v2388_v47, %v2405_v14  ;;  %v1732_v36 = vmul.f32 %v1731_v17, %v8081_v2  ;;  %v2400_v31 = vsel %vm2392_vm6, %v8260_v59, %v8262_v30 }
 0x227   : > { %v2402_v55 = vsel %vm2394_vm14, %v8264_v54, %v2401_v10  ;;  %v5373_v27 = vadd.s32 4294967169, %v2518_v22  ;;  %v1588_v0 = vsel %vm1581_vm12, %v8203_v12, %v8187_v53  ;;  %vm1736_vm11 = vcmp.eq.s32.totalorder %v8209_v56, 0 }
 0x228   : > { %v1869_v2 = vsel %vm1746_vm1, %v1868_v40, %v7733_v24  ;;  %v8301_v17 = vshll.u32 %v2368_v26, 8  ;;  %v2020_v57 = vxor.u32 2147483648, %v2019_v19  ;;  %v2158_v48 = vclz %v2157_v16 }
 0x229   : > { %v2305_v7 = vadd.s32 536870912, %v2304_v42  ;;  %v8305_v6 = vsel %vm2393_vm5, %v2404_v20, %v2406_v50  ;;  %v1877_v5 = vmul.f32 %v1876_v4, %v8161_v9  ;;  %v1885_v13 = vadd.f32 1.0, %v1884_v23 }
 0x22a   : > { %vm1900_vm10 = vcmp.lt.s32.totalorder %v12357_v61, 0  ;;  %v8311_v53 = vsel %vm2393_vm5, %v2400_v31, %v2402_v55  ;;  %v1737_v12 = vxor.u32 2147483648, %v1732_v36  ;;  %vm1739_vm1 = vcmp.eq.s32.totalorder %v8209_v56, 2 }
 0x22b   : > { %v1740_v24 = vxor.u32 2147483648, %v1724_v25  ;;  %v2524_v41 = vadd.s32 1, %v5373_v27  ;;  %v1871_v32 = vsel %vm8086_vm7, 0, %v1869_v2  ;;  %v12359_v47 = vand.u32 2147483647, %v12357_v61  ;;  %v12365_v27 = vld [vmem:[#allocation9_spill] sm:$0xff] }
 0x22c   : > { %v2409_v9 = vand.u32 65535, %v8301_v17  ;;  %v2412_v35 = vshrl.u32 %v8305_v6, 16  ;;  %v2021_v39 = vsel %vm1900_vm10, %v2020_v57, %v2019_v19  ;;  %v5365_v44 = vadd.s32 4294967294, %v2158_v48 }
 0x22d   : > { %vm8318_vm15 = vcmp.le.f32.partialorder %v12359_v47, 0.7853982  ;;  %v8326_v14 = vshrl.u32 %v2305_v7, 30  ;;  %v2434_v22 = vshrl.u32 %v8311_v53, 16  ;;  %v8331_v40 = vsel %vm1579_vm0, nan, %v1588_v0 }
 0x22e   : > { %12363 = vst [vmem:[#allocation17_spill] sm:$0xff] %v8331_v40  ;;  %vm1735_vm7 = vcmp.lt.s32.totalorder %v8209_v56, 2  ;;  %v1878_v26 = vadd.f32 1.0, %v1877_v5  ;;  %v1886_v10 = vmul.f32 %v1885_v13, %v8146_v60  ;;  %v1738_v4 = vsel %vm1736_vm11, %v1724_v25, %v1737_v12 }
 0x22f   : > { %12362 = vst [vmem:[#allocation16_spill] sm:$0xff] %v8326_v14  ;;  %v1741_v23 = vsel %vm1739_vm1, %v1740_v24, %v1732_v36  ;;  %v8339_v19 = vand.u32 3, %v1871_v32  ;;  %vm2525_vm4 = vcmp.gt.s32.totalorder %v2524_v41, 0  ;;  %v8344_v51 = vsel %vm8318_vm15, %v12357_v61, %v2021_v39 }
 0x230   : > { %12364 = vst [vmem:[#allocation18_spill] sm:$0xff] %v8344_v51  ;;  %v2410_v16 = vshrl.u32 %v8301_v17, 16  ;;  %v2411_v20 = vand.u32 65535, %v8305_v6  ;;  %v8348_v50 = vmul.u32 %v2412_v35, %v2409_v9  ;;  %vm5366_vm3 = vcmp.lt.s32.totalorder %v5365_v44, 0 }
 0x231   : > { %v2307_v60 = vshll.u32 %v8326_v14, 30  ;;  %v2433_v25 = vand.u32 65535, %v8311_v53  ;;  %v8352_v36 = vmul.u32 %v2434_v22, %v2409_v9  ;;  %v1891_v31 = vxor.u32 2147483648, %v1886_v10 }
 0x232   : > { %v1894_v55 = vxor.u32 2147483648, %v1878_v26  ;;  %v2022_v0 = vsub.s32 4, %v12365_v27  ;;  %v2526_v2 = vsel %vm2525_vm4, %v2524_v41, 0  ;;  %v8357_v57 = vsel %vm1735_vm7, %v1738_v4, %v1741_v23  ;;  %v12368_v4 = vld [vmem:[#allocation24_spill] sm:$0xff] }
 0x233   : > { %vm1890_vm8 = vcmp.eq.s32.totalorder %v8339_v19, 0  ;;  %vm1893_vm12 = vcmp.eq.s32.totalorder %v8339_v19, 2  ;;  %v8363_v48 = vmul.f32 %v8344_v51, %v8344_v51  ;;  %v8365_v7 = vsel %vm5366_vm3, 0, %v5365_v44 }
 0x234   : > { %v2413_v6 = vmul.u32 %v2411_v20, %v2409_v9  ;;  %v8367_v5 = vmul.u32 %v2411_v20, %v2410_v16  ;;  %v2417_v13 = vshll.u32 %v8348_v50, 16  ;;  %v8370_v53 = vsub.s32 %v2304_v42, %v2307_v60  ;;  %v12367_v42 = vld [vmem:[#allocation42_spill] sm:$0xff] }
 0x235   : > { %v2435_v56 = vmul.u32 %v2433_v25, %v2409_v9  ;;  %v2439_v12 = vshll.u32 %v8352_v36, 16  ;;  %v2528_v24 = vand.u32 31, %v2526_v2  ;;  %v8373_v41 = vsel %vm1890_vm8, %v1878_v26, %v1891_v31 }
 0x236   : > { %12366 = vst [vmem:[#allocation40_spill] sm:$0xff] %v8370_v53  ;;  %v8375_v63 = vsel %vm1893_vm12, %v1894_v55, %v1886_v10  ;;  %v8380_v32 = vsel %vm1900_vm10, %v2022_v0, %v12365_v27  ;;  %v8382_v47 = vmul.u32 %v2433_v25, %v2410_v16  ;;  %v8385_v39 = vmul.f32 -0.001358992, %v8363_v48 }
 0x237   : > { %v2146_v9 = vadd.s32 %v12367_v42, %v8124_v43  ;;  %v2162_v44 = vsub.s32 32, %v8365_v7  ;;  %v2671_v26 = vand.u32 2139095040, %v12368_v4  ;;  %v8392_v10 = vmul.f32 -0.00019511016, %v8363_v48 }
 0x238   : > { %v2166_v23 = vsub.s32 4294967266, %v8365_v7  ;;  %v2419_v20 = vshll.u32 %v8367_v5, 16  ;;  %v2423_v60 = vadd.s32 %v2417_v13, %v2413_v6  ;;  %v2310_v25 = vsub.s32 0, %v8370_v53 }
 0x239   : > { %vm2421_vm13 = vc.u32 %v2413_v6, %v2417_v13  ;;  %vm2443_vm9 = vc.u32 %v2435_v56, %v2439_v12  ;;  %v8397_v31 = vsub.s32 32, %v2528_v24  ;;  %vm2309_vm0 = vcmp.lt.s32.totalorder %v8370_v53, 0 }
 0x23a   : > { %v8403_v27 = vadd.s32 %v2439_v12, %v2435_v56  ;;  %v8405_v0 = vshrl.u32 %v2146_v9, %v2162_v44  ;;  %v2416_v42 = vmul.u32 %v2412_v35, %v2410_v16  ;;  %v2438_v11 = vmul.u32 %v2434_v22, %v2410_v16 }
 0x23b   : > { %12369 = vst [vmem:[#allocation9_spill] sm:$0xff] %v8397_v31  ;;  %v2672_v40 = vshrl.u32 %v2671_v26, 23  ;;  %v8407_v33 = vadd.s32 127, %v2166_v23  ;;  %v2422_v6 = vsel %vm2421_vm13, 1, %v12235_v29  ;;  %vm2425_vm11 = vc.u32 %v2423_v60, %v2419_v20 }
 0x23c   : > { %v2444_v13 = vsel %vm2443_vm9, 1, %v12235_v29  ;;  %v2311_v43 = vsel %vm2309_vm0, %v2310_v25, %v8370_v53  ;;  %v2543_v55 = vshll.u32 %v12248_v52, %v2528_v24  ;;  %v2544_v56 = vshrl.u32 %v12249_v18, %v8397_v31 }
 0x23d   : > { %v12370_v35 = vshll.u32 %v8382_v47, 16  ;;  %v8419_v22 = vshrl.u32 %v2526_v2, 5  ;;  %v2540_v16 = vshll.u32 %v12227_v15, %v2528_v24  ;;  %v2541_v12 = vshrl.u32 %v12248_v52, %v8397_v31 }
 0x23e   : > { %v2424_v9 = vadd.s32 %v2422_v6, %v2416_v42  ;;  %v2426_v44 = vsel %vm2425_vm11, 1, %v12235_v29  ;;  %v2446_v26 = vadd.s32 %v2444_v13, %v2438_v11  ;;  %v5376_v23 = vadd.s32 4294967169, %v2672_v40 }
 0x23f   : > { %vm2447_vm10 = vc.u32 %v8403_v27, %v12370_v35  ;;  %v2534_v20 = vshll.u32 %v12263_v1, %v2528_v24  ;;  %v2535_v60 = vshrl.u32 %v12264_v49, %v8397_v31  ;;  %v2537_v25 = vshll.u32 %v12264_v49, %v2528_v24 }
 0x240   : > { %v2538_v2 = vshrl.u32 %v12227_v15, %v8397_v31  ;;  %v2448_v35 = vsel %vm2447_vm10, 1, %v12235_v29  ;;  %v2531_v14 = vshll.u32 %v12224_v62, %v2528_v24  ;;  %v2532_v42 = vshrl.u32 %v12263_v1, %v8397_v31 }
 0x241   : > { %v2545_v6 = vor.u32 %v2544_v56, %v2543_v55  ;;  %vm1889_vm1 = vcmp.lt.s32.totalorder %v8339_v19, 2  ;;  %v2168_v11 = vshll.u32 %v8407_v33, 23  ;;  %v12371_v40 = vand.u32 2147483647, %v12356_v21 }
 0x242   : > { %v2542_v61 = vor.u32 %v2541_v12, %v2540_v16  ;;  %vm2549_vm7 = vcmp.lt.s32.totalorder %v8419_v22, 4  ;;  %v2312_v51 = vclz %v2311_v43  ;;  %v2418_v53 = vshrl.u32 %v8348_v50, 16 }
 0x243   : > { %v2521_v13 = vand.u32 8388607, %v12371_v40  ;;  %v2428_v46 = vadd.s32 %v2426_v44, %v2424_v9  ;;  %v2678_v45 = vadd.s32 1, %v5376_v23  ;;  %v2440_v24 = vshrl.u32 %v8352_v36, 16 }
 0x244   : > { %v2450_v38 = vadd.s32 %v2448_v35, %v2446_v26  ;;  %v8442_v31 = vor.u32 %v2535_v60, %v2534_v20  ;;  %v8444_v55 = vor.u32 %v2538_v2, %v2537_v25  ;;  %v8446_v56 = vor.u32 %v2532_v42, %v2531_v14 }
 0x245   : > { %vm2546_vm4 = vcmp.lt.s32.totalorder %v8419_v22, 1  ;;  %vm2548_vm3 = vcmp.lt.s32.totalorder %v8419_v22, 3  ;;  %v2559_v33 = vsel %vm2549_vm7, %v2545_v6, 1326507024  ;;  %v2376_v50 = vshrl.u32 %v12224_v62, %v8206_v34 }
 0x246   : > { %v2397_v36 = vsel %vm2395_vm2, %v8264_v54, 2102212464  ;;  %v2522_v43 = vor.u32 8388608, %v2521_v13  ;;  %v2555_v16 = vsel %vm2549_vm7, %v2542_v61, 920167782  ;;  %vm1733_vm8 = vweird.f32 %v12340_v28 }
 0x247   : > { %vm1887_vm12 = vweird.f32 %v12345_v58  ;;  %v2420_v14 = vshrl.u32 %v8367_v5, 16  ;;  %v2429_v12 = vadd.s32 %v2428_v46, %v2418_v53  ;;  %v2442_v9 = vshrl.u32 %v8382_v47, 16 }
 0x248   : > { %vm2679_vm13 = vcmp.gt.s32.totalorder %v2678_v45, 0  ;;  %v2451_v44 = vadd.s32 %v2450_v38, %v2440_v24  ;;  %vm2547_vm9 = vcmp.lt.s32.totalorder %v8419_v22, 2  ;;  %v2558_v34 = vsel %vm2546_vm4, %v8442_v31, %v8444_v55 }
 0x249   : > { %v2560_v54 = vsel %vm2548_vm3, %v2542_v61, %v2559_v33  ;;  %v2028_v26 = vadd.f32 0.041655596, %v8385_v39  ;;  %v5368_v23 = vadd.s32 4294967294, %v2312_v51  ;;  %v2554_v46 = vsel %vm2546_vm4, %v8446_v56, %v8442_v31 }
 0x24a   : > { %v2556_v38 = vsel %vm2548_vm3, %v8444_v55, %v2555_v16  ;;  %v2035_v5 = vadd.f32 0.008332121, %v8392_v10  ;;  %v12372_v53 = vshll.u32 %v8240_v37, %v8365_v7  ;;  %v8483_v61 = vshll.u32 %v2522_v43, 8 }
 0x24b   : > { %v2680_v39 = vsel %vm2679_vm13, %v2678_v45, 0  ;;  %v2169_v51 = vor.u32 4788187, %v2168_v11  ;;  %v2396_v60 = vsel %vm2392_vm6, %v2376_v50, %v8260_v59  ;;  %v2398_v25 = vsel %vm2394_vm14, %v8262_v30, %v2397_v36 }
 0x24c   : > { %v2165_v20 = vor.u32 %v8405_v0, %v12372_v53  ;;  %v8493_v10 = vsel %vm2547_vm9, %v2558_v34, %v2560_v54  ;;  %v8495_v2 = vadd.s32 %v2429_v12, %v2420_v14  ;;  %v12373_v37 = vshll.u32 %v8382_v47, 16 }
 0x24d   : > { %v2452_v45 = vadd.s32 %v2451_v44, %v2442_v9  ;;  %v8504_v0 = vsel %vm2547_vm9, %v2554_v46, %v2556_v38  ;;  %v1896_v59 = vsel %vm1889_vm1, %v8373_v41, %v8375_v63  ;;  %v2025_v30 = vsel %vm8318_vm15, 0, %v8380_v32 }
 0x24e   : > { %v8500_v7 = vadd.s32 %v8403_v27, %v12373_v37  ;;  %vm5369_vm2 = vcmp.lt.s32.totalorder %v5368_v23, 0  ;;  %v2682_v35 = vand.u32 31, %v2680_v39  ;;  %v2029_v47 = vmul.f32 %v2028_v26, %v8363_v48 }
 0x24f   : > { %v2036_v27 = vmul.f32 %v2035_v5, %v8363_v48  ;;  %v2563_v42 = vand.u32 65535, %v8483_v61  ;;  %v2566_v6 = vshrl.u32 %v8493_v10, 16  ;;  %v2170_v11 = vand.u32 2147483647, %v2169_v51 }
 0x250   : > { %v2172_v40 = vcvt.s32.f32 %v2165_v20  ;;  %v2399_v19 = vsel %vm2393_vm5, %v2396_v60, %v2398_v25  ;;  %v2588_v41 = vshrl.u32 %v8504_v0, 16  ;;  %v8520_v63 = vsel %vm5369_vm2, 0, %v5368_v23  ;;  %v12376_v25 = vld [vmem:[#allocation25_spill] sm:$0xff] }
 0x251   : > { %vm2455_vm6 = vc.u32 %v8495_v2, %v8500_v7  ;;  %v2456_v8 = vadd.s32 1, %v2452_v45  ;;  %v12119_v32 = vand.u32 2147483647, %v12368_v4  ;;  %v2564_v13 = vshrl.u32 %v8483_v61, 16 }
 0x252   : > { %v2565_v24 = vand.u32 65535, %v8493_v10  ;;  %v2587_v33 = vand.u32 65535, %v8504_v0  ;;  %v8528_v50 = vsub.s32 32, %v2682_v35  ;;  %v8533_v3 = vsel %vm1733_vm8, nan, %v8357_v57 }
 0x253   : > { %12374 = vst [vmem:[#allocation42_spill] sm:$0xff] %v8533_v3  ;;  %v8537_v36 = vsel %vm1887_vm12, nan, %v1896_v59  ;;  %v8539_v43 = vand.u32 3, %v2025_v30  ;;  %v8541_v16 = vmul.u32 %v2566_v6, %v2563_v42  ;;  %v8543_v14 = vadd.f32 -0.4999988, %v2029_v47 }
 0x254   : > { %12375 = vst [vmem:[#allocation46_spill] sm:$0xff] %v8537_v36  ;;  %v8545_v12 = vadd.f32 -0.16666654, %v2036_v27  ;;  %v8547_v9 = vmul.f32 %v2172_v40, %v2170_v11  ;;  %v8549_v44 = vmul.u32 %v2588_v41, %v2563_v42  ;;  %v2320_v28 = vsub.s32 4294967266, %v8520_v63 }
 0x255   : > { %v2453_v57 = vmul.u32 %v8301_v17, %v2399_v19  ;;  %v2457_v58 = vsel %vm2455_vm6, %v2456_v8, %v2452_v45  ;;  %v2675_v34 = vand.u32 8388607, %v12119_v32  ;;  %v8558_v54 = vmul.u32 %v2565_v24, %v2564_v13 }
 0x256   : > { %v2589_v26 = vmul.u32 %v2587_v33, %v2563_v42  ;;  %v2697_v23 = vshll.u32 %v12248_v52, %v2682_v35  ;;  %v2698_v46 = vshrl.u32 %v12249_v18, %v8528_v50  ;;  %v2567_v38 = vmul.u32 %v2565_v24, %v2563_v42 }
 0x257   : > { %v2571_v5 = vshll.u32 %v8541_v16, 16  ;;  %v8564_v53 = vmul.u32 %v2587_v33, %v2564_v13  ;;  %v8566_v17 = vshrl.u32 %v2680_v39, 5  ;;  %v2593_v20 = vshll.u32 %v8549_v44, 16 }
 0x258   : > { %v2694_v51 = vshll.u32 %v12227_v15, %v2682_v35  ;;  %v2695_v60 = vshrl.u32 %v12248_v52, %v8528_v50  ;;  %v2825_v10 = vand.u32 2139095040, %v12376_v25  ;;  %v2688_v37 = vshll.u32 %v12263_v1, %v2682_v35 }
 0x259   : > { %v2689_v45 = vshrl.u32 %v12264_v49, %v8528_v50  ;;  %v2691_v0 = vshll.u32 %v12264_v49, %v2682_v35  ;;  %v2692_v39 = vshrl.u32 %v12227_v15, %v8528_v50  ;;  %v8579_v59 = vadd.s32 %v2457_v58, %v2453_v57  ;;  %v12379_v57 = vld [vmem:[#allocation20_spill] sm:$0xff] }
 0x25a   : > { %v2573_v30 = vshll.u32 %v8558_v54, 16  ;;  %v2676_v47 = vor.u32 8388608, %v2675_v34  ;;  %v2699_v27 = vor.u32 %v2698_v46, %v2697_v23  ;;  %vm8582_vm14 = vc.u32 %v2567_v38, %v2571_v5 }
 0x25b   : > { %v2685_v11 = vshll.u32 %v12224_v62, %v2682_v35  ;;  %v2686_v40 = vshrl.u32 %v12263_v1, %v8528_v50  ;;  %vm2703_vm5 = vcmp.lt.s32.totalorder %v8566_v17, 4  ;;  %v2577_v19 = vadd.s32 %v2571_v5, %v2567_v38 }
 0x25c   : > { %v12120_v8 = vshll.u32 %v8564_v53, 16  ;;  %v2696_v24 = vor.u32 %v2695_v60, %v2694_v51  ;;  %v2826_v33 = vshrl.u32 %v2825_v10, 23  ;;  %vm2054_vm15 = vcmp.lt.s32.totalorder %v12379_v57, 0 }
 0x25d   : > { %vm2597_vm0 = vc.u32 %v2589_v26, %v2593_v20  ;;  %v8592_v58 = vadd.s32 %v2593_v20, %v2589_v26  ;;  %v8594_v34 = vor.u32 %v2689_v45, %v2688_v37  ;;  %v8596_v23 = vor.u32 %v2692_v39, %v2691_v0  ;;  %v12385_v39 = vld [vmem:[#allocation44_spill] sm:$0xff] }
 0x25e   : > { %v2570_v35 = vmul.u32 %v2566_v6, %v2564_v13  ;;  %vm2700_vm11 = vcmp.lt.s32.totalorder %v8566_v17, 1  ;;  %vm2702_vm10 = vcmp.lt.s32.totalorder %v8566_v17, 3  ;;  %v2713_v46 = vsel %vm2703_vm5, %v2699_v27, 1326507024 }
 0x25f   : > { %v2459_v38 = vadd.s32 536870912, %v8579_v59  ;;  %v2576_v5 = vsel %vm8582_vm14, 1, %v12235_v29  ;;  %v2592_v26 = vmul.u32 %v2588_v41, %v2564_v13  ;;  %v8606_v20 = vor.u32 %v2686_v40, %v2685_v11 }
 0x260   : > { %vm8608_vm1 = vc.u32 %v2577_v19, %v2573_v30  ;;  %v2598_v6 = vsel %vm2597_vm0, 1, %v12235_v29  ;;  %v2709_v60 = vsel %vm2703_vm5, %v2696_v24, 920167782  ;;  %v5379_v10 = vadd.s32 4294967169, %v2826_v33  ;;  %v12386_v30 = vld [vmem:[#allocation11_spill] sm:$0xff] }
 0x261   : > { %v12382_v37 = vand.u32 2147483647, %v12379_v57  ;;  %vm2601_vm12 = vc.u32 %v8592_v58, %v12120_v8  ;;  %vm2701_vm13 = vcmp.lt.s32.totalorder %v8566_v17, 2  ;;  %v2712_v41 = vsel %vm2700_vm11, %v8594_v34, %v8596_v23  ;;  %v12390_v8 = vld [vmem:[#allocation9_spill] sm:$0xff] }
 0x262   : > { %v2714_v13 = vsel %vm2702_vm10, %v2696_v24, %v2713_v46  ;;  %v2174_v0 = vxor.u32 2147483648, %v8547_v9  ;;  %v2300_v27 = vadd.s32 %v12386_v30, %v12385_v39  ;;  %v2578_v42 = vadd.s32 %v2576_v5, %v2570_v35 }
 0x263   : > { %vm8617_vm8 = vcmp.le.f32.partialorder %v12382_v37, 0.7853982  ;;  %v2832_v11 = vadd.s32 1, %v5379_v10  ;;  %v2600_v40 = vadd.s32 %v2598_v6, %v2592_v26  ;;  %v2708_v19 = vsel %vm2700_vm11, %v8606_v20, %v8594_v34 }
 0x264   : > { %v2710_v33 = vsel %vm2702_vm10, %v8596_v23, %v2709_v60  ;;  %v8641_v37 = vshll.u32 %v2676_v47, 8  ;;  %v2316_v24 = vsub.s32 32, %v8520_v63  ;;  %v2580_v46 = vsel %vm8608_vm1, 1, %v12235_v29 }
 0x265   : > { %v2602_v35 = vsel %vm2601_vm12, 1, %v12235_v29  ;;  %v2715_v5 = vsel %vm2701_vm13, %v2712_v41, %v2714_v13  ;;  %v2031_v26 = vmul.f32 %v8543_v14, %v8363_v48  ;;  %v2038_v6 = vmul.f32 %v8545_v12, %v8363_v48  ;;  %v12388_v12 = vld [vmem:[#allocation41_spill] sm:$0xff] }
 0x266   : > { %v2321_v47 = vadd.s32 127, %v2320_v28  ;;  %v8656_v60 = vshrl.u32 %v2459_v38, 30  ;;  %v2572_v10 = vshrl.u32 %v8541_v16, 16  ;;  %v2594_v51 = vshrl.u32 %v8549_v44, 16  ;;  %v12389_v16 = vld [vmem:[#allocation40_spill] sm:$0xff] }
 0x267   : > { %v8662_v39 = vsel %vm2701_vm13, %v2708_v19, %v2710_v33  ;;  %vm2833_vm2 = vcmp.gt.s32.totalorder %v2832_v11, 0  ;;  %v2582_v41 = vadd.s32 %v2580_v46, %v2578_v42  ;;  %v2604_v13 = vadd.s32 %v2602_v35, %v2600_v40 }
 0x268   : > { %12387 = vst [vmem:[#allocation44_spill] sm:$0xff] %v8656_v60  ;;  %v2717_v14 = vand.u32 65535, %v8641_v37  ;;  %v2720_v30 = vshrl.u32 %v2715_v5, 16  ;;  %v2175_v48 = vsel %vm2054_vm15, %v2174_v0, %v8547_v9  ;;  %v2176_v28 = vsub.s32 4, %v12388_v12 }
 0x269   : > { %v2317_v38 = vshll.u32 %v12389_v16, %v8520_v63  ;;  %v2318_v44 = vshrl.u32 %v2300_v27, %v2316_v24  ;;  %v2322_v32 = vshll.u32 %v2321_v47, 23  ;;  %v2530_v19 = vshrl.u32 %v12224_v62, %v12390_v8 }
 0x26a   : > { %v2742_v42 = vshrl.u32 %v8662_v39, 16  ;;  %v2834_v40 = vsel %vm2833_vm2, %v2832_v11, 0  ;;  %v2461_v33 = vshll.u32 %v8656_v60, 30  ;;  %v2551_v46 = vsel %vm2549_vm7, %v8444_v55, 2102212464 }
 0x26b   : > { %v2574_v9 = vshrl.u32 %v8558_v54, 16  ;;  %v2596_v0 = vshrl.u32 %v8564_v53, 16  ;;  %v2583_v35 = vadd.s32 %v2582_v41, %v2572_v10  ;;  %v2605_v63 = vadd.s32 %v2604_v13, %v2594_v51 }
 0x26c   : > { %v2719_v27 = vand.u32 65535, %v2715_v5  ;;  %v8680_v24 = vmul.u32 %v2720_v30, %v2717_v14  ;;  %v8682_v47 = vadd.f32 1.0, %v2031_v26  ;;  %v8687_v8 = vsel %vm8617_vm8, %v12379_v57, %v2175_v48 }
 0x26d   : > { %v2718_v11 = vshrl.u32 %v8641_v37, 16  ;;  %v2836_v16 = vand.u32 31, %v2834_v40  ;;  %v8690_v55 = vor.u32 %v2318_v44, %v2317_v38  ;;  %v8692_v54 = vor.u32 4788187, %v2322_v32 }
 0x26e   : > { %v2741_v10 = vand.u32 65535, %v8662_v39  ;;  %v8695_v51 = vmul.u32 %v2742_v42, %v2717_v14  ;;  %v8698_v5 = vsub.s32 %v8579_v59, %v2461_v33  ;;  %v2550_v26 = vsel %vm2546_vm4, %v2530_v19, %v8446_v56 }
 0x26f   : > { %v2552_v41 = vsel %vm2548_vm3, %v8442_v31, %v2551_v46  ;;  %v12391_v13 = vshll.u32 %v8564_v53, 16  ;;  %v8711_v48 = vadd.s32 %v2583_v35, %v2574_v9  ;;  %v2606_v39 = vadd.s32 %v2605_v63, %v2596_v0 }
 0x270   : > { %v2721_v38 = vmul.u32 %v2719_v27, %v2717_v14  ;;  %v2725_v59 = vshll.u32 %v8680_v24, 16  ;;  %v8714_v44 = vadd.f32 1.0, %v2038_v6  ;;  %v8719_v56 = vsel %vm2054_vm15, %v2176_v28, %v12388_v12 }
 0x271   : > { %v8709_v32 = vadd.s32 %v8592_v58, %v12391_v13  ;;  %v8721_v19 = vmul.u32 %v2719_v27, %v2718_v11  ;;  %v8723_v31 = vsub.s32 32, %v2836_v16  ;;  %v8727_v53 = vmul.f32 %v8687_v8, %v8687_v8 }
 0x272   : > { %v2326_v58 = vcvt.s32.f32 %v8690_v55  ;;  %v2743_v33 = vmul.u32 %v2741_v10, %v2717_v14  ;;  %v2747_v46 = vshll.u32 %v8695_v51, 16  ;;  %v2324_v6 = vand.u32 2147483647, %v8692_v54 }
 0x273   : > { %v2553_v9 = vsel %vm2547_vm9, %v2550_v26, %v2552_v41  ;;  %v8734_v12 = vmul.u32 %v2741_v10, %v2718_v11  ;;  %vm2463_vm7 = vcmp.lt.s32.totalorder %v8698_v5, 0  ;;  %vm2609_vm4 = vc.u32 %v8711_v48, %v8709_v32 }
 0x274   : > { %v2610_v0 = vadd.s32 1, %v2606_v39  ;;  %v2724_v35 = vmul.u32 %v2720_v30, %v2718_v11  ;;  %vm2729_vm3 = vc.u32 %v2721_v38, %v2725_v59  ;;  %v2727_v14 = vshll.u32 %v8721_v19, 16 }
 0x275   : > { %v2731_v63 = vadd.s32 %v2725_v59, %v2721_v38  ;;  %v2851_v27 = vshll.u32 %v12248_v52, %v2836_v16  ;;  %v2852_v22 = vshrl.u32 %v12249_v18, %v8723_v31  ;;  %vm2751_vm9 = vc.u32 %v2743_v33, %v2747_v46 }
 0x276   : > { %v8744_v55 = vshrl.u32 %v2834_v40, 5  ;;  %v2848_v54 = vshll.u32 %v12227_v15, %v2836_v16  ;;  %v2849_v10 = vshrl.u32 %v12248_v52, %v8723_v31  ;;  %v2730_v26 = vsel %vm2729_vm3, 1, %v12235_v29 }
 0x277   : > { %v2746_v30 = vmul.u32 %v2742_v42, %v2718_v11  ;;  %v8751_v13 = vadd.s32 %v2747_v46, %v2743_v33  ;;  %v2842_v38 = vshll.u32 %v12263_v1, %v2836_v16  ;;  %v2843_v59 = vshrl.u32 %v12264_v49, %v8723_v31 }
 0x278   : > { %v2845_v40 = vshll.u32 %v12264_v49, %v2836_v16  ;;  %v2846_v28 = vshrl.u32 %v12227_v15, %v8723_v31  ;;  %v2752_v36 = vsel %vm2751_vm9, 1, %v12235_v29  ;;  %v2839_v3 = vshll.u32 %v12224_v62, %v2836_v16 }
 0x279   : > { %v2840_v42 = vshrl.u32 %v12263_v1, %v8723_v31  ;;  %v2853_v11 = vor.u32 %v2852_v22, %v2851_v27  ;;  %v2464_v33 = vsub.s32 0, %v8698_v5  ;;  %v12392_v46 = vand.u32 2147483647, %v12376_v25 }
 0x27a   : > { %v2850_v4 = vor.u32 %v2849_v10, %v2848_v54  ;;  %vm2857_vm6 = vcmp.lt.s32.totalorder %v8744_v55, 4  ;;  %v2607_v57 = vmul.u32 %v8483_v61, %v2553_v9  ;;  %v2611_v21 = vsel %vm2609_vm4, %v2610_v0, %v2606_v39  ;;  %v12394_v54 = vld [vmem:[#allocation21_spill] sm:$0xff] }
 0x27b   : > { %v2829_v41 = vand.u32 8388607, %v12392_v46  ;;  %vm2733_vm14 = vc.u32 %v2731_v63, %v2727_v14  ;;  %v12393_v16 = vshll.u32 %v8734_v12, 16  ;;  %v2732_v27 = vadd.s32 %v2730_v26, %v2724_v35  ;;  %v12395_v26 = vld [vmem:[#allocation18_spill] sm:$0xff] }
 0x27c   : > { %v2754_v22 = vadd.s32 %v2752_v36, %v2746_v30  ;;  %v8774_v60 = vor.u32 %v2843_v59, %v2842_v38  ;;  %v8776_v25 = vor.u32 %v2846_v28, %v2845_v40  ;;  %vm2208_vm0 = vcmp.lt.s32.totalorder %v12394_v54, 0  ;;  %v12399_v40 = vld [vmem:[#allocation26_spill] sm:$0xff] }
 0x27d   : > { %vm2755_vm15 = vc.u32 %v8751_v13, %v12393_v16  ;;  %v8779_v10 = vor.u32 %v2840_v42, %v2839_v3  ;;  %vm2854_vm1 = vcmp.lt.s32.totalorder %v8744_v55, 1  ;;  %vm2856_vm12 = vcmp.lt.s32.totalorder %v8744_v55, 3 }
 0x27e   : > { %v2867_v61 = vsel %vm2857_vm6, %v2853_v11, 1326507024  ;;  %v2734_v39 = vsel %vm2733_vm14, 1, %v12235_v29  ;;  %v2756_v9 = vsel %vm2755_vm15, 1, %v12235_v29  ;;  %v2830_v36 = vor.u32 8388608, %v2829_v41 }
 0x27f   : > { %v2863_v28 = vsel %vm2857_vm6, %v2850_v4, 920167782  ;;  %v2327_v0 = vmul.f32 %v2326_v58, %v2324_v6  ;;  %v2465_v3 = vsel %vm2463_vm7, %v2464_v33, %v8698_v5  ;;  %v8792_v35 = vadd.s32 %v2611_v21, %v2607_v57 }
 0x280   : > { %v2726_v14 = vshrl.u32 %v8680_v24, 16  ;;  %vm2044_vm2 = vcmp.eq.s32.totalorder %v8539_v43, 0  ;;  %vm2047_vm4 = vcmp.eq.s32.totalorder %v8539_v43, 2  ;;  %v2748_v63 = vshrl.u32 %v8695_v51, 16 }
 0x281   : > { %vm2855_vm3 = vcmp.lt.s32.totalorder %v8744_v55, 2  ;;  %v2866_v58 = vsel %vm2854_vm1, %v8774_v60, %v8776_v25  ;;  %v2868_v6 = vsel %vm2856_vm12, %v2850_v4, %v2867_v61  ;;  %v2736_v21 = vadd.s32 %v2734_v39, %v2732_v27 }
 0x282   : > { %v2758_v57 = vadd.s32 %v2756_v9, %v2754_v22  ;;  %v2862_v24 = vsel %vm2854_vm1, %v8779_v10, %v8774_v60  ;;  %v2864_v51 = vsel %vm2856_vm12, %v8776_v25, %v2863_v28  ;;  %v2040_v30 = vmul.f32 %v8714_v44, %v12395_v26 }
 0x283   : > { %v2048_v41 = vxor.u32 2147483648, %v8682_v47  ;;  %v12396_v38 = vand.u32 2147483647, %v12394_v54  ;;  %v8821_v59 = vshll.u32 %v2830_v36, 8  ;;  %v2979_v42 = vand.u32 2139095040, %v12399_v40 }
 0x284   : > { %v2181_v11 = vmul.f32 -0.001358992, %v8727_v53  ;;  %v2188_v33 = vmul.f32 -0.00019511016, %v8727_v53  ;;  %v2328_v46 = vxor.u32 2147483648, %v2327_v0  ;;  %v8828_v44 = vsel %vm2855_vm3, %v2866_v58, %v2868_v6 }
 0x285   : > { %vm8817_vm7 = vcmp.le.f32.partialorder %v12396_v38, 0.7853982  ;;  %v2466_v16 = vclz %v2465_v3  ;;  %v2613_v27 = vadd.s32 536870912, %v8792_v35  ;;  %v2684_v22 = vshrl.u32 %v12224_v62, %v8528_v50 }
 0x286   : > { %v8835_v61 = vsel %vm2855_vm3, %v2862_v24, %v2864_v51  ;;  %v2728_v39 = vshrl.u32 %v8721_v19, 16  ;;  %v2737_v9 = vadd.s32 %v2736_v21, %v2726_v14  ;;  %v2750_v36 = vshrl.u32 %v8734_v12, 16 }
 0x287   : > { %v2759_v28 = vadd.s32 %v2758_v57, %v2748_v63  ;;  %vm2043_vm9 = vcmp.lt.s32.totalorder %v8539_v43, 2  ;;  %v2705_v3 = vsel %vm2703_vm5, %v8596_v23, 2102212464  ;;  %v2871_v58 = vand.u32 65535, %v8821_v59 }
 0x288   : > { %v2874_v50 = vshrl.u32 %v8828_v44, 16  ;;  %v2980_v6 = vshrl.u32 %v2979_v42, 23  ;;  %v2045_v26 = vxor.u32 2147483648, %v2040_v30  ;;  %v2182_v24 = vadd.f32 0.041655596, %v2181_v11 }
 0x289   : > { %v2189_v51 = vadd.f32 0.008332121, %v2188_v33  ;;  %v2896_v19 = vshrl.u32 %v8835_v61, 16  ;;  %v2329_v14 = vsel %vm2208_vm0, %v2328_v46, %v2327_v0  ;;  %v5371_v63 = vadd.s32 4294967294, %v2466_v16 }
 0x28a   : > { %v8848_v21 = vshrl.u32 %v2613_v27, 30  ;;  %v2704_v23 = vsel %vm2700_vm11, %v2684_v22, %v8606_v20  ;;  %v2706_v57 = vsel %vm2702_vm10, %v8594_v34, %v2705_v3  ;;  %v8856_v38 = vadd.s32 %v2737_v9, %v2728_v39 }
 0x28b   : > { %v12400_v42 = vshll.u32 %v8734_v12, 16  ;;  %v2760_v33 = vadd.s32 %v2759_v28, %v2750_v36  ;;  %v2872_v0 = vshrl.u32 %v8821_v59, 16  ;;  %v2873_v46 = vand.u32 65535, %v8828_v44 }
 0x28c   : > { %v8865_v16 = vmul.u32 %v2874_v50, %v2871_v58  ;;  %v5382_v27 = vadd.s32 4294967169, %v2980_v6  ;;  %v2046_v20 = vsel %vm2044_vm2, %v8682_v47, %v2045_v26  ;;  %v2049_v34 = vsel %vm2047_vm4, %v2048_v41, %v2040_v30 }
 0x28d   : > { %v8861_v11 = vadd.s32 %v8751_v13, %v12400_v42  ;;  %v2895_v12 = vand.u32 65535, %v8835_v61  ;;  %v8873_v22 = vmul.u32 %v2896_v19, %v2871_v58  ;;  %v2183_v13 = vmul.f32 %v2182_v24, %v8727_v53 }
 0x28e   : > { %v2190_v39 = vmul.f32 %v2189_v51, %v8727_v53  ;;  %vm5372_vm5 = vcmp.lt.s32.totalorder %v5371_v63, 0  ;;  %v2615_v44 = vshll.u32 %v8848_v21, 30  ;;  %v8881_v9 = vsel %vm8817_vm7, %v12394_v54, %v2329_v14  ;;  %v12401_v51 = vld [vmem:[#allocation19_spill] sm:$0xff] }
 0x28f   : > { %v2707_v47 = vsel %vm2701_vm13, %v2704_v23, %v2706_v57  ;;  %vm2763_vm11 = vc.u32 %v8856_v38, %v8861_v11  ;;  %v2764_v30 = vadd.s32 1, %v2760_v33  ;;  %v2875_v41 = vmul.u32 %v2873_v46, %v2871_v58 }
 0x290   : > { %v8887_v61 = vmul.u32 %v2873_v46, %v2872_v0  ;;  %v2879_v36 = vshll.u32 %v8865_v16, 16  ;;  %v2986_v28 = vadd.s32 1, %v5382_v27  ;;  %v8890_v3 = vsel %vm5372_vm5, 0, %v5371_v63 }
 0x291   : > { %v2897_v6 = vmul.u32 %v2895_v12, %v2871_v58  ;;  %v8892_v26 = vmul.u32 %v2895_v12, %v2872_v0  ;;  %v2901_v24 = vshll.u32 %v8873_v22, 16  ;;  %vm2041_vm10 = vweird.f32 %v12401_v51 }
 0x292   : > { %v2179_v17 = vsel %vm8617_vm8, 0, %v8719_v56  ;;  %v8901_v14 = vmul.f32 %v8881_v9, %v8881_v9  ;;  %v8904_v23 = vsub.s32 %v8792_v35, %v2615_v44  ;;  %v2761_v63 = vmul.u32 %v8641_v37, %v2707_v47 }
 0x293   : > { %v2050_v58 = vsel %vm2043_vm9, %v2046_v20, %v2049_v34  ;;  %v2184_v57 = vadd.f32 -0.4999988, %v2183_v13  ;;  %v2191_v42 = vadd.f32 -0.16666654, %v2190_v39  ;;  %v2765_v46 = vsel %vm2763_vm11, %v2764_v30, %v2760_v33 }
 0x294   : > { %v2474_v45 = vsub.s32 4294967266, %v8890_v3  ;;  %v2881_v56 = vshll.u32 %v8887_v61, 16  ;;  %vm8914_vm8 = vc.u32 %v2875_v41, %v2879_v36  ;;  %vm2987_vm13 = vcmp.gt.s32.totalorder %v2986_v28, 0 }
 0x295   : > { %v2885_v35 = vadd.s32 %v2879_v36, %v2875_v41  ;;  %v12127_v37 = vshll.u32 %v8892_v26, 16  ;;  %vm2905_vm14 = vc.u32 %v2897_v6, %v2901_v24  ;;  %v8919_v43 = vadd.s32 %v2901_v24, %v2897_v6 }
 0x296   : > { %v2342_v20 = vmul.f32 -0.00019511016, %v8901_v14  ;;  %v2454_v33 = vadd.s32 %v8500_v7, %v8495_v2  ;;  %v2618_v34 = vsub.s32 0, %v8904_v23  ;;  %v8925_v12 = vadd.s32 %v2765_v46, %v2761_v63 }
 0x297   : > { %vm2617_vm15 = vcmp.lt.s32.totalorder %v8904_v23, 0  ;;  %v2878_v13 = vmul.u32 %v2874_v50, %v2872_v0  ;;  %v2900_v39 = vmul.u32 %v2896_v19, %v2872_v0  ;;  %v2988_v44 = vsel %vm2987_vm13, %v2986_v28, 0 }
 0x298   : > { %v2470_v47 = vsub.s32 32, %v8890_v3  ;;  %v2475_v30 = vadd.s32 127, %v2474_v45  ;;  %v2884_v41 = vsel %vm8914_vm8, 1, %v12235_v29  ;;  %v2906_v36 = vsel %vm2905_vm14, 1, %v12235_v29 }
 0x299   : > { %v2185_v2 = vmul.f32 %v2184_v57, %v8727_v53  ;;  %v2192_v7 = vmul.f32 %v2191_v42, %v8727_v53  ;;  %vm2887_vm2 = vc.u32 %v2885_v35, %v2881_v56  ;;  %vm2909_vm4 = vc.u32 %v8919_v43, %v12127_v37  ;;  %v12405_v35 = vld [vmem:[#allocation16_spill] sm:$0xff] }
 0x29a   : > { %v2335_v50 = vmul.f32 -0.001358992, %v8901_v14  ;;  %v2619_v19 = vsel %vm2617_vm15, %v2618_v34, %v8904_v23  ;;  %v2767_v0 = vadd.s32 536870912, %v8925_v12  ;;  %v2990_v28 = vand.u32 31, %v2988_v44 }
 0x29b   : > { %v2343_v6 = vadd.f32 0.008332121, %v2342_v20  ;;  %v2471_v24 = vshll.u32 %v8698_v5, %v8890_v3  ;;  %v2886_v63 = vadd.s32 %v2884_v41, %v2878_v13  ;;  %v2908_v57 = vadd.s32 %v2906_v36, %v2900_v39 }
 0x29c   : > { %v2472_v46 = vshrl.u32 %v2454_v33, %v2470_v47  ;;  %v2476_v53 = vshll.u32 %v2475_v30, 23  ;;  %v2888_v42 = vsel %vm2887_vm2, 1, %v12235_v29  ;;  %v2910_v45 = vsel %vm2909_vm4, 1, %v12235_v29 }
 0x29d   : > { %v8947_v56 = vsel %vm2041_vm10, nan, %v2050_v58  ;;  %v8949_v27 = vand.u32 3, %v2179_v17  ;;  %v2620_v20 = vclz %v2619_v19  ;;  %v8952_v37 = vadd.f32 1.0, %v2185_v2 }
 0x29e   : > { %12404 = vst [vmem:[#allocation11_spill] sm:$0xff] %v8947_v56  ;;  %v8954_v5 = vadd.f32 1.0, %v2192_v7  ;;  %v8956_v3 = vshrl.u32 %v2767_v0, 30  ;;  %v8958_v33 = vsub.s32 32, %v2990_v28  ;;  %v2880_v13 = vshrl.u32 %v8865_v16, 16 }
 0x29f   : > { %v2890_v39 = vadd.s32 %v2888_v42, %v2886_v63  ;;  %v2902_v51 = vshrl.u32 %v8873_v22, 16  ;;  %v2912_v58 = vadd.s32 %v2910_v45, %v2908_v57  ;;  %v8962_v47 = vadd.f32 0.041655596, %v2335_v50 }
 0x2a0   : > { %v8965_v17 = vmul.f32 %v2343_v6, %v8901_v14  ;;  %v2473_v30 = vor.u32 %v2472_v46, %v2471_v24  ;;  %v2477_v41 = vor.u32 4788187, %v2476_v53  ;;  %v5374_v36 = vadd.s32 4294967294, %v2620_v20 }
 0x2a1   : > { %v2838_v2 = vshrl.u32 %v12224_v62, %v8723_v31  ;;  %v2859_v7 = vsel %vm2857_vm6, %v8776_v25, 2102212464  ;;  %v12128_v16 = vand.u32 2147483647, %v12399_v40  ;;  %v2769_v22 = vshll.u32 %v8956_v3, 30 }
 0x2a2   : > { %v2882_v50 = vshrl.u32 %v8887_v61, 16  ;;  %v3002_v19 = vshll.u32 %v12227_v15, %v2990_v28  ;;  %v3003_v0 = vshrl.u32 %v12248_v52, %v8958_v33  ;;  %v2891_v6 = vadd.s32 %v2890_v39, %v2880_v13 }
 0x2a3   : > { %v2904_v24 = vshrl.u32 %v8892_v26, 16  ;;  %v2913_v63 = vadd.s32 %v2912_v58, %v2902_v51  ;;  %v8979_v31 = vshrl.u32 %v2988_v44, 5  ;;  %v2993_v57 = vshll.u32 %v12224_v62, %v2990_v28 }
 0x2a4   : > { %v2994_v25 = vshrl.u32 %v12263_v1, %v8958_v33  ;;  %v2996_v46 = vshll.u32 %v12263_v1, %v2990_v28  ;;  %v2999_v61 = vshll.u32 %v12264_v49, %v2990_v28  ;;  %v2997_v53 = vshrl.u32 %v12264_v49, %v8958_v33 }
 0x2a5   : > { %v3000_v42 = vshrl.u32 %v12227_v15, %v8958_v33  ;;  %v3005_v45 = vshll.u32 %v12248_v52, %v2990_v28  ;;  %v3006_v44 = vshrl.u32 %v12249_v18, %v8958_v33  ;;  %v2480_v20 = vcvt.s32.f32 %v2473_v30 }
 0x2a6   : > { %vm5375_vm6 = vcmp.lt.s32.totalorder %v5374_v36, 0  ;;  %v2858_v13 = vsel %vm2854_vm1, %v2838_v2, %v8779_v10  ;;  %v3004_v39 = vor.u32 %v3003_v0, %v3002_v19  ;;  %v8997_v51 = vsub.s32 %v8925_v12, %v2769_v22  ;;  %v12407_v2 = vld [vmem:[#allocation27_spill] sm:$0xff] }
 0x2a7   : > { %v2914_v58 = vadd.s32 %v2913_v63, %v2904_v24  ;;  %v2983_v34 = vand.u32 8388607, %v12128_v16  ;;  %vm3011_vm9 = vcmp.lt.s32.totalorder %v8979_v31, 4  ;;  %v2860_v28 = vsel %vm2856_vm12, %v8774_v60, %v2859_v7 }
 0x2a8   : > { %v9005_v30 = vadd.s32 %v2891_v6, %v2882_v50  ;;  %v12406_v56 = vshll.u32 %v8892_v26, 16  ;;  %v3133_v12 = vand.u32 2139095040, %v12407_v2  ;;  %v9013_v22 = vor.u32 %v2994_v25, %v2993_v57  ;;  %v12408_v26 = vld [vmem:[#allocation22_spill] sm:$0xff] }
 0x2a9   : > { %v9015_v19 = vor.u32 %v2997_v53, %v2996_v46  ;;  %v9017_v0 = vor.u32 %v3000_v42, %v2999_v61  ;;  %v3007_v24 = vor.u32 %v3006_v44, %v3005_v45  ;;  %vm2201_vm1 = vcmp.eq.s32.totalorder %v8949_v27, 2 }
 0x2aa   : > { %v9010_v10 = vadd.s32 %v8919_v43, %v12406_v56  ;;  %v2478_v63 = vand.u32 2147483647, %v2477_v41  ;;  %vm3008_vm12 = vcmp.lt.s32.totalorder %v8979_v31, 1  ;;  %vm3010_vm5 = vcmp.lt.s32.totalorder %v8979_v31, 3 }
 0x2ab   : > { %v3017_v60 = vsel %vm3011_vm9, %v3004_v39, 920167782  ;;  %vm2362_vm11 = vcmp.lt.s32.totalorder %v12408_v26, 0  ;;  %v2772_v43 = vsub.s32 0, %v8997_v51  ;;  %v2861_v56 = vsel %vm2855_vm3, %v2858_v13, %v2860_v28 }
 0x2ac   : > { %v2918_v7 = vadd.s32 1, %v2914_v58  ;;  %v2984_v50 = vor.u32 8388608, %v2983_v34  ;;  %vm2198_vm10 = vcmp.eq.s32.totalorder %v8949_v27, 0  ;;  %v9030_v41 = vsel %vm5375_vm6, 0, %v5374_v36 }
 0x2ad   : > { %vm2771_vm8 = vcmp.lt.s32.totalorder %v8997_v51, 0  ;;  %vm2917_vm13 = vc.u32 %v9005_v30, %v9010_v10  ;;  %v3134_v6 = vshrl.u32 %v3133_v12, 23  ;;  %vm3009_vm14 = vcmp.lt.s32.totalorder %v8979_v31, 2 }
 0x2ae   : > { %v3016_v55 = vsel %vm3008_vm12, %v9013_v22, %v9015_v19  ;;  %v3018_v34 = vsel %vm3010_vm5, %v9017_v0, %v3017_v60  ;;  %v3021_v36 = vsel %vm3011_vm9, %v3007_v24, 1326507024  ;;  %v2194_v57 = vmul.f32 %v8954_v5, %v8687_v8 }
 0x2af   : > { %v12409_v25 = vsub.s32 4, %v12405_v35  ;;  %v2481_v61 = vmul.f32 %v2480_v20, %v2478_v63  ;;  %v2915_v53 = vmul.u32 %v8821_v59, %v2861_v56  ;;  %v2337_v42 = vmul.f32 %v8962_v47, %v8901_v14 }
 0x2b0   : > { %v2773_v45 = vsel %vm2771_vm8, %v2772_v43, %v8997_v51  ;;  %v2919_v44 = vsel %vm2917_vm13, %v2918_v7, %v2914_v58  ;;  %v9056_v13 = vshll.u32 %v2984_v50, 8  ;;  %vm2197_vm3 = vcmp.lt.s32.totalorder %v8949_v27, 2 }
 0x2b1   : > { %v2331_v46 = vsel %vm2208_vm0, %v12409_v25, %v12405_v35  ;;  %v2628_v8 = vsub.s32 4294967266, %v9030_v41  ;;  %v9062_v5 = vsel %vm3009_vm14, %v3016_v55, %v3018_v34  ;;  %v3020_v59 = vsel %vm3008_vm12, %v9015_v19, %v9017_v0 }
 0x2b2   : > { %v3022_v35 = vsel %vm3010_vm5, %v3004_v39, %v3021_v36  ;;  %v2202_v47 = vxor.u32 2147483648, %v8952_v37  ;;  %v2345_v20 = vadd.f32 -0.16666654, %v8965_v17  ;;  %v12410_v58 = vand.u32 2147483647, %v12408_v26 }
 0x2b3   : > { %v5385_v12 = vadd.s32 4294967169, %v3134_v6  ;;  %v2333_v24 = vsel %vm8817_vm7, 0, %v2331_v46  ;;  %v2482_v63 = vxor.u32 2147483648, %v2481_v61  ;;  %v2774_v60 = vclz %v2773_v45 }
 0x2b4   : > { %vm9074_vm0 = vcmp.le.f32.partialorder %v12410_v58, 0.7853982  ;;  %v9080_v43 = vadd.s32 %v2919_v44, %v2915_v53  ;;  %v2199_v56 = vxor.u32 2147483648, %v2194_v57  ;;  %v9084_v39 = vsel %vm3009_vm14, %v3020_v59, %v3022_v35  ;;  %v12413_v58 = vld [vmem:[#allocation44_spill] sm:$0xff] }
 0x2b5   : > { %v3025_v17 = vand.u32 65535, %v9056_v13  ;;  %v3050_v7 = vshrl.u32 %v9062_v5, 16  ;;  %v2338_v50 = vadd.f32 -0.4999988, %v2337_v42  ;;  %v2608_v6 = vadd.s32 %v8709_v32, %v8711_v48 }
 0x2b6   : > { %v2624_v4 = vsub.s32 32, %v9030_v41  ;;  %v2629_v55 = vadd.s32 127, %v2628_v8  ;;  %v2203_v34 = vsel %vm2201_vm1, %v2202_v47, %v2194_v57  ;;  %v2346_v36 = vmul.f32 %v2345_v20, %v8901_v14 }
 0x2b7   : > { %v9094_v25 = vand.u32 3, %v2333_v24  ;;  %v3140_v46 = vadd.s32 1, %v5385_v12  ;;  %v2483_v53 = vsel %vm2362_vm11, %v2482_v63, %v2481_v61  ;;  %v5377_v45 = vadd.s32 4294967294, %v2774_v60 }
 0x2b8   : > { %v2921_v42 = vadd.s32 536870912, %v9080_v43  ;;  %v3028_v44 = vshrl.u32 %v9084_v39, 16  ;;  %v2200_v32 = vsel %vm2198_vm10, %v8952_v37, %v2199_v56  ;;  %v3026_v48 = vshrl.u32 %v9056_v13, 16 }
 0x2b9   : > { %v3049_v57 = vand.u32 65535, %v9062_v5  ;;  %v9105_v8 = vmul.u32 %v3050_v7, %v3025_v17  ;;  %v2339_v59 = vmul.f32 %v2338_v50, %v8901_v14  ;;  %v2625_v61 = vshll.u32 %v8904_v23, %v9030_v41 }
 0x2ba   : > { %v2626_v35 = vshrl.u32 %v2608_v6, %v2624_v4  ;;  %v2630_v47 = vshll.u32 %v2629_v55, 23  ;;  %v2347_v20 = vadd.f32 1.0, %v2346_v36  ;;  %v2484_v12 = vsub.s32 4, %v12413_v58 }
 0x2bb   : > { %v9114_v37 = vsel %vm9074_vm0, %v12408_v26, %v2483_v53  ;;  %vm3141_vm7 = vcmp.gt.s32.totalorder %v3140_v46, 0  ;;  %vm5378_vm15 = vcmp.lt.s32.totalorder %v5377_v45, 0  ;;  %v9116_v5 = vshrl.u32 %v2921_v42, 30 }
 0x2bc   : > { %v3027_v24 = vand.u32 65535, %v9084_v39  ;;  %v9119_v14 = vmul.u32 %v3028_v44, %v3025_v17  ;;  %v9123_v23 = vsel %vm2197_vm3, %v2200_v32, %v2203_v34  ;;  %v3051_v41 = vmul.u32 %v3049_v57, %v3025_v17 }
 0x2bd   : > { %12414 = vst [vmem:[#allocation41_spill] sm:$0xff] %v9116_v5  ;;  %v9125_v63 = vmul.u32 %v3049_v57, %v3026_v48  ;;  %v3055_v60 = vshll.u32 %v9105_v8, 16  ;;  %v9128_v56 = vadd.f32 1.0, %v2339_v59  ;;  %v2627_v50 = vor.u32 %v2626_v35, %v2625_v61 }
 0x2be   : > { %v2631_v6 = vor.u32 4788187, %v2630_v47  ;;  %v3142_v4 = vsel %vm3141_vm7, %v3140_v46, 0  ;;  %v9131_v55 = vmul.f32 %v2347_v20, %v8881_v9  ;;  %v9136_v39 = vsel %vm2362_vm11, %v2484_v12, %v12413_v58 }
 0x2bf   : > { %v9140_v27 = vmul.f32 %v9114_v37, %v9114_v37  ;;  %v9142_v34 = vsel %vm5378_vm15, 0, %v5377_v45  ;;  %v2923_v36 = vshll.u32 %v9116_v5, 30  ;;  %v3029_v53 = vmul.u32 %v3027_v24, %v3025_v17 }
 0x2c0   : > { %v9145_v42 = vmul.u32 %v3027_v24, %v3026_v48  ;;  %v3033_v46 = vshll.u32 %v9119_v14, 16  ;;  %v12129_v9 = vshll.u32 %v9125_v63, 16  ;;  %vm3059_vm2 = vc.u32 %v3051_v41, %v3055_v60 }
 0x2c1   : > { %v9149_v32 = vadd.s32 %v3055_v60, %v3051_v41  ;;  %v3144_v57 = vand.u32 31, %v3142_v4  ;;  %v2489_v61 = vmul.f32 -0.001358992, %v9140_v27  ;;  %v2632_v35 = vand.u32 2147483647, %v2631_v6 }
 0x2c2   : > { %v2634_v45 = vcvt.s32.f32 %v2627_v50  ;;  %v2762_v47 = vadd.s32 %v8861_v11, %v8856_v38  ;;  %v2778_v17 = vsub.s32 32, %v9142_v34  ;;  %v2782_v20 = vsub.s32 4294967266, %v9142_v34 }
 0x2c3   : > { %v3054_v58 = vmul.u32 %v3050_v7, %v3026_v48  ;;  %v3035_v12 = vshll.u32 %v9145_v42, 16  ;;  %vm3037_vm4 = vc.u32 %v3029_v53, %v3033_v46  ;;  %v3039_v24 = vadd.s32 %v3033_v46, %v3029_v53 }
 0x2c4   : > { %v3060_v41 = vsel %vm3059_vm2, 1, %v12235_v29  ;;  %v9160_v60 = vsub.s32 %v9080_v43, %v2923_v36  ;;  %vm3063_vm6 = vc.u32 %v9149_v32, %v12129_v9  ;;  %v9166_v11 = vsub.s32 32, %v3144_v57 }
 0x2c5   : > { %v9169_v7 = vadd.f32 0.041655596, %v2489_v61  ;;  %v2496_v6 = vmul.f32 -0.00019511016, %v9140_v27  ;;  %v3032_v53 = vmul.u32 %v3028_v44, %v3026_v48  ;;  %v9172_v46 = vmul.f32 %v2634_v45, %v2632_v35 }
 0x2c6   : > { %v2779_v43 = vshll.u32 %v8997_v51, %v9142_v34  ;;  %v3038_v36 = vsel %vm3037_vm4, 1, %v12235_v29  ;;  %v3062_v16 = vadd.s32 %v3060_v41, %v3054_v58  ;;  %v2780_v59 = vshrl.u32 %v2762_v47, %v2778_v17 }
 0x2c7   : > { %v2783_v9 = vadd.s32 127, %v2782_v20  ;;  %vm3041_vm1 = vc.u32 %v3039_v24, %v3035_v12  ;;  %v3064_v38 = vsel %vm3063_vm6, 1, %v12235_v29  ;;  %vm2925_vm11 = vcmp.lt.s32.totalorder %v9160_v60, 0 }
 0x2c8   : > { %v12415_v61 = vand.u32 2147483647, %v12407_v2  ;;  %v3159_v44 = vshll.u32 %v12248_v52, %v3144_v57  ;;  %v3160_v48 = vshrl.u32 %v12249_v18, %v9166_v11  ;;  %v3040_v35 = vadd.s32 %v3038_v36, %v3032_v53  ;;  %v12416_v53 = vld [vmem:[#allocation23_spill] sm:$0xff] }
 0x2c9   : > { %v9184_v51 = vshrl.u32 %v3142_v4, 5  ;;  %v3156_v34 = vshll.u32 %v12227_v15, %v3144_v57  ;;  %v3157_v45 = vshrl.u32 %v12248_v52, %v9166_v11  ;;  %v2926_v47 = vsub.s32 0, %v9160_v60 }
 0x2ca   : > { %v3137_v50 = vand.u32 8388607, %v12415_v61  ;;  %v3042_v17 = vsel %vm3041_vm1, 1, %v12235_v29  ;;  %v3056_v20 = vshrl.u32 %v9105_v8, 16  ;;  %v3066_v58 = vadd.s32 %v3064_v38, %v3062_v16 }
 0x2cb   : > { %v3150_v12 = vshll.u32 %v12263_v1, %v3144_v57  ;;  %v3151_v24 = vshrl.u32 %v12264_v49, %v9166_v11  ;;  %v3153_v4 = vshll.u32 %v12264_v49, %v3144_v57  ;;  %v3154_v41 = vshrl.u32 %v12227_v15, %v9166_v11 }
 0x2cc   : > { %vm2355_vm10 = vcmp.eq.s32.totalorder %v9094_v25, 2  ;;  %vm2516_vm8 = vcmp.lt.s32.totalorder %v12416_v53, 0  ;;  %v2784_v36 = vshll.u32 %v2783_v9, 23  ;;  %v3147_v61 = vshll.u32 %v12224_v62, %v3144_v57 }
 0x2cd   : > { %v3148_v16 = vshrl.u32 %v12263_v1, %v9166_v11  ;;  %v3161_v8 = vor.u32 %v3160_v48, %v3159_v44  ;;  %vm2352_vm13 = vcmp.eq.s32.totalorder %v9094_v25, 0  ;;  %v3034_v38 = vshrl.u32 %v9119_v14, 16  ;;  %v12417_v48 = vld [vmem:[#allocation20_spill] sm:$0xff] }
 0x2ce   : > { %v3044_v2 = vadd.s32 %v3042_v17, %v3040_v35  ;;  %v3158_v40 = vor.u32 %v3157_v45, %v3156_v34  ;;  %vm3165_vm3 = vcmp.lt.s32.totalorder %v9184_v51, 4  ;;  %v2927_v5 = vsel %vm2925_vm11, %v2926_v47, %v9160_v60 }
 0x2cf   : > { %v2992_v9 = vshrl.u32 %v12224_v62, %v8958_v33  ;;  %v3013_v57 = vsel %vm3011_vm9, %v9017_v0, 2102212464  ;;  %v3138_v44 = vor.u32 8388608, %v3137_v50  ;;  %vm2195_vm7 = vweird.f32 %v12417_v48 }
 0x2d0   : > { %v12418_v14 = vand.u32 2147483647, %v12416_v53  ;;  %v3058_v34 = vshrl.u32 %v9125_v63, 16  ;;  %v3067_v45 = vadd.s32 %v3066_v58, %v3056_v20  ;;  %v9222_v47 = vor.u32 %v3151_v24, %v3150_v12 }
 0x2d1   : > { %v9224_v17 = vor.u32 %v3154_v41, %v3153_v4  ;;  %vm2351_vm2 = vcmp.lt.s32.totalorder %v9094_v25, 2  ;;  %v9227_v33 = vor.u32 %v3148_v16, %v3147_v61  ;;  %vm3162_vm9 = vcmp.lt.s32.totalorder %v9184_v51, 1 }
 0x2d2   : > { %vm9217_vm15 = vcmp.le.f32.partialorder %v12418_v14, 0.7853982  ;;  %vm3164_vm4 = vcmp.lt.s32.totalorder %v9184_v51, 3  ;;  %v3175_v0 = vsel %vm3165_vm3, %v3161_v8, 1326507024  ;;  %v2928_v50 = vclz %v2927_v5 }
 0x2d3   : > { %v3036_v14 = vshrl.u32 %v9145_v42, 16  ;;  %v3045_v26 = vadd.s32 %v3044_v2, %v3034_v38  ;;  %v3171_v20 = vsel %vm3165_vm3, %v3158_v40, 920167782  ;;  %v2497_v58 = vadd.f32 0.008332121, %v2496_v6 }
 0x2d4   : > { %v2636_v12 = vxor.u32 2147483648, %v9172_v46  ;;  %v2781_v24 = vor.u32 %v2780_v59, %v2779_v43  ;;  %v2785_v4 = vor.u32 4788187, %v2784_v36  ;;  %v3012_v41 = vsel %vm3008_vm12, %v2992_v9, %v9013_v22 }
 0x2d5   : > { %vm3163_vm6 = vcmp.lt.s32.totalorder %v9184_v51, 2  ;;  %v3174_v5 = vsel %vm3162_vm9, %v9222_v47, %v9224_v17  ;;  %v3176_v2 = vsel %vm3164_vm4, %v3158_v40, %v3175_v0  ;;  %v3014_v42 = vsel %vm3010_vm5, %v9015_v19, %v3013_v57 }
 0x2d6   : > { %v3068_v59 = vadd.s32 %v3067_v45, %v3058_v34  ;;  %v3170_v22 = vsel %vm3162_vm9, %v9227_v33, %v9222_v47  ;;  %v3172_v6 = vsel %vm3164_vm4, %v9224_v17, %v3171_v20  ;;  %v5380_v43 = vadd.s32 4294967294, %v2928_v50 }
 0x2d7   : > { %v9257_v36 = vadd.s32 %v3045_v26, %v3036_v14  ;;  %v12422_v61 = vshll.u32 %v9125_v63, 16  ;;  %v9264_v16 = vshll.u32 %v3138_v44, 8  ;;  %v2487_v19 = vsel %vm9074_vm0, 0, %v9136_v39 }
 0x2d8   : > { %v2786_v8 = vand.u32 2147483647, %v2785_v4  ;;  %v2788_v38 = vcvt.s32.f32 %v2781_v24  ;;  %v9271_v9 = vsel %vm3163_vm6, %v3174_v5, %v3176_v2  ;;  %v12424_v26 = vxor.u32 2147483648, %v9128_v56  ;;  %v12428_v4 = vld [vmem:[#allocation28_spill] sm:$0xff] }
 0x2d9   : > { %12421 = vst [vmem:[#allocation40_spill] sm:$0xff] %v9257_v36  ;;  %v9262_v40 = vadd.s32 %v9149_v32, %v12422_v61  ;;  %v2491_v32 = vmul.f32 %v9169_v7, %v9140_v27  ;;  %v2637_v28 = vsel %vm2516_vm8, %v2636_v12, %v9172_v46  ;;  %v9285_v39 = vsel %vm3163_vm6, %v3170_v22, %v3172_v6  ;;  %v12429_v22 = vld [vmem:[#allocation24_spill] sm:$0xff] }
 0x2da   : > { %v2357_v63 = vsel %vm2355_vm10, %v12424_v26, %v9131_v55  ;;  %v12425_v57 = vxor.u32 2147483648, %v9131_v55  ;;  %v2498_v34 = vmul.f32 %v2497_v58, %v9140_v27  ;;  %v3015_v45 = vsel %vm3009_vm14, %v3012_v41, %v3014_v42 }
 0x2db   : > { %12423 = vst [vmem:[#allocation9_spill] sm:$0xff] %v9262_v40  ;;  %v3072_v7 = vadd.s32 1, %v3068_v59  ;;  %vm5381_vm12 = vcmp.lt.s32.totalorder %v5380_v43, 0  ;;  %vm3071_vm5 = vc.u32 %v9257_v36, %v9262_v40  ;;  %v3179_v46 = vand.u32 65535, %v9264_v16 }
 0x2dc   : > { %v2354_v44 = vsel %vm2352_vm13, %v9128_v56, %v12425_v57  ;;  %v3182_v0 = vshrl.u32 %v9271_v9, 16  ;;  %v9302_v55 = vsel %vm2195_vm7, nan, %v9123_v23  ;;  %v9307_v56 = vsel %vm9217_vm15, %v12416_v53, %v2637_v28 }
 0x2dd   : > { %12426 = vst [vmem:[#allocation21_spill] sm:$0xff] %v9302_v55  ;;  %v2789_v31 = vmul.f32 %v2788_v38, %v2786_v8  ;;  %v3204_v50 = vshrl.u32 %v9285_v39, 16  ;;  %v9312_v14 = vsel %vm2351_vm2, %v2354_v44, %v2357_v63  ;;  %v2492_v20 = vadd.f32 -0.4999988, %v2491_v32 }
 0x2de   : > { %12427 = vst [vmem:[#allocation18_spill] sm:$0xff] %v9312_v14  ;;  %v9314_v58 = vand.u32 3, %v2487_v19  ;;  %v3069_v12 = vmul.u32 %v9056_v13, %v3015_v45  ;;  %v2499_v48 = vadd.f32 -0.16666654, %v2498_v34  ;;  %v9317_v23 = vsel %vm5381_vm12, 0, %v5380_v43 }
 0x2df   : > { %v3073_v24 = vsel %vm3071_vm5, %v3072_v7, %v3068_v59  ;;  %v3287_v41 = vand.u32 2139095040, %v12428_v4  ;;  %v9322_v5 = vmul.f32 %v9307_v56, %v9307_v56  ;;  %v3180_v2 = vshrl.u32 %v9264_v16, 16 }
 0x2e0   : > { %v3181_v25 = vand.u32 65535, %v9271_v9  ;;  %v9326_v42 = vmul.u32 %v3182_v0, %v3179_v46  ;;  %vm2670_vm14 = vcmp.lt.s32.totalorder %v12429_v22, 0  ;;  %v2790_v6 = vxor.u32 2147483648, %v2789_v31 }
 0x2e1   : > { %v3203_v13 = vand.u32 65535, %v9285_v39  ;;  %v9330_v43 = vmul.u32 %v3204_v50, %v3179_v46  ;;  %v2493_v59 = vmul.f32 %v2492_v20, %v9140_v27  ;;  %v12430_v61 = vand.u32 2147483647, %v12429_v22 }
 0x2e2   : > { %v2936_v8 = vsub.s32 4294967266, %v9317_v23  ;;  %v9340_v38 = vadd.s32 %v3073_v24, %v3069_v12  ;;  %v2500_v9 = vmul.f32 %v2499_v48, %v9140_v27  ;;  %v2638_v26 = vsub.s32 4, %v8848_v21 }
 0x2e3   : > { %vm9335_vm0 = vcmp.le.f32.partialorder %v12430_v61, 0.7853982  ;;  %v2643_v63 = vmul.f32 -0.001358992, %v9322_v5  ;;  %v3288_v32 = vshrl.u32 %v3287_v41, 23  ;;  %v3183_v39 = vmul.u32 %v3181_v25, %v3179_v46 }
 0x2e4   : > { %v2650_v28 = vmul.f32 -0.00019511016, %v9322_v5  ;;  %v9346_v57 = vmul.u32 %v3181_v25, %v3180_v2  ;;  %v3187_v44 = vshll.u32 %v9326_v42, 16  ;;  %v2791_v34 = vsel %vm2670_vm14, %v2790_v6, %v2789_v31 }
 0x2e5   : > { %v3205_v45 = vmul.u32 %v3203_v13, %v3179_v46  ;;  %v9351_v7 = vmul.u32 %v3203_v13, %v3180_v2  ;;  %v3209_v27 = vshll.u32 %v9330_v43, 16  ;;  %vm2509_vm1 = vcmp.eq.s32.totalorder %v9314_v58, 2 }
 0x2e6   : > { %v2916_v20 = vadd.s32 %v9010_v10, %v9005_v30  ;;  %v2932_v12 = vsub.s32 32, %v9317_v23  ;;  %v2937_v48 = vadd.s32 127, %v2936_v8  ;;  %v3075_v24 = vadd.s32 536870912, %v9340_v38 }
 0x2e7   : > { %v2494_v41 = vadd.f32 1.0, %v2493_v59  ;;  %v2501_v25 = vadd.f32 1.0, %v2500_v9  ;;  %v2644_v61 = vadd.f32 0.041655596, %v2643_v63  ;;  %v5388_v55 = vadd.s32 4294967169, %v3288_v32 }
 0x2e8   : > { %v2651_v31 = vadd.f32 0.008332121, %v2650_v28  ;;  %v9362_v46 = vsel %vm9335_vm0, %v12429_v22, %v2791_v34  ;;  %v3189_v6 = vshll.u32 %v9346_v57, 16  ;;  %vm9365_vm11 = vc.u32 %v3183_v39, %v3187_v44 }
 0x2e9   : > { %vm2506_vm10 = vcmp.eq.s32.totalorder %v9314_v58, 0  ;;  %v3193_v30 = vadd.s32 %v3187_v44, %v3183_v39  ;;  %v3211_v10 = vshll.u32 %v9351_v7, 16  ;;  %vm3213_vm13 = vc.u32 %v3205_v45, %v3209_v27 }
 0x2ea   : > { %v9371_v59 = vadd.s32 %v3209_v27, %v3205_v45  ;;  %v2933_v8 = vshll.u32 %v9160_v60, %v9317_v23  ;;  %v2934_v9 = vshrl.u32 %v2916_v20, %v2932_v12  ;;  %v2938_v63 = vshll.u32 %v2937_v48, 23 }
 0x2eb   : > { %v9375_v32 = vshrl.u32 %v3075_v24, 30  ;;  %v2502_v28 = vmul.f32 %v2501_v25, %v9114_v37  ;;  %v3186_v34 = vmul.u32 %v3182_v0, %v3180_v2  ;;  %v3208_v14 = vmul.u32 %v3204_v50, %v3180_v2 }
 0x2ec   : > { %v3294_v40 = vadd.s32 1, %v5388_v55  ;;  %v2652_v36 = vmul.f32 %v2651_v31, %v9322_v5  ;;  %v9381_v39 = vmul.f32 %v9362_v46, %v9362_v46  ;;  %v3192_v44 = vsel %vm9365_vm11, 1, %v12235_v29 }
 0x2ed   : > { %v3214_v60 = vsel %vm3213_vm13, 1, %v12235_v29  ;;  %v2510_v23 = vxor.u32 2147483648, %v2494_v41  ;;  %v2645_v45 = vmul.f32 %v2644_v61, %v9322_v5  ;;  %vm3195_vm7 = vc.u32 %v3193_v30, %v3189_v6 }
 0x2ee   : > { %vm3217_vm2 = vc.u32 %v9371_v59, %v3211_v10  ;;  %v2639_v37 = vsel %vm2516_vm8, %v2638_v26, %v8848_v21  ;;  %v2935_v0 = vor.u32 %v2934_v9, %v2933_v8  ;;  %v2939_v55 = vor.u32 4788187, %v2938_v63 }
 0x2ef   : > { %v3077_v50 = vshll.u32 %v9375_v32, 30  ;;  %v2507_v2 = vxor.u32 2147483648, %v2502_v28  ;;  %v3194_v27 = vadd.s32 %v3192_v44, %v3186_v34  ;;  %v3216_v20 = vadd.s32 %v3214_v60, %v3208_v14 }
 0x2f0   : > { %vm3295_vm12 = vcmp.gt.s32.totalorder %v3294_v40, 0  ;;  %v2653_v12 = vadd.f32 -0.16666654, %v2652_v36  ;;  %v2804_v48 = vmul.f32 -0.00019511016, %v9381_v39  ;;  %v3196_v24 = vsel %vm3195_vm7, 1, %v12235_v29 }
 0x2f1   : > { %v3218_v25 = vsel %vm3217_vm2, 1, %v12235_v29  ;;  %v9400_v61 = vsel %vm2509_vm1, %v2510_v23, %v2502_v28  ;;  %v2641_v21 = vsel %vm9217_vm15, 0, %v2639_v37  ;;  %v2646_v26 = vadd.f32 -0.4999988, %v2645_v45 }
 0x2f2   : > { %v2792_v31 = vsub.s32 4, %v8956_v3  ;;  %v2940_v6 = vand.u32 2147483647, %v2939_v55  ;;  %v2942_v14 = vcvt.s32.f32 %v2935_v0  ;;  %v9406_v36 = vsub.s32 %v9340_v38, %v3077_v50 }
 0x2f3   : > { %v3296_v13 = vsel %vm3295_vm12, %v3294_v40, 0  ;;  %v3188_v30 = vshrl.u32 %v9326_v42, 16  ;;  %v3198_v8 = vadd.s32 %v3196_v24, %v3194_v27  ;;  %v3210_v9 = vshrl.u32 %v9330_v43, 16  ;;  %v12435_v27 = vld [vmem:[#allocation25_spill] sm:$0xff] }
 0x2f4   : > { %v3220_v63 = vadd.s32 %v3218_v25, %v3216_v20  ;;  %v9412_v28 = vsel %vm2506_vm10, %v2494_v41, %v2507_v2  ;;  %v2654_v35 = vmul.f32 %v2653_v12, %v9322_v5  ;;  %v2797_v34 = vmul.f32 -0.001358992, %v9381_v39 }
 0x2f5   : > { %v2805_v44 = vadd.f32 0.008332121, %v2804_v48  ;;  %v2647_v60 = vmul.f32 %v2646_v26, %v9322_v5  ;;  %v9417_v38 = vand.u32 3, %v2641_v21  ;;  %v9422_v40 = vsel %vm2670_vm14, %v2792_v31, %v8956_v3 }
 0x2f6   : > { %v3298_v42 = vand.u32 31, %v3296_v13  ;;  %v2943_v43 = vmul.f32 %v2942_v14, %v2940_v6  ;;  %v3080_v23 = vsub.s32 0, %v9406_v36  ;;  %v3146_v41 = vshrl.u32 %v12224_v62, %v9166_v11 }
 0x2f7   : > { %v3167_v45 = vsel %vm3165_vm3, %v9224_v17, 2102212464  ;;  %v3190_v5 = vshrl.u32 %v9346_v57, 16  ;;  %v3199_v37 = vadd.s32 %v3198_v8, %v3188_v30  ;;  %v3212_v0 = vshrl.u32 %v9351_v7, 16 }
 0x2f8   : > { %v3221_v55 = vadd.s32 %v3220_v63, %v3210_v9  ;;  %v2655_v50 = vadd.f32 1.0, %v2654_v35  ;;  %v2798_v3 = vadd.f32 0.041655596, %v2797_v34  ;;  %v2806_v2 = vmul.f32 %v2805_v44, %v9381_v39 }
 0x2f9   : > { %vm3079_vm8 = vcmp.lt.s32.totalorder %v9406_v36, 0  ;;  %v2795_v11 = vsel %vm9335_vm0, 0, %v9422_v40  ;;  %v12436_v20 = vand.u32 2147483647, %v12435_v27  ;;  %vm2824_vm3 = vcmp.lt.s32.totalorder %v12435_v27, 0 }
 0x2fa   : > { %v9444_v57 = vsub.s32 32, %v3298_v42  ;;  %v9446_v12 = vadd.f32 1.0, %v2647_v60  ;;  %v2944_v48 = vxor.u32 2147483648, %v2943_v43  ;;  %v3166_v24 = vsel %vm3162_vm9, %v3146_v41, %v9227_v33 }
 0x2fb   : > { %vm9439_vm15 = vcmp.le.f32.partialorder %v12436_v20, 0.7853982  ;;  %v3168_v25 = vsel %vm3164_vm4, %v9222_v47, %v3167_v45  ;;  %v3081_v21 = vsel %vm3079_vm8, %v3080_v23, %v9406_v36  ;;  %v9455_v26 = vadd.s32 %v3199_v37, %v3190_v5  ;;  %v12439_v37 = vld [vmem:[#allocation29_spill] sm:$0xff] }
 0x2fc   : > { %v9460_v31 = vadd.s32 %v9371_v59, %v3211_v10  ;;  %v3222_v6 = vadd.s32 %v3221_v55, %v3212_v0  ;;  %v2656_v14 = vmul.f32 %v2655_v50, %v9307_v56  ;;  %v2799_v30 = vmul.f32 %v2798_v3, %v9381_v39 }
 0x2fd   : > { %v2807_v8 = vadd.f32 -0.16666654, %v2806_v2  ;;  %v12137_v33 = vand.u32 2147483647, %v12428_v4  ;;  %v3310_v9 = vshll.u32 %v12227_v15, %v3298_v42  ;;  %v3311_v47 = vshrl.u32 %v12248_v52, %v9444_v57  ;;  %v12445_v4 = vld [vmem:[#allocation18_spill] sm:$0xff] }
 0x2fe   : > { %v3313_v63 = vshll.u32 %v12248_v52, %v3298_v42  ;;  %v3314_v7 = vshrl.u32 %v12249_v18, %v9444_v57  ;;  %vm2663_vm9 = vcmp.eq.s32.totalorder %v9417_v38, 2  ;;  %v2945_v56 = vsel %vm2824_vm3, %v2944_v48, %v2943_v43 }
 0x2ff   : > { %v3082_v10 = vclz %v3081_v21  ;;  %v3169_v59 = vsel %vm3163_vm6, %v3166_v24, %v3168_v25  ;;  %v9476_v35 = vshrl.u32 %v3296_v13, 5  ;;  %vm2660_vm4 = vcmp.eq.s32.totalorder %v9417_v38, 0 }
 0x300   : > { %vm3225_vm5 = vc.u32 %v9455_v26, %v9460_v31  ;;  %v3226_v34 = vadd.s32 1, %v3222_v6  ;;  %v3301_v44 = vshll.u32 %v12224_v62, %v3298_v42  ;;  %v3304_v60 = vshll.u32 %v12263_v1, %v3298_v42 }
 0x301   : > { %v3302_v23 = vshrl.u32 %v12263_v1, %v9444_v57  ;;  %v3305_v43 = vshrl.u32 %v12264_v49, %v9444_v57  ;;  %v3307_v51 = vshll.u32 %v12264_v49, %v3298_v42  ;;  %v3308_v13 = vshrl.u32 %v12227_v15, %v9444_v57 }
 0x302   : > { %vm2505_vm6 = vcmp.lt.s32.totalorder %v9314_v58, 2  ;;  %v2664_v41 = vxor.u32 2147483648, %v9446_v12  ;;  %v3312_v45 = vor.u32 %v3311_v47, %v3310_v9  ;;  %v3315_v5 = vor.u32 %v3314_v7, %v3313_v63 }
 0x303   : > { %v3441_v0 = vand.u32 2139095040, %v12439_v37  ;;  %v2800_v55 = vadd.f32 -0.4999988, %v2799_v30  ;;  %v2808_v50 = vmul.f32 %v2807_v8, %v9381_v39  ;;  %v3291_v3 = vand.u32 8388607, %v12137_v33 }
 0x304   : > { %vm3319_vm14 = vcmp.lt.s32.totalorder %v9476_v35, 4  ;;  %v9500_v42 = vsel %vm9439_vm15, %v12435_v27, %v2945_v56  ;;  %v5383_v2 = vadd.s32 4294967294, %v3082_v10  ;;  %v3223_v20 = vmul.u32 %v9264_v16, %v3169_v59 }
 0x305   : > { %v3227_v48 = vsel %vm3225_vm5, %v3226_v34, %v3222_v6  ;;  %v9506_v24 = vor.u32 %v3302_v23, %v3301_v44  ;;  %v9508_v25 = vor.u32 %v3305_v43, %v3304_v60  ;;  %v9510_v21 = vor.u32 %v3308_v13, %v3307_v51 }
 0x306   : > { %vm3316_vm1 = vcmp.lt.s32.totalorder %v9476_v35, 1  ;;  %vm3318_vm11 = vcmp.lt.s32.totalorder %v9476_v35, 3  ;;  %v3325_v30 = vsel %vm3319_vm14, %v3312_v45, 920167782  ;;  %v3329_v16 = vsel %vm3319_vm14, %v3315_v5, 1326507024 }
 0x307   : > { %v3442_v8 = vshrl.u32 %v3441_v0, 23  ;;  %v2661_v9 = vxor.u32 2147483648, %v2656_v14  ;;  %v2801_v6 = vmul.f32 %v2800_v55, %v9381_v39  ;;  %v2809_v47 = vadd.f32 1.0, %v2808_v50 }
 0x308   : > { %v3292_v63 = vor.u32 8388608, %v3291_v3  ;;  %v9521_v7 = vmul.f32 %v9500_v42, %v9500_v42  ;;  %vm5384_vm10 = vcmp.lt.s32.totalorder %v5383_v2, 0  ;;  %v9523_v56 = vadd.s32 %v3227_v48, %v3223_v20  ;;  %v12441_v20 = vld [vmem:[#allocation41_spill] sm:$0xff] }
 0x309   : > { %vm3317_vm13 = vcmp.lt.s32.totalorder %v9476_v35, 2  ;;  %v3324_v10 = vsel %vm3316_vm1, %v9506_v24, %v9508_v25  ;;  %v3326_v39 = vsel %vm3318_vm11, %v9510_v21, %v3325_v30  ;;  %v3328_v59 = vsel %vm3316_vm1, %v9508_v25, %v9510_v21 }
 0x30a   : > { %v3330_v34 = vsel %vm3318_vm11, %v3312_v45, %v3329_v16  ;;  %vm2659_vm7 = vcmp.lt.s32.totalorder %v9417_v38, 2  ;;  %v2665_v44 = vsel %vm2663_vm9, %v2664_v41, %v2656_v14  ;;  %v9546_v60 = vand.u32 3, %v2795_v11  ;;  %v12440_v11 = vld [vmem:[#allocation22_spill] sm:$0xff] }
 0x30b   : > { %v5391_v23 = vadd.s32 4294967169, %v3442_v8  ;;  %v2662_v43 = vsel %vm2660_vm4, %v9446_v12, %v2661_v9  ;;  %v2802_v51 = vadd.f32 1.0, %v2801_v6  ;;  %v9551_v13 = vsel %vm5384_vm10, 0, %v5383_v2  ;;  %v12442_v8 = vld [vmem:[#allocation40_spill] sm:$0xff]  ;;  %v12443_v9 = vld [vmem:[#allocation9_spill] sm:$0xff] }
 0x30c   : > { %v9553_v45 = vshll.u32 %v3292_v63, 8  ;;  %v2810_v5 = vmul.f32 %v2809_v47, %v9362_v46  ;;  %v3229_v14 = vadd.s32 536870912, %v9523_v56  ;;  %v9559_v19 = vsel %vm3317_vm13, %v3324_v10, %v3326_v39 }
 0x30d   : > { %v9563_v40 = vsel %vm3317_vm13, %v3328_v59, %v3330_v34  ;;  %vm2349_vm0 = vweird.f32 %v12394_v54  ;;  %vm2503_vm2 = vweird.f32 %v12440_v11  ;;  %v2512_v12 = vsel %vm2505_vm6, %v9412_v28, %v9400_v61 }
 0x30e   : > { %v2951_v46 = vmul.f32 -0.001358992, %v9521_v7  ;;  %v2958_v41 = vmul.f32 -0.00019511016, %v9521_v7  ;;  %vm2657_vm12 = vweird.f32 %v12416_v53  ;;  %v2666_v0 = vsel %vm2659_vm7, %v2662_v43, %v2665_v44 }
 0x30f   : > { %v3090_v55 = vsub.s32 4294967266, %v9551_v13  ;;  %v3448_v50 = vadd.s32 1, %v5391_v23  ;;  %vm2813_vm8 = vcmp.lt.s32.totalorder %v9546_v60, 2  ;;  %vm2814_vm9 = vcmp.eq.s32.totalorder %v9546_v60, 0 }
 0x310   : > { %v3333_v3 = vand.u32 65535, %v9553_v45  ;;  %v3336_v58 = vshrl.u32 %v9563_v40, 16  ;;  %v3358_v61 = vshrl.u32 %v9559_v19, 16  ;;  %v2815_v28 = vxor.u32 2147483648, %v2810_v5 }
 0x311   : > { %v2818_v2 = vxor.u32 2147483648, %v2802_v51  ;;  %v2946_v48 = vsub.s32 4, %v12441_v20  ;;  %v9583_v30 = vshrl.u32 %v3229_v14, 30  ;;  %vm2817_vm4 = vcmp.eq.s32.totalorder %v9546_v60, 2 }
 0x312   : > { %v2952_v38 = vadd.f32 0.041655596, %v2951_v46  ;;  %v2959_v16 = vadd.f32 0.008332121, %v2958_v41  ;;  %v3070_v6 = vadd.s32 %v12443_v9, %v12442_v8  ;;  %v3086_v47 = vsub.s32 32, %v9551_v13  ;;  %v12444_v8 = vld [vmem:[#allocation30_spill] sm:$0xff] }
 0x313   : > { %v3091_v63 = vadd.s32 127, %v3090_v55  ;;  %v3335_v10 = vand.u32 65535, %v9563_v40  ;;  %vm3449_vm5 = vcmp.gt.s32.totalorder %v3448_v50, 0  ;;  %v3334_v39 = vshrl.u32 %v9553_v45, 16 }
 0x314   : > { %v9591_v59 = vmul.u32 %v3336_v58, %v3333_v3  ;;  %v3357_v34 = vand.u32 65535, %v9559_v19  ;;  %v9594_v44 = vmul.u32 %v3358_v61, %v3333_v3  ;;  %v2816_v23 = vsel %vm2814_vm9, %v2802_v51, %v2815_v28 }
 0x315   : > { %v2819_v43 = vsel %vm2817_vm4, %v2818_v2, %v2810_v5  ;;  %v9601_v14 = vsel %vm2824_vm3, %v2946_v48, %v12441_v20  ;;  %v3231_v40 = vshll.u32 %v9583_v30, 30  ;;  %v2953_v46 = vmul.f32 %v2952_v38, %v9521_v7 }
 0x316   : > { %v2960_v41 = vmul.f32 %v2959_v16, %v9521_v7  ;;  %v3450_v55 = vsel %vm3449_vm5, %v3448_v50, 0  ;;  %v3595_v19 = vand.u32 2139095040, %v12444_v8  ;;  %v3087_v9 = vshll.u32 %v9406_v36, %v9551_v13 }
 0x317   : > { %v3088_v33 = vshrl.u32 %v3070_v6, %v3086_v47  ;;  %v3092_v51 = vshll.u32 %v3091_v63, 23  ;;  %v3337_v5 = vmul.u32 %v3335_v10, %v3333_v3  ;;  %v3341_v28 = vshll.u32 %v9591_v59, 16 }
 0x318   : > { %v3359_v2 = vmul.u32 %v3357_v34, %v3333_v3  ;;  %v9610_v20 = vmul.u32 %v3357_v34, %v3334_v39  ;;  %v3363_v48 = vshll.u32 %v9594_v44, 16  ;;  %v9616_v38 = vsel %vm2349_vm0, nan, %v12445_v4 }
 0x319   : > { %12446 = vst [vmem:[#allocation19_spill] sm:$0xff] %v9616_v38  ;;  %v9620_v50 = vsel %vm2503_vm2, nan, %v2512_v12  ;;  %v9623_v36 = vsub.s32 %v9523_v56, %v3231_v40  ;;  %v3452_v13 = vand.u32 31, %v3450_v55  ;;  %v9627_v3 = vsel %vm2657_vm12, nan, %v2666_v0 }
 0x31a   : > { %12447 = vst [vmem:[#allocation16_spill] sm:$0xff] %v9620_v50  ;;  %v9632_v6 = vmul.u32 %v3335_v10, %v3334_v39  ;;  %v3596_v54 = vshrl.u32 %v3595_v19, 23  ;;  %v9636_v4 = vsel %vm2813_vm8, %v2816_v23, %v2819_v43  ;;  %v2954_v11 = vadd.f32 -0.4999988, %v2953_v46 }
 0x31b   : > { %12448 = vst [vmem:[#allocation44_spill] sm:$0xff] %v9627_v3  ;;  %v2961_v12 = vadd.f32 -0.16666654, %v2960_v41  ;;  %v3089_v56 = vor.u32 %v3088_v33, %v3087_v9  ;;  %v3093_v47 = vor.u32 4788187, %v3092_v51  ;;  %vm3345_vm3 = vc.u32 %v3337_v5, %v3341_v28 }
 0x31c   : > { %v12139_v53 = vshll.u32 %v9610_v20, 16  ;;  %v9639_v0 = vadd.s32 %v3363_v48, %v3359_v2  ;;  %vm3233_vm6 = vcmp.lt.s32.totalorder %v9623_v36, 0  ;;  %v3234_v63 = vsub.s32 0, %v9623_v36 }
 0x31d   : > { %vm3367_vm10 = vc.u32 %v3359_v2, %v3363_v48  ;;  %v9643_v10 = vsub.s32 32, %v3452_v13  ;;  %v3340_v34 = vmul.u32 %v3336_v58, %v3334_v39  ;;  %v3343_v60 = vshll.u32 %v9632_v6, 16 }
 0x31e   : > { %v3347_v23 = vadd.s32 %v3341_v28, %v3337_v5  ;;  %v5394_v43 = vadd.s32 4294967169, %v3596_v54  ;;  %v9647_v33 = vmul.f32 %v2954_v11, %v9521_v7  ;;  %v2962_v40 = vmul.f32 %v2961_v12, %v9521_v7 }
 0x31f   : > { %v3346_v46 = vsel %vm3345_vm3, 1, %v12235_v29  ;;  %v3362_v41 = vmul.u32 %v3358_v61, %v3334_v39  ;;  %v3096_v19 = vcvt.s32.f32 %v3089_v56  ;;  %v3368_v9 = vsel %vm3367_vm10, 1, %v12235_v29 }
 0x320   : > { %vm3371_vm7 = vc.u32 %v9639_v0, %v12139_v53  ;;  %v12141_v58 = vand.u32 2147483647, %v12439_v37  ;;  %v3094_v51 = vand.u32 2147483647, %v3093_v47  ;;  %v3235_v5 = vsel %vm3233_vm6, %v3234_v63, %v9623_v36 }
 0x321   : > { %v3467_v28 = vshll.u32 %v12248_v52, %v3452_v13  ;;  %v3468_v7 = vshrl.u32 %v12249_v18, %v9643_v10  ;;  %v3348_v61 = vadd.s32 %v3346_v46, %v3340_v34  ;;  %vm3349_vm0 = vc.u32 %v3347_v23, %v3343_v60 }
 0x322   : > { %v9662_v39 = vshrl.u32 %v3450_v55, 5  ;;  %v3602_v2 = vadd.s32 1, %v5394_v43  ;;  %v3370_v48 = vadd.s32 %v3368_v9, %v3362_v41  ;;  %v3372_v54 = vsel %vm3371_vm7, 1, %v12235_v29 }
 0x323   : > { %v3458_v11 = vshll.u32 %v12263_v1, %v3452_v13  ;;  %v3461_v12 = vshll.u32 %v12264_v49, %v3452_v13  ;;  %v3459_v56 = vshrl.u32 %v12264_v49, %v9643_v10  ;;  %v3462_v47 = vshrl.u32 %v12227_v15, %v9643_v10 }
 0x324   : > { %v3464_v63 = vshll.u32 %v12227_v15, %v3452_v13  ;;  %v3465_v55 = vshrl.u32 %v12248_v52, %v9643_v10  ;;  %vm2811_vm2 = vweird.f32 %v12429_v22  ;;  %v3236_v34 = vclz %v3235_v5 }
 0x325   : > { %v3300_v60 = vshrl.u32 %v12224_v62, %v9444_v57  ;;  %v3350_v23 = vsel %vm3349_vm0, 1, %v12235_v29  ;;  %v3469_v43 = vor.u32 %v3468_v7, %v3467_v28  ;;  %v3342_v46 = vshrl.u32 %v9591_v59, 16  ;;  %v12449_v57 = vld [vmem:[#allocation26_spill] sm:$0xff] }
 0x326   : > { %v3445_v41 = vand.u32 8388607, %v12141_v58  ;;  %vm3473_vm12 = vcmp.lt.s32.totalorder %v9662_v39, 4  ;;  %vm3603_vm8 = vcmp.gt.s32.totalorder %v3602_v2, 0  ;;  %v3364_v9 = vshrl.u32 %v9594_v44, 16 }
 0x327   : > { %v3374_v53 = vadd.s32 %v3372_v54, %v3370_v48  ;;  %v3455_v16 = vshll.u32 %v12224_v62, %v3452_v13  ;;  %v3456_v5 = vshrl.u32 %v12263_v1, %v9643_v10  ;;  %vm2978_vm9 = vcmp.lt.s32.totalorder %v12449_v57, 0 }
 0x328   : > { %v3352_v3 = vadd.s32 %v3350_v23, %v3348_v61  ;;  %v9687_v28 = vor.u32 %v3459_v56, %v3458_v11  ;;  %v9689_v59 = vor.u32 %v3462_v47, %v3461_v12  ;;  %v3466_v7 = vor.u32 %v3465_v55, %v3464_v63 }
 0x329   : > { %vm3470_vm4 = vcmp.lt.s32.totalorder %v9662_v39, 1  ;;  %vm3472_vm5 = vcmp.lt.s32.totalorder %v9662_v39, 3  ;;  %v3483_v44 = vsel %vm3473_vm12, %v3469_v43, 1326507024  ;;  %v3604_v48 = vsel %vm3603_vm8, %v3602_v2, 0 }
 0x32a   : > { %v3097_v13 = vmul.f32 %v3096_v19, %v3094_v51  ;;  %v3320_v54 = vsel %vm3316_vm1, %v3300_v60, %v9506_v24  ;;  %v3321_v61 = vsel %vm3319_vm14, %v9510_v21, 2102212464  ;;  %v3446_v11 = vor.u32 8388608, %v3445_v41 }
 0x32b   : > { %v3366_v12 = vshrl.u32 %v9610_v20, 16  ;;  %v3375_v56 = vadd.s32 %v3374_v53, %v3364_v9  ;;  %v9702_v47 = vor.u32 %v3456_v5, %v3455_v16  ;;  %vm3471_vm3 = vcmp.lt.s32.totalorder %v9662_v39, 2 }
 0x32c   : > { %v3479_v2 = vsel %vm3473_vm12, %v3466_v7, 920167782  ;;  %v3482_v24 = vsel %vm3470_vm4, %v9687_v28, %v9689_v59  ;;  %v3484_v19 = vsel %vm3472_vm5, %v3466_v7, %v3483_v44  ;;  %v3606_v21 = vand.u32 31, %v3604_v48 }
 0x32d   : > { %v5386_v51 = vadd.s32 4294967294, %v3236_v34  ;;  %v3322_v16 = vsel %vm3318_vm11, %v9508_v25, %v3321_v61  ;;  %v3344_v53 = vshrl.u32 %v9632_v6, 16  ;;  %v3353_v63 = vadd.s32 %v3352_v3, %v3342_v46 }
 0x32e   : > { %v2963_v55 = vadd.f32 1.0, %v2962_v40  ;;  %v12450_v60 = vsel %vm9439_vm15, 0, %v9601_v14  ;;  %v3100_v43 = vsub.s32 4, %v9375_v32  ;;  %v9724_v41 = vshll.u32 %v3446_v11, 8 }
 0x32f   : > { %v9721_v23 = vand.u32 3, %v12450_v60  ;;  %v3098_v9 = vxor.u32 2147483648, %v3097_v13  ;;  %v3478_v25 = vsel %vm3470_vm4, %v9702_v47, %v9687_v28  ;;  %v3480_v3 = vsel %vm3472_vm5, %v9689_v59, %v3479_v2 }
 0x330   : > { %v9735_v17 = vsel %vm3471_vm3, %v3482_v24, %v3484_v19  ;;  %v9740_v14 = vsel %vm2811_vm2, nan, %v9636_v4  ;;  %v3323_v6 = vsel %vm3317_vm13, %v3320_v54, %v3322_v16  ;;  %v3376_v40 = vadd.s32 %v3375_v56, %v3366_v12 }
 0x331   : > { %12451 = vst [vmem:[#allocation23_spill] sm:$0xff] %v9740_v14  ;;  %v9744_v34 = vsub.s32 32, %v3606_v21  ;;  %v9747_v46 = vadd.f32 1.0, %v9647_v33  ;;  %vm5387_vm15 = vcmp.lt.s32.totalorder %v5386_v51, 0  ;;  %v9749_v5 = vadd.s32 %v3353_v63, %v3344_v53 }
 0x332   : > { %v12452_v7 = vshll.u32 %v9610_v20, 16  ;;  %v9759_v22 = vsel %vm2978_vm9, %v3100_v43, %v9375_v32  ;;  %v9763_v35 = vsel %vm3471_vm3, %v3478_v25, %v3480_v3  ;;  %v3487_v4 = vand.u32 65535, %v9724_v41 }
 0x333   : > { %v12142_v33 = vshrl.u32 %v9735_v17, 16  ;;  %v9768_v54 = vmul.f32 %v2963_v55, %v9500_v42  ;;  %v9772_v20 = vsel %vm2978_vm9, %v3098_v9, %v3097_v13  ;;  %v3377_v32 = vmul.u32 %v9553_v45, %v3323_v6 }
 0x334   : > { %v9754_v44 = vadd.s32 %v9639_v0, %v12452_v7  ;;  %v9776_v0 = vadd.s32 %v9460_v31, %v9455_v26  ;;  %v9779_v61 = vsel %vm5387_vm15, 0, %v5386_v51  ;;  %v3380_v11 = vadd.s32 1, %v3376_v40 }
 0x335   : > { %v3621_v12 = vshll.u32 %v12248_v52, %v3606_v21  ;;  %v3622_v56 = vshrl.u32 %v12249_v18, %v9744_v34  ;;  %v3512_v42 = vshrl.u32 %v9763_v35, 16  ;;  %v12140_v13 = vand.u32 2147483647, %v12444_v8 }
 0x336   : > { %vm3379_vm14 = vc.u32 %v9749_v5, %v9754_v44  ;;  %v9788_v2 = vshrl.u32 %v3604_v48, 5  ;;  %v3240_v26 = vsub.s32 32, %v9779_v61  ;;  %v3488_v31 = vshrl.u32 %v9724_v41, 16 }
 0x337   : > { %v3489_v45 = vand.u32 65535, %v9735_v17  ;;  %v9795_v24 = vmul.u32 %v12142_v33, %v3487_v4  ;;  %v3612_v19 = vshll.u32 %v12263_v1, %v3606_v21  ;;  %v3613_v51 = vshrl.u32 %v12264_v49, %v9744_v34 }
 0x338   : > { %v3615_v16 = vshll.u32 %v12264_v49, %v3606_v21  ;;  %v3616_v48 = vshrl.u32 %v12227_v15, %v9744_v34  ;;  %v3381_v53 = vsel %vm3379_vm14, %v3380_v11, %v3376_v40  ;;  %v3618_v63 = vshll.u32 %v12227_v15, %v3606_v21 }
 0x339   : > { %v3619_v55 = vshrl.u32 %v12248_v52, %v9744_v34  ;;  %v3623_v60 = vor.u32 %v3622_v56, %v3621_v12  ;;  %v3511_v43 = vand.u32 65535, %v9763_v35  ;;  %v9807_v9 = vmul.u32 %v3512_v42, %v3487_v4 }
 0x33a   : > { %v3599_v25 = vand.u32 8388607, %v12140_v13  ;;  %vm3627_vm1 = vcmp.lt.s32.totalorder %v9788_v2, 4  ;;  %v12453_v3 = vand.u32 2147483647, %v12449_v57  ;;  %v3491_v40 = vmul.u32 %v3489_v45, %v3487_v4 }
 0x33b   : > { %v3495_v7 = vshll.u32 %v9795_v24, 16  ;;  %v3609_v11 = vshll.u32 %v12224_v62, %v3606_v21  ;;  %v3610_v35 = vshrl.u32 %v12263_v1, %v9744_v34  ;;  %v9822_v12 = vadd.s32 %v3381_v53, %v3377_v32 }
 0x33c   : > { %vm9814_vm11 = vcmp.le.f32.partialorder %v12453_v3, 0.7853982  ;;  %v9824_v56 = vmul.u32 %v3489_v45, %v3488_v31  ;;  %v9826_v13 = vor.u32 %v3613_v51, %v3612_v19  ;;  %v9828_v58 = vor.u32 %v3616_v48, %v3615_v16 }
 0x33d   : > { %v3620_v3 = vor.u32 %v3619_v55, %v3618_v63  ;;  %vm3624_vm13 = vcmp.lt.s32.totalorder %v9788_v2, 1  ;;  %vm3626_vm6 = vcmp.lt.s32.totalorder %v9788_v2, 3  ;;  %v3637_v33 = vsel %vm3627_vm1, %v3623_v60, 1326507024  ;;  %v12458_v63 = vld [vmem:[#allocation31_spill] sm:$0xff] }
 0x33e   : > { %v3513_v21 = vmul.u32 %v3511_v43, %v3487_v4  ;;  %v9834_v14 = vmul.u32 %v3511_v43, %v3488_v31  ;;  %v3517_v32 = vshll.u32 %v9807_v9, 16  ;;  %v3600_v53 = vor.u32 8388608, %v3599_v25 }
 0x33f   : > { %v3241_v45 = vshll.u32 %v9623_v36, %v9779_v61  ;;  %v3244_v19 = vsub.s32 4294967266, %v9779_v61  ;;  %vm9840_vm10 = vc.u32 %v3491_v40, %v3495_v7  ;;  %v9844_v16 = vor.u32 %v3610_v35, %v3609_v11 }
 0x340   : > { %vm3625_vm7 = vcmp.lt.s32.totalorder %v9788_v2, 2  ;;  %v3636_v4 = vsel %vm3624_vm13, %v9826_v13, %v9828_v58  ;;  %v3638_v48 = vsel %vm3626_vm6, %v3620_v3, %v3637_v33  ;;  %v3749_v36 = vand.u32 2139095040, %v12458_v63 }
 0x341   : > { %v3383_v61 = vadd.s32 536870912, %v9822_v12  ;;  %v3497_v55 = vshll.u32 %v9824_v56, 16  ;;  %v3501_v60 = vadd.s32 %v3495_v7, %v3491_v40  ;;  %v3633_v43 = vsel %vm3627_vm1, %v3620_v3, 920167782 }
 0x342   : > { %v12144_v25 = vshll.u32 %v9834_v14, 16  ;;  %vm3521_vm0 = vc.u32 %v3513_v21, %v3517_v32  ;;  %v9859_v11 = vadd.s32 %v3517_v32, %v3513_v21  ;;  %v9861_v35 = vshll.u32 %v3600_v53, 8 }
 0x343   : > { %v3245_v50 = vadd.s32 127, %v3244_v19  ;;  %v12459_v33 = vshrl.u32 %v9735_v17, 16  ;;  %v3500_v8 = vsel %vm9840_vm10, 1, %v12235_v29  ;;  %v9870_v40 = vsel %vm3625_vm7, %v3636_v4, %v3638_v48 }
 0x344   : > { %v3516_v7 = vmul.u32 %v3512_v42, %v3488_v31  ;;  %v3632_v3 = vsel %vm3624_vm13, %v9844_v16, %v9826_v13  ;;  %v3634_v21 = vsel %vm3626_vm6, %v9828_v58, %v3633_v43  ;;  %v3750_v17 = vshrl.u32 %v3749_v36, 23 }
 0x345   : > { %v3494_v38 = vmul.u32 %v12459_v33, %v3488_v31  ;;  %v3242_v32 = vshrl.u32 %v9776_v0, %v3240_v26  ;;  %v9880_v53 = vshrl.u32 %v3383_v61, 30  ;;  %vm3503_vm2 = vc.u32 %v3501_v60, %v3497_v55 }
 0x346   : > { %v3522_v19 = vsel %vm3521_vm0, 1, %v12235_v29  ;;  %v9887_v42 = vsel %vm9814_vm11, %v12449_v57, %v9772_v20  ;;  %vm3525_vm8 = vc.u32 %v9859_v11, %v12144_v25  ;;  %v3641_v31 = vand.u32 65535, %v9861_v35 }
 0x347   : > { %12460 = vst [vmem:[#allocation20_spill] sm:$0xff] %v9880_v53  ;;  %v3644_v51 = vshrl.u32 %v9870_v40, 16  ;;  %v3246_v26 = vshll.u32 %v3245_v50, 23  ;;  %v3502_v4 = vadd.s32 %v3500_v8, %v3494_v38  ;;  %v3635_v48 = vsel %vm3625_vm7, %v3632_v3, %v3634_v21 }
 0x348   : > { %12461 = vst [vmem:[#allocation24_spill] sm:$0xff] %v9887_v42  ;;  %v3504_v20 = vsel %vm3503_vm2, 1, %v12235_v29  ;;  %v3524_v61 = vadd.s32 %v3522_v19, %v3516_v7  ;;  %v5397_v55 = vadd.s32 4294967169, %v3750_v17  ;;  %v9901_v60 = vmul.f32 %v9887_v42, %v9887_v42 }
 0x349   : > { %v9903_v43 = vor.u32 %v3242_v32, %v3241_v45  ;;  %v3385_v33 = vshll.u32 %v9880_v53, 30  ;;  %v3526_v50 = vsel %vm3525_vm8, 1, %v12235_v29  ;;  %v3643_v8 = vand.u32 65535, %v9870_v40 }
 0x34a   : > { %v9908_v38 = vmul.u32 %v3644_v51, %v3641_v31  ;;  %v3666_v3 = vshrl.u32 %v3635_v48, 16  ;;  %v3756_v21 = vadd.s32 1, %v5397_v55  ;;  %v9910_v36 = vor.u32 4788187, %v3246_v26 }
 0x34b   : > { %v3454_v7 = vshrl.u32 %v12224_v62, %v9643_v10  ;;  %v3496_v17 = vshrl.u32 %v9795_v24, 16  ;;  %v3506_v19 = vadd.s32 %v3504_v20, %v3502_v4  ;;  %v3518_v45 = vshrl.u32 %v9807_v9, 16 }
 0x34c   : > { %v3528_v32 = vadd.s32 %v3526_v50, %v3524_v61  ;;  %v3642_v0 = vshrl.u32 %v9861_v35, 16  ;;  %vm3757_vm9 = vcmp.gt.s32.totalorder %v3756_v21, 0  ;;  %v9918_v40 = vsub.s32 %v9822_v12, %v3385_v33 }
 0x34d   : > { %v3475_v26 = vsel %vm3473_vm12, %v9689_v59, 2102212464  ;;  %v3665_v55 = vand.u32 65535, %v3635_v48  ;;  %v3758_v25 = vsel %vm3757_vm9, %v3756_v21, 0  ;;  %v3645_v57 = vmul.u32 %v3643_v8, %v3641_v31 }
 0x34e   : > { %v3649_v10 = vshll.u32 %v9908_v38, 16  ;;  %v9924_v24 = vmul.u32 %v3666_v3, %v3641_v31  ;;  %v3760_v4 = vand.u32 31, %v3758_v25  ;;  %v9927_v9 = vmul.f32 -0.001358992, %v9901_v60 }
 0x34f   : > { %v3498_v12 = vshrl.u32 %v9824_v56, 16  ;;  %v3507_v61 = vadd.s32 %v3506_v19, %v3496_v17  ;;  %v3248_v33 = vand.u32 2147483647, %v9910_v36  ;;  %v3520_v59 = vshrl.u32 %v9834_v14, 16 }
 0x350   : > { %v3529_v48 = vadd.s32 %v3528_v32, %v3518_v45  ;;  %v9933_v50 = vmul.u32 %v3643_v8, %v3642_v0  ;;  %vm3387_vm12 = vcmp.lt.s32.totalorder %v9918_v40, 0  ;;  %v3474_v21 = vsel %vm3470_vm4, %v3454_v7, %v9702_v47 }
 0x351   : > { %v3476_v20 = vsel %vm3472_vm5, %v9687_v28, %v3475_v26  ;;  %v9942_v37 = vsub.s32 32, %v3760_v4  ;;  %vm3653_vm15 = vc.u32 %v3645_v57, %v3649_v10  ;;  %v3667_v56 = vmul.u32 %v3665_v55, %v3641_v31 }
 0x352   : > { %v9944_v36 = vmul.u32 %v3665_v55, %v3642_v0  ;;  %v3671_v17 = vshll.u32 %v9924_v24, 16  ;;  %v3388_v8 = vsub.s32 0, %v9918_v40  ;;  %v9948_v19 = vadd.s32 %v3507_v61, %v3498_v12 }
 0x353   : > { %v12462_v45 = vshll.u32 %v9834_v14, 16  ;;  %v3530_v28 = vadd.s32 %v3529_v48, %v3520_v59  ;;  %v3648_v32 = vmul.u32 %v3644_v51, %v3642_v0  ;;  %v3651_v26 = vshll.u32 %v9933_v50, 16 }
 0x354   : > { %v3655_v31 = vadd.s32 %v3649_v10, %v3645_v57  ;;  %v3654_v55 = vsel %vm3653_vm15, 1, %v12235_v29  ;;  %v3670_v53 = vmul.u32 %v3666_v3, %v3642_v0  ;;  %v3772_v42 = vshll.u32 %v12227_v15, %v3760_v4 }
 0x355   : > { %v9953_v47 = vadd.s32 %v9859_v11, %v12462_v45  ;;  %v3773_v12 = vshrl.u32 %v12248_v52, %v9942_v37  ;;  %vm2971_vm4 = vcmp.eq.s32.totalorder %v9721_v23, 2  ;;  %v12153_v14 = vshll.u32 %v9944_v36, 16 }
 0x356   : > { %vm3675_vm5 = vc.u32 %v3667_v56, %v3671_v17  ;;  %v9963_v11 = vadd.s32 %v3671_v17, %v3667_v56  ;;  %v9965_v61 = vshrl.u32 %v3758_v25, 5  ;;  %v3763_v51 = vshll.u32 %v12224_v62, %v3760_v4 }
 0x357   : > { %v3766_v57 = vshll.u32 %v12263_v1, %v3760_v4  ;;  %v3775_v0 = vshll.u32 %v12248_v52, %v3760_v4  ;;  %v3776_v3 = vshrl.u32 %v12249_v18, %v9942_v37  ;;  %vm2968_vm14 = vcmp.eq.s32.totalorder %v9721_v23, 0  ;;  %v12464_v18 = vld [vmem:[#allocation27_spill] sm:$0xff] }
 0x358   : > { %v3764_v10 = vshrl.u32 %v12263_v1, %v9942_v37  ;;  %v3767_v59 = vshrl.u32 %v12264_v49, %v9942_v37  ;;  %v3769_v25 = vshll.u32 %v12264_v49, %v3760_v4  ;;  %v3770_v48 = vshrl.u32 %v12227_v15, %v9942_v37 }
 0x359   : > { %v3389_v56 = vsel %vm3387_vm12, %v3388_v8, %v9918_v40  ;;  %v3477_v17 = vsel %vm3471_vm3, %v3474_v21, %v3476_v20  ;;  %v3676_v45 = vsel %vm3675_vm5, 1, %v12235_v29  ;;  %v3774_v7 = vor.u32 %v3773_v12, %v3772_v42 }
 0x35a   : > { %vm3533_vm10 = vc.u32 %v9948_v19, %v9953_v47  ;;  %vm3679_vm0 = vc.u32 %v9963_v11, %v12153_v14  ;;  %v12463_v4 = vand.u32 2147483647, %v12458_v63  ;;  %vm3781_vm2 = vcmp.lt.s32.totalorder %v9965_v61, 4 }
 0x35b   : > { %v3534_v1 = vadd.s32 1, %v3530_v28  ;;  %v3656_v8 = vadd.s32 %v3654_v55, %v3648_v32  ;;  %vm3657_vm8 = vc.u32 %v3655_v31, %v3651_v26  ;;  %v3777_v39 = vor.u32 %v3776_v3, %v3775_v0 }
 0x35c   : > { %v3753_v49 = vand.u32 8388607, %v12463_v4  ;;  %vm2967_vm3 = vcmp.lt.s32.totalorder %v9721_v23, 2  ;;  %v3678_v20 = vadd.s32 %v3676_v45, %v3670_v53  ;;  %v9995_v42 = vor.u32 %v3764_v10, %v3763_v51 }
 0x35d   : > { %v9997_v21 = vor.u32 %v3767_v59, %v3766_v57  ;;  %v9999_v12 = vor.u32 %v3770_v48, %v3769_v25  ;;  %vm3132_vm9 = vcmp.lt.s32.totalorder %v12464_v18, 0  ;;  %v3680_v14 = vsel %vm3679_vm0, 1, %v12235_v29 }
 0x35e   : > { %vm3778_vm12 = vcmp.lt.s32.totalorder %v9965_v61, 1  ;;  %vm3780_vm15 = vcmp.lt.s32.totalorder %v9965_v61, 3  ;;  %v3787_v32 = vsel %vm3781_vm2, %v3774_v7, 920167782  ;;  %v12465_v26 = vcvt.s32.f32 %v9903_v43 }
 0x35f   : > { %v3531_v31 = vmul.u32 %v9724_v41, %v3477_v17  ;;  %v3658_v55 = vsel %vm3657_vm8, 1, %v12235_v29  ;;  %v3754_v51 = vor.u32 8388608, %v3753_v49  ;;  %v3390_v57 = vclz %v3389_v56 }
 0x360   : > { %v3251_v53 = vmul.f32 %v12465_v26, %v3248_v33  ;;  %v3535_v0 = vsel %vm3533_vm10, %v3534_v1, %v3530_v28  ;;  %v3672_v3 = vshrl.u32 %v9924_v24, 16  ;;  %v3791_v10 = vsel %vm3781_vm2, %v3777_v39, 1326507024 }
 0x361   : > { %v3682_v59 = vadd.s32 %v3680_v14, %v3678_v20  ;;  %vm3779_vm5 = vcmp.lt.s32.totalorder %v9965_v61, 2  ;;  %v3786_v41 = vsel %vm3778_vm12, %v9995_v42, %v9997_v21  ;;  %v3788_v49 = vsel %vm3780_vm15, %v9999_v12, %v3787_v32 }
 0x362   : > { %v12466_v1 = vxor.u32 2147483648, %v9747_v46  ;;  %v3103_v24 = vsel %vm9814_vm11, 0, %v9759_v22  ;;  %v3650_v33 = vshrl.u32 %v9908_v38, 16  ;;  %v3660_v28 = vadd.s32 %v3658_v55, %v3656_v8 }
 0x363   : > { %v12467_v14 = vand.u32 2147483647, %v12464_v18  ;;  %v10040_v48 = vadd.s32 %v3535_v0, %v3531_v31  ;;  %v3790_v56 = vsel %vm3778_vm12, %v9997_v21, %v9999_v12  ;;  %v3792_v17 = vsel %vm3780_vm15, %v3774_v7, %v3791_v10 }
 0x364   : > { %v2973_v43 = vsel %vm2971_vm4, %v12466_v1, %v9768_v54  ;;  %v10048_v45 = vshll.u32 %v3754_v51, 8  ;;  %v12470_v38 = vxor.u32 2147483648, %v9768_v54  ;;  %v3106_v8 = vadd.f32 0.041655596, %v9927_v9 }
 0x365   : > { %vm10036_vm10 = vcmp.le.f32.partialorder %v12467_v14, 0.7853982  ;;  %v3112_v39 = vmul.f32 -0.00019511016, %v9901_v60  ;;  %v10059_v20 = vsel %vm3779_vm5, %v3786_v41, %v3788_v49  ;;  %v3252_v32 = vxor.u32 2147483648, %v3251_v53 }
 0x366   : > { %v2970_v4 = vsel %vm2968_vm14, %v9747_v46, %v12470_v38  ;;  %v5389_v26 = vadd.s32 4294967294, %v3390_v57  ;;  %v3674_v7 = vshrl.u32 %v9944_v36, 16  ;;  %v3683_v31 = vadd.s32 %v3682_v59, %v3672_v3  ;;  %v12471_v59 = vld [vmem:[#allocation32_spill] sm:$0xff] }
 0x367   : > { %v3608_v54 = vshrl.u32 %v12224_v62, %v9744_v34  ;;  %v3652_v55 = vshrl.u32 %v9933_v50, 16  ;;  %v3661_v51 = vadd.s32 %v3660_v28, %v3650_v33  ;;  %v10067_v46 = vsel %vm3779_vm5, %v3790_v56, %v3792_v17 }
 0x368   : > { %v3537_v9 = vadd.s32 536870912, %v10040_v48  ;;  %v3629_v0 = vsel %vm3627_vm1, %v9828_v58, 2102212464  ;;  %v3795_v57 = vand.u32 65535, %v10048_v45  ;;  %v3820_v3 = vshrl.u32 %v10059_v20, 16 }
 0x369   : > { %v2974_v34 = vsel %vm2967_vm3, %v2970_v4, %v2973_v43  ;;  %v3107_v50 = vmul.f32 %v3106_v8, %v9901_v60  ;;  %v3113_v10 = vadd.f32 0.008332121, %v3112_v39  ;;  %v3903_v41 = vand.u32 2139095040, %v12471_v59 }
 0x36a   : > { %v3253_v49 = vsel %vm3132_vm9, %v3252_v32, %v3251_v53  ;;  %vm5390_vm4 = vcmp.lt.s32.totalorder %v5389_v26, 0  ;;  %v3684_v1 = vadd.s32 %v3683_v31, %v3674_v7  ;;  %v3798_v33 = vshrl.u32 %v10067_v46, 16 }
 0x36b   : > { %v3628_v58 = vsel %vm3624_vm13, %v3608_v54, %v9844_v16  ;;  %v3630_v23 = vsel %vm3626_vm6, %v9826_v13, %v3629_v0  ;;  %v10088_v43 = vadd.s32 %v3661_v51, %v3652_v55  ;;  %v12472_v28 = vshll.u32 %v9944_v36, 16 }
 0x36c   : > { %vm2965_vm1 = vweird.f32 %v12435_v27  ;;  %v10096_v53 = vshrl.u32 %v3537_v9, 30  ;;  %v3796_v56 = vshrl.u32 %v10048_v45, 16  ;;  %v3819_v17 = vand.u32 65535, %v10059_v20 }
 0x36d   : > { %v10093_v14 = vadd.s32 %v9963_v11, %v12472_v28  ;;  %v10100_v16 = vmul.u32 %v3820_v3, %v3795_v57  ;;  %v3108_v38 = vadd.f32 -0.4999988, %v3107_v50  ;;  %v3114_v13 = vmul.f32 %v3113_v10, %v9901_v60 }
 0x36e   : > { %v3797_v4 = vand.u32 65535, %v10067_v46  ;;  %v3904_v8 = vshrl.u32 %v3903_v41, 23  ;;  %v3393_v36 = vsel %vm5390_vm4, 0, %v5389_v26  ;;  %v3631_v11 = vsel %vm3625_vm7, %v3628_v58, %v3630_v23 }
 0x36f   : > { %v3688_v39 = vadd.s32 1, %v3684_v1  ;;  %v10107_v32 = vmul.u32 %v3798_v33, %v3795_v57  ;;  %v10112_v20 = vsel %vm10036_vm10, %v12464_v18, %v3253_v49  ;;  %v3378_v7 = vadd.s32 %v9754_v44, %v9749_v5 }
 0x370   : > { %v3394_v31 = vsub.s32 32, %v3393_v36  ;;  %vm3687_vm13 = vc.u32 %v10088_v43, %v10093_v14  ;;  %v3539_v26 = vshll.u32 %v10096_v53, 30  ;;  %v3821_v54 = vmul.u32 %v3819_v17, %v3795_v57 }
 0x371   : > { %v10119_v2 = vmul.u32 %v3819_v17, %v3796_v56  ;;  %v3825_v55 = vshll.u32 %v10100_v16, 16  ;;  %v3398_v51 = vsub.s32 4294967266, %v3393_v36  ;;  %v3685_v46 = vmul.u32 %v9861_v35, %v3631_v11 }
 0x372   : > { %v10123_v9 = vmul.u32 %v3797_v4, %v3796_v56  ;;  %v5400_v0 = vadd.s32 4294967169, %v3904_v8  ;;  %v3115_v50 = vadd.f32 -0.16666654, %v3114_v13  ;;  %v3689_v10 = vsel %vm3687_vm13, %v3688_v39, %v3684_v1 }
 0x373   : > { %v3799_v5 = vmul.u32 %v3797_v4, %v3795_v57  ;;  %v3803_v44 = vshll.u32 %v10107_v32, 16  ;;  %v10128_v41 = vmul.f32 %v10112_v20, %v10112_v20  ;;  %v3395_v49 = vshll.u32 %v9918_v40, %v3393_v36 }
 0x374   : > { %v3396_v58 = vshrl.u32 %v3378_v7, %v3394_v31  ;;  %v3910_v23 = vadd.s32 1, %v5400_v0  ;;  %v10132_v28 = vsub.s32 %v10040_v48, %v3539_v26  ;;  %v12154_v35 = vshll.u32 %v10119_v2, 16 }
 0x375   : > { %vm3829_vm6 = vc.u32 %v3821_v54, %v3825_v55  ;;  %v10135_v17 = vadd.s32 %v3825_v55, %v3821_v54  ;;  %v3399_v1 = vadd.s32 127, %v3398_v51  ;;  %v10137_v57 = vadd.s32 %v3689_v10, %v3685_v46 }
 0x376   : > { %v3805_v13 = vshll.u32 %v10123_v9, 16  ;;  %vm3911_vm7 = vcmp.gt.s32.totalorder %v3910_v23, 0  ;;  %vm3807_vm14 = vc.u32 %v3799_v5, %v3803_v44  ;;  %v3809_v4 = vadd.s32 %v3803_v44, %v3799_v5 }
 0x377   : > { %v3824_v8 = vmul.u32 %v3820_v3, %v3796_v56  ;;  %v3912_v40 = vsel %vm3911_vm7, %v3910_v23, 0  ;;  %v10142_v36 = vsel %vm2965_vm1, nan, %v2974_v34  ;;  %v3109_v48 = vmul.f32 %v3108_v38, %v9901_v60 }
 0x378   : > { %12473 = vst [vmem:[#allocation25_spill] sm:$0xff] %v10142_v36  ;;  %v3116_v11 = vmul.f32 %v3115_v50, %v9901_v60  ;;  %v3830_v39 = vsel %vm3829_vm6, 1, %v12235_v29  ;;  %v3542_v7 = vsub.s32 0, %v10132_v28  ;;  %v3802_v31 = vmul.u32 %v3798_v33, %v3796_v56 }
 0x379   : > { %vm3833_vm0 = vc.u32 %v10135_v17, %v12154_v35  ;;  %v3914_v26 = vand.u32 31, %v3912_v40  ;;  %v3266_v3 = vmul.f32 -0.00019511016, %v10128_v41  ;;  %vm3541_vm8 = vcmp.lt.s32.totalorder %v10132_v28, 0 }
 0x37a   : > { %v3691_v27 = vadd.s32 536870912, %v10137_v57  ;;  %v3808_v34 = vsel %vm3807_vm14, 1, %v12235_v29  ;;  %v10155_v38 = vor.u32 %v3396_v58, %v3395_v49  ;;  %v3400_v60 = vshll.u32 %v3399_v1, 23 }
 0x37b   : > { %vm3811_vm3 = vc.u32 %v3809_v4, %v3805_v13  ;;  %v3832_v54 = vadd.s32 %v3830_v39, %v3824_v8  ;;  %v10157_v55 = vadd.f32 1.0, %v3109_v48  ;;  %v10163_v33 = vand.u32 3, %v3103_v24 }
 0x37c   : > { %v3834_v51 = vsel %vm3833_vm0, 1, %v12235_v29  ;;  %v10167_v46 = vadd.f32 1.0, %v3116_v11  ;;  %v3543_v0 = vsel %vm3541_vm8, %v3542_v7, %v10132_v28  ;;  %v3810_v50 = vadd.s32 %v3808_v34, %v3802_v31 }
 0x37d   : > { %v10170_v10 = vsub.s32 32, %v3914_v26  ;;  %v3259_v5 = vmul.f32 -0.001358992, %v10128_v41  ;;  %v3267_v44 = vadd.f32 0.008332121, %v3266_v3  ;;  %v10173_v49 = vshrl.u32 %v3691_v27, 30 }
 0x37e   : > { %v3812_v22 = vsel %vm3811_vm3, 1, %v12235_v29  ;;  %v3401_v6 = vor.u32 4788187, %v3400_v60  ;;  %v3404_v24 = vcvt.s32.f32 %v10155_v38  ;;  %v3826_v58 = vshrl.u32 %v10100_v16, 16 }
 0x37f   : > { %12474 = vst [vmem:[#allocation22_spill] sm:$0xff] %v10173_v49  ;;  %v3836_v23 = vadd.s32 %v3834_v51, %v3832_v54  ;;  %v3544_v1 = vclz %v3543_v0  ;;  %v3762_v13 = vshrl.u32 %v12224_v62, %v9942_v37  ;;  %v3783_v4 = vsel %vm3781_vm2, %v9999_v12, 2102212464 }
 0x380   : > { %v12158_v8 = vand.u32 2147483647, %v12471_v59  ;;  %v3804_v48 = vshrl.u32 %v10107_v32, 16  ;;  %v3814_v11 = vadd.s32 %v3812_v22, %v3810_v50  ;;  %v3926_v39 = vshll.u32 %v12227_v15, %v3914_v26 }
 0x381   : > { %v3927_v7 = vshrl.u32 %v12248_v52, %v10170_v10  ;;  %v3693_v16 = vshll.u32 %v10173_v49, 30  ;;  %v10189_v31 = vshrl.u32 %v3912_v40, 5  ;;  %v3929_v37 = vshll.u32 %v12248_v52, %v3914_v26 }
 0x382   : > { %v12475_v3 = vmov 1326507024   ;;  %v3828_v12 = vshrl.u32 %v10119_v2, 16  ;;  %v3837_v34 = vadd.s32 %v3836_v23, %v3826_v58  ;;  %v3917_v32 = vshll.u32 %v12224_v62, %v3914_v26 }
 0x383   : > { %v3930_v27 = vshrl.u32 %v12475_v3, %v10170_v10  ;;  %v12476_v38 = vmov 2475754826   ;;  %v12477_v51 = vmov 2131351028   ;;  %v3924_v50 = vshrl.u32 %v12227_v15, %v10170_v10 }
 0x384   : > { %v3920_v60 = vshll.u32 %v12476_v38, %v3914_v26  ;;  %v3918_v54 = vshrl.u32 %v12476_v38, %v10170_v10  ;;  %v3921_v0 = vshrl.u32 %v12477_v51, %v10170_v10  ;;  %v3923_v40 = vshll.u32 %v12477_v51, %v3914_v26 }
 0x385   : > { %v3402_v22 = vand.u32 2147483647, %v3401_v6  ;;  %v3806_v56 = vshrl.u32 %v10123_v9, 16  ;;  %v3815_v35 = vadd.s32 %v3814_v11, %v3804_v48  ;;  %v3928_v58 = vor.u32 %v3927_v7, %v3926_v39 }
 0x386   : > { %v10206_v23 = vsub.s32 %v10137_v57, %v3693_v16  ;;  %v3907_v36 = vand.u32 8388607, %v12158_v8  ;;  %v3931_v63 = vor.u32 %v3930_v27, %v3929_v37  ;;  %vm3935_vm11 = vcmp.lt.s32.totalorder %v10189_v31, 4 }
 0x387   : > { %v5392_v49 = vadd.s32 4294967294, %v3544_v1  ;;  %v3782_v26 = vsel %vm3778_vm12, %v3762_v13, %v9995_v42  ;;  %v3784_v9 = vsel %vm3780_vm15, %v9997_v21, %v3783_v4  ;;  %v12478_v6 = vshll.u32 %v10119_v2, 16  ;;  %v12479_v2 = vld [vmem:[#allocation28_spill] sm:$0xff] }
 0x388   : > { %v3838_v48 = vadd.s32 %v3837_v34, %v3828_v12  ;;  %v10222_v11 = vor.u32 %v3918_v54, %v3917_v32  ;;  %v10224_v39 = vor.u32 %v3921_v0, %v3920_v60  ;;  %v10226_v7 = vor.u32 %v3924_v50, %v3923_v40  ;;  %v12480_v34 = vld [vmem:[#allocation33_spill] sm:$0xff]  ;;  %v12481_v60 = vld [vmem:[#allocation24_spill] sm:$0xff] }
 0x389   : > { %v10220_v57 = vadd.s32 %v10135_v17, %v12478_v6  ;;  %vm3125_vm2 = vcmp.eq.s32.totalorder %v10163_v33, 2  ;;  %v10229_v1 = vadd.s32 %v3815_v35, %v3806_v56  ;;  %vm3932_vm12 = vcmp.lt.s32.totalorder %v10189_v31, 1 }
 0x38a   : > { %vm3934_vm15 = vcmp.lt.s32.totalorder %v10189_v31, 3  ;;  %v3941_v42 = vsel %vm3935_vm11, %v3928_v58, 920167782  ;;  %v3260_v21 = vadd.f32 0.041655596, %v3259_v5  ;;  %vm3286_vm4 = vcmp.lt.s32.totalorder %v12479_v2, 0 }
 0x38b   : > { %v3696_v17 = vsub.s32 0, %v10206_v23  ;;  %v3908_v13 = vor.u32 8388608, %v3907_v36  ;;  %v3945_v4 = vsel %vm3935_vm11, %v3931_v63, 1326507024  ;;  %v3268_v16 = vmul.f32 %v3267_v44, %v10128_v41 }
 0x38c   : > { %vm5393_vm1 = vcmp.lt.s32.totalorder %v5392_v49, 0  ;;  %vm3695_vm13 = vcmp.lt.s32.totalorder %v10206_v23, 0  ;;  %v3785_v35 = vsel %vm3779_vm5, %v3782_v26, %v3784_v9  ;;  %v3842_v56 = vadd.s32 1, %v3838_v48 }
 0x38d   : > { %vm3933_vm6 = vcmp.lt.s32.totalorder %v10189_v31, 2  ;;  %v3940_v5 = vsel %vm3932_vm12, %v10222_v11, %v10224_v39  ;;  %v3942_v63 = vsel %vm3934_vm15, %v10226_v7, %v3941_v42  ;;  %vm3122_vm7 = vcmp.eq.s32.totalorder %v10163_v33, 0 }
 0x38e   : > { %v3405_v36 = vmul.f32 %v3404_v24, %v3402_v22  ;;  %vm3841_vm14 = vc.u32 %v10229_v1, %v10220_v57  ;;  %v3944_v61 = vsel %vm3932_vm12, %v10224_v39, %v10226_v7  ;;  %v3946_v44 = vsel %vm3934_vm15, %v3928_v58, %v3945_v4 }
 0x38f   : > { %v3547_v37 = vsel %vm5393_vm1, 0, %v5392_v49  ;;  %v3697_v27 = vsel %vm3695_vm13, %v3696_v17, %v10206_v23  ;;  %v10261_v12 = vshll.u32 %v3908_v13, 8  ;;  %v4057_v32 = vand.u32 2139095040, %v12480_v34 }
 0x390   : > { %v3118_v24 = vmul.f32 %v10167_v46, %v12481_v60  ;;  %v12482_v54 = vsub.s32 4, %v9583_v30  ;;  %v3839_v40 = vmul.u32 %v10048_v45, %v3785_v35  ;;  %v10274_v49 = vsel %vm3933_vm6, %v3940_v5, %v3942_v63 }
 0x391   : > { %v3126_v50 = vxor.u32 2147483648, %v10157_v55  ;;  %v3261_v22 = vmul.f32 %v3260_v21, %v10128_v41  ;;  %v3843_v58 = vsel %vm3841_vm14, %v3842_v56, %v3838_v48  ;;  %v10280_v46 = vsel %vm3933_vm6, %v3944_v61, %v3946_v44 }
 0x392   : > { %v3255_v0 = vsel %vm3132_vm9, %v12482_v54, %v9583_v30  ;;  %vm3121_vm5 = vcmp.lt.s32.totalorder %v10163_v33, 2  ;;  %v3269_v26 = vadd.f32 -0.16666654, %v3268_v16  ;;  %v3406_v9 = vxor.u32 2147483648, %v3405_v36 }
 0x393   : > { %v3552_v30 = vsub.s32 4294967266, %v3547_v37  ;;  %v3698_v6 = vclz %v3697_v27  ;;  %v12483_v45 = vand.u32 2147483647, %v12479_v2  ;;  %v3949_v17 = vand.u32 65535, %v10261_v12 }
 0x394   : > { %v3974_v48 = vshrl.u32 %v10274_v49, 16  ;;  %v4058_v21 = vshrl.u32 %v4057_v32, 23  ;;  %v3123_v13 = vxor.u32 2147483648, %v3118_v24  ;;  %v3257_v4 = vsel %vm10036_vm10, 0, %v3255_v0 }
 0x395   : > { %vm10285_vm9 = vcmp.le.f32.partialorder %v12483_v45, 0.7853982  ;;  %v10293_v35 = vadd.s32 %v3843_v58, %v3839_v40  ;;  %v3952_v16 = vshrl.u32 %v10280_v46, 16  ;;  %v3127_v56 = vsel %vm3125_vm2, %v3126_v50, %v3118_v24 }
 0x396   : > { %v3262_v5 = vadd.f32 -0.4999988, %v3261_v22  ;;  %v3532_v63 = vadd.s32 %v9953_v47, %v9948_v19  ;;  %v3548_v61 = vsub.s32 32, %v3547_v37  ;;  %v3270_v44 = vmul.f32 %v3269_v26, %v10128_v41 }
 0x397   : > { %v3407_v27 = vsel %vm3286_vm4, %v3406_v9, %v3405_v36  ;;  %v3553_v32 = vadd.s32 127, %v3552_v30  ;;  %v5395_v25 = vadd.s32 4294967294, %v3698_v6  ;;  %v3950_v60 = vshrl.u32 %v10261_v12, 16 }
 0x398   : > { %v3973_v54 = vand.u32 65535, %v10274_v49  ;;  %v10305_v0 = vmul.u32 %v3974_v48, %v3949_v17  ;;  %v5403_v40 = vadd.s32 4294967169, %v4058_v21  ;;  %v10307_v24 = vand.u32 3, %v3257_v4 }
 0x399   : > { %v3845_v50 = vadd.s32 536870912, %v10293_v35  ;;  %v3951_v19 = vand.u32 65535, %v10280_v46  ;;  %v10311_v47 = vmul.u32 %v3952_v16, %v3949_v17  ;;  %v3124_v36 = vsel %vm3122_vm7, %v10157_v55, %v3123_v13 }
 0x39a   : > { %v3263_v22 = vmul.f32 %v3262_v5, %v10128_v41  ;;  %v3549_v58 = vshll.u32 %v10132_v28, %v3547_v37  ;;  %v3550_v49 = vshrl.u32 %v3532_v63, %v3548_v61  ;;  %v3271_v26 = vadd.f32 1.0, %v3270_v44 }
 0x39b   : > { %v10321_v9 = vsel %vm10285_vm9, %v12479_v2, %v3407_v27  ;;  %v3554_v30 = vshll.u32 %v3553_v32, 23  ;;  %vm5396_vm10 = vcmp.lt.s32.totalorder %v5395_v25, 0  ;;  %v3975_v46 = vmul.u32 %v3973_v54, %v3949_v17 }
 0x39c   : > { %v10323_v6 = vmul.u32 %v3973_v54, %v3950_v60  ;;  %v3979_v45 = vshll.u32 %v10305_v0, 16  ;;  %v4064_v21 = vadd.s32 1, %v5403_v40  ;;  %v10326_v55 = vshrl.u32 %v3845_v50, 30  ;;  %v12487_v54 = vld [vmem:[#allocation20_spill] sm:$0xff] }
 0x39d   : > { %v3953_v41 = vmul.u32 %v3951_v19, %v3949_v17  ;;  %v10328_v13 = vmul.u32 %v3951_v19, %v3950_v60  ;;  %v3957_v28 = vshll.u32 %v10311_v47, 16  ;;  %v10333_v37 = vsel %vm3121_vm5, %v3124_v36, %v3127_v56 }
 0x39e   : > { %12486 = vst [vmem:[#allocation41_spill] sm:$0xff] %v10326_v55  ;;  %v3264_v4 = vadd.f32 1.0, %v3263_v22  ;;  %vm3276_vm0 = vcmp.eq.s32.totalorder %v10307_v24, 0  ;;  %v3551_v5 = vor.u32 %v3550_v49, %v3549_v58  ;;  %v3272_v63 = vmul.f32 %v3271_v26, %v10112_v20 }
 0x39f   : > { %v10339_v61 = vmul.f32 %v10321_v9, %v10321_v9  ;;  %v3555_v44 = vor.u32 4788187, %v3554_v30  ;;  %v10342_v17 = vsel %vm5396_vm10, 0, %v5395_v25  ;;  %v12159_v27 = vshll.u32 %v10323_v6, 16 }
 0x3a0   : > { %vm3983_vm8 = vc.u32 %v3975_v46, %v3979_v45  ;;  %v10345_v33 = vadd.s32 %v3979_v45, %v3975_v46  ;;  %vm4065_vm3 = vcmp.gt.s32.totalorder %v4064_v21, 0  ;;  %v3847_v56 = vshll.u32 %v10326_v55, 30 }
 0x3a1   : > { %v3959_v32 = vshll.u32 %v10328_v13, 16  ;;  %vm3961_vm2 = vc.u32 %v3953_v41, %v3957_v28  ;;  %v3963_v20 = vadd.s32 %v3957_v28, %v3953_v41  ;;  %v3408_v40 = vsub.s32 4, %v12487_v54 }
 0x3a2   : > { %v3413_v50 = vmul.f32 -0.001358992, %v10339_v61  ;;  %v3558_v19 = vcvt.s32.f32 %v3551_v5  ;;  %v3978_v36 = vmul.u32 %v3974_v48, %v3950_v60  ;;  %v3556_v25 = vand.u32 2147483647, %v3555_v44 }
 0x3a3   : > { %v3956_v22 = vmul.u32 %v3952_v16, %v3950_v60  ;;  %v3984_v58 = vsel %vm3983_vm8, 1, %v12235_v29  ;;  %v4066_v49 = vsel %vm4065_vm3, %v4064_v21, 0  ;;  %v3280_v26 = vxor.u32 2147483648, %v3264_v4 }
 0x3a4   : > { %v3706_v30 = vsub.s32 4294967266, %v10342_v17  ;;  %v3962_v46 = vsel %vm3961_vm2, 1, %v12235_v29  ;;  %vm3987_vm1 = vc.u32 %v10345_v33, %v12159_v27  ;;  %v3277_v45 = vxor.u32 2147483648, %v3272_v63 }
 0x3a5   : > { %v3420_v41 = vmul.f32 -0.00019511016, %v10339_v61  ;;  %v10359_v28 = vsub.s32 %v10293_v35, %v3847_v56  ;;  %vm3965_vm13 = vc.u32 %v3963_v20, %v3959_v32  ;;  %vm3279_vm7 = vcmp.eq.s32.totalorder %v10307_v24, 2 }
 0x3a6   : > { %v10365_v48 = vsel %vm3286_vm4, %v3408_v40, %v12487_v54  ;;  %v3986_v16 = vadd.s32 %v3984_v58, %v3978_v36  ;;  %v4068_v60 = vand.u32 31, %v4066_v49  ;;  %v3414_v21 = vadd.f32 0.041655596, %v3413_v50  ;;  %v12488_v50 = vld [vmem:[#allocation29_spill] sm:$0xff] }
 0x3a7   : > { %v3559_v5 = vmul.f32 %v3558_v19, %v3556_v25  ;;  %v3964_v44 = vadd.s32 %v3962_v46, %v3956_v22  ;;  %v3988_v8 = vsel %vm3987_vm1, 1, %v12235_v29  ;;  %v3686_v27 = vadd.s32 %v10093_v14, %v10088_v43 }
 0x3a8   : > { %v3702_v35 = vsub.s32 32, %v10342_v17  ;;  %v3707_v56 = vadd.s32 127, %v3706_v30  ;;  %v3966_v32 = vsel %vm3965_vm13, 1, %v12235_v29  ;;  %v10374_v20 = vsel %vm3276_vm0, %v3264_v4, %v3277_v45 }
 0x3a9   : > { %v10376_v54 = vsel %vm3279_vm7, %v3280_v26, %v3272_v63  ;;  %v3421_v40 = vadd.f32 0.008332121, %v3420_v41  ;;  %vm3440_vm4 = vcmp.lt.s32.totalorder %v12488_v50, 0  ;;  %v3850_v19 = vsub.s32 0, %v10359_v28 }
 0x3aa   : > { %vm3849_vm14 = vcmp.lt.s32.totalorder %v10359_v28, 0  ;;  %v3980_v43 = vshrl.u32 %v10305_v0, 16  ;;  %v3990_v14 = vadd.s32 %v3988_v8, %v3986_v16  ;;  %v10382_v36 = vsub.s32 32, %v4068_v60 }
 0x3ab   : > { %v10385_v25 = vmul.f32 %v3414_v21, %v10339_v61  ;;  %v3560_v22 = vxor.u32 2147483648, %v3559_v5  ;;  %v3958_v4 = vshrl.u32 %v10311_v47, 16  ;;  %v3968_v63 = vadd.s32 %v3966_v32, %v3964_v44 }
 0x3ac   : > { %12489 = vst [vmem:[#allocation40_spill] sm:$0xff] %v10382_v36  ;;  %v3703_v58 = vshll.u32 %v10206_v23, %v10342_v17  ;;  %v3704_v26 = vshrl.u32 %v3686_v27, %v3702_v35  ;;  %v3708_v30 = vshll.u32 %v3707_v56, 23  ;;  %v12160_v46 = vand.u32 2147483647, %v12480_v34  ;;  %v12493_v34 = vld [vmem:[#allocation26_spill] sm:$0xff] }
 0x3ad   : > { %v12490_v45 = vand.u32 2147483647, %v12488_v50  ;;  %v3851_v0 = vsel %vm3849_vm14, %v3850_v19, %v10359_v28  ;;  %v3916_v41 = vshrl.u32 %v12224_v62, %v10170_v10  ;;  %v3937_v47 = vsel %vm3935_vm11, %v10226_v7, 2102212464 }
 0x3ae   : > { %v3960_v23 = vshrl.u32 %v10328_v13, 16  ;;  %v3982_v17 = vshrl.u32 %v10323_v6, 16  ;;  %v3991_v27 = vadd.s32 %v3990_v14, %v3980_v43  ;;  %v4083_v16 = vshll.u32 %v12248_v52, %v4068_v60 }
 0x3af   : > { %vm10393_vm5 = vcmp.le.f32.partialorder %v12490_v45, 0.7853982  ;;  %v4084_v21 = vshrl.u32 %v12475_v3, %v10382_v36  ;;  %v3969_v44 = vadd.s32 %v3968_v63, %v3958_v4  ;;  %v10408_v35 = vshrl.u32 %v4066_v49, 5 }
 0x3b0   : > { %v4080_v56 = vshll.u32 %v12227_v15, %v4068_v60  ;;  %v4081_v10 = vshrl.u32 %v12248_v52, %v10382_v36  ;;  %v3852_v32 = vclz %v3851_v0  ;;  %v4061_v7 = vand.u32 8388607, %v12160_v46 }
 0x3b1   : > { %v4071_v13 = vshll.u32 %v12224_v62, %v4068_v60  ;;  %v4074_v19 = vshll.u32 %v12476_v38, %v4068_v60  ;;  %vm3275_vm11 = vcmp.lt.s32.totalorder %v10307_v24, 2  ;;  %v4072_v43 = vshrl.u32 %v12476_v38, %v10382_v36 }
 0x3b2   : > { %v4075_v49 = vshrl.u32 %v12477_v51, %v10382_v36  ;;  %v4077_v14 = vshll.u32 %v12477_v51, %v4068_v60  ;;  %v4078_v4 = vshrl.u32 %v12227_v15, %v10382_v36  ;;  %v3936_v63 = vsel %vm3932_vm12, %v3916_v41, %v10222_v11 }
 0x3b3   : > { %v3938_v45 = vsel %vm3934_vm15, %v10224_v39, %v3937_v47  ;;  %v3992_v0 = vadd.s32 %v3991_v27, %v3982_v17  ;;  %v4085_v46 = vor.u32 %v4084_v21, %v4083_v16  ;;  %vm3119_vm10 = vweird.f32 %v12493_v34 }
 0x3b4   : > { %v10432_v2 = vadd.s32 %v3969_v44, %v3960_v23  ;;  %v12494_v59 = vshll.u32 %v10323_v6, 16  ;;  %v4082_v55 = vor.u32 %v4081_v10, %v4080_v56  ;;  %vm4089_vm0 = vcmp.lt.s32.totalorder %v10408_v35, 4 }
 0x3b5   : > { %v3561_v11 = vsel %vm3440_vm4, %v3560_v22, %v3559_v5  ;;  %v3705_v41 = vor.u32 %v3704_v26, %v3703_v58  ;;  %v3709_v36 = vor.u32 4788187, %v3708_v30  ;;  %v5398_v39 = vadd.s32 4294967294, %v3852_v32  ;;  %v12495_v22 = vld [vmem:[#allocation34_spill] sm:$0xff] }
 0x3b6   : > { %v10437_v60 = vadd.s32 %v10345_v33, %v12494_v59  ;;  %v3939_v47 = vsel %vm3933_vm6, %v3936_v63, %v3938_v45  ;;  %v10444_v17 = vor.u32 %v4072_v43, %v4071_v13  ;;  %v10446_v23 = vor.u32 %v4075_v49, %v4074_v19 }
 0x3b7   : > { %v10448_v6 = vor.u32 %v4078_v4, %v4077_v14  ;;  %v3996_v59 = vadd.s32 1, %v3992_v0  ;;  %vm4086_vm12 = vcmp.lt.s32.totalorder %v10408_v35, 1  ;;  %vm4088_vm15 = vcmp.lt.s32.totalorder %v10408_v35, 3 }
 0x3b8   : > { %v4099_v33 = vsel %vm4089_vm0, %v4085_v46, 1326507024  ;;  %vm3995_vm8 = vc.u32 %v10432_v2, %v10437_v60  ;;  %v4062_v5 = vor.u32 8388608, %v4061_v7  ;;  %v4095_v31 = vsel %vm4089_vm0, %v4082_v55, 920167782 }
 0x3b9   : > { %v4211_v58 = vand.u32 2139095040, %v12495_v22  ;;  %v3422_v26 = vmul.f32 %v3421_v40, %v10339_v61  ;;  %v10463_v30 = vsel %vm10393_vm5, %v12488_v50, %v3561_v11  ;;  %v3712_v27 = vcvt.s32.f32 %v3705_v41 }
 0x3ba   : > { %vm5399_vm6 = vcmp.lt.s32.totalorder %v5398_v39, 0  ;;  %v3993_v46 = vmul.u32 %v10261_v12, %v3939_v47  ;;  %vm4087_vm3 = vcmp.lt.s32.totalorder %v10408_v35, 2  ;;  %v4098_v16 = vsel %vm4086_vm12, %v10446_v23, %v10448_v6 }
 0x3bb   : > { %v4100_v21 = vsel %vm4088_vm15, %v4082_v55, %v4099_v33  ;;  %v3710_v40 = vand.u32 2147483647, %v3709_v36  ;;  %v3997_v44 = vsel %vm3995_vm8, %v3996_v59, %v3992_v0  ;;  %v4094_v56 = vsel %vm4086_vm12, %v10444_v17, %v10446_v23  ;;  %v12498_v0 = vld [vmem:[#allocation30_spill] sm:$0xff] }
 0x3bc   : > { %v4096_v12 = vsel %vm4088_vm15, %v10448_v6, %v4095_v31  ;;  %v3411_v10 = vsel %vm10285_vm9, 0, %v10365_v48  ;;  %v10483_v32 = vsel %vm5399_vm6, 0, %v5398_v39  ;;  %v10485_v7 = vshll.u32 %v4062_v5, 8 }
 0x3bd   : > { %v4212_v55 = vshrl.u32 %v4211_v58, 23  ;;  %vm3273_vm2 = vweird.f32 %v12464_v18  ;;  %v3282_v36 = vsel %vm3275_vm11, %v10374_v20, %v10376_v54  ;;  %v3416_v13 = vadd.f32 -0.4999988, %v10385_v25 }
 0x3be   : > { %v10495_v19 = vsel %vm4087_vm3, %v4098_v16, %v4100_v21  ;;  %v3423_v42 = vadd.f32 -0.16666654, %v3422_v26  ;;  %v10499_v48 = vmul.f32 %v10463_v30, %v10463_v30  ;;  %v10501_v43 = vadd.s32 %v3997_v44, %v3993_v46 }
 0x3bf   : > { %v10505_v18 = vsel %vm4087_vm3, %v4094_v56, %v4096_v12  ;;  %v10510_v24 = vsel %vm3119_vm10, nan, %v10333_v37  ;;  %v10512_v20 = vand.u32 3, %v3411_v10  ;;  %v3713_v54 = vmul.f32 %v3712_v27, %v3710_v40 }
 0x3c0   : > { %12496 = vst [vmem:[#allocation9_spill] sm:$0xff] %v10510_v24  ;;  %v3860_v25 = vsub.s32 4294967266, %v10483_v32  ;;  %v10515_v49 = vsel %vm3273_vm2, nan, %v3282_v36  ;;  %v4103_v14 = vand.u32 65535, %v10485_v7  ;;  %v4106_v4 = vshrl.u32 %v10495_v19, 16 }
 0x3c1   : > { %12497 = vst [vmem:[#allocation18_spill] sm:$0xff] %v10515_v49  ;;  %v5406_v63 = vadd.s32 4294967169, %v4212_v55  ;;  %v3417_v45 = vmul.f32 %v3416_v13, %v10339_v61  ;;  %v12499_v11 = vand.u32 2147483647, %v12498_v0  ;;  %vm3594_vm1 = vcmp.lt.s32.totalorder %v12498_v0, 0 }
 0x3c2   : > { %v4128_v37 = vshrl.u32 %v10505_v18, 16  ;;  %v3424_v41 = vmul.f32 %v3423_v42, %v10339_v61  ;;  %v3567_v39 = vmul.f32 -0.001358992, %v10499_v48  ;;  %v3574_v47 = vmul.f32 -0.00019511016, %v10499_v48 }
 0x3c3   : > { %vm10522_vm9 = vcmp.le.f32.partialorder %v12499_v11, 0.7853982  ;;  %v3999_v59 = vadd.s32 536870912, %v10501_v43  ;;  %v3714_v33 = vxor.u32 2147483648, %v3713_v54  ;;  %v3840_v5 = vadd.s32 %v10220_v57, %v10229_v1 }
 0x3c4   : > { %v3856_v31 = vsub.s32 32, %v10483_v32  ;;  %v3861_v58 = vadd.s32 127, %v3860_v25  ;;  %v4104_v26 = vshrl.u32 %v10485_v7, 16  ;;  %v4105_v27 = vand.u32 65535, %v10495_v19 }
 0x3c5   : > { %v10537_v46 = vmul.u32 %v4106_v4, %v4103_v14  ;;  %v4218_v61 = vadd.s32 1, %v5406_v63  ;;  %v3418_v16 = vadd.f32 1.0, %v3417_v45  ;;  %v3562_v21 = vsub.s32 4, %v10096_v53 }
 0x3c6   : > { %v4127_v40 = vand.u32 65535, %v10505_v18  ;;  %v10541_v44 = vmul.u32 %v4128_v37, %v4103_v14  ;;  %v3425_v56 = vadd.f32 1.0, %v3424_v41  ;;  %v3568_v12 = vadd.f32 0.041655596, %v3567_v39 }
 0x3c7   : > { %v3575_v57 = vadd.f32 0.008332121, %v3574_v47  ;;  %v10543_v1 = vshrl.u32 %v3999_v59, 30  ;;  %vm3430_vm13 = vcmp.eq.s32.totalorder %v10512_v20, 0  ;;  %v3715_v10 = vsel %vm3594_vm1, %v3714_v33, %v3713_v54 }
 0x3c8   : > { %v3857_v55 = vshll.u32 %v10359_v28, %v10483_v32  ;;  %v3858_v36 = vshrl.u32 %v3840_v5, %v3856_v31  ;;  %v3862_v13 = vshll.u32 %v3861_v58, 23  ;;  %v4107_v19 = vmul.u32 %v4105_v27, %v4103_v14 }
 0x3c9   : > { %12502 = vst [vmem:[#allocation27_spill] sm:$0xff] %v10543_v1  ;;  %v10550_v42 = vmul.u32 %v4105_v27, %v4104_v26  ;;  %v4111_v18 = vshll.u32 %v10537_v46, 16  ;;  %vm4219_vm7 = vcmp.gt.s32.totalorder %v4218_v61, 0  ;;  %vm3433_vm14 = vcmp.eq.s32.totalorder %v10512_v20, 2 }
 0x3ca   : > { %v4129_v25 = vmul.u32 %v4127_v40, %v4103_v14  ;;  %v10554_v63 = vmul.u32 %v4127_v40, %v4104_v26  ;;  %v4133_v45 = vshll.u32 %v10541_v44, 16  ;;  %v3426_v54 = vmul.f32 %v3425_v56, %v10321_v9 }
 0x3cb   : > { %v3434_v11 = vxor.u32 2147483648, %v3418_v16  ;;  %v3563_v28 = vsel %vm3440_vm4, %v3562_v21, %v10096_v53  ;;  %v4001_v32 = vshll.u32 %v10543_v1, 30  ;;  %v3569_v41 = vmul.f32 %v3568_v12, %v10499_v48 }
 0x3cc   : > { %v3576_v39 = vmul.f32 %v3575_v57, %v10499_v48  ;;  %v10567_v14 = vsel %vm10522_vm9, %v12498_v0, %v3715_v10  ;;  %v4220_v47 = vsel %vm4219_vm7, %v4218_v61, 0  ;;  %v3859_v59 = vor.u32 %v3858_v36, %v3857_v55 }
 0x3cd   : > { %v3863_v33 = vor.u32 4788187, %v3862_v13  ;;  %v4113_v9 = vshll.u32 %v10550_v42, 16  ;;  %vm4115_vm11 = vc.u32 %v4107_v19, %v4111_v18  ;;  %v4117_v5 = vadd.s32 %v4111_v18, %v4107_v19  ;;  %v12503_v18 = vld [vmem:[#allocation22_spill] sm:$0xff] }
 0x3ce   : > { %v12167_v53 = vshll.u32 %v10554_v63, 16  ;;  %vm4137_vm4 = vc.u32 %v4129_v25, %v4133_v45  ;;  %v10571_v31 = vadd.s32 %v4133_v45, %v4129_v25  ;;  %v3431_v58 = vxor.u32 2147483648, %v3426_v54 }
 0x3cf   : > { %v3565_v27 = vsel %vm10393_vm5, 0, %v3563_v28  ;;  %v10576_v21 = vsub.s32 %v10501_v43, %v4001_v32  ;;  %v4222_v40 = vand.u32 31, %v4220_v47  ;;  %v10580_v61 = vsel %vm3433_vm14, %v3434_v11, %v3426_v54  ;;  %v12504_v32 = vld [vmem:[#allocation31_spill] sm:$0xff] }
 0x3d0   : > { %v3570_v56 = vadd.f32 -0.4999988, %v3569_v41  ;;  %v4110_v12 = vmul.u32 %v4106_v4, %v4104_v26  ;;  %v4132_v57 = vmul.u32 %v4128_v37, %v4104_v26  ;;  %v3577_v10 = vadd.f32 -0.16666654, %v3576_v39 }
 0x3d1   : > { %v10584_v55 = vmul.f32 %v10567_v14, %v10567_v14  ;;  %v4116_v36 = vsel %vm4115_vm11, 1, %v12235_v29  ;;  %v4138_v8 = vsel %vm4137_vm4, 1, %v12235_v29  ;;  %v3864_v13 = vand.u32 2147483647, %v3863_v33 }
 0x3d2   : > { %v3866_v43 = vcvt.s32.f32 %v3859_v59  ;;  %vm4119_vm5 = vc.u32 %v4117_v5, %v4113_v9  ;;  %vm4141_vm10 = vc.u32 %v10571_v31, %v12167_v53  ;;  %v10593_v4 = vsel %vm3430_vm13, %v3418_v16, %v3431_v58 }
 0x3d3   : > { %v10595_v37 = vand.u32 3, %v3565_v27  ;;  %v4004_v26 = vsub.s32 0, %v10576_v21  ;;  %v10598_v19 = vsub.s32 32, %v4222_v40  ;;  %vm4003_vm8 = vcmp.lt.s32.totalorder %v10576_v21, 0 }
 0x3d4   : > { %v4118_v45 = vadd.s32 %v4116_v36, %v4110_v12  ;;  %v4140_v54 = vadd.s32 %v4138_v8, %v4132_v57  ;;  %v10603_v11 = vmul.f32 %v3570_v56, %v10499_v48  ;;  %v3578_v28 = vmul.f32 %v3577_v10, %v10499_v48 }
 0x3d5   : > { %vm3748_vm6 = vcmp.lt.s32.totalorder %v12504_v32, 0  ;;  %v4120_v16 = vsel %vm4119_vm5, 1, %v12235_v29  ;;  %v4142_v41 = vsel %vm4141_vm10, 1, %v12235_v29  ;;  %v3721_v39 = vmul.f32 -0.001358992, %v10584_v55 }
 0x3d6   : > { %v3728_v59 = vmul.f32 -0.00019511016, %v10584_v55  ;;  %v3867_v33 = vmul.f32 %v3866_v43, %v3864_v13  ;;  %v4005_v5 = vsel %vm4003_vm8, %v4004_v26, %v10576_v21  ;;  %v4112_v58 = vshrl.u32 %v10537_v46, 16 }
 0x3d7   : > { %v4234_v27 = vshll.u32 %v12227_v15, %v4222_v40  ;;  %v4235_v48 = vshrl.u32 %v12248_v52, %v10598_v19  ;;  %v12505_v56 = vand.u32 2147483647, %v12504_v32  ;;  %v4122_v57 = vadd.s32 %v4120_v16, %v4118_v45  ;;  %v12508_v16 = vld [vmem:[#allocation40_spill] sm:$0xff] }
 0x3d8   : > { %v4134_v10 = vshrl.u32 %v10541_v44, 16  ;;  %v4144_v36 = vadd.s32 %v4142_v41, %v4140_v54  ;;  %v10624_v8 = vshrl.u32 %v4220_v47, 5  ;;  %v4225_v13 = vshll.u32 %v12224_v62, %v4222_v40 }
 0x3d9   : > { %vm10619_vm2 = vcmp.le.f32.partialorder %v12505_v56, 0.7853982  ;;  %v4228_v46 = vshll.u32 %v12476_v38, %v4222_v40  ;;  %v4231_v43 = vshll.u32 %v12477_v51, %v4222_v40  ;;  %v4237_v26 = vshll.u32 %v12248_v52, %v4222_v40 }
 0x3da   : > { %v4226_v56 = vshrl.u32 %v12476_v38, %v10598_v19  ;;  %v4229_v25 = vshrl.u32 %v12477_v51, %v10598_v19  ;;  %v4232_v44 = vshrl.u32 %v12227_v15, %v10598_v19  ;;  %v4238_v47 = vshrl.u32 %v12475_v3, %v10598_v19 }
 0x3db   : > { %v3868_v45 = vxor.u32 2147483648, %v3867_v33  ;;  %v4006_v54 = vclz %v4005_v5  ;;  %v4070_v41 = vshrl.u32 %v12224_v62, %v12508_v16  ;;  %v4236_v53 = vor.u32 %v4235_v48, %v4234_v27  ;;  %v12510_v5 = vld [vmem:[#allocation35_spill] sm:$0xff] }
 0x3dc   : > { %v4136_v40 = vshrl.u32 %v10554_v63, 16  ;;  %v4145_v9 = vadd.s32 %v4144_v36, %v4134_v10  ;;  %v12509_v49 = vand.u32 2147483647, %v12495_v22  ;;  %vm4243_vm13 = vcmp.lt.s32.totalorder %v10624_v8, 4 }
 0x3dd   : > { %v4091_v1 = vsel %vm4089_vm0, %v10448_v6, 2102212464  ;;  %v4114_v50 = vshrl.u32 %v10550_v42, 16  ;;  %v4123_v15 = vadd.s32 %v4122_v57, %v4112_v58  ;;  %v4365_v51 = vand.u32 2139095040, %v12510_v5 }
 0x3de   : > { %v4215_v24 = vand.u32 8388607, %v12509_v49  ;;  %vm3429_vm7 = vcmp.lt.s32.totalorder %v10512_v20, 2  ;;  %v10650_v27 = vor.u32 %v4226_v56, %v4225_v13  ;;  %v10652_v48 = vor.u32 %v4229_v25, %v4228_v46 }
 0x3df   : > { %v10654_v10 = vor.u32 %v4232_v44, %v4231_v43  ;;  %v4239_v49 = vor.u32 %v4238_v47, %v4237_v26  ;;  %v5401_v36 = vadd.s32 4294967294, %v4006_v54  ;;  %vm4240_vm14 = vcmp.lt.s32.totalorder %v10624_v8, 1 }
 0x3e0   : > { %vm4242_vm11 = vcmp.lt.s32.totalorder %v10624_v8, 3  ;;  %v4249_v6 = vsel %vm4243_vm13, %v4236_v53, 920167782  ;;  %v3869_v42 = vsel %vm3748_vm6, %v3868_v45, %v3867_v33  ;;  %v4090_v58 = vsel %vm4086_vm12, %v4070_v41, %v10444_v17 }
 0x3e1   : > { %v4146_v25 = vadd.s32 %v4145_v9, %v4136_v40  ;;  %v4216_v57 = vor.u32 8388608, %v4215_v24  ;;  %v4092_v13 = vsel %vm4088_vm15, %v10446_v23, %v4091_v1  ;;  %v10668_v46 = vadd.s32 %v4123_v15, %v4114_v50 }
 0x3e2   : > { %v12511_v43 = vshll.u32 %v10554_v63, 16  ;;  %vm4241_vm0 = vcmp.lt.s32.totalorder %v10624_v8, 2  ;;  %v4248_v17 = vsel %vm4240_vm14, %v10650_v27, %v10652_v48  ;;  %v4250_v24 = vsel %vm4242_vm11, %v10654_v10, %v4249_v6 }
 0x3e3   : > { %v4253_v15 = vsel %vm4243_vm13, %v4239_v49, 1326507024  ;;  %v4366_v50 = vshrl.u32 %v4365_v51, 23  ;;  %v3579_v23 = vadd.f32 1.0, %v3578_v28  ;;  %v3722_v1 = vadd.f32 0.041655596, %v3721_v39 }
 0x3e4   : > { %v10673_v26 = vadd.s32 %v10571_v31, %v12511_v43  ;;  %v10688_v63 = vsel %vm10619_vm2, %v12504_v32, %v3869_v42  ;;  %vm5402_vm12 = vcmp.lt.s32.totalorder %v5401_v36, 0  ;;  %v3729_v31 = vadd.f32 0.008332121, %v3728_v59 }
 0x3e5   : > { %v4093_v33 = vsel %vm4087_vm3, %v4090_v58, %v4092_v13  ;;  %v4150_v9 = vadd.s32 1, %v4146_v25  ;;  %v10692_v56 = vshll.u32 %v4216_v57, 8  ;;  %v10698_v51 = vsel %vm4241_vm0, %v4248_v17, %v4250_v24 }
 0x3e6   : > { %vm4149_vm15 = vc.u32 %v10668_v46, %v10673_v26  ;;  %v4252_v28 = vsel %vm4240_vm14, %v10652_v48, %v10654_v10  ;;  %v4254_v39 = vsel %vm4242_vm11, %v4236_v53, %v4253_v15  ;;  %v10707_v35 = vadd.f32 1.0, %v10603_v11 }
 0x3e7   : > { %v10711_v59 = vmul.f32 %v10688_v63, %v10688_v63  ;;  %v4009_v44 = vsel %vm5402_vm12, 0, %v5401_v36  ;;  %v5409_v47 = vadd.s32 4294967169, %v4366_v50  ;;  %v10714_v45 = vmul.f32 %v3579_v23, %v10463_v30 }
 0x3e8   : > { %v12512_v54 = vsub.s32 4, %v12503_v18  ;;  %v3723_v53 = vmul.f32 %v3722_v1, %v10584_v55  ;;  %v4147_v11 = vmul.u32 %v10485_v7, %v4093_v33  ;;  %v4151_v41 = vsel %vm4149_vm15, %v4150_v9, %v4146_v25  ;;  %v12513_v9 = vld [vmem:[#allocation41_spill] sm:$0xff] }
 0x3e9   : > { %v10725_v40 = vsel %vm4241_vm0, %v4252_v28, %v4254_v39  ;;  %v4257_v49 = vand.u32 65535, %v10692_v56  ;;  %v4282_v30 = vshrl.u32 %v10698_v51, 16  ;;  %v10733_v36 = vsel %vm3429_vm7, %v10593_v4, %v10580_v61 }
 0x3ea   : > { %v3717_v16 = vsel %vm3594_vm1, %v12512_v54, %v12503_v18  ;;  %vm3587_vm3 = vcmp.eq.s32.totalorder %v10595_v37, 2  ;;  %v3730_v18 = vmul.f32 %v3729_v31, %v10584_v55  ;;  %v4014_v7 = vsub.s32 4294967266, %v4009_v44 }
 0x3eb   : > { %v3588_v6 = vxor.u32 2147483648, %v10707_v35  ;;  %v3875_v42 = vmul.f32 -0.001358992, %v10711_v59  ;;  %v3882_v58 = vmul.f32 -0.00019511016, %v10711_v59  ;;  %v4372_v25 = vadd.s32 1, %v5409_v47 }
 0x3ec   : > { %v3585_v57 = vxor.u32 2147483648, %v10714_v45  ;;  %v3719_v13 = vsel %vm10522_vm9, 0, %v3717_v16  ;;  %v10743_v20 = vadd.s32 %v4151_v41, %v4147_v11  ;;  %v4260_v61 = vshrl.u32 %v10725_v40, 16 }
 0x3ed   : > { %v3724_v4 = vadd.f32 -0.4999988, %v3723_v53  ;;  %v4258_v43 = vshrl.u32 %v10692_v56, 16  ;;  %v4281_v17 = vand.u32 65535, %v10698_v51  ;;  %v10748_v24 = vmul.u32 %v4282_v30, %v4257_v49 }
 0x3ee   : > { %vm3584_vm1 = vcmp.eq.s32.totalorder %v10595_v37, 0  ;;  %v3731_v15 = vadd.f32 -0.16666654, %v3730_v18  ;;  %v3994_v50 = vadd.s32 %v10437_v60, %v10432_v2  ;;  %v4010_v23 = vsub.s32 32, %v4009_v44 }
 0x3ef   : > { %v4015_v34 = vadd.s32 127, %v4014_v7  ;;  %v10756_v1 = vsel %vm3587_vm3, %v3588_v6, %v10714_v45  ;;  %v3876_v31 = vadd.f32 0.041655596, %v3875_v42  ;;  %v3883_v33 = vadd.f32 0.008332121, %v3882_v58 }
 0x3f0   : > { %vm4373_vm9 = vcmp.gt.s32.totalorder %v4372_v25, 0  ;;  %v3870_v51 = vsub.s32 4, %v12513_v9  ;;  %v4153_v28 = vadd.s32 536870912, %v10743_v20  ;;  %v4259_v39 = vand.u32 65535, %v10725_v40 }
 0x3f1   : > { %v10761_v47 = vmul.u32 %v4260_v61, %v4257_v49  ;;  %v3725_v2 = vmul.f32 %v3724_v4, %v10584_v55  ;;  %v4283_v60 = vmul.u32 %v4281_v17, %v4257_v49  ;;  %v10764_v54 = vmul.u32 %v4281_v17, %v4258_v43 }
 0x3f2   : > { %v4287_v16 = vshll.u32 %v10748_v24, 16  ;;  %v4011_v45 = vshll.u32 %v10576_v21, %v4009_v44  ;;  %v4012_v53 = vshrl.u32 %v3994_v50, %v4010_v23  ;;  %v4016_v11 = vshll.u32 %v4015_v34, 23 }
 0x3f3   : > { %v4374_v41 = vsel %vm4373_vm9, %v4372_v25, 0  ;;  %v3732_v18 = vmul.f32 %v3731_v15, %v10584_v55  ;;  %v10769_v7 = vand.u32 3, %v3719_v13  ;;  %v3877_v40 = vmul.f32 %v3876_v31, %v10711_v59 }
 0x3f4   : > { %v3884_v6 = vmul.f32 %v3883_v33, %v10711_v59  ;;  %v10773_v42 = vshrl.u32 %v4153_v28, 30  ;;  %v4261_v58 = vmul.u32 %v4259_v39, %v4257_v49  ;;  %v10775_v4 = vmul.u32 %v4259_v39, %v4258_v43 }
 0x3f5   : > { %v4265_v17 = vshll.u32 %v10761_v47, 16  ;;  %v12173_v21 = vshll.u32 %v10764_v54, 16  ;;  %vm4291_vm4 = vc.u32 %v4283_v60, %v4287_v16  ;;  %v10779_v44 = vadd.s32 %v4287_v16, %v4283_v60 }
 0x3f6   : > { %v4376_v25 = vand.u32 31, %v4374_v41  ;;  %v10781_v55 = vadd.f32 1.0, %v3725_v2  ;;  %v10786_v13 = vsel %vm3748_vm6, %v3870_v51, %v12513_v9  ;;  %v4013_v15 = vor.u32 %v4012_v53, %v4011_v45 }
 0x3f7   : > { %v4017_v50 = vor.u32 4788187, %v4016_v11  ;;  %v3733_v49 = vadd.f32 1.0, %v3732_v18  ;;  %v3878_v23 = vadd.f32 -0.4999988, %v3877_v40  ;;  %v4286_v31 = vmul.u32 %v4282_v30, %v4258_v43 }
 0x3f8   : > { %v3885_v34 = vadd.f32 -0.16666654, %v3884_v6  ;;  %v4267_v33 = vshll.u32 %v10775_v4, 16  ;;  %vm4269_vm5 = vc.u32 %v4261_v58, %v4265_v17  ;;  %v4271_v28 = vadd.s32 %v4265_v17, %v4261_v58 }
 0x3f9   : > { %v4292_v39 = vsel %vm4291_vm4, 1, %v12235_v29  ;;  %v10793_v2 = vsel %vm3584_vm1, %v10707_v35, %v3585_v57  ;;  %v4155_v9 = vshll.u32 %v10773_v42, 30  ;;  %vm4295_vm10 = vc.u32 %v10779_v44, %v12173_v21  ;;  %v12517_v35 = vld [vmem:[#allocation32_spill] sm:$0xff] }
 0x3fa   : > { %v10799_v51 = vsub.s32 32, %v4376_v25  ;;  %v4018_v60 = vand.u32 2147483647, %v4017_v50  ;;  %v4020_v16 = vcvt.s32.f32 %v4013_v15  ;;  %v4264_v45 = vmul.u32 %v4260_v61, %v4258_v43 }
 0x3fb   : > { %v10805_v53 = vmul.f32 %v3733_v49, %v10567_v14  ;;  %v4270_v57 = vsel %vm4269_vm5, 1, %v12235_v29  ;;  %v4294_v11 = vadd.s32 %v4292_v39, %v4286_v31  ;;  %v10810_v18 = vmul.f32 %v3878_v23, %v10711_v59 }
 0x3fc   : > { %v3886_v40 = vmul.f32 %v3885_v34, %v10711_v59  ;;  %vm4273_vm8 = vc.u32 %v4271_v28, %v4267_v33  ;;  %v4296_v6 = vsel %vm4295_vm10, 1, %v12235_v29  ;;  %v10815_v58 = vsub.s32 %v10743_v20, %v4155_v9  ;;  %v12514_v34 = vld [vmem:[#allocation36_spill] sm:$0xff] }
 0x3fd   : > { %v12177_v61 = vand.u32 2147483647, %v12510_v5  ;;  %v4391_v14 = vshll.u32 %v12248_v52, %v4376_v25  ;;  %v4392_v43 = vshrl.u32 %v12475_v3, %v10799_v51  ;;  %v10821_v17 = vmul.f32 %v4020_v16, %v4018_v60 }
 0x3fe   : > { %v4224_v15 = vshrl.u32 %v12224_v62, %v10598_v19  ;;  %v4272_v50 = vadd.s32 %v4270_v57, %v4264_v45  ;;  %v10825_v59 = vshrl.u32 %v4374_v41, 5  ;;  %v4274_v49 = vsel %vm4273_vm8, 1, %v12235_v29 }
 0x3ff   : > { %v4288_v20 = vshrl.u32 %v10748_v24, 16  ;;  %v4298_v23 = vadd.s32 %v4296_v6, %v4294_v11  ;;  %v4519_v31 = vand.u32 2139095040, %v12514_v34  ;;  %v4382_v33 = vshll.u32 %v12476_v38, %v4376_v25 }
 0x400   : > { %v12515_v28 = vmov 2131351028   ;;  %v12516_v60 = vmov 2102212464   ;;  %v4158_v41 = vsub.s32 0, %v10815_v58  ;;  %v4389_v24 = vshrl.u32 %v12248_v52, %v10799_v51 }
 0x401   : > { %v4383_v39 = vshrl.u32 %v12515_v28, %v10799_v51  ;;  %v4385_v9 = vshll.u32 %v12515_v28, %v4376_v25  ;;  %v4386_v19 = vshrl.u32 %v12516_v60, %v10799_v51  ;;  %v4388_v16 = vshll.u32 %v12516_v60, %v4376_v25 }
 0x402   : > { %v4393_v45 = vor.u32 %v4392_v43, %v4391_v14  ;;  %vm3741_vm6 = vcmp.eq.s32.totalorder %v10769_v7, 2  ;;  %v4266_v57 = vshrl.u32 %v10761_v47, 16  ;;  %v4276_v11 = vadd.s32 %v4274_v49, %v4272_v50 }
 0x403   : > { %v4369_v6 = vand.u32 8388607, %v12177_v61  ;;  %vm4397_vm7 = vcmp.lt.s32.totalorder %v10825_v59, 4  ;;  %vm3902_vm12 = vcmp.lt.s32.totalorder %v12517_v35, 0  ;;  %vm4157_vm15 = vcmp.lt.s32.totalorder %v10815_v58, 0 }
 0x404   : > { %v4290_v30 = vshrl.u32 %v10764_v54, 16  ;;  %v4299_v21 = vadd.s32 %v4298_v23, %v4288_v20  ;;  %v4520_v22 = vshrl.u32 %v4519_v31, 23  ;;  %vm3738_vm3 = vcmp.eq.s32.totalorder %v10769_v7, 0 }
 0x405   : > { %v4379_v14 = vshll.u32 %v12224_v62, %v4376_v25  ;;  %v4380_v47 = vshrl.u32 %v12476_v38, %v10799_v51  ;;  %v10852_v43 = vor.u32 %v4383_v39, %v4382_v33  ;;  %v10854_v50 = vor.u32 %v4386_v19, %v4385_v9 }
 0x406   : > { %v4390_v49 = vor.u32 %v4389_v24, %v4388_v16  ;;  %vm4394_vm1 = vcmp.lt.s32.totalorder %v10825_v59, 1  ;;  %vm4396_vm9 = vcmp.lt.s32.totalorder %v10825_v59, 3  ;;  %v4407_v20 = vsel %vm4397_vm7, %v4393_v45, 1326507024 }
 0x407   : > { %v12518_v23 = vand.u32 2147483647, %v12517_v35  ;;  %v12519_v31 = vmov 0  ;;  %v4159_v25 = vsel %vm4157_vm15, %v4158_v41, %v10815_v58  ;;  %v4268_v33 = vshrl.u32 %v10775_v4, 16 }
 0x408   : > { %v4277_v39 = vadd.s32 %v4276_v11, %v4266_v57  ;;  %v4370_v9 = vor.u32 8388608, %v4369_v6  ;;  %v3887_v19 = vadd.f32 1.0, %v3886_v40  ;;  %v4022_v16 = vxor.u32 2147483648, %v10821_v17 }
 0x409   : > { %vm10862_vm4 = vcmp.le.f32.partialorder %v12518_v23, 0.7853982  ;;  %v4245_v24 = vsel %vm4243_vm13, %v10654_v10, 2102212464  ;;  %v5412_v45 = vadd.s32 4294967169, %v4520_v22  ;;  %vm3583_vm5 = vcmp.lt.s32.totalorder %v10595_v37, 2 }
 0x40a   : > { %v12520_v31 = vsel %vm10862_vm4, 4294967295, %v12519_v31  ;;  %vm3737_vm10 = vcmp.lt.s32.totalorder %v10769_v7, 2  ;;  %v10874_v23 = vor.u32 %v4380_v47, %v4379_v14  ;;  %vm12175_vm8 = vcmp.lt.s32.totalorder %v10825_v59, 2 }
 0x40b   : > { %12521 = vst [vmem:[#allocation24_spill] sm:$0xff] %v12520_v31  ;;  %v4406_v4 = vsel %vm4394_vm1, %v10852_v43, %v10854_v50  ;;  %v4408_v40 = vsel %vm4396_vm9, %v4390_v49, %v4407_v20  ;;  %v4160_v41 = vclz %v4159_v25  ;;  %v4244_v22 = vsel %vm4240_vm14, %v4224_v15, %v10650_v27  ;;  %v12524_v15 = vld [vmem:[#allocation28_spill] sm:$0xff] }
 0x40c   : > { %v4300_v10 = vadd.s32 %v4299_v21, %v4290_v30  ;;  %v4403_v57 = vsel %vm4397_vm7, %v4390_v49, 920167782  ;;  %v4246_v11 = vsel %vm4242_vm11, %v10652_v48, %v4245_v24  ;;  %v10891_v6 = vadd.s32 %v4277_v39, %v4268_v33 }
 0x40d   : > { %v12522_v14 = vshll.u32 %v10764_v54, 16  ;;  %v10898_v20 = vshll.u32 %v4370_v9, 8  ;;  %v3739_v25 = vxor.u32 2147483648, %v10805_v53  ;;  %v12523_v27 = vsel %vm10619_vm2, 0, %v10786_v13  ;;  %v12525_v54 = vld [vmem:[#allocation29_spill] sm:$0xff] }
 0x40e   : > { %v3890_v21 = vand.u32 3, %v12523_v27  ;;  %v10907_v30 = vsel %vm12175_vm8, %v4406_v4, %v4408_v40  ;;  %v4526_v48 = vadd.s32 1, %v5412_v45  ;;  %vm3427_vm13 = vweird.f32 %v12524_v15 }
 0x40f   : > { %v10896_v47 = vadd.s32 %v10779_v44, %v12522_v14  ;;  %vm3581_vm14 = vweird.f32 %v12525_v54  ;;  %v3880_v44 = vadd.f32 1.0, %v10810_v18  ;;  %v3888_v49 = vmul.f32 %v3887_v19, %v10688_v63 }
 0x410   : > { %v4402_v12 = vsel %vm4394_vm1, %v10874_v23, %v10852_v43  ;;  %v4404_v13 = vsel %vm4396_vm9, %v10854_v50, %v4403_v57  ;;  %v12526_v33 = vxor.u32 2147483648, %v10781_v55  ;;  %v5404_v9 = vadd.s32 4294967294, %v4160_v41 }
 0x411   : > { %v4247_v18 = vsel %vm4241_vm0, %v4244_v22, %v4246_v11  ;;  %v4304_v63 = vadd.s32 1, %v4300_v10  ;;  %v4023_v19 = vsel %vm3902_vm12, %v4022_v16, %v10821_v17  ;;  %vm4303_vm2 = vc.u32 %v10891_v6, %v10896_v47  ;;  %v12527_v17 = vld [vmem:[#allocation27_spill] sm:$0xff] }
 0x412   : > { %v3743_v39 = vsel %vm3741_vm6, %v12526_v33, %v10805_v53  ;;  %v4411_v24 = vand.u32 65535, %v10898_v20  ;;  %v4414_v45 = vshrl.u32 %v10907_v30, 16  ;;  %v3740_v53 = vsel %vm3738_vm3, %v10781_v55, %v3739_v25 }
 0x413   : > { %vm3892_vm11 = vcmp.eq.s32.totalorder %v3890_v21, 0  ;;  %v10939_v8 = vsel %vm12175_vm8, %v4402_v12, %v4404_v13  ;;  %vm4527_vm0 = vcmp.gt.s32.totalorder %v4526_v48, 0  ;;  %v3893_v4 = vxor.u32 2147483648, %v3888_v49 }
 0x414   : > { %v3896_v40 = vxor.u32 2147483648, %v3880_v44  ;;  %v4024_v16 = vsub.s32 4, %v12527_v17  ;;  %v4301_v41 = vmul.u32 %v10692_v56, %v4247_v18  ;;  %vm3895_vm6 = vcmp.eq.s32.totalorder %v3890_v21, 2 }
 0x415   : > { %v10946_v22 = vsel %vm10862_vm4, %v12517_v35, %v4023_v19  ;;  %vm5405_vm15 = vcmp.lt.s32.totalorder %v5404_v9, 0  ;;  %v4305_v55 = vsel %vm4303_vm2, %v4304_v63, %v4300_v10  ;;  %v4413_v57 = vand.u32 65535, %v10907_v30 }
 0x416   : > { %v10949_v11 = vmul.u32 %v4414_v45, %v4411_v24  ;;  %v4436_v14 = vshrl.u32 %v10939_v8, 16  ;;  %v4528_v25 = vsel %vm4527_vm0, %v4526_v48, 0  ;;  %v3590_v56 = vsel %vm3583_vm5, %v10793_v2, %v10756_v1 }
 0x417   : > { %vm3735_vm3 = vweird.f32 %v12498_v0  ;;  %v3744_v27 = vsel %vm3737_vm10, %v3740_v53, %v3743_v39  ;;  %vm3891_vm8 = vcmp.lt.s32.totalorder %v3890_v21, 2  ;;  %v3894_v10 = vsel %vm3892_vm11, %v3880_v44, %v3893_v4 }
 0x418   : > { %v3897_v12 = vsel %vm3895_vm6, %v3896_v40, %v3888_v49  ;;  %v10963_v30 = vsel %vm3902_vm12, %v4024_v16, %v12527_v17  ;;  %v10965_v48 = vadd.s32 %v4305_v55, %v4301_v41  ;;  %v10969_v37 = vmul.f32 %v10946_v22, %v10946_v22 }
 0x419   : > { %12528 = vst [vmem:[#allocation20_spill] sm:$0xff] %v10963_v30  ;;  %v10971_v1 = vsel %vm5405_vm15, 0, %v5404_v9  ;;  %v4412_v7 = vshrl.u32 %v10898_v20, 16  ;;  %v4530_v2 = vand.u32 31, %v4528_v25  ;;  %v4415_v13 = vmul.u32 %v4413_v57, %v4411_v24 }
 0x41a   : > { %v4419_v44 = vshll.u32 %v10949_v11, 16  ;;  %v4435_v49 = vand.u32 65535, %v10939_v8  ;;  %v10976_v33 = vmul.u32 %v4436_v14, %v4411_v24  ;;  %v10981_v39 = vsel %vm3427_vm13, nan, %v10733_v36 }
 0x41b   : > { %12529 = vst [vmem:[#allocation26_spill] sm:$0xff] %v10981_v39  ;;  %v10985_v18 = vsel %vm3581_vm14, nan, %v3590_v56  ;;  %v10989_v9 = vsel %vm3735_vm3, nan, %v3744_v27  ;;  %v4029_v63 = vmul.f32 -0.001358992, %v10969_v37  ;;  %v4168_v53 = vsub.s32 4294967266, %v10971_v1 }
 0x41c   : > { %12530 = vst [vmem:[#allocation30_spill] sm:$0xff] %v10985_v18  ;;  %v4307_v15 = vadd.s32 536870912, %v10965_v48  ;;  %v12176_v36 = vand.u32 2147483647, %v12514_v34  ;;  %v10999_v54 = vsel %vm3891_vm8, %v3894_v10, %v3897_v12  ;;  %v4148_v0 = vadd.s32 %v10673_v26, %v10668_v46 }
 0x41d   : > { %12531 = vst [vmem:[#allocation22_spill] sm:$0xff] %v10989_v9  ;;  %v11003_v8 = vmul.u32 %v4413_v57, %v4412_v7  ;;  %v11005_v4 = vsub.s32 32, %v4530_v2  ;;  %v11008_v40 = vmul.f32 -0.00019511016, %v10969_v37  ;;  %vm4423_vm12 = vc.u32 %v4415_v13, %v4419_v44 }
 0x41e   : > { %v4437_v17 = vmul.u32 %v4435_v49, %v4411_v24  ;;  %v4441_v16 = vshll.u32 %v10976_v33, 16  ;;  %v11011_v41 = vadd.f32 0.041655596, %v4029_v63  ;;  %v4164_v21 = vsub.s32 32, %v10971_v1 }
 0x41f   : > { %v11016_v56 = vmul.u32 %v4435_v49, %v4412_v7  ;;  %v11018_v46 = vadd.s32 127, %v4168_v53  ;;  %v11020_v26 = vshrl.u32 %v4307_v15, 30  ;;  %v4418_v57 = vmul.u32 %v4414_v45, %v4412_v7 }
 0x420   : > { %v4523_v27 = vand.u32 8388607, %v12176_v36  ;;  %v4421_v24 = vshll.u32 %v11003_v8, 16  ;;  %v4424_v10 = vsel %vm4423_vm12, 1, %v12235_v29  ;;  %v4545_v12 = vshll.u32 %v12248_v52, %v4530_v2 }
 0x421   : > { %12532 = vst [vmem:[#allocation31_spill] sm:$0xff] %v11020_v26  ;;  %v4546_v63 = vshrl.u32 %v12475_v3, %v11005_v4  ;;  %vm4445_vm5 = vc.u32 %v4437_v17, %v4441_v16  ;;  %v11029_v49 = vshrl.u32 %v4528_v25, 5  ;;  %v4542_v53 = vshll.u32 %v12516_v60, %v4530_v2 }
 0x422   : > { %v4543_v45 = vshrl.u32 %v12248_v52, %v11005_v4  ;;  %vm3889_vm10 = vweird.f32 %v12504_v32  ;;  %v4425_v15 = vadd.s32 %v4419_v44, %v4415_v13  ;;  %v4440_v36 = vmul.u32 %v4436_v14, %v4412_v7 }
 0x423   : > { %v4443_v61 = vshll.u32 %v11016_v56, 16  ;;  %v11036_v19 = vadd.s32 %v4441_v16, %v4437_v17  ;;  %v4536_v55 = vshll.u32 %v12476_v38, %v4530_v2  ;;  %v4537_v9 = vshrl.u32 %v12515_v28, %v11005_v4 }
 0x424   : > { %v4539_v25 = vshll.u32 %v12515_v28, %v4530_v2  ;;  %v4540_v18 = vshrl.u32 %v12516_v60, %v11005_v4  ;;  %v4446_v39 = vsel %vm4445_vm5, 1, %v12235_v29  ;;  %v4533_v35 = vshll.u32 %v12224_v62, %v4530_v2 }
 0x425   : > { %v4534_v14 = vshrl.u32 %v12476_v38, %v11005_v4  ;;  %v4547_v7 = vor.u32 %v4546_v63, %v4545_v12  ;;  %v4166_v13 = vshrl.u32 %v4148_v0, %v4164_v21  ;;  %v4170_v44 = vshll.u32 %v11018_v46, 23 }
 0x426   : > { %v4544_v17 = vor.u32 %v4543_v45, %v4542_v53  ;;  %vm4551_vm8 = vcmp.lt.s32.totalorder %v11029_v49, 4  ;;  %v4309_v16 = vshll.u32 %v11020_v26, 30  ;;  %vm4427_vm13 = vc.u32 %v4425_v15, %v4421_v24  ;;  %v12541_v26 = vld [vmem:[#allocation33_spill] sm:$0xff] }
 0x427   : > { %vm4449_vm14 = vc.u32 %v11036_v19, %v4443_v61  ;;  %v4524_v34 = vor.u32 8388608, %v4523_v27  ;;  %v4426_v5 = vadd.s32 %v4424_v10, %v4418_v57  ;;  %v4448_v2 = vadd.s32 %v4446_v39, %v4440_v36 }
 0x428   : > { %v11054_v30 = vor.u32 %v4537_v9, %v4536_v55  ;;  %v11056_v31 = vor.u32 %v4540_v18, %v4539_v25  ;;  %v11058_v0 = vor.u32 %v4534_v14, %v4533_v35  ;;  %vm4548_vm2 = vcmp.lt.s32.totalorder %v11029_v49, 1  ;;  %v12533_v9 = vld [vmem:[#allocation37_spill] sm:$0xff] }
 0x429   : > { %vm4550_vm11 = vcmp.lt.s32.totalorder %v11029_v49, 3  ;;  %v4561_v21 = vsel %vm4551_vm8, %v4547_v7, 1326507024  ;;  %v4428_v46 = vsel %vm4427_vm13, 1, %v12235_v29  ;;  %v4450_v24 = vsel %vm4449_vm14, 1, %v12235_v29 }
 0x42a   : > { %v4557_v39 = vsel %vm4551_vm8, %v4544_v17, 920167782  ;;  %v4673_v36 = vand.u32 2139095040, %v12533_v9  ;;  %v11070_v18 = vsub.s32 %v10965_v48, %v4309_v16  ;;  %v4378_v35 = vshrl.u32 %v12224_v62, %v10799_v51 }
 0x42b   : > { %v4399_v55 = vsel %vm4397_vm7, %v10854_v50, 2102212464  ;;  %v4420_v57 = vshrl.u32 %v10949_v11, 16  ;;  %v4442_v27 = vshrl.u32 %v10976_v33, 16  ;;  %vm4549_vm0 = vcmp.lt.s32.totalorder %v11029_v49, 2 }
 0x42c   : > { %v4560_v10 = vsel %vm4548_vm2, %v11054_v30, %v11056_v31  ;;  %v4562_v48 = vsel %vm4550_vm11, %v4544_v17, %v4561_v21  ;;  %v4430_v12 = vadd.s32 %v4428_v46, %v4426_v5  ;;  %v4452_v51 = vadd.s32 %v4450_v24, %v4448_v2 }
 0x42d   : > { %v4556_v50 = vsel %vm4548_vm2, %v11058_v0, %v11054_v30  ;;  %v4558_v11 = vsel %vm4550_vm11, %v11056_v31, %v4557_v39  ;;  %v11096_v33 = vsel %vm3889_vm10, nan, %v10999_v54  ;;  %v4037_v63 = vadd.f32 0.008332121, %v11008_v40 }
 0x42e   : > { %12534 = vst [vmem:[#allocation40_spill] sm:$0xff] %v11096_v33  ;;  %v11099_v53 = vshll.u32 %v4524_v34, 8  ;;  %v4674_v5 = vshrl.u32 %v4673_v36, 23  ;;  %v4031_v45 = vmul.f32 %v11011_v41, %v10969_v37  ;;  %v12535_v15 = vshll.u32 %v10815_v58, %v10971_v1 }
 0x42f   : > { %v4171_v14 = vor.u32 4788187, %v4170_v44  ;;  %v11108_v7 = vsel %vm4549_vm0, %v4560_v10, %v4562_v48  ;;  %v4312_v32 = vsub.s32 0, %v11070_v18  ;;  %v4398_v34 = vsel %vm4394_vm1, %v4378_v35, %v10874_v23 }
 0x430   : > { %v4167_v25 = vor.u32 %v4166_v13, %v12535_v15  ;;  %v4400_v54 = vsel %vm4396_vm9, %v10852_v43, %v4399_v55  ;;  %v11119_v40 = vsel %vm4549_vm0, %v4556_v50, %v4558_v11  ;;  %v4422_v58 = vshrl.u32 %v11003_v8, 16 }
 0x431   : > { %v4431_v1 = vadd.s32 %v4430_v12, %v4420_v57  ;;  %v4444_v41 = vshrl.u32 %v11016_v56, 16  ;;  %v4453_v13 = vadd.s32 %v4452_v51, %v4442_v27  ;;  %vm4311_vm7 = vcmp.lt.s32.totalorder %v11070_v18, 0 }
 0x432   : > { %v4565_v44 = vand.u32 65535, %v11099_v53  ;;  %v4568_v23 = vshrl.u32 %v11108_v7, 16  ;;  %v5415_v17 = vadd.s32 4294967169, %v4674_v5  ;;  %v4032_v16 = vadd.f32 -0.4999988, %v4031_v45 }
 0x433   : > { %v4038_v43 = vmul.f32 %v4037_v63, %v10969_v37  ;;  %v4590_v21 = vshrl.u32 %v11119_v40, 16  ;;  %v4172_v46 = vand.u32 2147483647, %v4171_v14  ;;  %v4174_v8 = vcvt.s32.f32 %v4167_v25 }
 0x434   : > { %vm12536_vm1 = vcmp.lt.s32.totalorder %v10825_v59, 2  ;;  %v4680_v39 = vadd.s32 1, %v5415_v17  ;;  %v11134_v36 = vsel %vm4311_vm7, %v4312_v32, %v11070_v18  ;;  %v11136_v35 = vadd.s32 %v4431_v1, %v4422_v58 }
 0x435   : > { %v11131_v24 = vsel %vm12536_vm1, %v4398_v34, %v4400_v54  ;;  %v11141_v55 = vadd.s32 %v11036_v19, %v4443_v61  ;;  %v4454_v57 = vadd.s32 %v4453_v13, %v4444_v41  ;;  %v4566_v27 = vshrl.u32 %v11099_v53, 16 }
 0x436   : > { %v4567_v10 = vand.u32 65535, %v11108_v7  ;;  %v11145_v48 = vmul.u32 %v4568_v23, %v4565_v44  ;;  %vm4681_vm9 = vcmp.gt.s32.totalorder %v4680_v39, 0  ;;  %v4589_v59 = vand.u32 65535, %v11119_v40 }
 0x437   : > { %v11148_v12 = vmul.u32 %v4590_v21, %v4565_v44  ;;  %v12183_v51 = vand.u32 2147483647, %v12533_v9  ;;  %v4682_v50 = vsel %vm4681_vm9, %v4680_v39, 0  ;;  %v11152_v56 = vmul.f32 %v4032_v16, %v10969_v37 }
 0x438   : > { %v4039_v61 = vadd.f32 -0.16666654, %v4038_v43  ;;  %v11154_v19 = vmul.f32 %v4174_v8, %v4172_v46  ;;  %v4684_v11 = vand.u32 31, %v4682_v50  ;;  %v4314_v63 = vclz %v11134_v36 }
 0x439   : > { %v4455_v5 = vmul.u32 %v10898_v20, %v11131_v24  ;;  %vm4457_vm6 = vc.u32 %v11136_v35, %v11141_v55  ;;  %v4458_v45 = vadd.s32 1, %v4454_v57  ;;  %v4569_v15 = vmul.u32 %v4567_v10, %v4565_v44 }
 0x43a   : > { %v11161_v25 = vmul.u32 %v4567_v10, %v4566_v27  ;;  %v4573_v14 = vshll.u32 %v11145_v48, 16  ;;  %v11164_v7 = vsub.s32 32, %v4684_v11  ;;  %v4591_v32 = vmul.u32 %v4589_v59, %v4565_v44 }
 0x43b   : > { %v11166_v34 = vmul.u32 %v4589_v59, %v4566_v27  ;;  %v4595_v54 = vshll.u32 %v11148_v12, 16  ;;  %v4677_v40 = vand.u32 8388607, %v12183_v51  ;;  %v4690_v20 = vshll.u32 %v12476_v38, %v4684_v11 }
 0x43c   : > { %v4693_v58 = vshll.u32 %v12515_v28, %v4684_v11  ;;  %v4696_v1 = vshll.u32 %v12516_v60, %v4684_v11  ;;  %v4699_v41 = vshll.u32 %v12248_v52, %v4684_v11  ;;  %v4691_v13 = vshrl.u32 %v12515_v28, %v11164_v7 }
 0x43d   : > { %v4694_v44 = vshrl.u32 %v12516_v60, %v11164_v7  ;;  %v4697_v17 = vshrl.u32 %v12248_v52, %v11164_v7  ;;  %v4700_v16 = vshrl.u32 %v12475_v3, %v11164_v7  ;;  %v4575_v43 = vshll.u32 %v11161_v25, 16 }
 0x43e   : > { %vm11184_vm15 = vc.u32 %v4569_v15, %v4573_v14  ;;  %v4579_v8 = vadd.s32 %v4573_v14, %v4569_v15  ;;  %v11188_v24 = vshrl.u32 %v4682_v50, 5  ;;  %vm11191_vm3 = vc.u32 %v4591_v32, %v4595_v54 }
 0x43f   : > { %v4687_v10 = vshll.u32 %v12224_v62, %v4684_v11  ;;  %v4688_v59 = vshrl.u32 %v12476_v38, %v11164_v7  ;;  %v11198_v51 = vadd.s32 %v4595_v54, %v4591_v32  ;;  %v4678_v2 = vor.u32 8388608, %v4677_v40 }
 0x440   : > { %v4698_v33 = vor.u32 %v4697_v17, %v4696_v1  ;;  %v4701_v9 = vor.u32 %v4700_v16, %v4699_v41  ;;  %v4459_v50 = vsel %vm4457_vm6, %v4458_v45, %v4454_v57  ;;  %v4572_v15 = vmul.u32 %v4568_v23, %v4566_v27 }
 0x441   : > { %v11203_v14 = vor.u32 %v4691_v13, %v4690_v20  ;;  %v11205_v39 = vor.u32 %v4694_v44, %v4693_v58  ;;  %vm4056_vm12 = vcmp.lt.s32.totalorder %v12541_v26, 0  ;;  %v4578_v11 = vsel %vm11184_vm15, 1, %v12235_v29 }
 0x442   : > { %v4594_v32 = vmul.u32 %v4590_v21, %v4566_v27  ;;  %vm4702_vm5 = vcmp.lt.s32.totalorder %v11188_v24, 1  ;;  %vm4705_vm10 = vcmp.lt.s32.totalorder %v11188_v24, 4  ;;  %vm4581_vm13 = vc.u32 %v4579_v8, %v4575_v43 }
 0x443   : > { %v4600_v23 = vsel %vm11191_vm3, 1, %v12235_v29  ;;  %v11216_v57 = vor.u32 %v4688_v59, %v4687_v10  ;;  %vm4704_vm14 = vcmp.lt.s32.totalorder %v11188_v24, 3  ;;  %v12542_v45 = vshll.u32 %v11166_v34, 16 }
 0x444   : > { %v4711_v21 = vsel %vm4705_vm10, %v4698_v33, 920167782  ;;  %v4715_v27 = vsel %vm4705_vm10, %v4701_v9, 1326507024  ;;  %v11226_v54 = vshll.u32 %v4678_v2, 8  ;;  %v5407_v40 = vadd.s32 4294967294, %v4314_v63 }
 0x445   : > { %vm4603_vm7 = vc.u32 %v11198_v51, %v12542_v45  ;;  %v4580_v20 = vadd.s32 %v4578_v11, %v4572_v15  ;;  %vm4703_vm1 = vcmp.lt.s32.totalorder %v11188_v24, 2  ;;  %v4714_v58 = vsel %vm4702_vm5, %v11203_v14, %v11205_v39 }
 0x446   : > { %v4040_v1 = vmul.f32 %v4039_v61, %v10969_v37  ;;  %v4582_v41 = vsel %vm4581_vm13, 1, %v12235_v29  ;;  %v4602_v13 = vadd.s32 %v4600_v23, %v4594_v32  ;;  %v4716_v44 = vsel %vm4704_vm14, %v4698_v33, %v4715_v27 }
 0x447   : > { %v11237_v9 = vadd.s32 %v4459_v50, %v4455_v5  ;;  %v4604_v2 = vsel %vm4603_vm7, 1, %v12235_v29  ;;  %v4710_v63 = vsel %vm4702_vm5, %v11216_v57, %v11203_v14  ;;  %v4712_v17 = vsel %vm4704_vm14, %v11205_v39, %v4711_v21 }
 0x448   : > { %v12543_v37 = vand.u32 2147483647, %v12541_v26  ;;  %v4176_v33 = vxor.u32 2147483648, %v11154_v19  ;;  %v4717_v5 = vsel %vm4703_vm1, %v4714_v58, %v4716_v44  ;;  %v4719_v16 = vand.u32 65535, %v11226_v54 }
 0x449   : > { %v4720_v43 = vshrl.u32 %v11226_v54, 16  ;;  %vm5408_vm6 = vcmp.lt.s32.totalorder %v5407_v40, 0  ;;  %v4574_v46 = vshrl.u32 %v11145_v48, 16  ;;  %v4584_v8 = vadd.s32 %v4582_v41, %v4580_v20 }
 0x44a   : > { %vm11249_vm9 = vcmp.le.f32.partialorder %v12543_v37, 0.7853982  ;;  %v4596_v36 = vshrl.u32 %v11148_v12, 16  ;;  %v4606_v10 = vadd.s32 %v4604_v2, %v4602_v13  ;;  %v4713_v59 = vsel %vm4703_vm1, %v4710_v63, %v4712_v17  ;;  %v12546_v17 = vld [vmem:[#allocation38_spill] sm:$0xff] }
 0x44b   : > { %v4721_v50 = vand.u32 65535, %v4717_v5  ;;  %v4722_v15 = vshrl.u32 %v4717_v5, 16  ;;  %v11263_v11 = vadd.f32 1.0, %v11152_v56  ;;  %v11265_v32 = vadd.f32 1.0, %v4040_v1 }
 0x44c   : > { %v4461_v23 = vadd.s32 536870912, %v11237_v9  ;;  %v4532_v45 = vshrl.u32 %v12224_v62, %v11005_v4  ;;  %v4553_v48 = vsel %vm4551_vm8, %v11056_v31, 2102212464  ;;  %v4177_v56 = vsel %vm4056_vm12, %v4176_v33, %v11154_v19 }
 0x44d   : > { %v4723_v12 = vmul.u32 %v4721_v50, %v4719_v16  ;;  %v4724_v21 = vmul.u32 %v4722_v15, %v4719_v16  ;;  %v11273_v27 = vmul.u32 %v4721_v50, %v4720_v43  ;;  %v11279_v20 = vsel %vm5408_vm6, 0, %v5407_v40 }
 0x44e   : > { %v4576_v58 = vshrl.u32 %v11161_v25, 16  ;;  %v4744_v1 = vshrl.u32 %v4713_v59, 16  ;;  %v4585_v41 = vadd.s32 %v4584_v8, %v4574_v46  ;;  %v4598_v4 = vshrl.u32 %v11166_v34, 16 }
 0x44f   : > { %v4607_v13 = vadd.s32 %v4606_v10, %v4596_v36  ;;  %v4727_v44 = vshll.u32 %v4724_v21, 16  ;;  %v11283_v31 = vshrl.u32 %v4461_v23, 30  ;;  %v4552_v2 = vsel %vm4548_vm2, %v4532_v45, %v11058_v0 }
 0x450   : > { %v4554_v19 = vsel %vm4550_vm11, %v11054_v30, %v4553_v48  ;;  %v4743_v40 = vand.u32 65535, %v4713_v59  ;;  %v4726_v63 = vmul.u32 %v4722_v15, %v4720_v43  ;;  %v4729_v25 = vshll.u32 %v11273_v27, 16 }
 0x451   : > { %vm4731_vm8 = vc.u32 %v4723_v12, %v4727_v44  ;;  %v4827_v37 = vand.u32 2139095040, %v12546_v17  ;;  %v4302_v33 = vadd.s32 %v10896_v47, %v10891_v6  ;;  %v4733_v46 = vadd.s32 %v4727_v44, %v4723_v12 }
 0x452   : > { %v4732_v5 = vsel %vm4731_vm8, 1, %v12235_v29  ;;  %v4746_v8 = vmul.u32 %v4744_v1, %v4719_v16  ;;  %v4322_v0 = vsub.s32 4294967266, %v11279_v20  ;;  %v11297_v36 = vadd.s32 %v4585_v41, %v4576_v58 }
 0x453   : > { %v12547_v30 = vshll.u32 %v11166_v34, 16  ;;  %v4608_v59 = vadd.s32 %v4607_v13, %v4598_v4  ;;  %v11307_v50 = vsel %vm11249_vm9, %v12541_v26, %v4177_v56  ;;  %v4318_v6 = vsub.s32 32, %v11279_v20 }
 0x454   : > { %v4555_v47 = vsel %vm4549_vm0, %v4552_v2, %v4554_v19  ;;  %v4745_v15 = vmul.u32 %v4743_v40, %v4719_v16  ;;  %v4463_v23 = vshll.u32 %v11283_v31, 30  ;;  %v4734_v45 = vadd.s32 %v4732_v5, %v4726_v63 }
 0x455   : > { %v11302_v10 = vadd.s32 %v11198_v51, %v12547_v30  ;;  %vm4735_vm2 = vc.u32 %v4733_v46, %v4729_v25  ;;  %v4828_v34 = vshrl.u32 %v4827_v37, 23  ;;  %v4747_v48 = vmul.u32 %v4743_v40, %v4720_v43 }
 0x456   : > { %v4736_v51 = vsel %vm4735_vm2, 1, %v12235_v29  ;;  %v4748_v12 = vmul.u32 %v4744_v1, %v4720_v43  ;;  %v4749_v58 = vshll.u32 %v4746_v8, 16  ;;  %v4323_v41 = vadd.s32 127, %v4322_v0 }
 0x457   : > { %vm4611_vm11 = vc.u32 %v11297_v36, %v11302_v10  ;;  %v4612_v56 = vadd.s32 1, %v4608_v59  ;;  %v4728_v4 = vshrl.u32 %v4724_v21, 16  ;;  %v4738_v13 = vadd.s32 %v4736_v51, %v4734_v45 }
 0x458   : > { %v4751_v49 = vshll.u32 %v4747_v48, 16  ;;  %vm4753_vm0 = vc.u32 %v4745_v15, %v4749_v58  ;;  %v4755_v16 = vadd.s32 %v4749_v58, %v4745_v15  ;;  %v11317_v44 = vsub.s32 %v11237_v9, %v4463_v23 }
 0x459   : > { %v4609_v2 = vmul.u32 %v11099_v53, %v4555_v47  ;;  %v4686_v19 = vshrl.u32 %v12224_v62, %v11164_v7  ;;  %v4754_v43 = vsel %vm4753_vm0, 1, %v12235_v29  ;;  %v4750_v1 = vshrl.u32 %v4746_v8, 16 }
 0x45a   : > { %v4756_v40 = vadd.s32 %v4754_v43, %v4748_v12  ;;  %vm4757_vm15 = vc.u32 %v4755_v16, %v4751_v49  ;;  %v5418_v63 = vadd.s32 4294967169, %v4828_v34  ;;  %v4613_v25 = vsel %vm4611_vm11, %v4612_v56, %v4608_v59 }
 0x45b   : > { %v4707_v21 = vsel %vm4705_vm10, %v11205_v39, 2102212464  ;;  %v4730_v37 = vshrl.u32 %v11273_v27, 16  ;;  %v4758_v9 = vsel %vm4757_vm15, 1, %v12235_v29  ;;  %v4739_v5 = vadd.s32 %v4738_v13, %v4728_v4 }
 0x45c   : > { %v4752_v53 = vshrl.u32 %v4747_v48, 16  ;;  %v4760_v46 = vadd.s32 %v4758_v9, %v4756_v40  ;;  %v4834_v0 = vadd.s32 1, %v5418_v63  ;;  %v4319_v7 = vshll.u32 %v11070_v18, %v11279_v20  ;;  %v12549_v48 = vld [vmem:[#allocation20_spill] sm:$0xff] }
 0x45d   : > { %v4320_v8 = vshrl.u32 %v4302_v33, %v4318_v6  ;;  %v4324_v30 = vshll.u32 %v4323_v41, 23  ;;  %v4466_v47 = vsub.s32 0, %v11317_v44  ;;  %vm4465_vm3 = vcmp.lt.s32.totalorder %v11317_v44, 0 }
 0x45e   : > { %v4761_v59 = vadd.s32 %v4760_v46, %v4750_v1  ;;  %v12187_v39 = vand.u32 2147483647, %v12546_v17  ;;  %vm4835_vm10 = vcmp.gt.s32.totalorder %v4834_v0, 0  ;;  %v11333_v27 = vadd.s32 %v4613_v25, %v4609_v2 }
 0x45f   : > { %v4706_v15 = vsel %vm4702_vm5, %v4686_v19, %v11216_v57  ;;  %v4708_v18 = vsel %vm4704_vm14, %v11203_v14, %v4707_v21  ;;  %v4836_v20 = vsel %vm4835_vm10, %v4834_v0, 0  ;;  %v11341_v33 = vadd.s32 %v4739_v5, %v4730_v37 }
 0x460   : > { %v11343_v6 = vadd.s32 %v4755_v16, %v4751_v49  ;;  %v4762_v23 = vadd.s32 %v4761_v59, %v4752_v53  ;;  %v4838_v45 = vand.u32 31, %v4836_v20  ;;  %v11347_v34 = vmul.f32 %v11265_v32, %v10946_v22 }
 0x461   : > { %v12550_v12 = vsel %vm10862_vm4, 0, %v12549_v48  ;;  %v12551_v14 = vsub.s32 4, %v10773_v42  ;;  %v4467_v41 = vsel %vm4465_vm3, %v4466_v47, %v11317_v44  ;;  %v4050_v56 = vxor.u32 2147483648, %v11263_v11 }
 0x462   : > { %v11353_v57 = vand.u32 3, %v12550_v12  ;;  %v11366_v22 = vmul.f32 %v11307_v50, %v11307_v50  ;;  %v4321_v32 = vor.u32 %v4320_v8, %v4319_v7  ;;  %v11368_v4 = vsub.s32 32, %v4838_v45  ;;  %v12553_v12 = vld [vmem:[#allocation34_spill] sm:$0xff] }
 0x463   : > { %v11360_v58 = vsel %vm4056_vm12, %v12551_v14, %v10773_v42  ;;  %v4325_v13 = vor.u32 4788187, %v4324_v30  ;;  %v4615_v49 = vadd.s32 536870912, %v11333_v27  ;;  %v4709_v16 = vsel %vm4703_vm1, %v4706_v15, %v4708_v18 }
 0x464   : > { %v4766_v2 = vadd.s32 1, %v4762_v23  ;;  %v4468_v42 = vclz %v4467_v41  ;;  %vm4765_vm4 = vc.u32 %v11341_v33, %v11343_v6  ;;  %v4831_v19 = vand.u32 8388607, %v12187_v39 }
 0x465   : > { %v4841_v43 = vshll.u32 %v12224_v62, %v4838_v45  ;;  %v4842_v1 = vshrl.u32 %v12476_v38, %v11368_v4  ;;  %v4844_v40 = vshll.u32 %v12476_v38, %v4838_v45  ;;  %v4845_v63 = vshrl.u32 %v12515_v28, %v11368_v4 }
 0x466   : > { %v4850_v24 = vshll.u32 %v12516_v60, %v4838_v45  ;;  %v4763_v25 = vmul.u32 %v11226_v54, %v4709_v16  ;;  %v11385_v21 = vshrl.u32 %v4836_v20, 5  ;;  %v4847_v37 = vshll.u32 %v12515_v28, %v4838_v45 }
 0x467   : > { %v4848_v9 = vshrl.u32 %v12516_v60, %v11368_v4  ;;  %v4328_v5 = vcvt.s32.f32 %v4321_v32  ;;  %v11390_v53 = vshrl.u32 %v4615_v49, 30  ;;  %v4767_v46 = vsel %vm4765_vm4, %v4766_v2, %v4762_v23 }
 0x468   : > { %v4851_v0 = vshrl.u32 %v12248_v52, %v11368_v4  ;;  %v4326_v7 = vand.u32 2147483647, %v4325_v13  ;;  %v5410_v8 = vadd.s32 4294967294, %v4468_v42  ;;  %v4853_v30 = vshll.u32 %v12248_v52, %v4838_v45 }
 0x469   : > { %12552 = vst [vmem:[#allocation41_spill] sm:$0xff] %v11390_v53  ;;  %v4854_v54 = vshrl.u32 %v12475_v3, %v11368_v4  ;;  %v4832_v47 = vor.u32 8388608, %v4831_v19  ;;  %v11397_v59 = vor.u32 %v4842_v1, %v4841_v43  ;;  %v11399_v15 = vor.u32 %v4845_v63, %v4844_v40 }
 0x46a   : > { %v4852_v18 = vor.u32 %v4851_v0, %v4850_v24  ;;  %v11401_v20 = vadd.s32 %v4767_v46, %v4763_v25  ;;  %v4849_v51 = vor.u32 %v4848_v9, %v4847_v37  ;;  %vm4856_vm12 = vcmp.lt.s32.totalorder %v11385_v21, 1  ;;  %v12554_v37 = vld [vmem:[#allocation39_spill] sm:$0xff] }
 0x46b   : > { %vm4859_vm5 = vcmp.lt.s32.totalorder %v11385_v21, 4  ;;  %vm4049_vm13 = vcmp.eq.s32.totalorder %v11353_v57, 2  ;;  %v4183_v23 = vmul.f32 -0.001358992, %v11366_v22  ;;  %v4617_v45 = vshll.u32 %v11390_v53, 30 }
 0x46c   : > { %vm4858_vm14 = vcmp.lt.s32.totalorder %v11385_v21, 3  ;;  %vm4210_vm7 = vcmp.lt.s32.totalorder %v12553_v12, 0  ;;  %v4329_v14 = vmul.f32 %v4328_v5, %v4326_v7  ;;  %v4855_v41 = vor.u32 %v4854_v54, %v4853_v30 }
 0x46d   : > { %v4865_v32 = vsel %vm4859_vm5, %v4852_v18, 920167782  ;;  %vm4857_vm1 = vcmp.lt.s32.totalorder %v11385_v21, 2  ;;  %v4864_v49 = vsel %vm4856_vm12, %v11397_v59, %v11399_v15  ;;  %v11421_v16 = vshll.u32 %v4832_v47, 8 }
 0x46e   : > { %v11424_v2 = vsel %vm4049_vm13, %v4050_v56, %v11347_v34  ;;  %vm5411_vm6 = vcmp.lt.s32.totalorder %v5410_v8, 0  ;;  %v4769_v42 = vadd.s32 536870912, %v11401_v20  ;;  %v4866_v19 = vsel %vm4858_vm14, %v4849_v51, %v4865_v32 }
 0x46f   : > { %v4184_v43 = vadd.f32 0.041655596, %v4183_v23  ;;  %v4190_v1 = vmul.f32 -0.00019511016, %v11366_v22  ;;  %v11431_v40 = vsub.s32 %v11333_v27, %v4617_v45  ;;  %v4868_v63 = vsel %vm4856_vm12, %v11399_v15, %v4849_v51 }
 0x470   : > { %v4330_v24 = vxor.u32 2147483648, %v4329_v14  ;;  %v4867_v56 = vsel %vm4857_vm1, %v4864_v49, %v4866_v19  ;;  %v4869_v25 = vsel %vm4859_vm5, %v4855_v41, 1326507024  ;;  %v4981_v9 = vand.u32 2139095040, %v12554_v37 }
 0x471   : > { %v4471_v5 = vsel %vm5411_vm6, 0, %v5410_v8  ;;  %v4870_v46 = vsel %vm4858_vm14, %v4852_v18, %v4869_v25  ;;  %v4873_v27 = vand.u32 65535, %v11421_v16  ;;  %v4874_v0 = vshrl.u32 %v11421_v16, 16 }
 0x472   : > { %v4456_v7 = vadd.s32 %v11141_v55, %v11136_v35  ;;  %v4472_v30 = vsub.s32 32, %v4471_v5  ;;  %v11447_v54 = vshrl.u32 %v4769_v42, 30  ;;  %v4871_v47 = vsel %vm4857_vm1, %v4868_v63, %v4870_v46 }
 0x473   : > { %v4620_v23 = vsub.s32 0, %v11431_v40  ;;  %v4875_v45 = vand.u32 65535, %v4871_v47  ;;  %v4876_v8 = vshrl.u32 %v4871_v47, 16  ;;  %v4898_v41 = vshrl.u32 %v4867_v56, 16 }
 0x474   : > { %12555 = vst [vmem:[#allocation28_spill] sm:$0xff] %v11447_v54  ;;  %v11452_v32 = vadd.f32 0.008332121, %v4190_v1  ;;  %v4476_v18 = vsub.s32 4294967266, %v4471_v5  ;;  %vm4619_vm8 = vcmp.lt.s32.totalorder %v11431_v40, 0  ;;  %v4982_v49 = vshrl.u32 %v4981_v9, 23 }
 0x475   : > { %v4185_v19 = vmul.f32 %v4184_v43, %v11366_v22  ;;  %v4878_v35 = vmul.u32 %v4876_v8, %v4873_v27  ;;  %v4879_v55 = vmul.u32 %v4875_v45, %v4874_v0  ;;  %v4897_v42 = vand.u32 65535, %v4867_v56 }
 0x476   : > { %v4473_v25 = vshll.u32 %v11317_v44, %v4471_v5  ;;  %v4474_v39 = vshrl.u32 %v4456_v7, %v4472_v30  ;;  %v4771_v63 = vshll.u32 %v11447_v54, 30  ;;  %v4877_v46 = vmul.u32 %v4875_v45, %v4873_v27 }
 0x477   : > { %v4331_v47 = vsel %vm4210_vm7, %v4330_v24, %v4329_v14  ;;  %v4621_v1 = vsel %vm4619_vm8, %v4620_v23, %v11431_v40  ;;  %v4881_v13 = vshll.u32 %v4878_v35, 16  ;;  %v4900_v48 = vmul.u32 %v4898_v41, %v4873_v27 }
 0x478   : > { %v4477_v53 = vadd.s32 127, %v4476_v18  ;;  %v4840_v43 = vshrl.u32 %v12224_v62, %v11368_v4  ;;  %v4880_v9 = vmul.u32 %v4876_v8, %v4874_v0  ;;  %v5421_v17 = vadd.s32 4294967169, %v4982_v49 }
 0x479   : > { %v4861_v44 = vsel %vm4859_vm5, %v4849_v51, 2102212464  ;;  %v4883_v56 = vshll.u32 %v4879_v55, 16  ;;  %v4899_v5 = vmul.u32 %v4897_v42, %v4873_v27  ;;  %v4901_v7 = vmul.u32 %v4897_v42, %v4874_v0 }
 0x47a   : > { %v12556_v30 = vand.u32 2147483647, %v12553_v12  ;;  %v11471_v24 = vor.u32 %v4474_v39, %v4473_v25  ;;  %v4622_v23 = vclz %v4621_v1  ;;  %v11474_v45 = vsub.s32 %v11401_v20, %v4771_v63 }
 0x47b   : > { %vm4885_vm11 = vc.u32 %v4877_v46, %v4881_v13  ;;  %v4887_v8 = vadd.s32 %v4881_v13, %v4877_v46  ;;  %v4902_v51 = vmul.u32 %v4898_v41, %v4874_v0  ;;  %v4903_v18 = vshll.u32 %v4900_v48, 16 }
 0x47c   : > { %vm11467_vm2 = vcmp.le.f32.partialorder %v12556_v30, 0.7853982  ;;  %v4886_v4 = vsel %vm4885_vm11, 1, %v12235_v29  ;;  %v4860_v27 = vsel %vm4856_vm12, %v4840_v43, %v11397_v59  ;;  %v4862_v49 = vsel %vm4858_vm14, %v11399_v15, %v4861_v44 }
 0x47d   : > { %v4888_v39 = vadd.s32 %v4886_v4, %v4880_v9  ;;  %v4988_v42 = vadd.s32 1, %v5421_v17  ;;  %v4882_v25 = vshrl.u32 %v4878_v35, 16  ;;  %vm4889_vm0 = vc.u32 %v4887_v8, %v4883_v56 }
 0x47e   : > { %v4905_v20 = vshll.u32 %v4901_v7, 16  ;;  %vm4907_vm15 = vc.u32 %v4899_v5, %v4903_v18  ;;  %vm4773_vm3 = vcmp.lt.s32.totalorder %v11474_v45, 0  ;;  %v4774_v13 = vsub.s32 0, %v11474_v45 }
 0x47f   : > { %v4890_v0 = vsel %vm4889_vm0, 1, %v12235_v29  ;;  %v4908_v41 = vsel %vm4907_vm15, 1, %v12235_v29  ;;  %v4884_v63 = vshrl.u32 %v4879_v55, 16  ;;  %v4909_v46 = vadd.s32 %v4903_v18, %v4899_v5 }
 0x480   : > { %v4892_v59 = vadd.s32 %v4890_v0, %v4888_v39  ;;  %v4910_v1 = vadd.s32 %v4908_v41, %v4902_v51  ;;  %v4478_v43 = vshll.u32 %v4477_v53, 23  ;;  %v5413_v15 = vadd.s32 4294967294, %v4622_v23 }
 0x481   : > { %v12191_v17 = vand.u32 2147483647, %v12554_v37  ;;  %vm4989_vm10 = vcmp.gt.s32.totalorder %v4988_v42, 0  ;;  %v4904_v9 = vshrl.u32 %v4900_v48, 16  ;;  %vm4911_vm4 = vc.u32 %v4909_v46, %v4905_v20 }
 0x482   : > { %v4893_v35 = vadd.s32 %v4892_v59, %v4882_v25  ;;  %v4990_v44 = vsel %vm4989_vm10, %v4988_v42, 0  ;;  %v4775_v56 = vsel %vm4773_vm3, %v4774_v13, %v11474_v45  ;;  %v4863_v30 = vsel %vm4857_vm1, %v4860_v27, %v4862_v49 }
 0x483   : > { %v4912_v55 = vsel %vm4911_vm4, 1, %v12235_v29  ;;  %v4992_v5 = vand.u32 31, %v4990_v44  ;;  %v4906_v53 = vshrl.u32 %v4901_v7, 16  ;;  %v11496_v23 = vadd.s32 %v4909_v46, %v4905_v20 }
 0x484   : > { %v11494_v4 = vadd.s32 %v4893_v35, %v4884_v63  ;;  %v4914_v8 = vadd.s32 %v4912_v55, %v4910_v1  ;;  %v11498_v51 = vadd.f32 -0.4999988, %v4185_v19  ;;  %v4192_v48 = vmul.f32 %v11452_v32, %v11366_v22 }
 0x485   : > { %v12559_v18 = vsel %vm11249_vm9, 0, %v11360_v58  ;;  %v11508_v27 = vsub.s32 32, %v4992_v5  ;;  %v11513_v7 = vsel %vm11467_vm2, %v12553_v12, %v4331_v47  ;;  %v4479_v49 = vor.u32 4788187, %v4478_v43 }
 0x486   : > { %v11506_v21 = vand.u32 3, %v12559_v18  ;;  %v4482_v19 = vcvt.s32.f32 %v11471_v24  ;;  %v4915_v39 = vadd.s32 %v4914_v8, %v4904_v9  ;;  %vm5414_vm12 = vcmp.lt.s32.totalorder %v5413_v15, 0  ;;  %v12560_v8 = vld [vmem:[#allocation35_spill] sm:$0xff] }
 0x487   : > { %v4776_v42 = vclz %v4775_v56  ;;  %v4917_v32 = vmul.u32 %v11421_v16, %v4863_v30  ;;  %v4985_v61 = vand.u32 8388607, %v12191_v17  ;;  %vm4919_vm9 = vc.u32 %v11494_v4, %v11496_v23 }
 0x488   : > { %v4916_v58 = vadd.s32 %v4915_v39, %v4906_v53  ;;  %v4998_v25 = vshll.u32 %v12476_v38, %v4992_v5  ;;  %v5004_v47 = vshll.u32 %v12516_v60, %v4992_v5  ;;  %v4999_v20 = vshrl.u32 %v12515_v28, %v11508_v27 }
 0x489   : > { %v5001_v24 = vshll.u32 %v12515_v28, %v4992_v5  ;;  %v5002_v13 = vshrl.u32 %v12516_v60, %v11508_v27  ;;  %v5005_v16 = vshrl.u32 %v12248_v52, %v11508_v27  ;;  %v11530_v41 = vshrl.u32 %v4990_v44, 5 }
 0x48a   : > { %v4920_v0 = vadd.s32 1, %v4916_v58  ;;  %v5007_v63 = vshll.u32 %v12248_v52, %v4992_v5  ;;  %v5008_v59 = vshrl.u32 %v12475_v3, %v11508_v27  ;;  %v11536_v46 = vsel %vm5414_vm12, 0, %v5413_v15 }
 0x48b   : > { %v4986_v1 = vor.u32 8388608, %v4985_v61  ;;  %v4995_v28 = vshll.u32 %v12224_v62, %v4992_v5  ;;  %v4996_v60 = vshrl.u32 %v12476_v38, %v11508_v27  ;;  %v5416_v43 = vadd.s32 4294967294, %v4776_v42 }
 0x48c   : > { %v4921_v35 = vsel %vm4919_vm9, %v4920_v0, %v4916_v58  ;;  %v5006_v9 = vor.u32 %v5005_v16, %v5004_v47  ;;  %v5009_v44 = vor.u32 %v5008_v59, %v5007_v63  ;;  %v4480_v52 = vand.u32 2147483647, %v4479_v49 }
 0x48d   : > { %v4922_v56 = vadd.s32 %v4921_v35, %v4917_v32  ;;  %v11544_v30 = vor.u32 %v4999_v20, %v4998_v25  ;;  %v11546_v3 = vor.u32 %v5002_v13, %v5001_v24  ;;  %v11548_v15 = vadd.f32 -0.16666654, %v4192_v48 }
 0x48e   : > { %v4630_v55 = vsub.s32 4294967266, %v11536_v46  ;;  %vm5010_vm5 = vcmp.lt.s32.totalorder %v11530_v41, 1  ;;  %vm5013_vm13 = vcmp.lt.s32.totalorder %v11530_v41, 4  ;;  %v11555_v38 = vmul.f32 %v11513_v7, %v11513_v7 }
 0x48f   : > { %v4923_v5 = vadd.s32 536870912, %v4922_v56  ;;  %v11557_v53 = vor.u32 %v4996_v60, %v4995_v28  ;;  %vm5012_vm14 = vcmp.lt.s32.totalorder %v11530_v41, 3  ;;  %vm4364_vm1 = vcmp.lt.s32.totalorder %v12560_v8, 0 }
 0x490   : > { %vm5417_vm6 = vcmp.lt.s32.totalorder %v5416_v43, 0  ;;  %v5019_v48 = vsel %vm5013_vm13, %v5006_v9, 920167782  ;;  %v5023_v18 = vsel %vm5013_vm13, %v5009_v44, 1326507024  ;;  %v11565_v49 = vshll.u32 %v4986_v1, 8 }
 0x491   : > { %v4483_v39 = vmul.f32 %v4482_v19, %v4480_v52  ;;  %v11567_v42 = vshrl.u32 %v4923_v5, 30  ;;  %vm5011_vm8 = vcmp.lt.s32.totalorder %v11530_v41, 2  ;;  %v5022_v32 = vsel %vm5010_vm5, %v11544_v30, %v11546_v3 }
 0x492   : > { %v4610_v61 = vadd.s32 %v11302_v10, %v11297_v36  ;;  %v4626_v58 = vsub.s32 32, %v11536_v46  ;;  %v4631_v25 = vadd.s32 127, %v4630_v55  ;;  %v5024_v47 = vsel %vm5012_vm14, %v5006_v9, %v5023_v18 }
 0x493   : > { %12561 = vst [vmem:[#allocation29_spill] sm:$0xff] %v11567_v42  ;;  %v11579_v20 = vsel %vm5417_vm6, 0, %v5416_v43  ;;  %v4925_v19 = vshll.u32 %v11567_v42, 30  ;;  %v5018_v24 = vsel %vm5010_vm5, %v11557_v53, %v11544_v30  ;;  %v5020_v13 = vsel %vm5012_vm14, %v11546_v3, %v5019_v48 }
 0x494   : > { %v4337_v36 = vmul.f32 -0.001358992, %v11555_v38  ;;  %v5025_v10 = vsel %vm5011_vm8, %v5022_v32, %v5024_v47  ;;  %v5027_v16 = vand.u32 65535, %v11565_v49  ;;  %v5028_v0 = vshrl.u32 %v11565_v49, 16 }
 0x495   : > { %v4344_v63 = vmul.f32 -0.00019511016, %v11555_v38  ;;  %v12562_v59 = vand.u32 2147483647, %v12560_v8  ;;  %v4484_v28 = vxor.u32 2147483648, %v4483_v39  ;;  %v4627_v60 = vshll.u32 %v11431_v40, %v11536_v46 }
 0x496   : > { %v11603_v43 = vsub.s32 %v4922_v56, %v4925_v19  ;;  %v4784_v35 = vsub.s32 4294967266, %v11579_v20  ;;  %v5021_v9 = vsel %vm5011_vm8, %v5018_v24, %v5020_v13  ;;  %v5029_v44 = vand.u32 65535, %v5025_v10 }
 0x497   : > { %vm11597_vm11 = vcmp.le.f32.partialorder %v12562_v59, 0.7853982  ;;  %v5030_v52 = vshrl.u32 %v5025_v10, 16  ;;  %v4628_v55 = vshrl.u32 %v4610_v61, %v4626_v58  ;;  %v4632_v5 = vshll.u32 %v4631_v25, 23 }
 0x498   : > { %vm4927_vm0 = vcmp.lt.s32.totalorder %v11603_v43, 0  ;;  %v4928_v48 = vsub.s32 0, %v11603_v43  ;;  %v4764_v18 = vadd.s32 %v11343_v6, %v11341_v33  ;;  %v5031_v32 = vmul.u32 %v5029_v44, %v5027_v16 }
 0x499   : > { %v5032_v40 = vmul.u32 %v5030_v52, %v5027_v16  ;;  %v11612_v46 = vmul.u32 %v5029_v44, %v5028_v0  ;;  %v4780_v56 = vsub.s32 32, %v11579_v20  ;;  %v5051_v19 = vand.u32 65535, %v5021_v9 }
 0x49a   : > { %v4929_v47 = vsel %vm4927_vm0, %v4928_v48, %v11603_v43  ;;  %v5052_v24 = vshrl.u32 %v5021_v9, 16  ;;  %v4785_v13 = vadd.s32 127, %v4784_v35  ;;  %v5034_v58 = vmul.u32 %v5030_v52, %v5028_v0 }
 0x49b   : > { %v4930_v61 = vclz %v4929_v47  ;;  %v5035_v25 = vshll.u32 %v5032_v40, 16  ;;  %v11616_v10 = vadd.f32 0.041655596, %v4337_v36  ;;  %v4485_v59 = vsel %vm4364_vm1, %v4484_v28, %v4483_v39 }
 0x49c   : > { %v5037_v33 = vshll.u32 %v11612_v46, 16  ;;  %v5054_v6 = vmul.u32 %v5052_v24, %v5027_v16  ;;  %v4629_v44 = vor.u32 %v4628_v55, %v4627_v60  ;;  %v4633_v37 = vor.u32 4788187, %v4632_v5 }
 0x49d   : > { %v5419_v17 = vadd.s32 4294967294, %v4930_v61  ;;  %vm5039_vm15 = vc.u32 %v5031_v32, %v5035_v25  ;;  %v5041_v42 = vadd.s32 %v5035_v25, %v5031_v32  ;;  %v4781_v9 = vshll.u32 %v11474_v45, %v11579_v20 }
 0x49e   : > { %v5040_v35 = vsel %vm5039_vm15, 1, %v12235_v29  ;;  %v5055_v52 = vmul.u32 %v5051_v19, %v5028_v0  ;;  %v4782_v48 = vshrl.u32 %v4764_v18, %v4780_v56  ;;  %v4786_v36 = vshll.u32 %v4785_v13, 23 }
 0x49f   : > { %vm5420_vm3 = vcmp.lt.s32.totalorder %v5419_v17, 0  ;;  %v5042_v47 = vadd.s32 %v5040_v35, %v5034_v58  ;;  %vm5043_vm10 = vc.u32 %v5041_v42, %v5037_v33  ;;  %v5053_v39 = vmul.u32 %v5051_v19, %v5027_v16 }
 0x4a0   : > { %v11624_v54 = vsel %vm5420_vm3, 0, %v5419_v17  ;;  %v5057_v28 = vshll.u32 %v5054_v6, 16  ;;  %v4345_v60 = vadd.f32 0.008332121, %v4344_v63  ;;  %v11629_v55 = vsel %vm11597_vm11, %v12560_v8, %v4485_v59 }
 0x4a1   : > { %v4636_v5 = vcvt.s32.f32 %v4629_v44  ;;  %v5036_v45 = vshrl.u32 %v5032_v40, 16  ;;  %v4994_v20 = vshrl.u32 %v12224_v62, %v11508_v27  ;;  %v5044_v18 = vsel %vm5043_vm10, 1, %v12235_v29 }
 0x4a2   : > { %v5056_v32 = vmul.u32 %v5052_v24, %v5028_v0  ;;  %v5059_v56 = vshll.u32 %v5055_v52, 16  ;;  %vm4046_vm4 = vcmp.eq.s32.totalorder %v11353_v57, 0  ;;  %v4634_v17 = vand.u32 2147483647, %v4633_v37 }
 0x4a3   : > { %v4783_v42 = vor.u32 %v4782_v48, %v4781_v9  ;;  %v4938_v16 = vsub.s32 4294967266, %v11624_v54  ;;  %v5046_v63 = vadd.s32 %v5044_v18, %v5042_v47  ;;  %v4787_v19 = vor.u32 4788187, %v4786_v36 }
 0x4a4   : > { %v5015_v13 = vsel %vm5013_vm13, %v11546_v3, 2102212464  ;;  %vm5061_vm12 = vc.u32 %v5053_v39, %v5057_v28  ;;  %v5063_v40 = vadd.s32 %v5057_v28, %v5053_v39  ;;  %v4918_v62 = vadd.s32 %v11496_v23, %v11494_v4 }
 0x4a5   : > { %v5038_v27 = vshrl.u32 %v11612_v46, 16  ;;  %v5047_v0 = vadd.s32 %v5046_v63, %v5036_v45  ;;  %v5062_v24 = vsel %vm5061_vm12, 1, %v12235_v29  ;;  %v5014_v37 = vsel %vm5010_vm5, %v4994_v20, %v11557_v53  ;;  %v12565_v45 = vld [vmem:[#allocation36_spill] sm:$0xff] }
 0x4a6   : > { %v5058_v61 = vshrl.u32 %v5054_v6, 16  ;;  %v5064_v58 = vadd.s32 %v5062_v24, %v5056_v32  ;;  %vm5065_vm9 = vc.u32 %v5063_v40, %v5059_v56  ;;  %vm4045_vm6 = vcmp.lt.s32.totalorder %v11353_v57, 2 }
 0x4a7   : > { %v4934_v3 = vsub.s32 32, %v11624_v54  ;;  %v4939_v25 = vadd.s32 127, %v4938_v16  ;;  %v5016_v4 = vsel %vm5012_vm14, %v11544_v30, %v5015_v13  ;;  %v5066_v23 = vsel %vm5065_vm9, 1, %v12235_v29 }
 0x4a8   : > { %v11654_v46 = vmul.f32 %v11629_v55, %v11629_v55  ;;  %v4637_v59 = vmul.f32 %v4636_v5, %v4634_v17  ;;  %v5060_v53 = vshrl.u32 %v5055_v52, 16  ;;  %v5068_v33 = vadd.s32 %v5066_v23, %v5064_v58  ;;  %v12572_v58 = vld [vmem:[#allocation37_spill] sm:$0xff] }
 0x4a9   : > { %v4788_v6 = vand.u32 2147483647, %v4787_v19  ;;  %v4790_v44 = vcvt.s32.f32 %v4783_v42  ;;  %v11656_v9 = vadd.s32 %v5047_v0, %v5038_v27  ;;  %v11658_v35 = vadd.s32 %v5063_v40, %v5059_v56  ;;  %v12567_v56 = vld [vmem:[#allocation31_spill] sm:$0xff] }
 0x4aa   : > { %v4194_v48 = vmul.f32 %v11548_v15, %v11366_v22  ;;  %v4346_v30 = vmul.f32 %v4345_v60, %v11555_v38  ;;  %v5017_v29 = vsel %vm5011_vm8, %v5014_v37, %v5016_v4  ;;  %v5069_v36 = vadd.s32 %v5068_v33, %v5058_v61  ;;  %v12583_v19 = vld [vmem:[#allocation43_spill] sm:$0xff] }
 0x4ab   : > { %v4187_v47 = vmul.f32 %v11498_v51, %v11366_v22  ;;  %v4935_v52 = vshll.u32 %v11603_v43, %v11624_v54  ;;  %v4936_v39 = vshrl.u32 %v4918_v62, %v4934_v3  ;;  %v4940_v28 = vshll.u32 %v4939_v25, 23 }
 0x4ac   : > { %v4339_v5 = vmul.f32 %v11616_v10, %v11555_v38  ;;  %vm4518_vm5 = vcmp.lt.s32.totalorder %v12565_v45, 0  ;;  %v4638_v15 = vxor.u32 2147483648, %v4637_v59  ;;  %v5070_v20 = vadd.s32 %v5069_v36, %v5060_v53 }
 0x4ad   : > { %v4498_v60 = vmul.f32 -0.00019511016, %v11654_v46  ;;  %v4791_v41 = vmul.f32 %v4790_v44, %v4788_v6  ;;  %v5071_v18 = vmul.u32 %v11565_v49, %v5017_v29  ;;  %vm5073_vm13 = vc.u32 %v11656_v9, %v11658_v35 }
 0x4ae   : > { %v12566_v22 = vxor.u32 2147483648, %v11347_v34  ;;  %v4195_v51 = vadd.f32 1.0, %v4194_v48  ;;  %v4347_v43 = vadd.f32 -0.16666654, %v4346_v30  ;;  %v5074_v10 = vadd.s32 1, %v5070_v20 }
 0x4af   : > { %v4188_v32 = vadd.f32 1.0, %v4187_v47  ;;  %v4332_v17 = vsub.s32 4, %v12567_v56  ;;  %v4937_v42 = vor.u32 %v4936_v39, %v4935_v52  ;;  %v4941_v16 = vor.u32 4788187, %v4940_v28 }
 0x4b0   : > { %v4048_v54 = vsel %vm4046_vm4, %v11263_v11, %v12566_v22  ;;  %v4340_v63 = vadd.f32 -0.4999988, %v4339_v5  ;;  %v12568_v49 = vand.u32 2147483647, %v12565_v45  ;;  %v4639_v34 = vsel %vm4518_vm5, %v4638_v15, %v4637_v59  ;;  %v12571_v11 = vld [vmem:[#allocation32_spill] sm:$0xff] }
 0x4b1   : > { %v5075_v13 = vsel %vm5073_vm13, %v5074_v10, %v5070_v20  ;;  %vm4043_vm8 = vweird.f32 %v12571_v11  ;;  %v4491_v40 = vmul.f32 -0.001358992, %v11654_v46  ;;  %v4499_v62 = vadd.f32 0.008332121, %v4498_v60 }
 0x4b2   : > { %vm11684_vm14 = vcmp.le.f32.partialorder %v12568_v49, 0.7853982  ;;  %v4792_v27 = vxor.u32 2147483648, %v4791_v41  ;;  %v5076_v0 = vadd.s32 %v5075_v13, %v5071_v18  ;;  %v4052_v24 = vsel %vm4045_vm6, %v4048_v54, %v11424_v2 }
 0x4b3   : > { %v4196_v37 = vmul.f32 %v4195_v51, %v11307_v50  ;;  %v4348_v61 = vmul.f32 %v4347_v43, %v11555_v38  ;;  %vm4672_vm0 = vcmp.lt.s32.totalorder %v12572_v58, 0  ;;  %v11701_v3 = vsel %vm11684_vm14, %v12565_v45, %v4639_v34 }
 0x4b4   : > { %v4942_v25 = vand.u32 2147483647, %v4941_v16  ;;  %v4944_v4 = vcvt.s32.f32 %v4937_v42  ;;  %v5077_v23 = vadd.s32 536870912, %v5076_v0  ;;  %v4204_v59 = vxor.u32 2147483648, %v4188_v32 }
 0x4b5   : > { %v4333_v57 = vsel %vm4210_vm7, %v4332_v17, %v12567_v56  ;;  %v4341_v2 = vmul.f32 %v4340_v63, %v11555_v38  ;;  %v12573_v50 = vand.u32 2147483647, %v12572_v58  ;;  %v4492_v33 = vadd.f32 0.041655596, %v4491_v40 }
 0x4b6   : > { %v4500_v6 = vmul.f32 %v4499_v62, %v11654_v46  ;;  %v4793_v44 = vsel %vm4672_vm0, %v4792_v27, %v4791_v41  ;;  %v11716_v48 = vshrl.u32 %v5077_v23, 30  ;;  %v4201_v30 = vxor.u32 2147483648, %v4196_v37 }
 0x4b7   : > { %vm11709_vm15 = vcmp.le.f32.partialorder %v12573_v50, 0.7853982  ;;  %vm4203_vm3 = vcmp.eq.s32.totalorder %v11506_v21, 2  ;;  %v4349_v29 = vadd.f32 1.0, %v4348_v61  ;;  %v11721_v38 = vmul.f32 %v11701_v3, %v11701_v3 }
 0x4b8   : > { %vm4200_vm7 = vcmp.eq.s32.totalorder %v11506_v21, 0  ;;  %v4335_v36 = vsel %vm11467_vm2, 0, %v4333_v57  ;;  %v4945_v47 = vmul.f32 %v4944_v4, %v4942_v25  ;;  %v5079_v52 = vshll.u32 %v11716_v48, 30 }
 0x4b9   : > { %vm4199_vm10 = vcmp.lt.s32.totalorder %v11506_v21, 2  ;;  %v4342_v39 = vadd.f32 1.0, %v4341_v2  ;;  %v4486_v28 = vsub.s32 4, %v11283_v31  ;;  %v11732_v5 = vsel %vm11709_vm15, %v12572_v58, %v4793_v44 }
 0x4ba   : > { %v4205_v15 = vsel %vm4203_vm3, %v4204_v59, %v4196_v37  ;;  %v4493_v20 = vmul.f32 %v4492_v33, %v11654_v46  ;;  %v4501_v60 = vadd.f32 -0.16666654, %v4500_v6  ;;  %v5080_v41 = vsub.s32 %v5076_v0, %v5079_v52 }
 0x4bb   : > { %v4202_v14 = vsel %vm4200_vm7, %v4188_v32, %v4201_v30  ;;  %v4350_v18 = vmul.f32 %v4349_v29, %v11513_v7  ;;  %v4352_v22 = vand.u32 3, %v4335_v36  ;;  %v4652_v54 = vmul.f32 -0.00019511016, %v11721_v38  ;;  %v12576_v32 = vld [vmem:[#allocation38_spill] sm:$0xff] }
 0x4bc   : > { %v11739_v51 = vmul.f32 %v11732_v5, %v11732_v5  ;;  %v4946_v43 = vxor.u32 2147483648, %v4945_v47  ;;  %vm5081_vm2 = vcmp.lt.s32.totalorder %v5080_v41, 0  ;;  %v5082_v10 = vsub.s32 0, %v5080_v41 }
 0x4bd   : > { %v11743_v56 = vsel %vm4043_vm8, nan, %v4052_v24  ;;  %vm4197_vm4 = vweird.f32 %v12541_v26  ;;  %v4358_v17 = vxor.u32 2147483648, %v4342_v39  ;;  %v4487_v7 = vsel %vm4364_vm1, %v4486_v28, %v11283_v31 }
 0x4be   : > { %vm4826_vm12 = vcmp.lt.s32.totalorder %v12576_v32, 0  ;;  %v4494_v42 = vadd.f32 -0.4999988, %v4493_v20  ;;  %v4502_v16 = vmul.f32 %v4501_v60, %v11654_v46  ;;  %v4645_v63 = vmul.f32 -0.001358992, %v11721_v38 }
 0x4bf   : > { %v5083_v49 = vsel %vm5081_vm2, %v5082_v10, %v5080_v41  ;;  %v4206_v34 = vsel %vm4199_vm10, %v4202_v14, %v4205_v15  ;;  %vm4357_vm9 = vcmp.eq.s32.totalorder %v4352_v22, 2  ;;  %v4653_v13 = vadd.f32 0.008332121, %v4652_v54 }
 0x4c0   : > { %v5084_v11 = vclz %v5083_v49  ;;  %v4355_v40 = vxor.u32 2147483648, %v4350_v18  ;;  %v4806_v62 = vmul.f32 -0.00019511016, %v11739_v51  ;;  %v12577_v27 = vand.u32 2147483647, %v12576_v32 }
 0x4c1   : > { %v4947_v0 = vsel %vm4826_vm12, %v4946_v43, %v4945_v47  ;;  %vm4353_vm6 = vcmp.lt.s32.totalorder %v4352_v22, 2  ;;  %vm4354_vm13 = vcmp.eq.s32.totalorder %v4352_v22, 0  ;;  %v4489_v21 = vsel %vm11597_vm11, 0, %v4487_v7  ;;  %v12580_v47 = vld [vmem:[#allocation41_spill] sm:$0xff] }
 0x4c2   : > { %vm11757_vm1 = vcmp.le.f32.partialorder %v12577_v27, 0.7853982  ;;  %v5422_v24 = vadd.s32 4294967294, %v5084_v11  ;;  %v4359_v37 = vsel %vm4357_vm9, %v4358_v17, %v4350_v18  ;;  %v4495_v61 = vmul.f32 %v4494_v42, %v11654_v46  ;;  %v12581_v11 = vld [vmem:[#allocation28_spill] sm:$0xff] }
 0x4c3   : > { %v4503_v25 = vadd.f32 1.0, %v4502_v16  ;;  %v4646_v4 = vadd.f32 0.041655596, %v4645_v63  ;;  %v4654_v23 = vmul.f32 %v4653_v13, %v11721_v38  ;;  %v11770_v59 = vsel %vm11757_vm1, %v12576_v32, %v4947_v0 }
 0x4c4   : > { %v5072_v57 = vadd.s32 %v11658_v35, %v11656_v9  ;;  %vm5423_vm8 = vcmp.lt.s32.totalorder %v5422_v24, 0  ;;  %v4356_v2 = vsel %vm4354_vm13, %v4342_v39, %v4355_v40  ;;  %v4799_v1 = vmul.f32 -0.001358992, %v11739_v51 }
 0x4c5   : > { %v4807_v50 = vadd.f32 0.008332121, %v4806_v62  ;;  %v5087_v33 = vsel %vm5423_vm8, 0, %v5422_v24  ;;  %v4506_v6 = vand.u32 3, %v4489_v21  ;;  %v4496_v29 = vadd.f32 1.0, %v4495_v61 }
 0x4c6   : > { %v5088_v46 = vsub.s32 32, %v5087_v33  ;;  %v5089_v44 = vshll.u32 %v5080_v41, %v5087_v33  ;;  %v5092_v30 = vsub.s32 4294967266, %v5087_v33  ;;  %v4504_v36 = vmul.f32 %v4503_v25, %v11629_v55 }
 0x4c7   : > { %v4640_v52 = vsub.s32 4, %v12580_v47  ;;  %v11779_v28 = vmul.f32 %v11770_v59, %v11770_v59  ;;  %v4647_v9 = vmul.f32 %v4646_v4, %v11721_v38  ;;  %v4655_v35 = vadd.f32 -0.16666654, %v4654_v23  ;;  %v12582_v4 = vld [vmem:[#allocation39_spill] sm:$0xff] }
 0x4c8   : > { %v5090_v39 = vshrl.u32 %v5072_v57, %v5088_v46  ;;  %v5093_v15 = vadd.s32 127, %v5092_v30  ;;  %v11784_v20 = vsel %vm4197_vm4, nan, %v4206_v34  ;;  %vm4351_vm11 = vweird.f32 %v12553_v12 }
 0x4c9   : > { %v4800_v60 = vadd.f32 0.041655596, %v4799_v1  ;;  %v4808_v55 = vmul.f32 %v4807_v50, %v11739_v51  ;;  %v4360_v41 = vsel %vm4353_vm6, %v4356_v2, %v4359_v37  ;;  %vm4511_vm3 = vcmp.eq.s32.totalorder %v4506_v6, 2  ;;  %v12584_v2 = vld [vmem:[#allocation29_spill] sm:$0xff] }
 0x4ca   : > { %v5091_v14 = vor.u32 %v5090_v39, %v5089_v44  ;;  %v5094_v18 = vshll.u32 %v5093_v15, 23  ;;  %v4509_v54 = vxor.u32 2147483648, %v4504_v36  ;;  %v4512_v43 = vxor.u32 2147483648, %v4496_v29 }
 0x4cb   : > { %v4641_v10 = vsel %vm4518_vm5, %v4640_v52, %v12580_v47  ;;  %v4960_v26 = vmul.f32 -0.00019511016, %v11779_v28  ;;  %v4648_v17 = vadd.f32 -0.4999988, %v4647_v9  ;;  %v4656_v7 = vmul.f32 %v4655_v35, %v11721_v38  ;;  %v12588_v9 = vld [vmem:[#allocation8_spill] sm:$0xff] }
 0x4cc   : > { %v5095_v12 = vor.u32 4788187, %v5094_v18  ;;  %v5098_v42 = vcvt.s32.f32 %v5091_v14  ;;  %v11794_v16 = vsel %vm4351_vm11, nan, %v4360_v41  ;;  %vm4508_vm7 = vcmp.eq.s32.totalorder %v4506_v6, 0 }
 0x4cd   : > { %v4801_v22 = vmul.f32 %v4800_v60, %v11739_v51  ;;  %v4809_v63 = vadd.f32 -0.16666654, %v4808_v55  ;;  %vm4505_vm10 = vweird.f32 %v12560_v8  ;;  %vm4507_vm2 = vcmp.lt.s32.totalorder %v4506_v6, 2 }
 0x4ce   : > { %v4643_v49 = vsel %vm11684_vm14, 0, %v4641_v10  ;;  %v5096_v34 = vand.u32 2147483647, %v5095_v12  ;;  %v4513_v13 = vsel %vm4511_vm3, %v4512_v43, %v4504_v36  ;;  %v4794_v40 = vsub.s32 4, %v12581_v11  ;;  %v12589_v43 = vld [vmem:[#allocation14_spill] sm:$0xff] }
 0x4cf   : > { %v4953_v62 = vmul.f32 -0.001358992, %v11779_v28  ;;  %v4961_v27 = vadd.f32 0.008332121, %v4960_v26  ;;  %v4510_v0 = vsel %vm4508_vm7, %v4496_v29, %v4509_v54  ;;  %v4649_v21 = vmul.f32 %v4648_v17, %v11721_v38 }
 0x4d0   : > { %v4657_v24 = vadd.f32 1.0, %v4656_v7  ;;  %v5099_v37 = vmul.f32 %v5098_v42, %v5096_v34  ;;  %v4802_v61 = vadd.f32 -0.4999988, %v4801_v22  ;;  %v4810_v25 = vmul.f32 %v4809_v63, %v11739_v51 }
 0x4d1   : > { %vm4980_vm5 = vcmp.lt.s32.totalorder %v12582_v4, 0  ;;  %v5132_v23 = vmul.f32 0.0004995, %v12583_v19  ;;  %v11807_v57 = vand.u32 3, %v4643_v49  ;;  %v4948_v1 = vsub.s32 4, %v12584_v2  ;;  %v12592_v19 = vld [vmem:[#allocation12_spill] sm:$0xff] }
 0x4d2   : > { %v12585_v50 = vand.u32 2147483647, %v12582_v4  ;;  %v5100_v38 = vxor.u32 2147483648, %v5099_v37  ;;  %v4514_v46 = vsel %vm4507_vm2, %v4510_v0, %v4513_v13  ;;  %v4795_v44 = vsel %vm4672_vm0, %v4794_v40, %v12581_v11 }
 0x4d3   : > { %v4954_v30 = vadd.f32 0.041655596, %v4953_v62  ;;  %v4962_v29 = vmul.f32 %v4961_v27, %v11779_v28  ;;  %v11821_v36 = vadd.f32 1.0, %v4649_v21  ;;  %v11824_v47 = vmul.f32 %v4657_v24, %v11701_v3  ;;  %v12590_v62 = vld [vmem:[#allocation15_spill] sm:$0xff]  ;;  %v12591_v21 = vld [vmem:[#allocation10_spill] sm:$0xff] }
 0x4d4   : > { %vm11812_vm14 = vcmp.le.f32.partialorder %v12585_v50, 0.7853982  ;;  %v5101_v52 = vsel %vm4980_vm5, %v5100_v38, %v5099_v37  ;;  %v5133_v35 = vmul.f32 0.0004995, %v12588_v9  ;;  %v4803_v6 = vmul.f32 %v4802_v61, %v11739_v51 }
 0x4d5   : > { %v4811_v39 = vadd.f32 1.0, %v4810_v25  ;;  %v11833_v15 = vsel %vm11812_vm14, %v12582_v4, %v5101_v52  ;;  %v5164_v60 = vadd.f32 0.0005005, %v5132_v23  ;;  %v11837_v55 = vsel %vm4505_vm10, nan, %v4514_v46 }
 0x4d6   : > { %v4797_v3 = vsel %vm11709_vm15, 0, %v4795_v44  ;;  %v4949_v41 = vsel %vm4826_vm12, %v4948_v1, %v12584_v2  ;;  %v5106_v51 = vmul.f32 %v11833_v15, %v11833_v15  ;;  %v4955_v14 = vmul.f32 %v4954_v30, %v11779_v28  ;;  %v12593_v1 = vld [vmem:[#allocation13_spill] sm:$0xff] }
 0x4d7   : > { %v4963_v18 = vadd.f32 -0.16666654, %v4962_v29  ;;  %v5102_v54 = vsub.s32 4, %v11716_v48  ;;  %v5134_v10 = vmul.f32 0.0004995, %v12589_v43  ;;  %5196 = vst [vmem:[%s11851_s17] sm:$0xff] %v5164_v60  ;;  %vm4665_vm0 = vcmp.eq.s32.totalorder %v11807_v57, 2 }
 0x4d8   : > { %v5107_v8 = vmul.f32 -0.001358992, %v5106_v51  ;;  %v5114_v53 = vmul.f32 -0.00019511016, %v5106_v51  ;;  %v5165_v26 = vadd.f32 0.0005005, %v5133_v35  ;;  %v11861_v42 = vmul.f32 %v4811_v39, %v11732_v5 }
 0x4d9   : > { %vm4662_vm15 = vcmp.eq.s32.totalorder %v11807_v57, 0  ;;  %v4663_v17 = vxor.u32 2147483648, %v11824_v47  ;;  %v4666_v7 = vxor.u32 2147483648, %v11821_v36  ;;  %v11858_v12 = vadd.f32 1.0, %v4803_v6  ;;  %v12594_v44 = vld [vmem:[#allocation45_spill] sm:$0xff]  ;;  %v12596_v60 = vld [vmem:[#allocation42_spill] sm:$0xff] }
 0x4da   : > { %v11863_v22 = vand.u32 3, %v4797_v3  ;;  %v4951_v63 = vsel %vm11757_vm1, 0, %v4949_v41  ;;  %v5108_v49 = vadd.f32 0.041655596, %v5107_v8  ;;  %v5115_v34 = vadd.f32 0.008332121, %v5114_v53 }
 0x4db   : > { %v4956_v13 = vadd.f32 -0.4999988, %v4955_v14  ;;  %v4964_v11 = vmul.f32 %v4963_v18, %v11779_v28  ;;  %v5103_v40 = vsel %vm4980_vm5, %v5102_v54, %v11716_v48  ;;  %v5135_v27 = vmul.f32 0.0004995, %v12590_v62  ;;  %5197 = vst [vmem:[%s11851_s17 + $0x8] sm:$0xff] %v5165_v26  ;;  %v12595_v35 = vld [vmem:[#allocation17_spill] sm:$0xff] }
 0x4dc   : > { %vm4661_vm4 = vcmp.lt.s32.totalorder %v11807_v57, 2  ;;  %v5109_v5 = vmul.f32 %v5108_v49, %v5106_v51  ;;  %v5116_v0 = vmul.f32 %v5115_v34, %v5106_v51  ;;  %v5136_v24 = vmul.f32 0.0004995, %v12591_v21  ;;  %v12597_v41 = vld [vmem:[#allocation46_spill] sm:$0xff]  ;;  %v12598_v54 = vld [vmem:[#allocation11_spill] sm:$0xff]  ;;  %v12599_v53 = vld [vmem:[#allocation21_spill] sm:$0xff] }
 0x4dd   : > { %v5166_v37 = vadd.f32 0.0005005, %v5134_v10  ;;  %v4817_v31 = vxor.u32 2147483648, %v11861_v42  ;;  %v4820_v61 = vxor.u32 2147483648, %v11858_v12  ;;  %v11877_v25 = vand.u32 3, %v4951_v63  ;;  %v12600_v34 = vld [vmem:[#allocation19_spill] sm:$0xff] }
 0x4de   : > { %v5137_v23 = vmul.f32 0.0004995, %v12592_v19  ;;  %vm4819_vm12 = vcmp.eq.s32.totalorder %v11863_v22, 2  ;;  %v5110_v48 = vadd.f32 -0.4999988, %v5109_v5  ;;  %v4957_v38 = vmul.f32 %v4956_v13, %v11779_v28 }
 0x4df   : > { %v5117_v2 = vadd.f32 -0.16666654, %v5116_v0  ;;  %v5138_v50 = vmul.f32 0.0004995, %v12593_v1  ;;  %v5105_v46 = vsel %vm11812_vm14, 0, %v5103_v40  ;;  %vm4816_vm9 = vcmp.eq.s32.totalorder %v11863_v22, 0 }
 0x4e0   : > { %v5139_v30 = vmul.f32 0.0004995, %v12594_v44  ;;  %v5167_v29 = vadd.f32 0.0005005, %v5135_v27  ;;  %v4965_v52 = vadd.f32 1.0, %v4964_v11  ;;  %5198 = vst [vmem:[%s11851_s17 + $0x10] sm:$0xff] %v5166_v37  ;;  %v5111_v33 = vmul.f32 %v5110_v48, %v5106_v51 }
 0x4e1   : > { %v5118_v9 = vmul.f32 %v5117_v2, %v5106_v51  ;;  %v5140_v6 = vmul.f32 0.0004995, %v12595_v35  ;;  %v5168_v39 = vadd.f32 0.0005005, %v5136_v24  ;;  %v5141_v3 = vmul.f32 0.0004995, %v12596_v60 }
 0x4e2   : > { %v5142_v14 = vmul.f32 0.0004995, %v12597_v41  ;;  %v5169_v28 = vadd.f32 0.0005005, %v5137_v23  ;;  %v5143_v43 = vmul.f32 0.0004995, %v12598_v54  ;;  %v4667_v8 = vsel %vm4665_vm0, %v4666_v7, %v11824_v47 }
 0x4e3   : > { %v5119_v18 = vadd.f32 1.0, %v5118_v9  ;;  %v5170_v10 = vadd.f32 0.0005005, %v5138_v50  ;;  %vm4970_vm1 = vcmp.eq.s32.totalorder %v11877_v25, 0  ;;  %v5144_v26 = vmul.f32 0.0004995, %v12599_v53 }
 0x4e4   : > { %v5171_v63 = vadd.f32 0.0005005, %v5139_v30  ;;  %5199 = vst [vmem:[%s11851_s17 + $0x18] sm:$0xff] %v5167_v29  ;;  %vm4659_vm6 = vweird.f32 %v12565_v45  ;;  %v4664_v51 = vsel %vm4662_vm15, %v11821_v36, %v4663_v17  ;;  %vm4815_vm13 = vcmp.lt.s32.totalorder %v11863_v22, 2  ;;  %v12601_v40 = vld [vmem:[#allocation16_spill] sm:$0xff]  ;;  %v12604_v48 = vld [vmem:[#allocation25_spill] sm:$0xff] }
 0x4e5   : > { %v4958_v49 = vadd.f32 1.0, %v4957_v38  ;;  %v5145_v13 = vmul.f32 0.0004995, %v12600_v34  ;;  %v5172_v47 = vadd.f32 0.0005005, %v5140_v6  ;;  %5200 = vst [vmem:[%s11851_s17 + $0x20] sm:$0xff] %v5168_v39  ;;  %v4966_v7 = vmul.f32 %v4965_v52, %v11770_v59 }
 0x4e6   : > { %v5122_v11 = vand.u32 3, %v5105_v46  ;;  %v5146_v62 = vmul.f32 0.0004995, %v12601_v40  ;;  %v5173_v27 = vadd.f32 0.0005005, %v5141_v3  ;;  %5201 = vst [vmem:[%s11851_s17 + $0x28] sm:$0xff] %v5169_v28  ;;  %v5120_v0 = vmul.f32 %v5119_v18, %v11833_v15 }
 0x4e7   : > { %v5112_v5 = vadd.f32 1.0, %v5111_v33  ;;  %v12602_v36 = vld [vmem:[#allocation44_spill] sm:$0xff]  ;;  %v5174_v21 = vadd.f32 0.0005005, %v5142_v14  ;;  %5202 = vst [vmem:[%s11851_s17 + $0x30] sm:$0xff] %v5170_v10  ;;  %v4668_v24 = vsel %vm4661_vm4, %v4664_v51, %v4667_v8  ;;  %vm4973_vm8 = vcmp.eq.s32.totalorder %v11877_v25, 2 }
 0x4e8   : > { %v5147_v17 = vmul.f32 0.0004995, %v12602_v36  ;;  %v12603_v59 = vld [vmem:[#allocation23_spill] sm:$0xff]  ;;  %v5175_v19 = vadd.f32 0.0005005, %v5143_v43  ;;  %5203 = vst [vmem:[%s11851_s17 + $0x38] sm:$0xff] %v5171_v63  ;;  %vm4813_vm11 = vweird.f32 %v12572_v58  ;;  %v4821_v57 = vsel %vm4819_vm12, %v4820_v61, %v11861_v42 }
 0x4e9   : > { %v5148_v37 = vmul.f32 0.0004995, %v12603_v59  ;;  %v4974_v23 = vxor.u32 2147483648, %v4958_v49  ;;  %v5149_v15 = vmul.f32 0.0004995, %v12604_v48  ;;  %5204 = vst [vmem:[%s11851_s17 + $0x40] sm:$0xff] %v5172_v47  ;;  %v4818_v52 = vsel %vm4816_vm9, %v11858_v12, %v4817_v31 }
 0x4ea   : > { %v5176_v2 = vadd.f32 0.0005005, %v5144_v26  ;;  %v4971_v1 = vxor.u32 2147483648, %v4966_v7  ;;  %v12605_v50 = vld [vmem:[#allocation9_spill] sm:$0xff]  ;;  %v5177_v46 = vadd.f32 0.0005005, %v5145_v13  ;;  %v4822_v10 = vsel %vm4815_vm13, %v4818_v52, %v4821_v57 }
 0x4eb   : > { %v5150_v38 = vmul.f32 0.0004995, %v12605_v50  ;;  %5205 = vst [vmem:[%s11851_s17 + $0x48] sm:$0xff] %v5173_v27  ;;  %vm5124_vm3 = vcmp.eq.s32.totalorder %v5122_v11, 0  ;;  %v5125_v44 = vxor.u32 2147483648, %v5120_v0  ;;  %v5128_v30 = vxor.u32 2147483648, %v5112_v5 }
 0x4ec   : > { %v5178_v29 = vadd.f32 0.0005005, %v5146_v62  ;;  %5206 = vst [vmem:[%s11851_s17 + $0x50] sm:$0xff] %v5174_v21  ;;  %vm5127_vm7 = vcmp.eq.s32.totalorder %v5122_v11, 2  ;;  %v12606_v61 = vld [vmem:[#allocation18_spill] sm:$0xff]  ;;  %vm4969_vm10 = vcmp.lt.s32.totalorder %v11877_v25, 2  ;;  %v4975_v6 = vsel %vm4973_vm8, %v4974_v23, %v4966_v7 }
 0x4ed   : > { %v5151_v9 = vmul.f32 0.0004995, %v12606_v61  ;;  %v5179_v35 = vadd.f32 0.0005005, %v5147_v17  ;;  %5207 = vst [vmem:[%s11851_s17 + $0x58] sm:$0xff] %v5175_v19  ;;  %v12607_v39 = vld [vmem:[#allocation26_spill] sm:$0xff]  ;;  %v4972_v42 = vsel %vm4970_vm1, %v4958_v49, %v4971_v1  ;;  %v5126_v14 = vsel %vm5124_vm3, %v5112_v5, %v5125_v44 }
 0x4ee   : > { %v5152_v60 = vmul.f32 0.0004995, %v12607_v39  ;;  %v5180_v3 = vadd.f32 0.0005005, %v5148_v37  ;;  %5208 = vst [vmem:[%s11851_s17 + $0x60] sm:$0xff] %v5176_v2  ;;  %vm5123_vm2 = vcmp.lt.s32.totalorder %v5122_v11, 2  ;;  %v5129_v28 = vsel %vm5127_vm7, %v5128_v30, %v5120_v0 }
 0x4ef   : > { %v12608_v12 = vld [vmem:[#allocation30_spill] sm:$0xff]  ;;  %v5181_v41 = vadd.f32 0.0005005, %v5149_v15  ;;  %5209 = vst [vmem:[%s11851_s17 + $0x68] sm:$0xff] %v5177_v46  ;;  %v5182_v54 = vadd.f32 0.0005005, %v5150_v38  ;;  %vm4967_vm5 = vweird.f32 %v12576_v32  ;;  %v4976_v63 = vsel %vm4969_vm10, %v4972_v42, %v4975_v6 }
 0x4f0   : > { %v5153_v31 = vmul.f32 0.0004995, %v12608_v12  ;;  %v12609_v33 = vld [vmem:[#allocation22_spill] sm:$0xff]  ;;  %5210 = vst [vmem:[%s11851_s17 + $0x70] sm:$0xff] %v5178_v29  ;;  %v4669_v43 = vsel %vm4659_vm6, nan, %v4668_v24  ;;  %v12610_v8 = vld [vmem:[#allocation40_spill] sm:$0xff]  ;;  %vm5121_vm14 = vweird.f32 %v12582_v4  ;;  %v5130_v45 = vsel %vm5123_vm2, %v5126_v14, %v5129_v28 }
 0x4f1   : > { %v5154_v18 = vmul.f32 0.0004995, %v12609_v33  ;;  %v5155_v53 = vmul.f32 0.0004995, %v12610_v8  ;;  %v5183_v26 = vadd.f32 0.0005005, %v5151_v9 }
 0x4f2   : > { %5211 = vst [vmem:[%s11851_s17 + $0x78] sm:$0xff] %v5179_v35  ;;  %v5156_v51 = vmul.f32 0.0004995, %v11743_v56  ;;  %v5184_v49 = vadd.f32 0.0005005, %v5152_v60  ;;  %v4823_v32 = vsel %vm4813_vm11, nan, %v4822_v10 }
 0x4f3   : > { %5212 = vst [vmem:[%s11851_s17 + $0x80] sm:$0xff] %v5180_v3  ;;  %v5157_v22 = vmul.f32 0.0004995, %v11784_v20  ;;  %v5185_v34 = vadd.f32 0.0005005, %v5153_v31  ;;  %v4977_v13 = vsel %vm4967_vm5, nan, %v4976_v63 }
 0x4f4   : > { %5213 = vst [vmem:[%s11851_s17 + $0x88] sm:$0xff] %v5181_v41  ;;  %v5158_v25 = vmul.f32 0.0004995, %v11794_v16  ;;  %v5186_v56 = vadd.f32 0.0005005, %v5154_v18  ;;  %v5131_v20 = vsel %vm5121_vm14, nan, %v5130_v45 }
 0x4f5   : > { %5214 = vst [vmem:[%s11851_s17 + $0x90] sm:$0xff] %v5182_v54  ;;  %v5159_v4 = vmul.f32 0.0004995, %v11837_v55  ;;  %v5187_v47 = vadd.f32 0.0005005, %v5155_v53 }
 0x4f6   : > { %5215 = vst [vmem:[%s11851_s17 + $0x98] sm:$0xff] %v5183_v26  ;;  %v5160_v7 = vmul.f32 0.0004995, %v4669_v43  ;;  %v5188_v11 = vadd.f32 0.0005005, %v5156_v51 }
 0x4f7   : > { %5216 = vst [vmem:[%s11851_s17 + $0xa0] sm:$0xff] %v5184_v49  ;;  %v5161_v58 = vmul.f32 0.0004995, %v4823_v32  ;;  %v5189_v40 = vadd.f32 0.0005005, %v5157_v22 }
 0x4f8   : > { %5217 = vst [vmem:[%s11851_s17 + $0xa8] sm:$0xff] %v5185_v34  ;;  %v5162_v16 = vmul.f32 0.0004995, %v4977_v13  ;;  %v5190_v62 = vadd.f32 0.0005005, %v5158_v25 }
 0x4f9   : > { %5218 = vst [vmem:[%s11851_s17 + $0xb0] sm:$0xff] %v5186_v56  ;;  %v5163_v55 = vmul.f32 0.0004995, %v5131_v20  ;;  %v5191_v27 = vadd.f32 0.0005005, %v5159_v4 }
 0x4fa   : > { %5219 = vst [vmem:[%s11851_s17 + $0xb8] sm:$0xff] %v5187_v47  ;;  %v5192_v5 = vadd.f32 0.0005005, %v5160_v7  ;;  %v5193_v0 = vadd.f32 0.0005005, %v5161_v58 }
 0x4fb   : > { %5220 = vst [vmem:[%s11851_s17 + $0xc0] sm:$0xff] %v5188_v11  ;;  %v5194_v36 = vadd.f32 0.0005005, %v5162_v16  ;;  %v5195_v17 = vadd.f32 0.0005005, %v5163_v55 }
 0x4fc   : > { %5221 = vst [vmem:[%s11851_s17 + $0xc8] sm:$0xff] %v5189_v40 }
 0x4fd   : > { %5222 = vst [vmem:[%s11851_s17 + $0xd0] sm:$0xff] %v5190_v62 }
 0x4fe   : > { %5223 = vst [vmem:[%s11851_s17 + $0xd8] sm:$0xff] %v5191_v27 }
 0x4ff   : > { %5224 = vst [vmem:[%s11851_s17 + $0xe0] sm:$0xff] %v5192_v5 }
 0x500   : > { %5225 = vst [vmem:[%s11851_s17 + $0xe8] sm:$0xff] %v5193_v0 }
 0x501   : > { %5226 = vst [vmem:[%s11851_s17 + $0xf0] sm:$0xff] %v5194_v36 }
 0x502   : > { %5227 = vst [vmem:[%s11851_s17 + $0xf8] sm:$0xff] %v5195_v17 }
 0x503   : > { %5548 = shalt.err (!%p5545_p4)
}
 0x504   : > { %s5598_s16 = smov 1024   ;;  %s5599_s20 = smov 64  }
 0x505   : > { %5436 = dma.vmem_to_hbm [thread:$0]  (%p5659_p10), %s5243_s28, 4096, %s5245_s29, %s5229_s30, %s5598_s16, %s5598_s16, %s5599_s20  }
 0x506 PF: > { %p5447_p5 = scmp.ge.s32.totalorder %s5587_s9, 2  ;;  %s5259_s21 = sand.u32 1, %s5575_s6  }
 0x507   : > { %s5260_s22 = scalar_lea.sflag [#allocation4], %s5259_s21 }
 0x508   : > { %p5443_p7 = pnand %p5447_p5, %p5663_p11 }
 0x50a   : > { %p5444_p8 = pneg %p5443_p7 }
 0x50c   : > { %5570 = dma.done.wait (%p5444_p8), %s5260_s22, 4096  }
 0x50d   : > { %5572 = vsyncadd (%p5444_p8), %s5260_s22, 4294963200  ;;  %p14_p9 = scmp.ge.s32.totalorder %s5635_s12, 6   ;;  %s12611_s6 = smov %s5579_s7 }
 0x50e   : > { %s12612_s7 = smov %s5583_s8  ;;  %s12613_s8 = smov %s5647_s15 }
 0x50f   : > { %s12614_s9 = smov %s5635_s12  ;;  %16 = sbr.rel (!%p14_p9) target bundleno = 5 (0x5), region = 69 }
 0x514   :  { %5266 = vsyncpa [#allocation3], 1 }
 0x515   :  { %5268 = vsyncpa [#allocation3 + $0x1], 1 }
 0x516   :  { %5269 = vsyncpa [#allocation4], 1 }
 0x517   :  { %5271 = vsyncpa [#allocation4 + $0x1], 1 }

</bundles_post_ra>
